<compile_context>
chip_gen: v7x
topology: tpu7x:2x2x1
jax: 0.10.0
libtpu: 0.0.40
codegen_flags: <defaults>
</compile_context>

<pallas_src>
import functools

import jax
import jax.numpy as jnp
from jax.experimental import pallas as pl
from jax.experimental.pallas import tpu as pltpu

_EPS = 1e-5  # PyTorch BatchNorm2d default.

_COMPILER_PARAMS = pltpu.CompilerParams(
    dimension_semantics=("arbitrary",),
    vmem_limit_bytes=32 * 1024 * 1024,
)


def _full_spec(shape):
    return pl.BlockSpec(shape, lambda i: tuple(0 for _ in shape))


# --------------------------- fused sequence kernels -------------------------- #

def _seq_stride1_kernel(x_ref, w1_ref, b1_ref, w2_ref, gb_ref, o_ref, pad_ref,
                        *, N, H, W, Cmid, Cout, eps):
    """1x1 conv -> 3x3 conv (stride 1, pad 1) -> BN -> ReLU -> + input skip."""
    M = N * H * W

    # --- 1x1 conv (bf16 MXU inputs, f32 accumulate) + bias ---
    h = jnp.dot(x_ref[...].astype(jnp.bfloat16), w1_ref[...],
                preferred_element_type=jnp.float32) + b1_ref[...]

    # --- zero-padded activation kept in VMEM scratch ---
    pad_ref[...] = jnp.zeros_like(pad_ref)
    pad_ref[:, 1:H + 1, 1:W + 1, :] = h.reshape(N, H, W, Cmid)

    # --- 3x3 conv as 9 contiguous shifted taps, accumulated in f32 ---
    # NOTE: 3x3-conv bias is intentionally omitted; BN mean-subtraction cancels it.
    acc = jnp.zeros((M, Cout), jnp.float32)
    for dh in range(3):
        for dw in range(3):
            patch = pad_ref[:, dh:dh + H, dw:dw + W, :].reshape(M, Cmid)
            acc = acc + jnp.dot(patch.astype(jnp.bfloat16), w2_ref[dh * 3 + dw],
                                preferred_element_type=jnp.float32)

    # --- BatchNorm (training batch stats, one pass) + ReLU + skip ---
    mean = jnp.sum(acc, axis=0, keepdims=True) / M
    var = jnp.maximum(jnp.sum(acc * acc, axis=0, keepdims=True) / M - mean * mean, 0.0)
    inv = jax.lax.rsqrt(var + eps)
    y = (acc - mean) * (inv * gb_ref[0:1, :]) + gb_ref[1:2, :]
    o_ref[...] = jnp.maximum(y, 0.0) + x_ref[...]     # ReLU(BN(conv)) + skip(==input)


def _seq_down_kernel(xp_ref, w1_ref, b1_ref, w2_ref, gb_ref, o_ref,
                     pad_ee, pad_eo, pad_oe, pad_oo,
                     *, N, Hh, Wh, Cmid, Cout, eps):
    """1x1 conv -> 3x3 conv (stride 2, pad 1) -> BN -> ReLU (no skip).

    xp_ref holds the input split into spatial parity planes [ee, eo, oe, oo]
    (ORIGINAL row/col parity), each flattened to (N*Hh*Wh, Cin).  pad_XY are
    zero-padded parity planes of the 16-channel intermediate indexed by the
    parity of the PADDED coordinate, so every stride-2 3x3 tap becomes a
    contiguous static slice of one parity buffer.
    """
    Mo = N * Hh * Wh

    for ref in (pad_ee, pad_eo, pad_oe, pad_oo):
        ref[...] = jnp.zeros_like(ref)

    def conv1x1(k):
        hk = jnp.dot(xp_ref[k].astype(jnp.bfloat16), w1_ref[...],
                     preferred_element_type=jnp.float32) + b1_ref[...]
        return hk.reshape(N, Hh, Wh, Cmid)

    # original (odd, odd) pixels -> padded (even, even) coordinates, etc.
    pad_ee[:, 1:Hh + 1, 1:Wh + 1, :] = conv1x1(3)   # x_oo
    pad_eo[:, 1:Hh + 1, 0:Wh,     :] = conv1x1(2)   # x_oe
    pad_oe[:, 0:Hh,     1:Wh + 1, :] = conv1x1(1)   # x_eo
    pad_oo[:, 0:Hh,     0:Wh,     :] = conv1x1(0)   # x_ee

    bufs = {(0, 0): pad_ee, (0, 1): pad_eo, (1, 0): pad_oe, (1, 1): pad_oo}
    acc = jnp.zeros((Mo, Cout), jnp.float32)
    for dh in range(3):
        for dw in range(3):
            buf = bufs[(dh % 2, dw % 2)]
            r0, c0 = dh // 2, dw // 2
            patch = buf[:, r0:r0 + Hh, c0:c0 + Wh, :].reshape(Mo, Cmid)
            acc = acc + jnp.dot(patch.astype(jnp.bfloat16), w2_ref[dh * 3 + dw],
                                preferred_element_type=jnp.float32)

    mean = jnp.sum(acc, axis=0, keepdims=True) / Mo
    var = jnp.maximum(jnp.sum(acc * acc, axis=0, keepdims=True) / Mo - mean * mean, 0.0)
    inv = jax.lax.rsqrt(var + eps)
    y = (acc - mean) * (inv * gb_ref[0:1, :]) + gb_ref[1:2, :]
    o_ref[...] = jnp.maximum(y, 0.0)


# ------------------------------ Pallas wrappers ------------------------------ #

def _seq_stride1(x2d, p, N, H, W):
    M, Cin = x2d.shape
    Cmid = p["w1"].shape[1]
    Cout = p["w2"].shape[2]
    assert Cout == Cin, "stride-1 sequence needs matching channels for the skip"
    gb = jnp.stack([p["gamma"], p["beta"]])                      # (2, Cout)
    kernel = functools.partial(_seq_stride1_kernel, N=N, H=H, W=W,
                               Cmid=Cmid, Cout=Cout, eps=_EPS)
    return pl.pallas_call(
        kernel,
        out_shape=jax.ShapeDtypeStruct((M, Cout), jnp.float32),
        grid=(1,),
        in_specs=[_full_spec((M, Cin)),
                  _full_spec((Cin, Cmid)),
                  _full_spec((1, Cmid)),
                  _full_spec((9, Cmid, Cout)),
                  _full_spec((2, Cout))],
        out_specs=_full_spec((M, Cout)),
        scratch_shapes=[pltpu.VMEM((N, H + 2, W + 2, Cmid), jnp.float32)],
        compiler_params=_COMPILER_PARAMS,
    )(x2d,
      p["w1"].astype(jnp.bfloat16),
      p["b1"].reshape(1, Cmid),
      p["w2"].astype(jnp.bfloat16),
      gb)


def _seq_down(x_nhwc, p):
    N, H, W, Cin = x_nhwc.shape
    Hh, Wh = H // 2, W // 2
    Mo = N * Hh * Wh
    Cmid = p["w1"].shape[1]
    Cout = p["w2"].shape[2]
    gb = jnp.stack([p["gamma"], p["beta"]])                      # (2, Cout)
    # Spatial parity planes by ORIGINAL row/col parity: ee, eo, oe, oo.
    xp = jnp.stack([x_nhwc[:, 0::2, 0::2, :], x_nhwc[:, 0::2, 1::2, :],
                    x_nhwc[:, 1::2, 0::2, :], x_nhwc[:, 1::2, 1::2, :]])
    xp = xp.reshape(4, Mo, Cin)
    kernel = functools.partial(_seq_down_kernel, N=N, Hh=Hh, Wh=Wh,
                               Cmid=Cmid, Cout=Cout, eps=_EPS)
    out = pl.pallas_call(
        kernel,
        out_shape=jax.ShapeDtypeStruct((Mo, Cout), jnp.float32),
        grid=(1,),
        in_specs=[_full_spec((4, Mo, Cin)),
                  _full_spec((Cin, Cmid)),
                  _full_spec((1, Cmid)),
                  _full_spec((9, Cmid, Cout)),
                  _full_spec((2, Cout))],
        out_specs=_full_spec((Mo, Cout)),
        scratch_shapes=[pltpu.VMEM((N, Hh + 1, Wh + 1, Cmid), jnp.float32)
                        for _ in range(4)],
        compiler_params=_COMPILER_PARAMS,
    )(xp,
      p["w1"].astype(jnp.bfloat16),
      p["b1"].reshape(1, Cmid),
      p["w2"].astype(jnp.bfloat16),
      gb)
    return out.reshape(N, Hh, Wh, Cout)


# -------------------------------- forward pass ------------------------------- #

def res_block_forward(x_nchw, params):
    """Forward pass matching ResBlock.forward (NCHW in, NCHW out)."""
    x0 = jnp.transpose(x_nchw, (0, 2, 3, 1))                     # NCHW -> NHWC
    N, H, W, Cin = x0.shape
    x1 = _seq_stride1(x0.reshape(N * H * W, Cin), params["first"], N, H, W)
    x2 = _seq_stride1(x1, params["second"], N, H, W)
    x3 = _seq_down(x2.reshape(N, H, W, Cin), params["down"])
    return jnp.transpose(x3, (0, 3, 1, 2))                       # NHWC -> NCHW


# --------------------------- parameter construction -------------------------- #

def init_res_block_params(key, in_channels, out_channels):
    def seq_params(key, cin, cout, cmid=16):
        k1, k2, k3, k4 = jax.random.split(key, 4)
        w1 = jax.random.normal(k1, (cin, cmid), jnp.float32) * 0.1
        b1 = jax.random.normal(k2, (cmid,), jnp.float32) * 0.01
        # (kh, kw, cin, cout) flattened to (9, cmid, cout): tap index = kh*3 + kw.
        w2 = jax.random.normal(k3, (3, 3, cmid, cout), jnp.float32) * 0.1
        b2 = jax.random.normal(k4, (cout,), jnp.float32) * 0.01
        return {
            "w1": w1, "b1": b1,
            "w2": w2.reshape(9, cmid, cout),
            # b2 exists as a parameter (matching nn.Conv2d) but is never fed to the
            # kernel: training-mode BatchNorm subtracts the batch mean, which
            # cancels a per-channel bias added right before it exactly.
            "b2": b2,
            "gamma": jnp.ones((cout,), jnp.float32),   # BatchNorm2d weight init
            "beta": jnp.zeros((cout,), jnp.float32),   # BatchNorm2d bias init
        }

    kf, ks, kd = jax.random.split(key, 3)
    return {
        "first": seq_params(kf, in_channels, in_channels),
        "second": seq_params(ks, in_channels, in_channels),
        "down": seq_params(kd, in_channels, out_channels),
    }


# ----------------------------------- main ------------------------------------ #

if __name__ == "__main__":
    key = jax.random.PRNGKey(0)
    kx, kp = jax.random.split(key)

    batch, in_channels, out_channels, spatial = 2, 4, 8, 16
    x = jax.random.normal(kx, (batch, in_channels, spatial, spatial), jnp.float32)
    params = init_res_block_params(kp, in_channels, out_channels)

    y = jax.jit(res_block_forward)(x, params)
    y = jax.block_until_ready(y)

    assert y.shape == (batch, out_channels, spatial // 2, spatial // 2), y.shape
    assert jnp.all(jnp.isfinite(y))
    print("KERNEL_OK")
</pallas_src>

<mosaic_0001>
module attributes {stable_mosaic.version = 11 : i64} {
  func.func @_seq_stride1_kernel(%arg0: i32, %arg1: memref<512x4xf32, #tpu.memory_space<vmem>>, %arg2: memref<4x16xbf16, #tpu.memory_space<vmem>>, %arg3: memref<1x16xf32, #tpu.memory_space<vmem>>, %arg4: memref<9x16x4xbf16, #tpu.memory_space<vmem>>, %arg5: memref<2x4xf32, #tpu.memory_space<vmem>>, %arg6: memref<512x4xf32, #tpu.memory_space<vmem>>, %arg7: memref<2x18x18x16xf32, #tpu.memory_space<vmem>>) attributes {dimension_semantics = [#tpu.dimension_semantics<arbitrary>], iteration_bounds = array<i64: 1>, scalar_prefetch = 0 : i64, scratch_operands = 1 : i64, tpu.core_type = #tpu.core_type<tc>, window_params = [{pipeline_mode = #tpu.pipeline_mode<synchronous>, transform_indices = @transform_0, window_bounds = array<i64: 512, 4>}, {pipeline_mode = #tpu.pipeline_mode<synchronous>, transform_indices = @transform_1, window_bounds = array<i64: 4, 16>}, {pipeline_mode = #tpu.pipeline_mode<synchronous>, transform_indices = @transform_2, window_bounds = array<i64: 1, 16>}, {pipeline_mode = #tpu.pipeline_mode<synchronous>, transform_indices = @transform_3, window_bounds = array<i64: 9, 16, 4>}, {pipeline_mode = #tpu.pipeline_mode<synchronous>, transform_indices = @transform_4, window_bounds = array<i64: 2, 4>}, {pipeline_mode = #tpu.pipeline_mode<synchronous>, transform_indices = @transform_5, window_bounds = array<i64: 512, 4>}]} {
    %c0 = arith.constant 0 : index
    %c0_0 = arith.constant 0 : index
    %0 = vector.load %arg1[%c0, %c0_0] : memref<512x4xf32, #tpu.memory_space<vmem>>, vector<512x4xf32>
    %1 = arith.truncf %0 : vector<512x4xf32> to vector<512x4xbf16>
    %c0_1 = arith.constant 0 : index
    %c0_2 = arith.constant 0 : index
    %2 = vector.load %arg2[%c0_1, %c0_2] : memref<4x16xbf16, #tpu.memory_space<vmem>>, vector<4x16xbf16>
    %cst = arith.constant dense<0.000000e+00> : vector<512x16xf32>
    %3 = tpu.matmul %1, %2, %cst {dimension_numbers = #tpu.dot_dimension_numbers<[1], [0], [0], [1], [0, 0, 1, 1], [], []>} : vector<512x4xbf16>, vector<4x16xbf16>, vector<512x16xf32> -> vector<512x16xf32>
    %c0_3 = arith.constant 0 : index
    %c0_4 = arith.constant 0 : index
    %4 = vector.load %arg3[%c0_3, %c0_4] : memref<1x16xf32, #tpu.memory_space<vmem>>, vector<1x16xf32>
    %5 = vector.broadcast %4 : vector<1x16xf32> to vector<512x16xf32>
    %6 = arith.addf %3, %5 : vector<512x16xf32>
    %cst_5 = arith.constant 0.000000e+00 : f32
    %7 = vector.broadcast %cst_5 : f32 to vector<2x18x18x16xf32>
    %c0_6 = arith.constant 0 : index
    %c0_7 = arith.constant 0 : index
    %c0_8 = arith.constant 0 : index
    %c0_9 = arith.constant 0 : index
    %8 = vector.load %arg7[%c0_6, %c0_7, %c0_8, %c0_9] : memref<2x18x18x16xf32, #tpu.memory_space<vmem>>, vector<2x18x18x16xf32>
    tpu.vector_store %arg7[%c0_6, %c0_7, %c0_8, %c0_9], %7 {strides = array<i32>} : memref<2x18x18x16xf32, #tpu.memory_space<vmem>>, vector<2x18x18x16xf32>,
    %9 = vector.shape_cast %6 : vector<512x16xf32> to vector<2x16x16x16xf32>
    %c0_10 = arith.constant 0 : index
    %c1 = arith.constant 1 : index
    %c1_11 = arith.constant 1 : index
    %c0_12 = arith.constant 0 : index
    %10 = vector.load %arg7[%c0_10, %c1, %c1_11, %c0_12] : memref<2x18x18x16xf32, #tpu.memory_space<vmem>>, vector<2x16x16x16xf32>
    tpu.vector_store %arg7[%c0_10, %c1, %c1_11, %c0_12], %9 {strides = array<i32>} : memref<2x18x18x16xf32, #tpu.memory_space<vmem>>, vector<2x16x16x16xf32>,
    %cst_13 = arith.constant 0.000000e+00 : f32
    %11 = vector.broadcast %cst_13 : f32 to vector<512x4xf32>
    %c0_14 = arith.constant 0 : index
    %c0_15 = arith.constant 0 : index
    %c0_16 = arith.constant 0 : index
    %c0_17 = arith.constant 0 : index
    %12 = vector.load %arg7[%c0_14, %c0_15, %c0_16, %c0_17] : memref<2x18x18x16xf32, #tpu.memory_space<vmem>>, vector<2x16x16x16xf32>
    %13 = vector.shape_cast %12 : vector<2x16x16x16xf32> to vector<512x16xf32>
    %14 = arith.truncf %13 : vector<512x16xf32> to vector<512x16xbf16>
    %c0_18 = arith.constant 0 : index
    %c0_19 = arith.constant 0 : index
    %c0_20 = arith.constant 0 : index
    %15 = vector.load %arg4[%c0_18, %c0_19, %c0_20] : memref<9x16x4xbf16, #tpu.memory_space<vmem>>, vector<1x16x4xbf16>
    %16 = vector.shape_cast %15 : vector<1x16x4xbf16> to vector<16x4xbf16>
    %cst_21 = arith.constant dense<0.000000e+00> : vector<512x4xf32>
    %17 = tpu.matmul %14, %16, %cst_21 {dimension_numbers = #tpu.dot_dimension_numbers<[1], [0], [0], [1], [0, 0, 1, 1], [], []>} : vector<512x16xbf16>, vector<16x4xbf16>, vector<512x4xf32> -> vector<512x4xf32>
    %18 = arith.addf %11, %17 : vector<512x4xf32>
    %c0_22 = arith.constant 0 : index
    %c0_23 = arith.constant 0 : index
    %c1_24 = arith.constant 1 : index
    %c0_25 = arith.constant 0 : index
    %19 = vector.load %arg7[%c0_22, %c0_23, %c1_24, %c0_25] : memref<2x18x18x16xf32, #tpu.memory_space<vmem>>, vector<2x16x16x16xf32>
    %20 = vector.shape_cast %19 : vector<2x16x16x16xf32> to vector<512x16xf32>
    %21 = arith.truncf %20 : vector<512x16xf32> to vector<512x16xbf16>
    %c1_26 = arith.constant 1 : index
    %c0_27 = arith.constant 0 : index
    %c0_28 = arith.constant 0 : index
    %22 = vector.load %arg4[%c1_26, %c0_27, %c0_28] : memref<9x16x4xbf16, #tpu.memory_space<vmem>>, vector<1x16x4xbf16>
    %23 = vector.shape_cast %22 : vector<1x16x4xbf16> to vector<16x4xbf16>
    %cst_29 = arith.constant dense<0.000000e+00> : vector<512x4xf32>
    %24 = tpu.matmul %21, %23, %cst_29 {dimension_numbers = #tpu.dot_dimension_numbers<[1], [0], [0], [1], [0, 0, 1, 1], [], []>} : vector<512x16xbf16>, vector<16x4xbf16>, vector<512x4xf32> -> vector<512x4xf32>
    %25 = arith.addf %18, %24 : vector<512x4xf32>
    %c0_30 = arith.constant 0 : index
    %c0_31 = arith.constant 0 : index
    %c2 = arith.constant 2 : index
    %c0_32 = arith.constant 0 : index
    %26 = vector.load %arg7[%c0_30, %c0_31, %c2, %c0_32] : memref<2x18x18x16xf32, #tpu.memory_space<vmem>>, vector<2x16x16x16xf32>
    %27 = vector.shape_cast %26 : vector<2x16x16x16xf32> to vector<512x16xf32>
    %28 = arith.truncf %27 : vector<512x16xf32> to vector<512x16xbf16>
    %c2_33 = arith.constant 2 : index
    %c0_34 = arith.constant 0 : index
    %c0_35 = arith.constant 0 : index
    %29 = vector.load %arg4[%c2_33, %c0_34, %c0_35] : memref<9x16x4xbf16, #tpu.memory_space<vmem>>, vector<1x16x4xbf16>
    %30 = vector.shape_cast %29 : vector<1x16x4xbf16> to vector<16x4xbf16>
    %cst_36 = arith.constant dense<0.000000e+00> : vector<512x4xf32>
    %31 = tpu.matmul %28, %30, %cst_36 {dimension_numbers = #tpu.dot_dimension_numbers<[1], [0], [0], [1], [0, 0, 1, 1], [], []>} : vector<512x16xbf16>, vector<16x4xbf16>, vector<512x4xf32> -> vector<512x4xf32>
    %32 = arith.addf %25, %31 : vector<512x4xf32>
    %c0_37 = arith.constant 0 : index
    %c1_38 = arith.constant 1 : index
    %c0_39 = arith.constant 0 : index
    %c0_40 = arith.constant 0 : index
    %33 = vector.load %arg7[%c0_37, %c1_38, %c0_39, %c0_40] : memref<2x18x18x16xf32, #tpu.memory_space<vmem>>, vector<2x16x16x16xf32>
    %34 = vector.shape_cast %33 : vector<2x16x16x16xf32> to vector<512x16xf32>
    %35 = arith.truncf %34 : vector<512x16xf32> to vector<512x16xbf16>
    %c3 = arith.constant 3 : index
    %c0_41 = arith.constant 0 : index
    %c0_42 = arith.constant 0 : index
    %36 = vector.load %arg4[%c3, %c0_41, %c0_42] : memref<9x16x4xbf16, #tpu.memory_space<vmem>>, vector<1x16x4xbf16>
    %37 = vector.shape_cast %36 : vector<1x16x4xbf16> to vector<16x4xbf16>
    %cst_43 = arith.constant dense<0.000000e+00> : vector<512x4xf32>
    %38 = tpu.matmul %35, %37, %cst_43 {dimension_numbers = #tpu.dot_dimension_numbers<[1], [0], [0], [1], [0, 0, 1, 1], [], []>} : vector<512x16xbf16>, vector<16x4xbf16>, vector<512x4xf32> -> vector<512x4xf32>
    %39 = arith.addf %32, %38 : vector<512x4xf32>
    %c0_44 = arith.constant 0 : index
    %c1_45 = arith.constant 1 : index
    %c1_46 = arith.constant 1 : index
    %c0_47 = arith.constant 0 : index
    %40 = vector.load %arg7[%c0_44, %c1_45, %c1_46, %c0_47] : memref<2x18x18x16xf32, #tpu.memory_space<vmem>>, vector<2x16x16x16xf32>
    %41 = vector.shape_cast %40 : vector<2x16x16x16xf32> to vector<512x16xf32>
    %42 = arith.truncf %41 : vector<512x16xf32> to vector<512x16xbf16>
    %c4 = arith.constant 4 : index
    %c0_48 = arith.constant 0 : index
    %c0_49 = arith.constant 0 : index
    %43 = vector.load %arg4[%c4, %c0_48, %c0_49] : memref<9x16x4xbf16, #tpu.memory_space<vmem>>, vector<1x16x4xbf16>
    %44 = vector.shape_cast %43 : vector<1x16x4xbf16> to vector<16x4xbf16>
    %cst_50 = arith.constant dense<0.000000e+00> : vector<512x4xf32>
    %45 = tpu.matmul %42, %44, %cst_50 {dimension_numbers = #tpu.dot_dimension_numbers<[1], [0], [0], [1], [0, 0, 1, 1], [], []>} : vector<512x16xbf16>, vector<16x4xbf16>, vector<512x4xf32> -> vector<512x4xf32>
    %46 = arith.addf %39, %45 : vector<512x4xf32>
    %c0_51 = arith.constant 0 : index
    %c1_52 = arith.constant 1 : index
    %c2_53 = arith.constant 2 : index
    %c0_54 = arith.constant 0 : index
    %47 = vector.load %arg7[%c0_51, %c1_52, %c2_53, %c0_54] : memref<2x18x18x16xf32, #tpu.memory_space<vmem>>, vector<2x16x16x16xf32>
    %48 = vector.shape_cast %47 : vector<2x16x16x16xf32> to vector<512x16xf32>
    %49 = arith.truncf %48 : vector<512x16xf32> to vector<512x16xbf16>
    %c5 = arith.constant 5 : index
    %c0_55 = arith.constant 0 : index
    %c0_56 = arith.constant 0 : index
    %50 = vector.load %arg4[%c5, %c0_55, %c0_56] : memref<9x16x4xbf16, #tpu.memory_space<vmem>>, vector<1x16x4xbf16>
    %51 = vector.shape_cast %50 : vector<1x16x4xbf16> to vector<16x4xbf16>
    %cst_57 = arith.constant dense<0.000000e+00> : vector<512x4xf32>
    %52 = tpu.matmul %49, %51, %cst_57 {dimension_numbers = #tpu.dot_dimension_numbers<[1], [0], [0], [1], [0, 0, 1, 1], [], []>} : vector<512x16xbf16>, vector<16x4xbf16>, vector<512x4xf32> -> vector<512x4xf32>
    %53 = arith.addf %46, %52 : vector<512x4xf32>
    %c0_58 = arith.constant 0 : index
    %c2_59 = arith.constant 2 : index
    %c0_60 = arith.constant 0 : index
    %c0_61 = arith.constant 0 : index
    %54 = vector.load %arg7[%c0_58, %c2_59, %c0_60, %c0_61] : memref<2x18x18x16xf32, #tpu.memory_space<vmem>>, vector<2x16x16x16xf32>
    %55 = vector.shape_cast %54 : vector<2x16x16x16xf32> to vector<512x16xf32>
    %56 = arith.truncf %55 : vector<512x16xf32> to vector<512x16xbf16>
    %c6 = arith.constant 6 : index
    %c0_62 = arith.constant 0 : index
    %c0_63 = arith.constant 0 : index
    %57 = vector.load %arg4[%c6, %c0_62, %c0_63] : memref<9x16x4xbf16, #tpu.memory_space<vmem>>, vector<1x16x4xbf16>
    %58 = vector.shape_cast %57 : vector<1x16x4xbf16> to vector<16x4xbf16>
    %cst_64 = arith.constant dense<0.000000e+00> : vector<512x4xf32>
    %59 = tpu.matmul %56, %58, %cst_64 {dimension_numbers = #tpu.dot_dimension_numbers<[1], [0], [0], [1], [0, 0, 1, 1], [], []>} : vector<512x16xbf16>, vector<16x4xbf16>, vector<512x4xf32> -> vector<512x4xf32>
    %60 = arith.addf %53, %59 : vector<512x4xf32>
    %c0_65 = arith.constant 0 : index
    %c2_66 = arith.constant 2 : index
    %c1_67 = arith.constant 1 : index
    %c0_68 = arith.constant 0 : index
    %61 = vector.load %arg7[%c0_65, %c2_66, %c1_67, %c0_68] : memref<2x18x18x16xf32, #tpu.memory_space<vmem>>, vector<2x16x16x16xf32>
    %62 = vector.shape_cast %61 : vector<2x16x16x16xf32> to vector<512x16xf32>
    %63 = arith.truncf %62 : vector<512x16xf32> to vector<512x16xbf16>
    %c7 = arith.constant 7 : index
    %c0_69 = arith.constant 0 : index
    %c0_70 = arith.constant 0 : index
    %64 = vector.load %arg4[%c7, %c0_69, %c0_70] : memref<9x16x4xbf16, #tpu.memory_space<vmem>>, vector<1x16x4xbf16>
    %65 = vector.shape_cast %64 : vector<1x16x4xbf16> to vector<16x4xbf16>
    %cst_71 = arith.constant dense<0.000000e+00> : vector<512x4xf32>
    %66 = tpu.matmul %63, %65, %cst_71 {dimension_numbers = #tpu.dot_dimension_numbers<[1], [0], [0], [1], [0, 0, 1, 1], [], []>} : vector<512x16xbf16>, vector<16x4xbf16>, vector<512x4xf32> -> vector<512x4xf32>
    %67 = arith.addf %60, %66 : vector<512x4xf32>
    %c0_72 = arith.constant 0 : index
    %c2_73 = arith.constant 2 : index
    %c2_74 = arith.constant 2 : index
    %c0_75 = arith.constant 0 : index
    %68 = vector.load %arg7[%c0_72, %c2_73, %c2_74, %c0_75] : memref<2x18x18x16xf32, #tpu.memory_space<vmem>>, vector<2x16x16x16xf32>
    %69 = vector.shape_cast %68 : vector<2x16x16x16xf32> to vector<512x16xf32>
    %70 = arith.truncf %69 : vector<512x16xf32> to vector<512x16xbf16>
    %c8 = arith.constant 8 : index
    %c0_76 = arith.constant 0 : index
    %c0_77 = arith.constant 0 : index
    %71 = vector.load %arg4[%c8, %c0_76, %c0_77] : memref<9x16x4xbf16, #tpu.memory_space<vmem>>, vector<1x16x4xbf16>
    %72 = vector.shape_cast %71 : vector<1x16x4xbf16> to vector<16x4xbf16>
    %cst_78 = arith.constant dense<0.000000e+00> : vector<512x4xf32>
    %73 = tpu.matmul %70, %72, %cst_78 {dimension_numbers = #tpu.dot_dimension_numbers<[1], [0], [0], [1], [0, 0, 1, 1], [], []>} : vector<512x16xbf16>, vector<16x4xbf16>, vector<512x4xf32> -> vector<512x4xf32>
    %74 = arith.addf %67, %73 : vector<512x4xf32>
    %cst_79 = arith.constant dense<0.000000e+00> : vector<4xf32>
    %75 = vector.multi_reduction <add>, %74, %cst_79 [0] : vector<512x4xf32> to vector<4xf32>
    %76 = vector.shape_cast %75 : vector<4xf32> to vector<1x4xf32>
    %cst_80 = arith.constant 5.120000e+02 : f32
    %77 = vector.broadcast %cst_80 : f32 to vector<1x4xf32>
    %78 = arith.divf %76, %77 : vector<1x4xf32>
    %79 = arith.mulf %74, %74 : vector<512x4xf32>
    %cst_81 = arith.constant dense<0.000000e+00> : vector<4xf32>
    %80 = vector.multi_reduction <add>, %79, %cst_81 [0] : vector<512x4xf32> to vector<4xf32>
    %81 = vector.shape_cast %80 : vector<4xf32> to vector<1x4xf32>
    %cst_82 = arith.constant 5.120000e+02 : f32
    %82 = vector.broadcast %cst_82 : f32 to vector<1x4xf32>
    %83 = arith.divf %81, %82 : vector<1x4xf32>
    %84 = arith.mulf %78, %78 : vector<1x4xf32>
    %85 = arith.subf %83, %84 : vector<1x4xf32>
    %cst_83 = arith.constant 0.000000e+00 : f32
    %86 = vector.broadcast %cst_83 : f32 to vector<1x4xf32>
    %87 = arith.maximumf %85, %86 : vector<1x4xf32>
    %cst_84 = arith.constant 9.99999974E-6 : f32
    %88 = vector.broadcast %cst_84 : f32 to vector<1x4xf32>
    %89 = arith.addf %87, %88 : vector<1x4xf32>
    %90 = math.rsqrt %89 : vector<1x4xf32>
    %91 = vector.broadcast %78 : vector<1x4xf32> to vector<512x4xf32>
    %92 = arith.subf %74, %91 : vector<512x4xf32>
    %c0_85 = arith.constant 0 : index
    %c0_86 = arith.constant 0 : index
    %93 = vector.load %arg5[%c0_85, %c0_86] : memref<2x4xf32, #tpu.memory_space<vmem>>, vector<1x4xf32>
    %94 = arith.mulf %90, %93 : vector<1x4xf32>
    %95 = vector.broadcast %94 : vector<1x4xf32> to vector<512x4xf32>
    %96 = arith.mulf %92, %95 : vector<512x4xf32>
    %c1_87 = arith.constant 1 : index
    %c0_88 = arith.constant 0 : index
    %97 = vector.load %arg5[%c1_87, %c0_88] : memref<2x4xf32, #tpu.memory_space<vmem>>, vector<1x4xf32>
    %98 = vector.broadcast %97 : vector<1x4xf32> to vector<512x4xf32>
    %99 = arith.addf %96, %98 : vector<512x4xf32>
    %cst_89 = arith.constant 0.000000e+00 : f32
    %100 = vector.broadcast %cst_89 : f32 to vector<512x4xf32>
    %101 = arith.maximumf %99, %100 : vector<512x4xf32>
    %c0_90 = arith.constant 0 : index
    %c0_91 = arith.constant 0 : index
    %102 = vector.load %arg1[%c0_90, %c0_91] : memref<512x4xf32, #tpu.memory_space<vmem>>, vector<512x4xf32>
    %103 = arith.addf %101, %102 : vector<512x4xf32>
    %c0_92 = arith.constant 0 : index
    %c0_93 = arith.constant 0 : index
    %104 = vector.load %arg6[%c0_92, %c0_93] : memref<512x4xf32, #tpu.memory_space<vmem>>, vector<512x4xf32>
    tpu.vector_store %arg6[%c0_92, %c0_93], %103 {strides = array<i32>} : memref<512x4xf32, #tpu.memory_space<vmem>>, vector<512x4xf32>,
    return
  }
  func.func @transform_0(%arg0: i32) -> (i32, i32) {
    %c0_i32 = arith.constant 0 : i32
    %c0_i32_0 = arith.constant 0 : i32
    %c0_i32_1 = arith.constant 0 : i32
    return %c0_i32, %c0_i32_0 : i32, i32
  }
  func.func @transform_1(%arg0: i32) -> (i32, i32) {
    %c0_i32 = arith.constant 0 : i32
    %c0_i32_0 = arith.constant 0 : i32
    %c0_i32_1 = arith.constant 0 : i32
    return %c0_i32, %c0_i32_0 : i32, i32
  }
  func.func @transform_2(%arg0: i32) -> (i32, i32) {
    %c0_i32 = arith.constant 0 : i32
    %c0_i32_0 = arith.constant 0 : i32
    %c0_i32_1 = arith.constant 0 : i32
    return %c0_i32, %c0_i32_0 : i32, i32
  }
  func.func @transform_3(%arg0: i32) -> (i32, i32, i32) {
    %c0_i32 = arith.constant 0 : i32
    %c0_i32_0 = arith.constant 0 : i32
    %c0_i32_1 = arith.constant 0 : i32
    %c0_i32_2 = arith.constant 0 : i32
    return %c0_i32, %c0_i32_0, %c0_i32_1 : i32, i32, i32
  }
  func.func @transform_4(%arg0: i32) -> (i32, i32) {
    %c0_i32 = arith.constant 0 : i32
    %c0_i32_0 = arith.constant 0 : i32
    %c0_i32_1 = arith.constant 0 : i32
    return %c0_i32, %c0_i32_0 : i32, i32
  }
  func.func @transform_5(%arg0: i32) -> (i32, i32) {
    %c0_i32 = arith.constant 0 : i32
    %c0_i32_0 = arith.constant 0 : i32
    %c0_i32_1 = arith.constant 0 : i32
    return %c0_i32, %c0_i32_0 : i32, i32
  }
}

module attributes {stable_mosaic.version = 11 : i64} {
  func.func @_seq_down_kernel(%arg0: i32, %arg1: memref<4x128x4xf32, #tpu.memory_space<vmem>>, %arg2: memref<4x16xbf16, #tpu.memory_space<vmem>>, %arg3: memref<1x16xf32, #tpu.memory_space<vmem>>, %arg4: memref<9x16x8xbf16, #tpu.memory_space<vmem>>, %arg5: memref<2x8xf32, #tpu.memory_space<vmem>>, %arg6: memref<128x8xf32, #tpu.memory_space<vmem>>, %arg7: memref<2x9x9x16xf32, #tpu.memory_space<vmem>>, %arg8: memref<2x9x9x16xf32, #tpu.memory_space<vmem>>, %arg9: memref<2x9x9x16xf32, #tpu.memory_space<vmem>>, %arg10: memref<2x9x9x16xf32, #tpu.memory_space<vmem>>) attributes {dimension_semantics = [#tpu.dimension_semantics<arbitrary>], iteration_bounds = array<i64: 1>, scalar_prefetch = 0 : i64, scratch_operands = 4 : i64, tpu.core_type = #tpu.core_type<tc>, window_params = [{pipeline_mode = #tpu.pipeline_mode<synchronous>, transform_indices = @transform_0, window_bounds = array<i64: 4, 128, 4>}, {pipeline_mode = #tpu.pipeline_mode<synchronous>, transform_indices = @transform_1, window_bounds = array<i64: 4, 16>}, {pipeline_mode = #tpu.pipeline_mode<synchronous>, transform_indices = @transform_2, window_bounds = array<i64: 1, 16>}, {pipeline_mode = #tpu.pipeline_mode<synchronous>, transform_indices = @transform_3, window_bounds = array<i64: 9, 16, 8>}, {pipeline_mode = #tpu.pipeline_mode<synchronous>, transform_indices = @transform_4, window_bounds = array<i64: 2, 8>}, {pipeline_mode = #tpu.pipeline_mode<synchronous>, transform_indices = @transform_5, window_bounds = array<i64: 128, 8>}]} {
    %cst = arith.constant 0.000000e+00 : f32
    %0 = vector.broadcast %cst : f32 to vector<2x9x9x16xf32>
    %c0 = arith.constant 0 : index
    %c0_0 = arith.constant 0 : index
    %c0_1 = arith.constant 0 : index
    %c0_2 = arith.constant 0 : index
    %1 = vector.load %arg7[%c0, %c0_0, %c0_1, %c0_2] : memref<2x9x9x16xf32, #tpu.memory_space<vmem>>, vector<2x9x9x16xf32>
    tpu.vector_store %arg7[%c0, %c0_0, %c0_1, %c0_2], %0 {strides = array<i32>} : memref<2x9x9x16xf32, #tpu.memory_space<vmem>>, vector<2x9x9x16xf32>,
    %cst_3 = arith.constant 0.000000e+00 : f32
    %2 = vector.broadcast %cst_3 : f32 to vector<2x9x9x16xf32>
    %c0_4 = arith.constant 0 : index
    %c0_5 = arith.constant 0 : index
    %c0_6 = arith.constant 0 : index
    %c0_7 = arith.constant 0 : index
    %3 = vector.load %arg8[%c0_4, %c0_5, %c0_6, %c0_7] : memref<2x9x9x16xf32, #tpu.memory_space<vmem>>, vector<2x9x9x16xf32>
    tpu.vector_store %arg8[%c0_4, %c0_5, %c0_6, %c0_7], %2 {strides = array<i32>} : memref<2x9x9x16xf32, #tpu.memory_space<vmem>>, vector<2x9x9x16xf32>,
    %cst_8 = arith.constant 0.000000e+00 : f32
    %4 = vector.broadcast %cst_8 : f32 to vector<2x9x9x16xf32>
    %c0_9 = arith.constant 0 : index
    %c0_10 = arith.constant 0 : index
    %c0_11 = arith.constant 0 : index
    %c0_12 = arith.constant 0 : index
    %5 = vector.load %arg9[%c0_9, %c0_10, %c0_11, %c0_12] : memref<2x9x9x16xf32, #tpu.memory_space<vmem>>, vector<2x9x9x16xf32>
    tpu.vector_store %arg9[%c0_9, %c0_10, %c0_11, %c0_12], %4 {strides = array<i32>} : memref<2x9x9x16xf32, #tpu.memory_space<vmem>>, vector<2x9x9x16xf32>,
    %cst_13 = arith.constant 0.000000e+00 : f32
    %6 = vector.broadcast %cst_13 : f32 to vector<2x9x9x16xf32>
    %c0_14 = arith.constant 0 : index
    %c0_15 = arith.constant 0 : index
    %c0_16 = arith.constant 0 : index
    %c0_17 = arith.constant 0 : index
    %7 = vector.load %arg10[%c0_14, %c0_15, %c0_16, %c0_17] : memref<2x9x9x16xf32, #tpu.memory_space<vmem>>, vector<2x9x9x16xf32>
    tpu.vector_store %arg10[%c0_14, %c0_15, %c0_16, %c0_17], %6 {strides = array<i32>} : memref<2x9x9x16xf32, #tpu.memory_space<vmem>>, vector<2x9x9x16xf32>,
    %c3 = arith.constant 3 : index
    %c0_18 = arith.constant 0 : index
    %c0_19 = arith.constant 0 : index
    %8 = vector.load %arg1[%c3, %c0_18, %c0_19] : memref<4x128x4xf32, #tpu.memory_space<vmem>>, vector<1x128x4xf32>
    %9 = vector.shape_cast %8 : vector<1x128x4xf32> to vector<128x4xf32>
    %10 = arith.truncf %9 : vector<128x4xf32> to vector<128x4xbf16>
    %c0_20 = arith.constant 0 : index
    %c0_21 = arith.constant 0 : index
    %11 = vector.load %arg2[%c0_20, %c0_21] : memref<4x16xbf16, #tpu.memory_space<vmem>>, vector<4x16xbf16>
    %cst_22 = arith.constant dense<0.000000e+00> : vector<128x16xf32>
    %12 = tpu.matmul %10, %11, %cst_22 {dimension_numbers = #tpu.dot_dimension_numbers<[1], [0], [0], [1], [0, 0, 1, 1], [], []>} : vector<128x4xbf16>, vector<4x16xbf16>, vector<128x16xf32> -> vector<128x16xf32>
    %c0_23 = arith.constant 0 : index
    %c0_24 = arith.constant 0 : index
    %13 = vector.load %arg3[%c0_23, %c0_24] : memref<1x16xf32, #tpu.memory_space<vmem>>, vector<1x16xf32>
    %14 = vector.broadcast %13 : vector<1x16xf32> to vector<128x16xf32>
    %15 = arith.addf %12, %14 : vector<128x16xf32>
    %16 = vector.shape_cast %15 : vector<128x16xf32> to vector<2x8x8x16xf32>
    %c0_25 = arith.constant 0 : index
    %c1 = arith.constant 1 : index
    %c1_26 = arith.constant 1 : index
    %c0_27 = arith.constant 0 : index
    %17 = vector.load %arg7[%c0_25, %c1, %c1_26, %c0_27] : memref<2x9x9x16xf32, #tpu.memory_space<vmem>>, vector<2x8x8x16xf32>
    tpu.vector_store %arg7[%c0_25, %c1, %c1_26, %c0_27], %16 {strides = array<i32>} : memref<2x9x9x16xf32, #tpu.memory_space<vmem>>, vector<2x8x8x16xf32>,
    %c2 = arith.constant 2 : index
    %c0_28 = arith.constant 0 : index
    %c0_29 = arith.constant 0 : index
    %18 = vector.load %arg1[%c2, %c0_28, %c0_29] : memref<4x128x4xf32, #tpu.memory_space<vmem>>, vector<1x128x4xf32>
    %19 = vector.shape_cast %18 : vector<1x128x4xf32> to vector<128x4xf32>
    %20 = arith.truncf %19 : vector<128x4xf32> to vector<128x4xbf16>
    %c0_30 = arith.constant 0 : index
    %c0_31 = arith.constant 0 : index
    %21 = vector.load %arg2[%c0_30, %c0_31] : memref<4x16xbf16, #tpu.memory_space<vmem>>, vector<4x16xbf16>
    %cst_32 = arith.constant dense<0.000000e+00> : vector<128x16xf32>
    %22 = tpu.matmul %20, %21, %cst_32 {dimension_numbers = #tpu.dot_dimension_numbers<[1], [0], [0], [1], [0, 0, 1, 1], [], []>} : vector<128x4xbf16>, vector<4x16xbf16>, vector<128x16xf32> -> vector<128x16xf32>
    %c0_33 = arith.constant 0 : index
    %c0_34 = arith.constant 0 : index
    %23 = vector.load %arg3[%c0_33, %c0_34] : memref<1x16xf32, #tpu.memory_space<vmem>>, vector<1x16xf32>
    %24 = vector.broadcast %23 : vector<1x16xf32> to vector<128x16xf32>
    %25 = arith.addf %22, %24 : vector<128x16xf32>
    %26 = vector.shape_cast %25 : vector<128x16xf32> to vector<2x8x8x16xf32>
    %c0_35 = arith.constant 0 : index
    %c1_36 = arith.constant 1 : index
    %c0_37 = arith.constant 0 : index
    %c0_38 = arith.constant 0 : index
    %27 = vector.load %arg8[%c0_35, %c1_36, %c0_37, %c0_38] : memref<2x9x9x16xf32, #tpu.memory_space<vmem>>, vector<2x8x8x16xf32>
    tpu.vector_store %arg8[%c0_35, %c1_36, %c0_37, %c0_38], %26 {strides = array<i32>} : memref<2x9x9x16xf32, #tpu.memory_space<vmem>>, vector<2x8x8x16xf32>,
    %c1_39 = arith.constant 1 : index
    %c0_40 = arith.constant 0 : index
    %c0_41 = arith.constant 0 : index
    %28 = vector.load %arg1[%c1_39, %c0_40, %c0_41] : memref<4x128x4xf32, #tpu.memory_space<vmem>>, vector<1x128x4xf32>
    %29 = vector.shape_cast %28 : vector<1x128x4xf32> to vector<128x4xf32>
    %30 = arith.truncf %29 : vector<128x4xf32> to vector<128x4xbf16>
    %c0_42 = arith.constant 0 : index
    %c0_43 = arith.constant 0 : index
    %31 = vector.load %arg2[%c0_42, %c0_43] : memref<4x16xbf16, #tpu.memory_space<vmem>>, vector<4x16xbf16>
    %cst_44 = arith.constant dense<0.000000e+00> : vector<128x16xf32>
    %32 = tpu.matmul %30, %31, %cst_44 {dimension_numbers = #tpu.dot_dimension_numbers<[1], [0], [0], [1], [0, 0, 1, 1], [], []>} : vector<128x4xbf16>, vector<4x16xbf16>, vector<128x16xf32> -> vector<128x16xf32>
    %c0_45 = arith.constant 0 : index
    %c0_46 = arith.constant 0 : index
    %33 = vector.load %arg3[%c0_45, %c0_46] : memref<1x16xf32, #tpu.memory_space<vmem>>, vector<1x16xf32>
    %34 = vector.broadcast %33 : vector<1x16xf32> to vector<128x16xf32>
    %35 = arith.addf %32, %34 : vector<128x16xf32>
    %36 = vector.shape_cast %35 : vector<128x16xf32> to vector<2x8x8x16xf32>
    %c0_47 = arith.constant 0 : index
    %c0_48 = arith.constant 0 : index
    %c1_49 = arith.constant 1 : index
    %c0_50 = arith.constant 0 : index
    %37 = vector.load %arg9[%c0_47, %c0_48, %c1_49, %c0_50] : memref<2x9x9x16xf32, #tpu.memory_space<vmem>>, vector<2x8x8x16xf32>
    tpu.vector_store %arg9[%c0_47, %c0_48, %c1_49, %c0_50], %36 {strides = array<i32>} : memref<2x9x9x16xf32, #tpu.memory_space<vmem>>, vector<2x8x8x16xf32>,
    %c0_51 = arith.constant 0 : index
    %c0_52 = arith.constant 0 : index
    %c0_53 = arith.constant 0 : index
    %38 = vector.load %arg1[%c0_51, %c0_52, %c0_53] : memref<4x128x4xf32, #tpu.memory_space<vmem>>, vector<1x128x4xf32>
    %39 = vector.shape_cast %38 : vector<1x128x4xf32> to vector<128x4xf32>
    %40 = arith.truncf %39 : vector<128x4xf32> to vector<128x4xbf16>
    %c0_54 = arith.constant 0 : index
    %c0_55 = arith.constant 0 : index
    %41 = vector.load %arg2[%c0_54, %c0_55] : memref<4x16xbf16, #tpu.memory_space<vmem>>, vector<4x16xbf16>
    %cst_56 = arith.constant dense<0.000000e+00> : vector<128x16xf32>
    %42 = tpu.matmul %40, %41, %cst_56 {dimension_numbers = #tpu.dot_dimension_numbers<[1], [0], [0], [1], [0, 0, 1, 1], [], []>} : vector<128x4xbf16>, vector<4x16xbf16>, vector<128x16xf32> -> vector<128x16xf32>
    %c0_57 = arith.constant 0 : index
    %c0_58 = arith.constant 0 : index
    %43 = vector.load %arg3[%c0_57, %c0_58] : memref<1x16xf32, #tpu.memory_space<vmem>>, vector<1x16xf32>
    %44 = vector.broadcast %43 : vector<1x16xf32> to vector<128x16xf32>
    %45 = arith.addf %42, %44 : vector<128x16xf32>
    %46 = vector.shape_cast %45 : vector<128x16xf32> to vector<2x8x8x16xf32>
    %c0_59 = arith.constant 0 : index
    %c0_60 = arith.constant 0 : index
    %c0_61 = arith.constant 0 : index
    %c0_62 = arith.constant 0 : index
    %47 = vector.load %arg10[%c0_59, %c0_60, %c0_61, %c0_62] : memref<2x9x9x16xf32, #tpu.memory_space<vmem>>, vector<2x8x8x16xf32>
    tpu.vector_store %arg10[%c0_59, %c0_60, %c0_61, %c0_62], %46 {strides = array<i32>} : memref<2x9x9x16xf32, #tpu.memory_space<vmem>>, vector<2x8x8x16xf32>,
    %cst_63 = arith.constant 0.000000e+00 : f32
    %48 = vector.broadcast %cst_63 : f32 to vector<128x8xf32>
    %c0_64 = arith.constant 0 : index
    %c0_65 = arith.constant 0 : index
    %c0_66 = arith.constant 0 : index
    %c0_67 = arith.constant 0 : index
    %49 = vector.load %arg7[%c0_64, %c0_65, %c0_66, %c0_67] : memref<2x9x9x16xf32, #tpu.memory_space<vmem>>, vector<2x8x8x16xf32>
    %50 = vector.shape_cast %49 : vector<2x8x8x16xf32> to vector<128x16xf32>
    %51 = arith.truncf %50 : vector<128x16xf32> to vector<128x16xbf16>
    %c0_68 = arith.constant 0 : index
    %c0_69 = arith.constant 0 : index
    %c0_70 = arith.constant 0 : index
    %52 = vector.load %arg4[%c0_68, %c0_69, %c0_70] : memref<9x16x8xbf16, #tpu.memory_space<vmem>>, vector<1x16x8xbf16>
    %53 = vector.shape_cast %52 : vector<1x16x8xbf16> to vector<16x8xbf16>
    %cst_71 = arith.constant dense<0.000000e+00> : vector<128x8xf32>
    %54 = tpu.matmul %51, %53, %cst_71 {dimension_numbers = #tpu.dot_dimension_numbers<[1], [0], [0], [1], [0, 0, 1, 1], [], []>} : vector<128x16xbf16>, vector<16x8xbf16>, vector<128x8xf32> -> vector<128x8xf32>
    %55 = arith.addf %48, %54 : vector<128x8xf32>
    %c0_72 = arith.constant 0 : index
    %c0_73 = arith.constant 0 : index
    %c0_74 = arith.constant 0 : index
    %c0_75 = arith.constant 0 : index
    %56 = vector.load %arg8[%c0_72, %c0_73, %c0_74, %c0_75] : memref<2x9x9x16xf32, #tpu.memory_space<vmem>>, vector<2x8x8x16xf32>
    %57 = vector.shape_cast %56 : vector<2x8x8x16xf32> to vector<128x16xf32>
    %58 = arith.truncf %57 : vector<128x16xf32> to vector<128x16xbf16>
    %c1_76 = arith.constant 1 : index
    %c0_77 = arith.constant 0 : index
    %c0_78 = arith.constant 0 : index
    %59 = vector.load %arg4[%c1_76, %c0_77, %c0_78] : memref<9x16x8xbf16, #tpu.memory_space<vmem>>, vector<1x16x8xbf16>
    %60 = vector.shape_cast %59 : vector<1x16x8xbf16> to vector<16x8xbf16>
    %cst_79 = arith.constant dense<0.000000e+00> : vector<128x8xf32>
    %61 = tpu.matmul %58, %60, %cst_79 {dimension_numbers = #tpu.dot_dimension_numbers<[1], [0], [0], [1], [0, 0, 1, 1], [], []>} : vector<128x16xbf16>, vector<16x8xbf16>, vector<128x8xf32> -> vector<128x8xf32>
    %62 = arith.addf %55, %61 : vector<128x8xf32>
    %c0_80 = arith.constant 0 : index
    %c0_81 = arith.constant 0 : index
    %c1_82 = arith.constant 1 : index
    %c0_83 = arith.constant 0 : index
    %63 = vector.load %arg7[%c0_80, %c0_81, %c1_82, %c0_83] : memref<2x9x9x16xf32, #tpu.memory_space<vmem>>, vector<2x8x8x16xf32>
    %64 = vector.shape_cast %63 : vector<2x8x8x16xf32> to vector<128x16xf32>
    %65 = arith.truncf %64 : vector<128x16xf32> to vector<128x16xbf16>
    %c2_84 = arith.constant 2 : index
    %c0_85 = arith.constant 0 : index
    %c0_86 = arith.constant 0 : index
    %66 = vector.load %arg4[%c2_84, %c0_85, %c0_86] : memref<9x16x8xbf16, #tpu.memory_space<vmem>>, vector<1x16x8xbf16>
    %67 = vector.shape_cast %66 : vector<1x16x8xbf16> to vector<16x8xbf16>
    %cst_87 = arith.constant dense<0.000000e+00> : vector<128x8xf32>
    %68 = tpu.matmul %65, %67, %cst_87 {dimension_numbers = #tpu.dot_dimension_numbers<[1], [0], [0], [1], [0, 0, 1, 1], [], []>} : vector<128x16xbf16>, vector<16x8xbf16>, vector<128x8xf32> -> vector<128x8xf32>
    %69 = arith.addf %62, %68 : vector<128x8xf32>
    %c0_88 = arith.constant 0 : index
    %c0_89 = arith.constant 0 : index
    %c0_90 = arith.constant 0 : index
    %c0_91 = arith.constant 0 : index
    %70 = vector.load %arg9[%c0_88, %c0_89, %c0_90, %c0_91] : memref<2x9x9x16xf32, #tpu.memory_space<vmem>>, vector<2x8x8x16xf32>
    %71 = vector.shape_cast %70 : vector<2x8x8x16xf32> to vector<128x16xf32>
    %72 = arith.truncf %71 : vector<128x16xf32> to vector<128x16xbf16>
    %c3_92 = arith.constant 3 : index
    %c0_93 = arith.constant 0 : index
    %c0_94 = arith.constant 0 : index
    %73 = vector.load %arg4[%c3_92, %c0_93, %c0_94] : memref<9x16x8xbf16, #tpu.memory_space<vmem>>, vector<1x16x8xbf16>
    %74 = vector.shape_cast %73 : vector<1x16x8xbf16> to vector<16x8xbf16>
    %cst_95 = arith.constant dense<0.000000e+00> : vector<128x8xf32>
    %75 = tpu.matmul %72, %74, %cst_95 {dimension_numbers = #tpu.dot_dimension_numbers<[1], [0], [0], [1], [0, 0, 1, 1], [], []>} : vector<128x16xbf16>, vector<16x8xbf16>, vector<128x8xf32> -> vector<128x8xf32>
    %76 = arith.addf %69, %75 : vector<128x8xf32>
    %c0_96 = arith.constant 0 : index
    %c0_97 = arith.constant 0 : index
    %c0_98 = arith.constant 0 : index
    %c0_99 = arith.constant 0 : index
    %77 = vector.load %arg10[%c0_96, %c0_97, %c0_98, %c0_99] : memref<2x9x9x16xf32, #tpu.memory_space<vmem>>, vector<2x8x8x16xf32>
    %78 = vector.shape_cast %77 : vector<2x8x8x16xf32> to vector<128x16xf32>
    %79 = arith.truncf %78 : vector<128x16xf32> to vector<128x16xbf16>
    %c4 = arith.constant 4 : index
    %c0_100 = arith.constant 0 : index
    %c0_101 = arith.constant 0 : index
    %80 = vector.load %arg4[%c4, %c0_100, %c0_101] : memref<9x16x8xbf16, #tpu.memory_space<vmem>>, vector<1x16x8xbf16>
    %81 = vector.shape_cast %80 : vector<1x16x8xbf16> to vector<16x8xbf16>
    %cst_102 = arith.constant dense<0.000000e+00> : vector<128x8xf32>
    %82 = tpu.matmul %79, %81, %cst_102 {dimension_numbers = #tpu.dot_dimension_numbers<[1], [0], [0], [1], [0, 0, 1, 1], [], []>} : vector<128x16xbf16>, vector<16x8xbf16>, vector<128x8xf32> -> vector<128x8xf32>
    %83 = arith.addf %76, %82 : vector<128x8xf32>
    %c0_103 = arith.constant 0 : index
    %c0_104 = arith.constant 0 : index
    %c1_105 = arith.constant 1 : index
    %c0_106 = arith.constant 0 : index
    %84 = vector.load %arg9[%c0_103, %c0_104, %c1_105, %c0_106] : memref<2x9x9x16xf32, #tpu.memory_space<vmem>>, vector<2x8x8x16xf32>
    %85 = vector.shape_cast %84 : vector<2x8x8x16xf32> to vector<128x16xf32>
    %86 = arith.truncf %85 : vector<128x16xf32> to vector<128x16xbf16>
    %c5 = arith.constant 5 : index
    %c0_107 = arith.constant 0 : index
    %c0_108 = arith.constant 0 : index
    %87 = vector.load %arg4[%c5, %c0_107, %c0_108] : memref<9x16x8xbf16, #tpu.memory_space<vmem>>, vector<1x16x8xbf16>
    %88 = vector.shape_cast %87 : vector<1x16x8xbf16> to vector<16x8xbf16>
    %cst_109 = arith.constant dense<0.000000e+00> : vector<128x8xf32>
    %89 = tpu.matmul %86, %88, %cst_109 {dimension_numbers = #tpu.dot_dimension_numbers<[1], [0], [0], [1], [0, 0, 1, 1], [], []>} : vector<128x16xbf16>, vector<16x8xbf16>, vector<128x8xf32> -> vector<128x8xf32>
    %90 = arith.addf %83, %89 : vector<128x8xf32>
    %c0_110 = arith.constant 0 : index
    %c1_111 = arith.constant 1 : index
    %c0_112 = arith.constant 0 : index
    %c0_113 = arith.constant 0 : index
    %91 = vector.load %arg7[%c0_110, %c1_111, %c0_112, %c0_113] : memref<2x9x9x16xf32, #tpu.memory_space<vmem>>, vector<2x8x8x16xf32>
    %92 = vector.shape_cast %91 : vector<2x8x8x16xf32> to vector<128x16xf32>
    %93 = arith.truncf %92 : vector<128x16xf32> to vector<128x16xbf16>
    %c6 = arith.constant 6 : index
    %c0_114 = arith.constant 0 : index
    %c0_115 = arith.constant 0 : index
    %94 = vector.load %arg4[%c6, %c0_114, %c0_115] : memref<9x16x8xbf16, #tpu.memory_space<vmem>>, vector<1x16x8xbf16>
    %95 = vector.shape_cast %94 : vector<1x16x8xbf16> to vector<16x8xbf16>
    %cst_116 = arith.constant dense<0.000000e+00> : vector<128x8xf32>
    %96 = tpu.matmul %93, %95, %cst_116 {dimension_numbers = #tpu.dot_dimension_numbers<[1], [0], [0], [1], [0, 0, 1, 1], [], []>} : vector<128x16xbf16>, vector<16x8xbf16>, vector<128x8xf32> -> vector<128x8xf32>
    %97 = arith.addf %90, %96 : vector<128x8xf32>
    %c0_117 = arith.constant 0 : index
    %c1_118 = arith.constant 1 : index
    %c0_119 = arith.constant 0 : index
    %c0_120 = arith.constant 0 : index
    %98 = vector.load %arg8[%c0_117, %c1_118, %c0_119, %c0_120] : memref<2x9x9x16xf32, #tpu.memory_space<vmem>>, vector<2x8x8x16xf32>
    %99 = vector.shape_cast %98 : vector<2x8x8x16xf32> to vector<128x16xf32>
    %100 = arith.truncf %99 : vector<128x16xf32> to vector<128x16xbf16>
    %c7 = arith.constant 7 : index
    %c0_121 = arith.constant 0 : index
    %c0_122 = arith.constant 0 : index
    %101 = vector.load %arg4[%c7, %c0_121, %c0_122] : memref<9x16x8xbf16, #tpu.memory_space<vmem>>, vector<1x16x8xbf16>
    %102 = vector.shape_cast %101 : vector<1x16x8xbf16> to vector<16x8xbf16>
    %cst_123 = arith.constant dense<0.000000e+00> : vector<128x8xf32>
    %103 = tpu.matmul %100, %102, %cst_123 {dimension_numbers = #tpu.dot_dimension_numbers<[1], [0], [0], [1], [0, 0, 1, 1], [], []>} : vector<128x16xbf16>, vector<16x8xbf16>, vector<128x8xf32> -> vector<128x8xf32>
    %104 = arith.addf %97, %103 : vector<128x8xf32>
    %c0_124 = arith.constant 0 : index
    %c1_125 = arith.constant 1 : index
    %c1_126 = arith.constant 1 : index
    %c0_127 = arith.constant 0 : index
    %105 = vector.load %arg7[%c0_124, %c1_125, %c1_126, %c0_127] : memref<2x9x9x16xf32, #tpu.memory_space<vmem>>, vector<2x8x8x16xf32>
    %106 = vector.shape_cast %105 : vector<2x8x8x16xf32> to vector<128x16xf32>
    %107 = arith.truncf %106 : vector<128x16xf32> to vector<128x16xbf16>
    %c8 = arith.constant 8 : index
    %c0_128 = arith.constant 0 : index
    %c0_129 = arith.constant 0 : index
    %108 = vector.load %arg4[%c8, %c0_128, %c0_129] : memref<9x16x8xbf16, #tpu.memory_space<vmem>>, vector<1x16x8xbf16>
    %109 = vector.shape_cast %108 : vector<1x16x8xbf16> to vector<16x8xbf16>
    %cst_130 = arith.constant dense<0.000000e+00> : vector<128x8xf32>
    %110 = tpu.matmul %107, %109, %cst_130 {dimension_numbers = #tpu.dot_dimension_numbers<[1], [0], [0], [1], [0, 0, 1, 1], [], []>} : vector<128x16xbf16>, vector<16x8xbf16>, vector<128x8xf32> -> vector<128x8xf32>
    %111 = arith.addf %104, %110 : vector<128x8xf32>
    %cst_131 = arith.constant dense<0.000000e+00> : vector<8xf32>
    %112 = vector.multi_reduction <add>, %111, %cst_131 [0] : vector<128x8xf32> to vector<8xf32>
    %113 = vector.shape_cast %112 : vector<8xf32> to vector<1x8xf32>
    %cst_132 = arith.constant 1.280000e+02 : f32
    %114 = vector.broadcast %cst_132 : f32 to vector<1x8xf32>
    %115 = arith.divf %113, %114 : vector<1x8xf32>
    %116 = arith.mulf %111, %111 : vector<128x8xf32>
    %cst_133 = arith.constant dense<0.000000e+00> : vector<8xf32>
    %117 = vector.multi_reduction <add>, %116, %cst_133 [0] : vector<128x8xf32> to vector<8xf32>
    %118 = vector.shape_cast %117 : vector<8xf32> to vector<1x8xf32>
    %cst_134 = arith.constant 1.280000e+02 : f32
    %119 = vector.broadcast %cst_134 : f32 to vector<1x8xf32>
    %120 = arith.divf %118, %119 : vector<1x8xf32>
    %121 = arith.mulf %115, %115 : vector<1x8xf32>
    %122 = arith.subf %120, %121 : vector<1x8xf32>
    %cst_135 = arith.constant 0.000000e+00 : f32
    %123 = vector.broadcast %cst_135 : f32 to vector<1x8xf32>
    %124 = arith.maximumf %122, %123 : vector<1x8xf32>
    %cst_136 = arith.constant 9.99999974E-6 : f32
    %125 = vector.broadcast %cst_136 : f32 to vector<1x8xf32>
    %126 = arith.addf %124, %125 : vector<1x8xf32>
    %127 = math.rsqrt %126 : vector<1x8xf32>
    %128 = vector.broadcast %115 : vector<1x8xf32> to vector<128x8xf32>
    %129 = arith.subf %111, %128 : vector<128x8xf32>
    %c0_137 = arith.constant 0 : index
    %c0_138 = arith.constant 0 : index
    %130 = vector.load %arg5[%c0_137, %c0_138] : memref<2x8xf32, #tpu.memory_space<vmem>>, vector<1x8xf32>
    %131 = arith.mulf %127, %130 : vector<1x8xf32>
    %132 = vector.broadcast %131 : vector<1x8xf32> to vector<128x8xf32>
    %133 = arith.mulf %129, %132 : vector<128x8xf32>
    %c1_139 = arith.constant 1 : index
    %c0_140 = arith.constant 0 : index
    %134 = vector.load %arg5[%c1_139, %c0_140] : memref<2x8xf32, #tpu.memory_space<vmem>>, vector<1x8xf32>
    %135 = vector.broadcast %134 : vector<1x8xf32> to vector<128x8xf32>
    %136 = arith.addf %133, %135 : vector<128x8xf32>
    %cst_141 = arith.constant 0.000000e+00 : f32
    %137 = vector.broadcast %cst_141 : f32 to vector<128x8xf32>
    %138 = arith.maximumf %136, %137 : vector<128x8xf32>
    %c0_142 = arith.constant 0 : index
    %c0_143 = arith.constant 0 : index
    %139 = vector.load %arg6[%c0_142, %c0_143] : memref<128x8xf32, #tpu.memory_space<vmem>>, vector<128x8xf32>
    tpu.vector_store %arg6[%c0_142, %c0_143], %138 {strides = array<i32>} : memref<128x8xf32, #tpu.memory_space<vmem>>, vector<128x8xf32>,
    return
  }
  func.func @transform_0(%arg0: i32) -> (i32, i32, i32) {
    %c0_i32 = arith.constant 0 : i32
    %c0_i32_0 = arith.constant 0 : i32
    %c0_i32_1 = arith.constant 0 : i32
    %c0_i32_2 = arith.constant 0 : i32
    return %c0_i32, %c0_i32_0, %c0_i32_1 : i32, i32, i32
  }
  func.func @transform_1(%arg0: i32) -> (i32, i32) {
    %c0_i32 = arith.constant 0 : i32
    %c0_i32_0 = arith.constant 0 : i32
    %c0_i32_1 = arith.constant 0 : i32
    return %c0_i32, %c0_i32_0 : i32, i32
  }
  func.func @transform_2(%arg0: i32) -> (i32, i32) {
    %c0_i32 = arith.constant 0 : i32
    %c0_i32_0 = arith.constant 0 : i32
    %c0_i32_1 = arith.constant 0 : i32
    return %c0_i32, %c0_i32_0 : i32, i32
  }
  func.func @transform_3(%arg0: i32) -> (i32, i32, i32) {
    %c0_i32 = arith.constant 0 : i32
    %c0_i32_0 = arith.constant 0 : i32
    %c0_i32_1 = arith.constant 0 : i32
    %c0_i32_2 = arith.constant 0 : i32
    return %c0_i32, %c0_i32_0, %c0_i32_1 : i32, i32, i32
  }
  func.func @transform_4(%arg0: i32) -> (i32, i32) {
    %c0_i32 = arith.constant 0 : i32
    %c0_i32_0 = arith.constant 0 : i32
    %c0_i32_1 = arith.constant 0 : i32
    return %c0_i32, %c0_i32_0 : i32, i32
  }
  func.func @transform_5(%arg0: i32) -> (i32, i32) {
    %c0_i32 = arith.constant 0 : i32
    %c0_i32_0 = arith.constant 0 : i32
    %c0_i32_1 = arith.constant 0 : i32
    return %c0_i32, %c0_i32_0 : i32, i32
  }
}

</mosaic_0001>

<bundles_post_ra>
// kernel: res_block_forward.5
= control target key start
LH: loop header
LB: loop body
LE: loop exit
PB: predicated region body
PF: predicated region fallthrough
CT: control target
= control target key end

     0   :  { %vm225_vm0 = vcmask 1041408   ;;  %vm21_vm1 = vcmask 130048   ;;  %vm200_vm2 = vcmask 31744   ;;  %vm23_vm3 = vcmask 122880   ;;  %s4413_s1 = inlined_call_operand.vmem [shape: bf16[4,16], index: 1, kind: input, shape index: {}]   ;;  %s4414_s0 = inlined_call_operand.vmem [shape: f32[4,128,4], index: 0, kind: input, shape index: {}]   ;;  %s4415_s3 = inlined_call_operand.vmem [shape: bf16[9,16,8], index: 3, kind: input, shape index: {}]   ;;  %s4416_s2 = inlined_call_operand.vmem [shape: f32[1,16], index: 2, kind: input, shape index: {}]   ;;  %s4417_s4 = inlined_call_operand.vmem [shape: f32[2,8], index: 4, kind: input, shape index: {}]   ;;  %s4418_s5 = inlined_call_operand.vmem [shape: f32[128,8], index: 5, kind: output, shape index: {}]  }
   0x1   :  { %v3266_v0 = vld [vmem:[%s4413_s1] sm:$0x3]  ;;  %v3276_v2 = vld [vmem:[%s4414_s0 + $0x188] sm:$0xff]  ;;  %v3232_v3 = vmov 0.0   ;;  %v2555_v6 = vld [vmem:[%s4414_s0 + $0x190] sm:$0xff]  ;;  %vm2359_vm4 = vcmask 64512  }
   0x2   :  { %v3271_v1 = vld [vmem:[%s4414_s0 + $0x180] sm:$0xff]  ;;  %29 = vst.msk [vmem:[#allocation2 + $0x30] sm:$0xff] %vm21_vm1, %v3232_v3  ;;  %22 = vst.msk [vmem:[#allocation2] sm:$0xff] %vm21_vm1, %v3232_v3  ;;  %3216 = vmatprep.subr.msk.bf16.mxu1 %vm225_vm0, %v3266_v0  ;;  %v227_v4 = vsel %vm225_vm0, %v3266_v0, 0  ;;  %v2556_v7 = vld [vmem:[%s4414_s0 + $0x198] sm:$0xff] }
   0x3   :  { %25 = vst.msk [vmem:[#allocation2 + $0x10] sm:$0xff] %vm21_vm1, %v3232_v3  ;;  %27 = vst.msk [vmem:[#allocation2 + $0x20] sm:$0xff] %vm21_vm1, %v3232_v3  ;;  %v184_v5 = vpack.c.bf16 %v3276_v2, %v3271_v1  ;;  %v368_v8 = vld [vmem:[%s4413_s1] sm:$0x3]  ;;  %2853 = vmatpush3.bf16.msra.mxu1 %v227_v4  ;;  %v185_v9 = vpack.c.bf16 %v2556_v7, %v2555_v6  ;;  %v2558_v11 = vld [vmem:[%s4414_s0 + $0x1a8] sm:$0xff] }
   0x4   :  { %31 = vst.msk [vmem:[#allocation2 + $0x40] sm:$0xff] %vm21_vm1, %v3232_v3  ;;  %33 = vst.msk [vmem:[#allocation2 + $0x50] sm:$0xff] %vm21_vm1, %v3232_v3  ;;  %v2557_v10 = vld [vmem:[%s4414_s0 + $0x1a0] sm:$0xff]  ;;  %3217 = vmatprep.subr.msk.bf16.mxu1 %vm225_vm0, %v368_v8  ;;  %v401_v12 = vsel %vm225_vm0, %v368_v8, 0  ;;  %v2559_v14 = vld [vmem:[%s4414_s0 + $0x1b0] sm:$0xff] }
   0x5   :  { %35 = vst.msk [vmem:[#allocation2 + $0x60] sm:$0xff] %vm21_vm1, %v3232_v3  ;;  %37 = vst.msk [vmem:[#allocation2 + $0x70] sm:$0xff] %vm21_vm1, %v3232_v3  ;;  %2854 = vmatprep.mubr.msk.bf16.mxu1 %vm200_vm2, %v184_v5  ;;  %v186_v13 = vpack.c.bf16 %v2558_v11, %v2557_v10  ;;  %v2560_v15 = vld [vmem:[%s4414_s0 + $0x1b8] sm:$0xff]  ;;  %v2561_v16 = vld [vmem:[%s4414_s0 + $0x1c0] sm:$0xff] }
   0x6   :  { %39 = vst.msk [vmem:[#allocation2 + $0x80] sm:$0xff] %vm21_vm1, %v3232_v3  ;;  %41 = vst.msk [vmem:[#allocation2 + $0x90] sm:$0xff] %vm21_vm1, %v3232_v3  ;;  %2855 = vmatmul.mubr.msk.bf16.vlgmr.msra.gmra.mrb[0].mxu1 %vm200_vm2, %v185_v9  ;;  %v2562_v17 = vld [vmem:[%s4414_s0 + $0x1c8] sm:$0xff]  ;;  %v542_v18 = vld [vmem:[%s4413_s1] sm:$0x3]  ;;  %v187_v19 = vpack.c.bf16 %v2560_v15, %v2559_v14 }
   0x7   :  { %43 = vst.msk [vmem:[#allocation2 + $0xa0] sm:$0xff] %vm21_vm1, %v3232_v3  ;;  %45 = vst.msk [vmem:[#allocation2 + $0xb0] sm:$0xff] %vm21_vm1, %v3232_v3  ;;  %2871 = vmatpush3.bf16.msra.mxu1 %v401_v12  ;;  %2858 = vmatprep.mubr.msk.bf16.mxu1 %vm200_vm2, %v186_v13  ;;  %v188_v20 = vpack.c.bf16 %v2562_v17, %v2561_v16  ;;  %v2563_v21 = vld [vmem:[%s4414_s0 + $0x1d0] sm:$0xff]  ;;  %v2564_v22 = vld [vmem:[%s4414_s0 + $0x1d8] sm:$0xff]  ;;  %v575_v39 = vsel %vm225_vm0, %v542_v18, 0 }
   0x8   :  { %47 = vst.msk [vmem:[#allocation2 + $0xc0] sm:$0xff] %vm21_vm1, %v3232_v3  ;;  %49 = vst.msk [vmem:[#allocation2 + $0xd0] sm:$0xff] %vm21_vm1, %v3232_v3  ;;  %3218 = vmatprep.subr.msk.bf16.mxu1 %vm225_vm0, %v542_v18  ;;  %v2565_v23 = vld [vmem:[%s4414_s0 + $0x1e0] sm:$0xff]  ;;  %v2566_v24 = vld [vmem:[%s4414_s0 + $0x1e8] sm:$0xff]  ;;  %v189_v25 = vpack.c.bf16 %v2564_v22, %v2563_v21 }
   0x9   :  { %51 = vst.msk [vmem:[#allocation2 + $0xe0] sm:$0xff] %vm21_vm1, %v3232_v3  ;;  %53 = vst.msk [vmem:[#allocation2 + $0xf0] sm:$0xff] %vm21_vm1, %v3232_v3  ;;  %v190_v26 = vpack.c.bf16 %v2566_v24, %v2565_v23  ;;  %v2567_v27 = vld [vmem:[%s4414_s0 + $0x1f0] sm:$0xff]  ;;  %v2568_v28 = vld [vmem:[%s4414_s0 + $0x1f8] sm:$0xff] }
   0xa   :  { %55 = vst.msk [vmem:[#allocation2 + $0x100] sm:$0xff] %vm21_vm1, %v3232_v3  ;;  %57 = vst.msk [vmem:[#allocation2 + $0x110] sm:$0xff] %vm21_vm1, %v3232_v3  ;;  %v2578_v29 = vld [vmem:[%s4414_s0 + $0x100] sm:$0xff]  ;;  %v2579_v30 = vld [vmem:[%s4414_s0 + $0x108] sm:$0xff]  ;;  %v191_v31 = vpack.c.bf16 %v2568_v28, %v2567_v27 }
   0xb   :  { %59 = vst.msk [vmem:[#allocation3] sm:$0xff] %vm21_vm1, %v3232_v3  ;;  %61 = vst.msk [vmem:[#allocation3 + $0x10] sm:$0xff] %vm21_vm1, %v3232_v3  ;;  %v360_v32 = vpack.c.bf16 %v2579_v30, %v2578_v29  ;;  %v2580_v33 = vld [vmem:[%s4414_s0 + $0x110] sm:$0xff]  ;;  %v2581_v34 = vld [vmem:[%s4414_s0 + $0x118] sm:$0xff] }
   0xc   :  { %63 = vst.msk [vmem:[#allocation3 + $0x20] sm:$0xff] %vm21_vm1, %v3232_v3  ;;  %65 = vst.msk [vmem:[#allocation3 + $0x30] sm:$0xff] %vm21_vm1, %v3232_v3  ;;  %v2582_v35 = vld [vmem:[%s4414_s0 + $0x120] sm:$0xff]  ;;  %v2583_v36 = vld [vmem:[%s4414_s0 + $0x128] sm:$0xff]  ;;  %v361_v37 = vpack.c.bf16 %v2581_v34, %v2580_v33 }
   0xd   :  { %67 = vst.msk [vmem:[#allocation3 + $0x40] sm:$0xff] %vm21_vm1, %v3232_v3  ;;  %69 = vst.msk [vmem:[#allocation3 + $0x50] sm:$0xff] %vm21_vm1, %v3232_v3  ;;  %v362_v38 = vpack.c.bf16 %v2583_v36, %v2582_v35  ;;  %v714_v40 = vld [vmem:[%s4413_s1] sm:$0x3]  ;;  %v2584_v41 = vld [vmem:[%s4414_s0 + $0x130] sm:$0xff] }
   0xe   :  { %71 = vst.msk [vmem:[#allocation3 + $0x60] sm:$0xff] %vm21_vm1, %v3232_v3  ;;  %73 = vst.msk [vmem:[#allocation3 + $0x70] sm:$0xff] %vm21_vm1, %v3232_v3  ;;  %2859 = vmatmul.mubr.msk.bf16.gmra.mrb[4].mxu1 %vm200_vm2, %v187_v19  ;;  %v2585_v42 = vld [vmem:[%s4414_s0 + $0x138] sm:$0xff]  ;;  %v2586_v43 = vld [vmem:[%s4414_s0 + $0x140] sm:$0xff]  ;;  %v747_v1 = vsel %vm225_vm0, %v714_v40, 0 }
   0xf   :  { %75 = vst.msk [vmem:[#allocation3 + $0x80] sm:$0xff] %vm21_vm1, %v3232_v3  ;;  %77 = vst.msk [vmem:[#allocation3 + $0x90] sm:$0xff] %vm21_vm1, %v3232_v3  ;;  %2862 = vmatprep.mubr.msk.bf16.mxu1 %vm200_vm2, %v188_v20  ;;  %v2587_v44 = vld [vmem:[%s4414_s0 + $0x148] sm:$0xff]  ;;  %v363_v45 = vpack.c.bf16 %v2585_v42, %v2584_v41  ;;  %v2588_v47 = vld [vmem:[%s4414_s0 + $0x150] sm:$0xff] }
  0x10   :  { %79 = vst.msk [vmem:[#allocation3 + $0xa0] sm:$0xff] %vm21_vm1, %v3232_v3  ;;  %81 = vst.msk [vmem:[#allocation3 + $0xb0] sm:$0xff] %vm21_vm1, %v3232_v3  ;;  %v364_v46 = vpack.c.bf16 %v2587_v44, %v2586_v43  ;;  %v2589_v48 = vld [vmem:[%s4414_s0 + $0x158] sm:$0xff]  ;;  %v2590_v49 = vld [vmem:[%s4414_s0 + $0x160] sm:$0xff] }
  0x11   :  { %83 = vst.msk [vmem:[#allocation3 + $0xc0] sm:$0xff] %vm21_vm1, %v3232_v3  ;;  %85 = vst.msk [vmem:[#allocation3 + $0xd0] sm:$0xff] %vm21_vm1, %v3232_v3  ;;  %v2591_v50 = vld [vmem:[%s4414_s0 + $0x168] sm:$0xff]  ;;  %v365_v51 = vpack.c.bf16 %v2589_v48, %v2588_v47  ;;  %v2592_v53 = vld [vmem:[%s4414_s0 + $0x170] sm:$0xff] }
  0x12   :  { %87 = vst.msk [vmem:[#allocation3 + $0xe0] sm:$0xff] %vm21_vm1, %v3232_v3  ;;  %89 = vst.msk [vmem:[#allocation3 + $0xf0] sm:$0xff] %vm21_vm1, %v3232_v3  ;;  %v366_v52 = vpack.c.bf16 %v2591_v50, %v2590_v49  ;;  %v2593_v54 = vld [vmem:[%s4414_s0 + $0x178] sm:$0xff]  ;;  %v2603_v55 = vld [vmem:[%s4414_s0 + $0x80] sm:$0xff] }
  0x13   :  { %91 = vst.msk [vmem:[#allocation3 + $0x100] sm:$0xff] %vm21_vm1, %v3232_v3  ;;  %93 = vst.msk [vmem:[#allocation3 + $0x110] sm:$0xff] %vm21_vm1, %v3232_v3  ;;  %v2604_v56 = vld [vmem:[%s4414_s0 + $0x88] sm:$0xff]  ;;  %v367_v57 = vpack.c.bf16 %v2593_v54, %v2592_v53  ;;  %v2605_v59 = vld [vmem:[%s4414_s0 + $0x90] sm:$0xff] }
  0x14   :  { %95 = vst.msk [vmem:[#allocation4] sm:$0xff] %vm21_vm1, %v3232_v3  ;;  %97 = vst.msk [vmem:[#allocation4 + $0x10] sm:$0xff] %vm21_vm1, %v3232_v3  ;;  %v534_v58 = vpack.c.bf16 %v2604_v56, %v2603_v55  ;;  %v2606_v60 = vld [vmem:[%s4414_s0 + $0x98] sm:$0xff]  ;;  %v2607_v61 = vld [vmem:[%s4414_s0 + $0xa0] sm:$0xff] }
  0x15   :  { %99 = vst.msk [vmem:[#allocation4 + $0x20] sm:$0xff] %vm21_vm1, %v3232_v3  ;;  %101 = vst.msk [vmem:[#allocation4 + $0x30] sm:$0xff] %vm21_vm1, %v3232_v3  ;;  %v2608_v62 = vld [vmem:[%s4414_s0 + $0xa8] sm:$0xff]  ;;  %v535_v63 = vpack.c.bf16 %v2606_v60, %v2605_v59  ;;  %v2609_v2 = vld [vmem:[%s4414_s0 + $0xb0] sm:$0xff] }
  0x16   :  { %103 = vst.msk [vmem:[#allocation4 + $0x40] sm:$0xff] %vm21_vm1, %v3232_v3  ;;  %105 = vst.msk [vmem:[#allocation4 + $0x50] sm:$0xff] %vm21_vm1, %v3232_v3  ;;  %2863 = vmatmul.mubr.msk.bf16.gmra.mrb[8].mxu1 %vm200_vm2, %v189_v25  ;;  %v536_v0 = vpack.c.bf16 %v2608_v62, %v2607_v61  ;;  %v2611_v4 = vld [vmem:[%s4414_s0 + $0xc0] sm:$0xff]  ;;  %v2612_v5 = vld [vmem:[%s4414_s0 + $0xc8] sm:$0xff] }
  0x17   :  { %107 = vst.msk [vmem:[#allocation4 + $0x60] sm:$0xff] %vm21_vm1, %v3232_v3  ;;  %109 = vst.msk [vmem:[#allocation4 + $0x70] sm:$0xff] %vm21_vm1, %v3232_v3  ;;  %2866 = vmatprep.mubr.msk.bf16.mxu1 %vm200_vm2, %v190_v26  ;;  %v538_v7 = vpack.c.bf16 %v2612_v5, %v2611_v4  ;;  %v2613_v8 = vld [vmem:[%s4414_s0 + $0xd0] sm:$0xff]  ;;  %v2614_v9 = vld [vmem:[%s4414_s0 + $0xd8] sm:$0xff] }
  0x18   :  { %113 = vst.msk [vmem:[#allocation4 + $0x90] sm:$0xff] %vm21_vm1, %v3232_v3  ;;  %115 = vst.msk [vmem:[#allocation4 + $0xa0] sm:$0xff] %vm21_vm1, %v3232_v3  ;;  %v2615_v10 = vld [vmem:[%s4414_s0 + $0xe0] sm:$0xff]  ;;  %v2616_v11 = vld [vmem:[%s4414_s0 + $0xe8] sm:$0xff]  ;;  %v539_v12 = vpack.c.bf16 %v2614_v9, %v2613_v8 }
  0x19   :  { %117 = vst.msk [vmem:[#allocation4 + $0xb0] sm:$0xff] %vm21_vm1, %v3232_v3  ;;  %119 = vst.msk [vmem:[#allocation4 + $0xc0] sm:$0xff] %vm21_vm1, %v3232_v3  ;;  %v540_v13 = vpack.c.bf16 %v2616_v11, %v2615_v10  ;;  %v2617_v14 = vld [vmem:[%s4414_s0 + $0xf0] sm:$0xff]  ;;  %v2618_v15 = vld [vmem:[%s4414_s0 + $0xf8] sm:$0xff] }
  0x1a   :  { %121 = vst.msk [vmem:[#allocation4 + $0xd0] sm:$0xff] %vm21_vm1, %v3232_v3  ;;  %123 = vst.msk [vmem:[#allocation4 + $0xe0] sm:$0xff] %vm21_vm1, %v3232_v3  ;;  %v690_v16 = vld [vmem:[%s4414_s0] sm:$0xff]  ;;  %v691_v17 = vld [vmem:[%s4414_s0 + $0x8] sm:$0xff]  ;;  %v541_v18 = vpack.c.bf16 %v2618_v15, %v2617_v14 }
  0x1b   :  { %125 = vst.msk [vmem:[#allocation4 + $0xf0] sm:$0xff] %vm21_vm1, %v3232_v3  ;;  %127 = vst.msk [vmem:[#allocation4 + $0x100] sm:$0xff] %vm21_vm1, %v3232_v3  ;;  %v706_v19 = vpack.c.bf16 %v691_v17, %v690_v16  ;;  %v692_v20 = vld [vmem:[%s4414_s0 + $0x10] sm:$0xff]  ;;  %v693_v21 = vld [vmem:[%s4414_s0 + $0x18] sm:$0xff] }
  0x1c   :  { %131 = vst.msk [vmem:[#allocation5] sm:$0xff] %vm21_vm1, %v3232_v3  ;;  %133 = vst.msk [vmem:[#allocation5 + $0x10] sm:$0xff] %vm21_vm1, %v3232_v3  ;;  %v694_v22 = vld [vmem:[%s4414_s0 + $0x20] sm:$0xff]  ;;  %v695_v23 = vld [vmem:[%s4414_s0 + $0x28] sm:$0xff]  ;;  %v707_v24 = vpack.c.bf16 %v693_v21, %v692_v20 }
  0x1d   :  { %135 = vst.msk [vmem:[#allocation5 + $0x20] sm:$0xff] %vm21_vm1, %v3232_v3  ;;  %137 = vst.msk [vmem:[#allocation5 + $0x30] sm:$0xff] %vm21_vm1, %v3232_v3  ;;  %v708_v25 = vpack.c.bf16 %v695_v23, %v694_v22  ;;  %v3687_v26 = vld [vmem:[%s4415_s3 + $0x10] sm:$0xff]   ;;  %v697_v28 = vld [vmem:[%s4414_s0 + $0x38] sm:$0xff] }
  0x1e   :  { %139 = vst.msk [vmem:[#allocation5 + $0x40] sm:$0xff] %vm21_vm1, %v3232_v3  ;;  %141 = vst.msk [vmem:[#allocation5 + $0x50] sm:$0xff] %vm21_vm1, %v3232_v3  ;;  %2867 = vmatmul.mubr.msk.bf16.gmra.mrb[12].mxu1 %vm200_vm2, %v191_v31  ;;  %v696_v27 = vld [vmem:[%s4414_s0 + $0x30] sm:$0xff]  ;;  %2960 = vmatprep.subr.bf16.mxu0 %v3687_v26  ;;  %v698_v29 = vld [vmem:[%s4414_s0 + $0x40] sm:$0xff] }
  0x1f   :  { %143 = vst.msk [vmem:[#allocation5 + $0x60] sm:$0xff] %vm21_vm1, %v3232_v3  ;;  %145 = vst.msk [vmem:[#allocation5 + $0x70] sm:$0xff] %vm21_vm1, %v3232_v3  ;;  %2872 = vmatprep.mubr.msk.bf16.mxu1 %vm200_vm2, %v360_v32  ;;  %v699_v30 = vld [vmem:[%s4414_s0 + $0x48] sm:$0xff]  ;;  %2961 = vmatpush3.bf16.msra.mxu0 %v3687_v26  ;;  %v709_v31 = vpack.c.bf16 %v697_v28, %v696_v27  ;;  %v700_v33 = vld [vmem:[%s4414_s0 + $0x50] sm:$0xff] }
  0x20   :  { %149 = vst.msk [vmem:[#allocation5 + $0x90] sm:$0xff] %vm21_vm1, %v3232_v3  ;;  %151 = vst.msk [vmem:[#allocation5 + $0xa0] sm:$0xff] %vm21_vm1, %v3232_v3  ;;  %v710_v32 = vpack.c.bf16 %v699_v30, %v698_v29  ;;  %v701_v34 = vld [vmem:[%s4414_s0 + $0x58] sm:$0xff]  ;;  %v702_v35 = vld [vmem:[%s4414_s0 + $0x60] sm:$0xff] }
  0x21   :  { %153 = vst.msk [vmem:[#allocation5 + $0xb0] sm:$0xff] %vm21_vm1, %v3232_v3  ;;  %155 = vst.msk [vmem:[#allocation5 + $0xc0] sm:$0xff] %vm21_vm1, %v3232_v3  ;;  %v703_v36 = vld [vmem:[%s4414_s0 + $0x68] sm:$0xff]  ;;  %v3223_v43 = vld [vmem:[%s4415_s3 + $0x18] sm:$0xff]  }
  0x22   :  { %157 = vst.msk [vmem:[#allocation5 + $0xd0] sm:$0xff] %vm21_vm1, %v3232_v3  ;;  %159 = vst.msk [vmem:[#allocation5 + $0xe0] sm:$0xff] %vm21_vm1, %v3232_v3  ;;  %v3222_v42 = vld [vmem:[%s4415_s3 + $0x8] sm:$0xff]   ;;  %2978 = vmatprep.subr.bf16.mxu0 %v3223_v43  ;;  %v3737_v44 = vld [vmem:[%s4415_s3] sm:$0xff]  }
  0x23   :  { %161 = vst.msk [vmem:[#allocation5 + $0xf0] sm:$0xff] %vm21_vm1, %v3232_v3  ;;  %163 = vst.msk [vmem:[#allocation5 + $0x100] sm:$0xff] %vm21_vm1, %v3232_v3  ;;  %v3788_v11 = vld [vmem:[%s4415_s3 + $0x20] sm:$0xff]  }
  0x24   :  { %30 = vst.msk [vmem:[#allocation2 + $0x38] sm:$0x1] %vm23_vm3, %v3232_v3  ;;  %24 = vst.msk [vmem:[#allocation2 + $0x8] sm:$0x1] %vm23_vm3, %v3232_v3 }
  0x25   :  { %26 = vst.msk [vmem:[#allocation2 + $0x18] sm:$0x1] %vm23_vm3, %v3232_v3  ;;  %28 = vst.msk [vmem:[#allocation2 + $0x28] sm:$0x1] %vm23_vm3, %v3232_v3 }
  0x26   :  { %32 = vst.msk [vmem:[#allocation2 + $0x48] sm:$0x1] %vm23_vm3, %v3232_v3  ;;  %34 = vst.msk [vmem:[#allocation2 + $0x58] sm:$0x1] %vm23_vm3, %v3232_v3  ;;  %2873 = vmatmul.mubr.msk.bf16.vlgmr.msra.gmra.mrb[16].mxu1 %vm200_vm2, %v361_v37  ;;  %v711_v37 = vpack.c.bf16 %v701_v34, %v700_v33 }
  0x27   :  { %36 = vst.msk [vmem:[#allocation2 + $0x68] sm:$0x1] %vm23_vm3, %v3232_v3  ;;  %38 = vst.msk [vmem:[#allocation2 + $0x78] sm:$0x1] %vm23_vm3, %v3232_v3  ;;  %2889 = vmatpush3.bf16.msra.mxu1 %v575_v39  ;;  %2876 = vmatprep.mubr.msk.bf16.mxu1 %vm200_vm2, %v362_v38  ;;  %v712_v38 = vpack.c.bf16 %v703_v36, %v702_v35  ;;  %v704_v39 = vld [vmem:[%s4414_s0 + $0x70] sm:$0xff] }
  0x28   :  { %40 = vst.msk [vmem:[#allocation2 + $0x88] sm:$0x1] %vm23_vm3, %v3232_v3  ;;  %42 = vst.msk [vmem:[#allocation2 + $0x98] sm:$0x1] %vm23_vm3, %v3232_v3  ;;  %3219 = vmatprep.subr.msk.bf16.mxu1 %vm225_vm0, %v714_v40  ;;  %v705_v40 = vld [vmem:[%s4414_s0 + $0x78] sm:$0xff] }
  0x29   :  { %44 = vst.msk [vmem:[#allocation2 + $0xa8] sm:$0x1] %vm23_vm3, %v3232_v3  ;;  %46 = vst.msk [vmem:[#allocation2 + $0xb8] sm:$0x1] %vm23_vm3, %v3232_v3  ;;  %v713_v41 = vpack.c.bf16 %v705_v40, %v704_v39 }
  0x2a   :  { %48 = vst.msk [vmem:[#allocation2 + $0xc8] sm:$0x1] %vm23_vm3, %v3232_v3  ;;  %50 = vst.msk [vmem:[#allocation2 + $0xd8] sm:$0x1] %vm23_vm3, %v3232_v3 }
  0x2b   :  { %52 = vst.msk [vmem:[#allocation2 + $0xe8] sm:$0x1] %vm23_vm3, %v3232_v3  ;;  %54 = vst.msk [vmem:[#allocation2 + $0xf8] sm:$0x1] %vm23_vm3, %v3232_v3 }
  0x2c   :  { %56 = vst.msk [vmem:[#allocation2 + $0x108] sm:$0x1] %vm23_vm3, %v3232_v3  ;;  %58 = vst.msk [vmem:[#allocation2 + $0x118] sm:$0x1] %vm23_vm3, %v3232_v3 }
  0x2d   :  { %96 = vst.msk [vmem:[#allocation4 + $0x8] sm:$0x1] %vm23_vm3, %v3232_v3  ;;  %98 = vst.msk [vmem:[#allocation4 + $0x18] sm:$0x1] %vm23_vm3, %v3232_v3 }
  0x2e   :  { %100 = vst.msk [vmem:[#allocation4 + $0x28] sm:$0x1] %vm23_vm3, %v3232_v3  ;;  %102 = vst.msk [vmem:[#allocation4 + $0x38] sm:$0x1] %vm23_vm3, %v3232_v3  ;;  %2877 = vmatmul.mubr.msk.bf16.gmra.mrb[20].mxu1 %vm200_vm2, %v363_v45  ;;  %v3743_v45 = vld [vmem:[%s4416_s2] ss:$0 sm:$0xff] }
  0x2f   :  { %104 = vst.msk [vmem:[#allocation4 + $0x48] sm:$0x1] %vm23_vm3, %v3232_v3  ;;  %106 = vst.msk [vmem:[#allocation4 + $0x58] sm:$0x1] %vm23_vm3, %v3232_v3  ;;  %2880 = vmatprep.mubr.msk.bf16.mxu1 %vm200_vm2, %v364_v46 }
  0x30   :  { %108 = vst.msk [vmem:[#allocation4 + $0x68] sm:$0x1] %vm23_vm3, %v3232_v3  ;;  %110 = vst.msk [vmem:[#allocation4 + $0x78] sm:$0x1] %vm23_vm3, %v3232_v3 }
  0x31   :  { %114 = vst.msk [vmem:[#allocation4 + $0x98] sm:$0x1] %vm23_vm3, %v3232_v3  ;;  %116 = vst.msk [vmem:[#allocation4 + $0xa8] sm:$0x1] %vm23_vm3, %v3232_v3 }
  0x32   :  { %118 = vst.msk [vmem:[#allocation4 + $0xb8] sm:$0x1] %vm23_vm3, %v3232_v3  ;;  %120 = vst.msk [vmem:[#allocation4 + $0xc8] sm:$0x1] %vm23_vm3, %v3232_v3 }
  0x33   :  { %122 = vst.msk [vmem:[#allocation4 + $0xd8] sm:$0x1] %vm23_vm3, %v3232_v3  ;;  %124 = vst.msk [vmem:[#allocation4 + $0xe8] sm:$0x1] %vm23_vm3, %v3232_v3 }
  0x34   :  { %126 = vst.msk [vmem:[#allocation4 + $0xf8] sm:$0x1] %vm23_vm3, %v3232_v3  ;;  %128 = vst.msk [vmem:[#allocation4 + $0x108] sm:$0x1] %vm23_vm3, %v3232_v3  ;;  %v2610_v3 = vld [vmem:[%s4414_s0 + $0xb8] sm:$0xff] }
  0x35   :  { %v537_v6 = vpack.c.bf16 %v2610_v3, %v2609_v2 }
  0x36   :  { %2881 = vmatmul.mubr.msk.bf16.gmra.mrb[24].mxu1 %vm200_vm2, %v365_v51 }
  0x37   :  { %2884 = vmatprep.mubr.msk.bf16.mxu1 %vm200_vm2, %v366_v52 }
  0x3e   :  { %2885 = vmatmul.mubr.msk.bf16.gmra.mrb[28].mxu1 %vm200_vm2, %v367_v57  ;;  %v1169_v57 = vld [vmem:[#allocation2 + $0x1] sm:$0xff] }
  0x3f   :  { %2890 = vmatprep.mubr.msk.bf16.mxu1 %vm200_vm2, %v534_v58 }
  0x46   :  { %2891 = vmatmul.mubr.msk.bf16.vlgmr.msra.gmra.mrb[32].mxu1 %vm200_vm2, %v535_v63 }
  0x47   :  { %2907 = vmatpush3.bf16.msra.mxu1 %v747_v1  ;;  %2894 = vmatprep.mubr.msk.bf16.mxu1 %vm200_vm2, %v536_v0 }
  0x48   :  { %2924 = vmatprep.subr.bf16.mxu1 %v3222_v42 }
  0x4e   :  { %2895 = vmatmul.mubr.msk.bf16.gmra.mrb[36].mxu1 %vm200_vm2, %v537_v6 }
  0x4f   :  { %2898 = vmatprep.mubr.msk.bf16.mxu1 %vm200_vm2, %v538_v7 }
  0x56   :  { %2899 = vmatmul.mubr.msk.bf16.gmra.mrb[40].mxu1 %vm200_vm2, %v539_v12 }
  0x57   :  { %2902 = vmatprep.mubr.msk.bf16.mxu1 %vm200_vm2, %v540_v13 }
  0x5e   :  { %2903 = vmatmul.mubr.msk.bf16.gmra.mrb[44].mxu1 %vm200_vm2, %v541_v18 }
  0x5f   :  { %2908 = vmatprep.mubr.msk.bf16.mxu1 %vm200_vm2, %v706_v19 }
  0x66   :  { %2909 = vmatmul.mubr.msk.bf16.vlgmr.msra.gmra.mrb[48].mxu1 %vm200_vm2, %v707_v24 }
  0x67   :  { %2912 = vmatprep.mubr.msk.bf16.mxu1 %vm200_vm2, %v708_v25  ;;  %2925 = vmatpush3.bf16.msra.mxu1 %v3222_v42 }
  0x68   :  { %2942 = vmatprep.subr.bf16.mxu1 %v3737_v44 }
  0x6e   :  { %2913 = vmatmul.mubr.msk.bf16.gmra.mrb[52].mxu1 %vm200_vm2, %v709_v31 }
  0x6f   :  { %2916 = vmatprep.mubr.msk.bf16.mxu1 %vm200_vm2, %v710_v32 }
  0x76   :  { %2917 = vmatmul.mubr.msk.bf16.gmra.mrb[56].mxu1 %vm200_vm2, %v711_v37 }
  0x77   :  { %2920 = vmatprep.mubr.msk.bf16.mxu1 %vm200_vm2, %v712_v38 }
  0x7e   :  { %2921 = vmatmul.mubr.msk.bf16.gmra.mrb[60].mxu1 %vm200_vm2, %v713_v41 }
  0xd9   :  { %v2856_v46 = vpop.f32.mrb[0].mxu1 }
  0xda   :  { %v272_v47 = vadd.f32 %v2856_v46, %v3743_v45  ;;  %v263_v48 = vpop.f32.mrb[1].mxu1 }
  0xdb   :  { %v264_v49 = vadd.f32 %v3743_v45, %v263_v48  ;;  %v2857_v50 = vpop.f32.mrb[2].mxu1 }
  0xdc   :  { %329 = vst.msk [vmem:[#allocation2 + $0x31] sm:$0xff] %vm21_vm1, %v272_v47  ;;  %v275_v51 = vadd.f32 %v2857_v50, %v3743_v45  ;;  %v266_v52 = vpop.f32.mrb[3].mxu1 }
  0xdd   :  { %327 = vst.msk [vmem:[#allocation2 + $0x11] sm:$0xff] %vm21_vm1, %v264_v49  ;;  %v267_v53 = vadd.f32 %v3743_v45, %v266_v52 }
  0xde   :  { %330 = vst.msk [vmem:[#allocation2 + $0x41] sm:$0xff] %vm21_vm1, %v275_v51 }
  0xdf   :  { %328 = vst.msk [vmem:[#allocation2 + $0x21] sm:$0xff] %vm21_vm1, %v267_v53  ;;  %v862_v53 = vld [vmem:[#allocation2] sm:$0xff] }
  0xe1   :  { %v2860_v54 = vpop.f32.mrb[4].mxu1 }
  0xe2   :  { %v288_v55 = vadd.f32 %v2860_v54, %v3743_v45  ;;  %v279_v56 = vpop.f32.mrb[5].mxu1 }
  0xe3   :  { %v280_v58 = vadd.f32 %v3743_v45, %v279_v56  ;;  %v2861_v59 = vpop.f32.mrb[6].mxu1  ;;  %v3759_v63 = vld [vmem:[#allocation2 + $0x31] sm:$0xff] }
  0xe4   :  { %333 = vst.msk [vmem:[#allocation2 + $0x71] sm:$0xff] %vm21_vm1, %v288_v55  ;;  %v291_v60 = vadd.f32 %v2861_v59, %v3743_v45  ;;  %v282_v61 = vpop.f32.mrb[7].mxu1  ;;  %v3757_v62 = vld [vmem:[#allocation2 + $0x11] sm:$0xff] }
  0xe5   :  { %331 = vst.msk [vmem:[#allocation2 + $0x51] sm:$0xff] %vm21_vm1, %v280_v58  ;;  %v283_v0 = vadd.f32 %v3743_v45, %v282_v61  ;;  %v1185_v1 = vpack.c.bf16 %v3757_v62, %v1169_v57  ;;  %v3764_v2 = vld [vmem:[#allocation2 + $0x41] sm:$0xff]  ;;  %v3766_v3 = vld [vmem:[#allocation2 + $0x30] sm:$0xff] }
  0xe6   :  { %v3768_v4 = vld [vmem:[#allocation2 + $0x40] sm:$0xff]  ;;  %334 = vst.msk [vmem:[#allocation2 + $0x81] sm:$0xff] %vm21_vm1, %v291_v60  ;;  %v3773_v6 = vld [vmem:[#allocation2 + $0x10] sm:$0xff] }
  0xe7   :  { %v3771_v5 = vld [vmem:[#allocation2 + $0x21] sm:$0xff]  ;;  %v1866_v8 = vpack.c.bf16 %v3768_v4, %v3766_v3  ;;  %332 = vst.msk [vmem:[#allocation2 + $0x61] sm:$0xff] %vm21_vm1, %v283_v0  ;;  %2962 = vmatprep.mubr.msk.bf16.mxu0 %vm21_vm1, %v1185_v1 }
  0xe8   :  { %v3775_v7 = vld [vmem:[#allocation2 + $0x20] sm:$0xff]  ;;  %v1186_v10 = vpack.c.bf16 %v3759_v63, %v3771_v5 }
  0xe9   :  { %v1865_v12 = vpack.c.bf16 %v3775_v7, %v3773_v6  ;;  %v2864_v14 = vpop.f32.mrb[8].mxu1 }
  0xea   :  { %2963 = vmatmul.mubr.msk.bf16.vlgmr.msra.gmra.mrb[0].mxu0 %vm21_vm1, %v1186_v10  ;;  %v304_v15 = vadd.f32 %v2864_v14, %v3743_v45  ;;  %v295_v16 = vpop.f32.mrb[9].mxu1 }
  0xeb   :  { %2979 = vmatpush3.bf16.msra.mxu0 %v3223_v43  ;;  %v296_v17 = vadd.f32 %v3743_v45, %v295_v16  ;;  %v2865_v18 = vpop.f32.mrb[10].mxu1  ;;  %v3806_v24 = vld [vmem:[#allocation2 + $0x71] sm:$0xff] }
  0xec   :  { %2996 = vmatprep.subr.bf16.mxu0 %v3788_v11  ;;  %337 = vst.msk [vmem:[#allocation2 + $0xc1] sm:$0xff] %vm21_vm1, %v304_v15  ;;  %v307_v19 = vadd.f32 %v2865_v18, %v3743_v45  ;;  %v298_v20 = vpop.f32.mrb[11].mxu1  ;;  %v3800_v21 = vld [vmem:[#allocation2 + $0x51] sm:$0xff] }
  0xed   :  { %335 = vst.msk [vmem:[#allocation2 + $0xa1] sm:$0xff] %vm21_vm1, %v296_v17  ;;  %v299_v22 = vadd.f32 %v3743_v45, %v298_v20  ;;  %v1187_v23 = vpack.c.bf16 %v3800_v21, %v3764_v2  ;;  %v3811_v27 = vld [vmem:[#allocation2 + $0x50] sm:$0xff]  ;;  %v888_v20 = vld [vmem:[#allocation3] sm:$0xff] }
  0xee   :  { %338 = vst.msk [vmem:[#allocation2 + $0xd1] sm:$0xff] %vm21_vm1, %v307_v19  ;;  %v3809_v25 = vld [vmem:[#allocation2 + $0x61] sm:$0xff] }
  0xef   :  { %v3813_v28 = vld [vmem:[#allocation2 + $0x60] sm:$0xff]  ;;  %336 = vst.msk [vmem:[#allocation2 + $0xb1] sm:$0xff] %vm21_vm1, %v299_v22  ;;  %2966 = vmatprep.mubr.msk.bf16.mxu0 %vm21_vm1, %v1187_v23  ;;  %v1188_v29 = vpack.c.bf16 %v3806_v24, %v3809_v25 }
  0xf0   :  { %v1867_v30 = vpack.c.bf16 %v3813_v28, %v3811_v27 }
  0xf1   :  { %v2868_v32 = vpop.f32.mrb[12].mxu1 }
  0xf2   :  { %2967 = vmatmul.mubr.msk.bf16.gmra.mrb[4].mxu0 %vm21_vm1, %v1188_v29  ;;  %v320_v33 = vadd.f32 %v2868_v32, %v3743_v45  ;;  %v311_v34 = vpop.f32.mrb[13].mxu1 }
  0xf3   :  { %v312_v35 = vadd.f32 %v3743_v45, %v311_v34  ;;  %v2869_v36 = vpop.f32.mrb[14].mxu1  ;;  %v3828_v39 = vld [vmem:[#allocation2 + $0xc0] sm:$0xff] }
  0xf4   :  { %341 = vst.msk [vmem:[#allocation2 + $0x101] sm:$0xff] %vm21_vm1, %v320_v33  ;;  %v323_v37 = vadd.f32 %v2869_v36, %v3743_v45  ;;  %v314_v38 = vpop.f32.mrb[15].mxu1  ;;  %v3830_v40 = vld [vmem:[#allocation2 + $0xc1] sm:$0xff] }
  0xf5   :  { %339 = vst.msk [vmem:[#allocation2 + $0xe1] sm:$0xff] %vm21_vm1, %v312_v35  ;;  %v315_v41 = vadd.f32 %v3743_v45, %v314_v38  ;;  %v3834_v42 = vld [vmem:[#allocation2 + $0xa0] sm:$0xff]  ;;  %v3836_v43 = vld [vmem:[#allocation2 + $0xd0] sm:$0xff] }
  0xf6   :  { %v3838_v46 = vld [vmem:[#allocation2 + $0xd1] sm:$0xff]  ;;  %342 = vst.msk [vmem:[#allocation2 + $0x111] sm:$0xff] %vm21_vm1, %v323_v37  ;;  %v3843_v48 = vld [vmem:[#allocation2 + $0xa1] sm:$0xff]  ;;  %v1870_v50 = vpack.c.bf16 %v3836_v43, %v3828_v39 }
  0xf7   :  { %v3841_v47 = vld [vmem:[#allocation2 + $0xb0] sm:$0xff]  ;;  %340 = vst.msk [vmem:[#allocation2 + $0xf1] sm:$0xff] %vm21_vm1, %v315_v41 }
  0xf8   :  { %v3845_v49 = vld [vmem:[#allocation2 + $0xb1] sm:$0xff]  ;;  %v1869_v52 = vpack.c.bf16 %v3841_v47, %v3834_v42 }
  0xf9   :  { %v2874_v54 = vpop.f32.mrb[16].mxu1 }
  0xfa   :  { %v446_v55 = vadd.f32 %v2874_v54, %v3743_v45  ;;  %v437_v56 = vpop.f32.mrb[17].mxu1 }
  0xfb   :  { %v438_v57 = vadd.f32 %v3743_v45, %v437_v56  ;;  %v2875_v58 = vpop.f32.mrb[18].mxu1 }
  0xfc   :  { %503 = vst.msk [vmem:[#allocation3 + $0x30] sm:$0xff] %vm21_vm1, %v446_v55  ;;  %v449_v59 = vadd.f32 %v2875_v58, %v3743_v45  ;;  %v440_v60 = vpop.f32.mrb[19].mxu1  ;;  %v3862_v0 = vld [vmem:[#allocation2 + $0xe0] sm:$0xff] }
  0xfd   :  { %501 = vst.msk [vmem:[#allocation3 + $0x10] sm:$0xff] %vm21_vm1, %v438_v57  ;;  %v441_v61 = vadd.f32 %v3743_v45, %v440_v60  ;;  %v3867_v10 = vld [vmem:[#allocation2 + $0xe1] sm:$0xff] }
  0xfe   :  { %504 = vst.msk [vmem:[#allocation3 + $0x40] sm:$0xff] %vm21_vm1, %v449_v59  ;;  %v3865_v1 = vld [vmem:[#allocation2 + $0xf0] sm:$0xff] }
  0xff   :  { %v3869_v14 = vld [vmem:[#allocation2 + $0xf1] sm:$0xff]  ;;  %502 = vst.msk [vmem:[#allocation3 + $0x20] sm:$0xff] %vm21_vm1, %v441_v61 }
 0x101   :  { %v2878_v17 = vpop.f32.mrb[20].mxu1 }
 0x102   :  { %v462_v18 = vadd.f32 %v2878_v17, %v3743_v45  ;;  %v453_v19 = vpop.f32.mrb[21].mxu1 }
 0x103   :  { %v454_v22 = vadd.f32 %v3743_v45, %v453_v19  ;;  %v2879_v23 = vpop.f32.mrb[22].mxu1  ;;  %v3885_v36 = vld [vmem:[#allocation3 + $0x30] sm:$0xff] }
 0x104   :  { %507 = vst.msk [vmem:[#allocation3 + $0x70] sm:$0xff] %vm21_vm1, %v462_v18  ;;  %v465_v29 = vadd.f32 %v2879_v23, %v3743_v45  ;;  %v456_v32 = vpop.f32.mrb[23].mxu1  ;;  %v3880_v33 = vld [vmem:[#allocation3 + $0x10] sm:$0xff] }
 0x105   :  { %505 = vst.msk [vmem:[#allocation3 + $0x50] sm:$0xff] %vm21_vm1, %v454_v22  ;;  %v457_v34 = vadd.f32 %v3743_v45, %v456_v32  ;;  %v904_v35 = vpack.c.bf16 %v3880_v33, %v888_v20  ;;  %v3887_v37 = vld [vmem:[#allocation3 + $0x40] sm:$0xff] }
 0x106   :  { %508 = vst.msk [vmem:[#allocation3 + $0x80] sm:$0xff] %vm21_vm1, %v465_v29  ;;  %v3890_v38 = vld [vmem:[#allocation3 + $0x20] sm:$0xff] }
 0x107   :  { %506 = vst.msk [vmem:[#allocation3 + $0x60] sm:$0xff] %vm21_vm1, %v457_v34  ;;  %2926 = vmatprep.mubr.msk.bf16.mxu1 %vm21_vm1, %v904_v35  ;;  %v905_v54 = vpack.c.bf16 %v3885_v36, %v3890_v38 }
 0x109   :  { %v2882_v56 = vpop.f32.mrb[24].mxu1  ;;  %2927 = vmatmul.mubr.msk.bf16.vlgmr.msra.gmra.mrb[64].mxu1 %vm21_vm1, %v905_v54  ;;  %v896_v54 = vld [vmem:[#allocation3 + $0x90] sm:$0xff] }
 0x10a   :  { %v478_v57 = vadd.f32 %v2882_v56, %v3743_v45  ;;  %v469_v58 = vpop.f32.mrb[25].mxu1  ;;  %2943 = vmatpush3.bf16.msra.mxu1 %v3737_v44 }
 0x10b   :  { %v470_v59 = vadd.f32 %v3743_v45, %v469_v58  ;;  %v2883_v60 = vpop.f32.mrb[26].mxu1  ;;  %3086 = vmatprep.subr.bf16.mxu1 %v3687_v26  ;;  %v3916_v22 = vld [vmem:[#allocation3 + $0x70] sm:$0xff] }
 0x10c   :  { %511 = vst.msk [vmem:[#allocation3 + $0xc0] sm:$0xff] %vm21_vm1, %v478_v57  ;;  %v481_v61 = vadd.f32 %v2883_v60, %v3743_v45  ;;  %v472_v17 = vpop.f32.mrb[27].mxu1  ;;  %v3907_v18 = vld [vmem:[#allocation3 + $0x50] sm:$0xff] }
 0x10d   :  { %509 = vst.msk [vmem:[#allocation3 + $0xa0] sm:$0xff] %vm21_vm1, %v470_v59  ;;  %v473_v19 = vadd.f32 %v3743_v45, %v472_v17  ;;  %v906_v20 = vpack.c.bf16 %v3907_v18, %v3887_v37 }
 0x10e   :  { %512 = vst.msk [vmem:[#allocation3 + $0xd0] sm:$0xff] %vm21_vm1, %v481_v61  ;;  %v3914_v44 = vld [vmem:[#allocation3 + $0x60] sm:$0xff] }
 0x10f   :  { %510 = vst.msk [vmem:[#allocation3 + $0xb0] sm:$0xff] %vm21_vm1, %v473_v19  ;;  %2930 = vmatprep.mubr.msk.bf16.mxu1 %vm21_vm1, %v906_v20  ;;  %v907_v23 = vpack.c.bf16 %v3916_v22, %v3914_v44 }
 0x111   :  { %v2886_v32 = vpop.f32.mrb[28].mxu1  ;;  %2931 = vmatmul.mubr.msk.bf16.gmra.mrb[68].mxu1 %vm21_vm1, %v907_v23 }
 0x112   :  { %v494_v34 = vadd.f32 %v2886_v32, %v3743_v45  ;;  %v485_v35 = vpop.f32.mrb[29].mxu1 }
 0x113   :  { %v486_v56 = vadd.f32 %v3743_v45, %v485_v35  ;;  %v2887_v57 = vpop.f32.mrb[30].mxu1  ;;  %v3934_v19 = vld [vmem:[#allocation3 + $0xc0] sm:$0xff] }
 0x114   :  { %515 = vst.msk [vmem:[#allocation3 + $0x100] sm:$0xff] %vm21_vm1, %v494_v34  ;;  %v497_v58 = vadd.f32 %v2887_v57, %v3743_v45  ;;  %v488_v59 = vpop.f32.mrb[31].mxu1  ;;  %v3929_v60 = vld [vmem:[#allocation3 + $0xa0] sm:$0xff] }
 0x115   :  { %513 = vst.msk [vmem:[#allocation3 + $0xe0] sm:$0xff] %vm21_vm1, %v486_v56  ;;  %v489_v61 = vadd.f32 %v3743_v45, %v488_v59  ;;  %v908_v17 = vpack.c.bf16 %v3929_v60, %v896_v54  ;;  %v3936_v20 = vld [vmem:[#allocation3 + $0xd0] sm:$0xff] }
 0x116   :  { %516 = vst.msk [vmem:[#allocation3 + $0x110] sm:$0xff] %vm21_vm1, %v497_v58  ;;  %v3939_v23 = vld [vmem:[#allocation3 + $0xb0] sm:$0xff] }
 0x117   :  { %514 = vst.msk [vmem:[#allocation3 + $0xf0] sm:$0xff] %vm21_vm1, %v489_v61  ;;  %2934 = vmatprep.mubr.msk.bf16.mxu1 %vm21_vm1, %v908_v17  ;;  %v909_v34 = vpack.c.bf16 %v3934_v19, %v3939_v23 }
 0x119   :  { %v2892_v54 = vpop.f32.mrb[32].mxu1  ;;  %2935 = vmatmul.mubr.msk.bf16.gmra.mrb[72].mxu1 %vm21_vm1, %v909_v34 }
 0x11a   :  { %v620_v56 = vadd.f32 %v2892_v54, %v3743_v45  ;;  %v611_v57 = vpop.f32.mrb[33].mxu1 }
 0x11b   :  { %v612_v58 = vadd.f32 %v3743_v45, %v611_v57  ;;  %v2893_v59 = vpop.f32.mrb[34].mxu1  ;;  %v3963_v57 = vld [vmem:[#allocation3 + $0x100] sm:$0xff] }
 0x11c   :  { %676 = vst.msk [vmem:[#allocation4 + $0x21] sm:$0xff] %vm21_vm1, %v620_v56  ;;  %v623_v61 = vadd.f32 %v2893_v59, %v3743_v45  ;;  %v614_v17 = vpop.f32.mrb[35].mxu1  ;;  %v3954_v16 = vld [vmem:[#allocation3 + $0xe0] sm:$0xff]  ;;  %v878_v59 = vpack.c.bf16 %v3773_v6, %v862_v53 }
 0x11d   :  { %674 = vst.msk [vmem:[#allocation4 + $0x1] sm:$0xff] %vm21_vm1, %v612_v58  ;;  %v615_v51 = vadd.f32 %v3743_v45, %v614_v17  ;;  %v910_v34 = vpack.c.bf16 %v3954_v16, %v3936_v20 }
 0x11e   :  { %677 = vst.msk [vmem:[#allocation4 + $0x31] sm:$0xff] %vm21_vm1, %v623_v61  ;;  %v3961_v54 = vld [vmem:[#allocation3 + $0xf0] sm:$0xff] }
 0x11f   :  { %675 = vst.msk [vmem:[#allocation4 + $0x11] sm:$0xff] %vm21_vm1, %v615_v51  ;;  %2938 = vmatprep.mubr.msk.bf16.mxu1 %vm21_vm1, %v910_v34  ;;  %v911_v56 = vpack.c.bf16 %v3963_v57, %v3961_v54 }
 0x121   :  { %v2896_v17 = vpop.f32.mrb[36].mxu1  ;;  %2939 = vmatmul.mubr.msk.bf16.gmra.mrb[76].mxu1 %vm21_vm1, %v911_v56 }
 0x122   :  { %v636_v61 = vadd.f32 %v2896_v17, %v3743_v45  ;;  %v627_v31 = vpop.f32.mrb[37].mxu1  ;;  %2944 = vmatprep.mubr.msk.bf16.mxu1 %vm21_vm1, %v878_v59 }
 0x123   :  { %v628_v51 = vadd.f32 %v3743_v45, %v627_v31  ;;  %v2897_v9 = vpop.f32.mrb[38].mxu1  ;;  %v879_v31 = vpack.c.bf16 %v3766_v3, %v3775_v7  ;;  %v1341_v32 = vld [vmem:[#allocation4 + $0x20] sm:$0xff]  ;;  %v4419_v3 = vpack.c.bf16 %v3865_v1, %v3862_v0 }
 0x124   :  { %680 = vst.msk [vmem:[#allocation4 + $0x61] sm:$0xff] %vm21_vm1, %v636_v61  ;;  %v639_v34 = vadd.f32 %v2897_v9, %v3743_v45  ;;  %v630_v13 = vpop.f32.mrb[39].mxu1  ;;  %v1339_v56 = vld [vmem:[#allocation4] sm:$0xff]  ;;  %v880_v9 = vpack.c.bf16 %v3811_v27, %v3768_v4  ;;  %v1864_v4 = vld [vmem:[#allocation2 + $0x110] sm:$0xff]  ;;  %v4422_v27 = vpack.c.bf16 %v3914_v44, %v3907_v18 }
 0x125   :  { %678 = vst.msk [vmem:[#allocation4 + $0x41] sm:$0xff] %vm21_vm1, %v628_v51  ;;  %v631_v53 = vadd.f32 %v3743_v45, %v630_v13  ;;  %v1342_v58 = vld [vmem:[#allocation4 + $0x30] sm:$0xff]  ;;  %v3989_v13 = vld [vmem:[%s4415_s3 + $0x28] sm:$0xff]  }
 0x126   :  { %681 = vst.msk [vmem:[#allocation4 + $0x71] sm:$0xff] %vm21_vm1, %v639_v34  ;;  %v1340_v17 = vld [vmem:[#allocation4 + $0x10] sm:$0xff]  ;;  %v1356_v61 = vpack.c.bf16 %v1342_v58, %v1341_v32  ;;  %v1679_v15 = vld [vmem:[#allocation4 + $0x1] sm:$0xff] }
 0x127   :  { %679 = vst.msk [vmem:[#allocation4 + $0x51] sm:$0xff] %vm21_vm1, %v631_v53  ;;  %v1355_v59 = vpack.c.bf16 %v1340_v17, %v1339_v56 }
 0x129   :  { %v2900_v51 = vpop.f32.mrb[40].mxu1  ;;  %2945 = vmatmul.mubr.msk.bf16.vlgmr.msra.gmra.mrb[64].mxu1 %vm21_vm1, %v879_v31  ;;  %2980 = vmatprep.mubr.msk.bf16.mxu0 %vm21_vm1, %v1355_v59  ;;  %v870_v59 = vld [vmem:[#allocation2 + $0x90] sm:$0xff] }
 0x12a   :  { %v652_v34 = vadd.f32 %v2900_v51, %v3743_v45  ;;  %v643_v53 = vpop.f32.mrb[41].mxu1  ;;  %2948 = vmatprep.mubr.msk.bf16.mxu1 %vm21_vm1, %v880_v9  ;;  %2981 = vmatmul.mubr.msk.bf16.vlgmr.msra.gmra.mrb[0].mxu0 %vm21_vm1, %v1356_v61  ;;  %v4005_v61 = vld [vmem:[#allocation2 + $0x70] sm:$0xff] }
 0x12b   :  { %v644_v56 = vadd.f32 %v3743_v45, %v643_v53  ;;  %v2901_v32 = vpop.f32.mrb[42].mxu1  ;;  %2997 = vmatpush3.bf16.msra.mxu0 %v3788_v11  ;;  %3087 = vmatpush3.bf16.msra.mxu1 %v3687_v26  ;;  %v881_v26 = vpack.c.bf16 %v4005_v61, %v3813_v28  ;;  %v1345_v53 = vld [vmem:[#allocation4 + $0x60] sm:$0xff] }
 0x12c   :  { %684 = vst.msk [vmem:[#allocation4 + $0xb1] sm:$0xff] %vm21_vm1, %v652_v34  ;;  %v655_v58 = vadd.f32 %v2901_v32, %v3743_v45  ;;  %v646_v17 = vpop.f32.mrb[43].mxu1  ;;  %3014 = vmatprep.subr.bf16.mxu0 %v3989_v13  ;;  %v1343_v11 = vld [vmem:[#allocation4 + $0x40] sm:$0xff]  ;;  %v882_v32 = vpack.c.bf16 %v3834_v42, %v870_v59  ;;  %v4424_v42 = vpack.c.bf16 %v3936_v20, %v3934_v19 }
 0x12d   :  { %682 = vst.msk [vmem:[#allocation4 + $0x91] sm:$0xff] %vm21_vm1, %v644_v56  ;;  %v647_v31 = vadd.f32 %v3743_v45, %v646_v17  ;;  %v1346_v9 = vld [vmem:[#allocation4 + $0x70] sm:$0xff]  ;;  %v2026_v28 = vld [vmem:[#allocation3 + $0x80] sm:$0xff] }
 0x12e   :  { %685 = vst.msk [vmem:[#allocation4 + $0xc1] sm:$0xff] %vm21_vm1, %v655_v58  ;;  %v1344_v51 = vld [vmem:[#allocation4 + $0x50] sm:$0xff]  ;;  %v1358_v56 = vpack.c.bf16 %v1346_v9, %v1345_v53 }
 0x12f   :  { %683 = vst.msk [vmem:[#allocation4 + $0xa1] sm:$0xff] %vm21_vm1, %v647_v31  ;;  %v1357_v34 = vpack.c.bf16 %v1344_v51, %v1343_v11 }
 0x131   :  { %v2904_v35 = vpop.f32.mrb[44].mxu1  ;;  %2949 = vmatmul.mubr.msk.bf16.gmra.mrb[68].mxu1 %vm21_vm1, %v881_v26  ;;  %2984 = vmatprep.mubr.msk.bf16.mxu0 %vm21_vm1, %v1357_v34  ;;  %v883_v34 = vpack.c.bf16 %v3828_v39, %v3841_v47  ;;  %v4423_v39 = vpack.c.bf16 %v3939_v23, %v3929_v60  ;;  %v2034_v47 = vld [vmem:[#allocation3 + $0x110] sm:$0xff] }
 0x132   :  { %v668_v58 = vadd.f32 %v2904_v35, %v3743_v45  ;;  %v659_v17 = vpop.f32.mrb[45].mxu1  ;;  %2952 = vmatprep.mubr.msk.bf16.mxu1 %vm21_vm1, %v882_v32  ;;  %2985 = vmatmul.mubr.msk.bf16.gmra.mrb[4].mxu0 %vm21_vm1, %v1358_v56 }
 0x133   :  { %v660_v31 = vadd.f32 %v3743_v45, %v659_v17  ;;  %v2905_v29 = vpop.f32.mrb[46].mxu1  ;;  %v1349_v32 = vld [vmem:[#allocation4 + $0xb0] sm:$0xff] }
 0x134   :  { %688 = vst.msk [vmem:[#allocation4 + $0xf1] sm:$0xff] %vm21_vm1, %v668_v58  ;;  %v671_v59 = vadd.f32 %v2905_v29, %v3743_v45  ;;  %v662_v9 = vpop.f32.mrb[47].mxu1  ;;  %v1347_v35 = vld [vmem:[#allocation4 + $0x90] sm:$0xff]  ;;  %v884_v29 = vpack.c.bf16 %v3862_v0, %v3836_v43  ;;  %v4425_v43 = vpack.c.bf16 %v3961_v54, %v3954_v16  ;;  %v4427_v0 = vpack.c.bf16 %v3764_v2, %v3759_v63  ;;  %v2196_v16 = vld [vmem:[#allocation2 + $0x81] sm:$0xff] }
 0x135   :  { %686 = vst.msk [vmem:[#allocation4 + $0xd1] sm:$0xff] %vm21_vm1, %v660_v31  ;;  %v663_v11 = vadd.f32 %v3743_v45, %v662_v9  ;;  %v1350_v51 = vld [vmem:[#allocation4 + $0xc0] sm:$0xff]  ;;  %v4430_v63 = vpack.c.bf16 %v3838_v46, %v3830_v40  ;;  %v4431_v2 = vpack.c.bf16 %v3869_v14, %v3867_v10 }
 0x136   :  { %689 = vst.msk [vmem:[#allocation4 + $0x101] sm:$0xff] %vm21_vm1, %v671_v59  ;;  %v1348_v26 = vld [vmem:[#allocation4 + $0xa0] sm:$0xff]  ;;  %v1360_v56 = vpack.c.bf16 %v1350_v51, %v1349_v32 }
 0x137   :  { %687 = vst.msk [vmem:[#allocation4 + $0xe1] sm:$0xff] %vm21_vm1, %v663_v11  ;;  %v1359_v53 = vpack.c.bf16 %v1348_v26, %v1347_v35  ;;  %v1177_v26 = vld [vmem:[#allocation2 + $0x91] sm:$0xff] }
 0x139   :  { %v2910_v58 = vpop.f32.mrb[48].mxu1  ;;  %2953 = vmatmul.mubr.msk.bf16.gmra.mrb[72].mxu1 %vm21_vm1, %v883_v34  ;;  %2988 = vmatprep.mubr.msk.bf16.mxu0 %vm21_vm1, %v1359_v53  ;;  %v4038_v53 = vld [vmem:[#allocation2 + $0x100] sm:$0xff] }
 0x13a   :  { %v792_v17 = vadd.f32 %v2910_v58, %v3743_v45  ;;  %v783_v31 = vpop.f32.mrb[49].mxu1  ;;  %2956 = vmatprep.mubr.msk.bf16.mxu1 %vm21_vm1, %v884_v29  ;;  %2989 = vmatmul.mubr.msk.bf16.gmra.mrb[8].mxu0 %vm21_vm1, %v1360_v56  ;;  %v885_v56 = vpack.c.bf16 %v4038_v53, %v3865_v1  ;;  %v1872_v7 = vpack.c.bf16 %v1864_v4, %v4038_v53 }
 0x13b   :  { %v784_v59 = vadd.f32 %v3743_v45, %v783_v31  ;;  %v2911_v9 = vpop.f32.mrb[50].mxu1  ;;  %v1189_v31 = vpack.c.bf16 %v3843_v48, %v1177_v26  ;;  %v4428_v1 = vpack.c.bf16 %v3809_v25, %v3800_v21 }
 0x13c   :  { %848 = vst.msk [vmem:[#allocation5 + $0x20] sm:$0xff] %vm21_vm1, %v792_v17  ;;  %v795_v11 = vadd.f32 %v2911_v9, %v3743_v45  ;;  %v786_v51 = vpop.f32.mrb[51].mxu1  ;;  %v1351_v32 = vld [vmem:[#allocation4 + $0xd0] sm:$0xff] }
 0x13d   :  { %846 = vst.msk [vmem:[#allocation5] sm:$0xff] %vm21_vm1, %v784_v59  ;;  %v787_v35 = vadd.f32 %v3743_v45, %v786_v51  ;;  %v1354_v34 = vld [vmem:[#allocation4 + $0x100] sm:$0xff]  ;;  %v1353_v17 = vld [vmem:[#allocation4 + $0xf0] sm:$0xff] }
 0x13e   :  { %849 = vst.msk [vmem:[#allocation5 + $0x30] sm:$0xff] %vm21_vm1, %v795_v11  ;;  %v1352_v29 = vld [vmem:[#allocation4 + $0xe0] sm:$0xff]  ;;  %v1362_v59 = vpack.c.bf16 %v1354_v34, %v1353_v17  ;;  %v1190_v17 = vpack.c.bf16 %v3830_v40, %v3845_v49 }
 0x13f   :  { %847 = vst.msk [vmem:[#allocation5 + $0x10] sm:$0xff] %vm21_vm1, %v787_v35  ;;  %v1361_v58 = vpack.c.bf16 %v1352_v29, %v1351_v32 }
 0x141   :  { %v2914_v9 = vpop.f32.mrb[52].mxu1  ;;  %2957 = vmatmul.mubr.msk.bf16.gmra.mrb[76].mxu1 %vm21_vm1, %v885_v56  ;;  %2992 = vmatprep.mubr.msk.bf16.mxu0 %vm21_vm1, %v1361_v58 }
 0x142   :  { %v808_v11 = vadd.f32 %v2914_v9, %v3743_v45  ;;  %v799_v51 = vpop.f32.mrb[53].mxu1  ;;  %2970 = vmatprep.mubr.msk.bf16.mxu1 %vm21_vm1, %v1189_v31  ;;  %2993 = vmatmul.mubr.msk.bf16.gmra.mrb[12].mxu0 %vm21_vm1, %v1362_v59 }
 0x143   :  { %v800_v35 = vadd.f32 %v3743_v45, %v799_v51  ;;  %v2915_v41 = vpop.f32.mrb[54].mxu1  ;;  %v1511_v59 = vld [vmem:[#allocation5 + $0x20] sm:$0xff] }
 0x144   :  { %852 = vst.msk [vmem:[#allocation5 + $0x60] sm:$0xff] %vm21_vm1, %v808_v11  ;;  %v811_v26 = vadd.f32 %v2915_v41, %v3743_v45  ;;  %v802_v34 = vpop.f32.mrb[55].mxu1  ;;  %v1509_v56 = vld [vmem:[#allocation5] sm:$0xff]  ;;  %v1191_v41 = vpack.c.bf16 %v3867_v10, %v3838_v46  ;;  %v4063_v11 = vld [vmem:[%s4415_s3 + $0x30] sm:$0xff]  }
 0x145   :  { %850 = vst.msk [vmem:[#allocation5 + $0x40] sm:$0xff] %vm21_vm1, %v800_v35  ;;  %v803_v32 = vadd.f32 %v3743_v45, %v802_v34  ;;  %v1512_v29 = vld [vmem:[#allocation5 + $0x30] sm:$0xff] }
 0x146   :  { %853 = vst.msk [vmem:[#allocation5 + $0x70] sm:$0xff] %vm21_vm1, %v811_v26  ;;  %v1510_v58 = vld [vmem:[#allocation5 + $0x10] sm:$0xff]  ;;  %v1526_v9 = vpack.c.bf16 %v1512_v29, %v1511_v59 }
 0x147   :  { %851 = vst.msk [vmem:[#allocation5 + $0x50] sm:$0xff] %vm21_vm1, %v803_v32  ;;  %v1525_v31 = vpack.c.bf16 %v1510_v58, %v1509_v56 }
 0x149   :  { %v2918_v51 = vpop.f32.mrb[56].mxu1  ;;  %2971 = vmatmul.mubr.msk.bf16.vlgmr.msra.gmra.mrb[72].mxu1 %vm21_vm1, %v1190_v17  ;;  %2998 = vmatprep.mubr.msk.bf16.mxu0 %vm21_vm1, %v1525_v31  ;;  %v4078_v31 = vld [vmem:[#allocation2 + $0x101] sm:$0xff] }
 0x14a   :  { %v824_v35 = vadd.f32 %v2918_v51, %v3743_v45  ;;  %v815_v26 = vpop.f32.mrb[57].mxu1  ;;  %2974 = vmatprep.mubr.msk.bf16.mxu1 %vm21_vm1, %v1191_v41  ;;  %2999 = vmatmul.mubr.msk.bf16.vlgmr.msra.gmra.mrb[0].mxu0 %vm21_vm1, %v1526_v9 }
 0x14b   :  { %v816_v34 = vadd.f32 %v3743_v45, %v815_v26  ;;  %v2919_v32 = vpop.f32.mrb[58].mxu1  ;;  %3015 = vmatpush3.bf16.msra.mxu0 %v3989_v13  ;;  %v1192_v13 = vpack.c.bf16 %v4078_v31, %v3869_v14  ;;  %v1515_v51 = vld [vmem:[#allocation5 + $0x60] sm:$0xff] }
 0x14c   :  { %856 = vst.msk [vmem:[#allocation5 + $0xb0] sm:$0xff] %vm21_vm1, %v824_v35  ;;  %v827_v29 = vadd.f32 %v2919_v32, %v3743_v45  ;;  %v818_v56 = vpop.f32.mrb[59].mxu1  ;;  %3032 = vmatprep.subr.bf16.mxu0 %v4063_v11  ;;  %v1513_v59 = vld [vmem:[#allocation5 + $0x40] sm:$0xff] }
 0x14d   :  { %854 = vst.msk [vmem:[#allocation5 + $0x90] sm:$0xff] %vm21_vm1, %v816_v34  ;;  %v819_v58 = vadd.f32 %v3743_v45, %v818_v56  ;;  %v1516_v17 = vld [vmem:[#allocation5 + $0x70] sm:$0xff] }
 0x14e   :  { %857 = vst.msk [vmem:[#allocation5 + $0xc0] sm:$0xff] %vm21_vm1, %v827_v29  ;;  %v1514_v41 = vld [vmem:[#allocation5 + $0x50] sm:$0xff]  ;;  %v1528_v35 = vpack.c.bf16 %v1516_v17, %v1515_v51 }
 0x14f   :  { %855 = vst.msk [vmem:[#allocation5 + $0xa0] sm:$0xff] %vm21_vm1, %v819_v58  ;;  %v1527_v9 = vpack.c.bf16 %v1514_v41, %v1513_v59 }
 0x151   :  { %v2922_v26 = vpop.f32.mrb[60].mxu1  ;;  %2975 = vmatmul.mubr.msk.bf16.gmra.mrb[76].mxu1 %vm21_vm1, %v1192_v13  ;;  %3002 = vmatprep.mubr.msk.bf16.mxu0 %vm21_vm1, %v1527_v9 }
 0x152   :  { %v840_v34 = vadd.f32 %v2922_v26, %v3743_v45  ;;  %v831_v32 = vpop.f32.mrb[61].mxu1  ;;  %3003 = vmatmul.mubr.msk.bf16.gmra.mrb[4].mxu0 %vm21_vm1, %v1528_v35 }
 0x153   :  { %v832_v29 = vadd.f32 %v3743_v45, %v831_v32  ;;  %v2923_v56 = vpop.f32.mrb[62].mxu1  ;;  %v1519_v35 = vld [vmem:[#allocation5 + $0xb0] sm:$0xff] }
 0x154   :  { %860 = vst.msk [vmem:[#allocation5 + $0xf0] sm:$0xff] %vm21_vm1, %v840_v34  ;;  %v843_v58 = vadd.f32 %v2923_v56, %v3743_v45  ;;  %v834_v59 = vpop.f32.mrb[63].mxu1  ;;  %v1517_v13 = vld [vmem:[#allocation5 + $0x90] sm:$0xff] }
 0x155   :  { %858 = vst.msk [vmem:[#allocation5 + $0xd0] sm:$0xff] %vm21_vm1, %v832_v29  ;;  %v835_v17 = vadd.f32 %v3743_v45, %v834_v59  ;;  %v1520_v41 = vld [vmem:[#allocation5 + $0xc0] sm:$0xff]  ;;  %v1680_v29 = vld [vmem:[#allocation4 + $0x11] sm:$0xff] }
 0x156   :  { %861 = vst.msk [vmem:[#allocation5 + $0x100] sm:$0xff] %vm21_vm1, %v843_v58  ;;  %v1518_v9 = vld [vmem:[#allocation5 + $0xa0] sm:$0xff]  ;;  %v1530_v26 = vpack.c.bf16 %v1520_v41, %v1519_v35  ;;  %v1695_v58 = vpack.c.bf16 %v1680_v29, %v1679_v15  ;;  %v1684_v41 = vld [vmem:[#allocation4 + $0x51] sm:$0xff] }
 0x157   :  { %859 = vst.msk [vmem:[#allocation5 + $0xe0] sm:$0xff] %vm21_vm1, %v835_v17  ;;  %v1529_v51 = vpack.c.bf16 %v1518_v9, %v1517_v13  ;;  %v1682_v17 = vld [vmem:[#allocation4 + $0x31] sm:$0xff]  ;;  %v1681_v13 = vld [vmem:[#allocation4 + $0x21] sm:$0xff] }
 0x158   :  { %v1696_v9 = vpack.c.bf16 %v1682_v17, %v1681_v13  ;;  %v3228_v35 = vld [vmem:[%s4415_s3 + $0x38] sm:$0xff]  }
 0x159   :  { %3006 = vmatprep.mubr.msk.bf16.mxu0 %vm21_vm1, %v1529_v51  ;;  %v1683_v51 = vld [vmem:[#allocation4 + $0x41] sm:$0xff]  ;;  %v1686_v15 = vld [vmem:[#allocation4 + $0x71] sm:$0xff] }
 0x15a   :  { %3007 = vmatmul.mubr.msk.bf16.gmra.mrb[8].mxu0 %vm21_vm1, %v1530_v26  ;;  %v1697_v26 = vpack.c.bf16 %v1684_v41, %v1683_v51  ;;  %v1691_v41 = vld [vmem:[#allocation4 + $0xd1] sm:$0xff] }
 0x15b   :  { %v1523_v45 = vld [vmem:[#allocation5 + $0xf0] sm:$0xff] }
 0x15c   :  { %v1521_v32 = vld [vmem:[#allocation5 + $0xd0] sm:$0xff] }
 0x15d   :  { %v1524_v34 = vld [vmem:[#allocation5 + $0x100] sm:$0xff] }
 0x15e   :  { %v1522_v56 = vld [vmem:[#allocation5 + $0xe0] sm:$0xff]  ;;  %v1532_v59 = vpack.c.bf16 %v1524_v34, %v1523_v45 }
 0x15f   :  { %v1531_v55 = vpack.c.bf16 %v1522_v56, %v1521_v32  ;;  %v1685_v34 = vld [vmem:[#allocation4 + $0x61] sm:$0xff]  ;;  %v1687_v56 = vld [vmem:[#allocation4 + $0x91] sm:$0xff] }
 0x160   :  { %v1698_v32 = vpack.c.bf16 %v1686_v15, %v1685_v34  ;;  %v1690_v45 = vld [vmem:[#allocation4 + $0xc1] sm:$0xff] }
 0x161   :  { %3010 = vmatprep.mubr.msk.bf16.mxu0 %vm21_vm1, %v1531_v55  ;;  %v1688_v55 = vld [vmem:[#allocation4 + $0xa1] sm:$0xff] }
 0x162   :  { %3011 = vmatmul.mubr.msk.bf16.gmra.mrb[12].mxu0 %vm21_vm1, %v1532_v59  ;;  %v1699_v29 = vpack.c.bf16 %v1688_v55, %v1687_v56  ;;  %v1692_v59 = vld [vmem:[#allocation4 + $0xe1] sm:$0xff] }
 0x163   :  { %3016 = vmatprep.mubr.msk.bf16.mxu0 %vm21_vm1, %v1695_v58  ;;  %v1689_v58 = vld [vmem:[#allocation4 + $0xb1] sm:$0xff]  ;;  %v1701_v13 = vpack.c.bf16 %v1692_v59, %v1691_v41  ;;  %v1856_v15 = vld [vmem:[#allocation2 + $0x80] sm:$0xff] }
 0x164   :  { %v1700_v17 = vpack.c.bf16 %v1690_v45, %v1689_v58  ;;  %v1868_v6 = vpack.c.bf16 %v1856_v15, %v4005_v61 }
 0x16a   :  { %3017 = vmatmul.mubr.msk.bf16.vlgmr.msra.gmra.mrb[0].mxu0 %vm21_vm1, %v1696_v9  ;;  %v1693_v9 = vld [vmem:[#allocation4 + $0xf1] sm:$0xff] }
 0x16b   :  { %3020 = vmatprep.mubr.msk.bf16.mxu0 %vm21_vm1, %v1697_v26  ;;  %3033 = vmatpush3.bf16.msra.mxu0 %v4063_v11  ;;  %v1694_v11 = vld [vmem:[#allocation4 + $0x101] sm:$0xff] }
 0x16c   :  { %3050 = vmatprep.subr.bf16.mxu0 %v3228_v35  ;;  %v1702_v51 = vpack.c.bf16 %v1694_v11, %v1693_v9  ;;  %v3229_v26 = vld [vmem:[%s4415_s3 + $0x40] sm:$0xff]  }
 0x172   :  { %3021 = vmatmul.mubr.msk.bf16.gmra.mrb[4].mxu0 %vm21_vm1, %v1698_v32 }
 0x173   :  { %3024 = vmatprep.mubr.msk.bf16.mxu0 %vm21_vm1, %v1699_v29 }
 0x17a   :  { %3025 = vmatmul.mubr.msk.bf16.gmra.mrb[8].mxu0 %vm21_vm1, %v1700_v17 }
 0x17b   :  { %3028 = vmatprep.mubr.msk.bf16.mxu0 %vm21_vm1, %v1701_v13 }
 0x182   :  { %3029 = vmatmul.mubr.msk.bf16.gmra.mrb[12].mxu0 %vm21_vm1, %v1702_v51 }
 0x183   :  { %3034 = vmatprep.mubr.msk.bf16.mxu0 %vm21_vm1, %v1865_v12  ;;  %v4421_v12 = vpack.c.bf16 %v3887_v37, %v3885_v36 }
 0x18a   :  { %3035 = vmatmul.mubr.msk.bf16.vlgmr.msra.gmra.mrb[0].mxu0 %vm21_vm1, %v1866_v8  ;;  %v4420_v8 = vpack.c.bf16 %v3890_v38, %v3880_v33  ;;  %v2208_v33 = vpack.c.bf16 %v2196_v16, %v3806_v24 }
 0x18b   :  { %3038 = vmatprep.mubr.msk.bf16.mxu0 %vm21_vm1, %v1867_v30  ;;  %3051 = vmatpush3.bf16.msra.mxu0 %v3228_v35  ;;  %v2038_v30 = vpack.c.bf16 %v2026_v28, %v3916_v22 }
 0x18c   :  { %3068 = vmatprep.subr.bf16.mxu0 %v3229_v26 }
 0x192   :  { %3039 = vmatmul.mubr.msk.bf16.gmra.mrb[4].mxu0 %vm21_vm1, %v1868_v6 }
 0x193   :  { %3042 = vmatprep.mubr.msk.bf16.mxu0 %vm21_vm1, %v1869_v52  ;;  %v4426_v52 = vpack.c.bf16 %v3771_v5, %v3757_v62  ;;  %v4429_v62 = vpack.c.bf16 %v3845_v49, %v3843_v48  ;;  %v2204_v5 = vld [vmem:[#allocation2 + $0x111] sm:$0xff] }
 0x194   :  { %v2212_v21 = vpack.c.bf16 %v2204_v5, %v4078_v31 }
 0x19a   :  { %3043 = vmatmul.mubr.msk.bf16.gmra.mrb[8].mxu0 %vm21_vm1, %v1870_v50  ;;  %v2042_v50 = vpack.c.bf16 %v2034_v47, %v3963_v57 }
 0x19b   :  { %3046 = vmatprep.mubr.msk.bf16.mxu0 %vm21_vm1, %v4419_v3 }
 0x1a2   :  { %3047 = vmatmul.mubr.msk.bf16.gmra.mrb[12].mxu0 %vm21_vm1, %v1872_v7 }
 0x1a3   :  { %3052 = vmatprep.mubr.msk.bf16.mxu0 %vm21_vm1, %v4420_v8 }
 0x1aa   :  { %3053 = vmatmul.mubr.msk.bf16.vlgmr.msra.gmra.mrb[0].mxu0 %vm21_vm1, %v4421_v12 }
 0x1ab   :  { %3056 = vmatprep.mubr.msk.bf16.mxu0 %vm21_vm1, %v4422_v27  ;;  %3069 = vmatpush3.bf16.msra.mxu0 %v3229_v26 }
 0x1b2   :  { %3057 = vmatmul.mubr.msk.bf16.gmra.mrb[4].mxu0 %vm21_vm1, %v2038_v30 }
 0x1b3   :  { %3060 = vmatprep.mubr.msk.bf16.mxu0 %vm21_vm1, %v4423_v39 }
 0x1ba   :  { %3061 = vmatmul.mubr.msk.bf16.gmra.mrb[8].mxu0 %vm21_vm1, %v4424_v42 }
 0x1bb   :  { %3064 = vmatprep.mubr.msk.bf16.mxu0 %vm21_vm1, %v4425_v43 }
 0x1c2   :  { %3065 = vmatmul.mubr.msk.bf16.gmra.mrb[12].mxu0 %vm21_vm1, %v2042_v50 }
 0x1c3   :  { %3070 = vmatprep.mubr.msk.bf16.mxu0 %vm21_vm1, %v4426_v52 }
 0x1ca   :  { %3071 = vmatmul.mubr.msk.bf16.vlgmr.msra.gmra.mrb[0].mxu0 %vm21_vm1, %v4427_v0 }
 0x1cb   :  { %3074 = vmatprep.mubr.msk.bf16.mxu0 %vm21_vm1, %v4428_v1 }
 0x1d2   :  { %3075 = vmatmul.mubr.msk.bf16.gmra.mrb[4].mxu0 %vm21_vm1, %v2208_v33 }
 0x1d3   :  { %3078 = vmatprep.mubr.msk.bf16.mxu0 %vm21_vm1, %v4429_v62 }
 0x1da   :  { %3079 = vmatmul.mubr.msk.bf16.gmra.mrb[8].mxu0 %vm21_vm1, %v4430_v63 }
 0x1db   :  { %3082 = vmatprep.mubr.msk.bf16.mxu0 %vm21_vm1, %v4431_v2 }
 0x1e2   :  { %3083 = vmatmul.mubr.msk.bf16.gmra.mrb[12].mxu0 %vm21_vm1, %v2212_v21 }
 0x1fc   :  { %v2946_v24 = vpop.f32.mrb[64].mxu1 }
 0x1fd   :  { %v1106_v25 = vpop.f32.mrb[65].mxu1 }
 0x1fe   :  { %v2947_v48 = vpop.f32.mrb[66].mxu1 }
 0x1ff   :  { %v1109_v49 = vpop.f32.mrb[67].mxu1 }
 0x204   :  { %v2950_v36 = vpop.f32.mrb[68].mxu1 }
 0x205   :  { %v1122_v37 = vpop.f32.mrb[69].mxu1 }
 0x206   :  { %v2951_v38 = vpop.f32.mrb[70].mxu1 }
 0x207   :  { %v1125_v40 = vpop.f32.mrb[71].mxu1 }
 0x21c   :  { %v2972_v46 = vpop.f32.mrb[72].mxu1 }
 0x21d   :  { %v1292_v18 = vpop.f32.mrb[73].mxu1 }
 0x21e   :  { %v4197_v44 = vpop.f32.mrb[74].mxu1 }
 0x21f   :  { %v4199_v10 = vpop.f32.mrb[75].mxu1 }
 0x224   :  { %v4201_v14 = vpop.f32.mrb[76].mxu1 }
 0x225   :  { %v4203_v22 = vpop.f32.mrb[77].mxu1 }
 0x226   :  { %v4205_v60 = vpop.f32.mrb[78].mxu1 }
 0x227   :  { %v4207_v19 = vpop.f32.mrb[79].mxu1 }
 0x29d   :  { %v3072_v20 = vpop.f32.mrb[0].mxu0 }
 0x29e   :  { %v4209_v23 = vadd.f32 %v3072_v20, %v2946_v24  ;;  %v2280_v54 = vpop.f32.mrb[1].mxu0 }
 0x29f   :  { %v4211_v57 = vadd.f32 %v2280_v54, %v1106_v25  ;;  %v3073_v61 = vpop.f32.mrb[2].mxu0 }
 0x2a0   :  { %v4213_v53 = vadd.f32 %v3073_v61, %v2947_v48  ;;  %v2283_v31 = vpop.f32.mrb[3].mxu0  ;;  %v2401_v34 = vmul.f32 %v4209_v23, %v4209_v23  ;;  %v2363_v58 = vsel %vm2359_vm4, %v4209_v23, 0.0 }
 0x2a1   :  { %v2399_v35 = vmul.f32 %v4211_v57, %v4211_v57  ;;  %v4217_v55 = vadd.f32 %v2283_v31, %v1109_v49  ;;  %v2360_v32 = vsel %vm2359_vm4, %v4211_v57, 0.0 }
 0x2a2   :  { %v2402_v45 = vmul.f32 %v4213_v53, %v4213_v53  ;;  %v2418_v15 = vsel %vm2359_vm4, %v2401_v34, 0.0  ;;  %v2365_v6 = vsel %vm2359_vm4, %v4213_v53, 0.0 }
 0x2a3   :  { %v2361_v56 = vsel %vm2359_vm4, %v4217_v55, 0.0  ;;  %v2400_v29 = vmul.f32 %v4217_v55, %v4217_v55  ;;  %v2415_v17 = vsel %vm2359_vm4, %v2399_v35, 0.0 }
 0x2a4   :  { %v2362_v59 = vadd.f32 %v2361_v56, %v2360_v32  ;;  %v2420_v7 = vsel %vm2359_vm4, %v2402_v45, 0.0 }
 0x2a5   :  { %v2416_v41 = vsel %vm2359_vm4, %v2400_v29, 0.0  ;;  %v3076_v13 = vpop.f32.mrb[4].mxu0 }
 0x2a6   :  { %v2364_v11 = vadd.f32 %v2363_v58, %v2362_v59  ;;  %v2417_v9 = vadd.f32 %v2416_v41, %v2415_v17  ;;  %v4233_v51 = vadd.f32 %v3076_v13, %v2950_v36  ;;  %v2296_v26 = vpop.f32.mrb[5].mxu0 }
 0x2a7   :  { %v4238_v3 = vadd.f32 %v2296_v26, %v1122_v37  ;;  %v3077_v4 = vpop.f32.mrb[6].mxu0 }
 0x2a8   :  { %v2419_v8 = vadd.f32 %v2418_v15, %v2417_v9  ;;  %v2366_v12 = vadd.f32 %v2365_v6, %v2364_v11  ;;  %v2299_v27 = vpop.f32.mrb[7].mxu0  ;;  %v4245_v39 = vadd.f32 %v3077_v4, %v2951_v38  ;;  %v2405_v0 = vmul.f32 %v4233_v51, %v4233_v51 }
 0x2a9   :  { %v2367_v28 = vsel %vm2359_vm4, %v4238_v3, 0.0  ;;  %v2403_v30 = vmul.f32 %v4238_v3, %v4238_v3  ;;  %v4247_v42 = vadd.f32 %v2299_v27, %v1125_v40  ;;  %v2371_v62 = vsel %vm2359_vm4, %v4233_v51, 0.0 }
 0x2aa   :  { %v2368_v43 = vadd.f32 %v2367_v28, %v2366_v12  ;;  %v2421_v47 = vadd.f32 %v2420_v7, %v2419_v8  ;;  %v2406_v2 = vmul.f32 %v4245_v39, %v4245_v39  ;;  %v2373_v48 = vsel %vm2359_vm4, %v4245_v39, 0.0 }
 0x2ab   :  { %v2422_v50 = vsel %vm2359_vm4, %v2403_v30, 0.0  ;;  %v2369_v52 = vsel %vm2359_vm4, %v4247_v42, 0.0  ;;  %v2404_v33 = vmul.f32 %v4247_v42, %v4247_v42  ;;  %v2426_v38 = vsel %vm2359_vm4, %v2405_v0, 0.0 }
 0x2ac   :  { %v2423_v1 = vadd.f32 %v2422_v50, %v2421_v47  ;;  %v2370_v16 = vadd.f32 %v2369_v52, %v2368_v43 }
 0x2ad   :  { %v3080_v63 = vpop.f32.mrb[8].mxu0  ;;  %v2424_v21 = vsel %vm2359_vm4, %v2404_v33, 0.0 }
 0x2ae   :  { %v2372_v5 = vadd.f32 %v2371_v62, %v2370_v16  ;;  %v4261_v24 = vadd.f32 %v3080_v63, %v2972_v46  ;;  %v2312_v25 = vpop.f32.mrb[9].mxu0  ;;  %v2425_v49 = vadd.f32 %v2424_v21, %v2423_v1 }
 0x2af   :  { %v4265_v36 = vadd.f32 %v2312_v25, %v1292_v18  ;;  %v3081_v37 = vpop.f32.mrb[10].mxu0  ;;  %v2428_v18 = vsel %vm2359_vm4, %v2406_v2, 0.0 }
 0x2b0   :  { %v2374_v40 = vadd.f32 %v2373_v48, %v2372_v5  ;;  %v4269_v20 = vadd.f32 %v3081_v37, %v4197_v44  ;;  %v2315_v54 = vpop.f32.mrb[11].mxu0  ;;  %v2427_v61 = vadd.f32 %v2426_v38, %v2425_v49  ;;  %v2409_v45 = vmul.f32 %v4261_v24, %v4261_v24 }
 0x2b1   :  { %v2375_v46 = vsel %vm2359_vm4, %v4265_v36, 0.0  ;;  %v2407_v31 = vmul.f32 %v4265_v36, %v4265_v36  ;;  %v4276_v35 = vadd.f32 %v2315_v54, %v4199_v10  ;;  %v2379_v10 = vsel %vm2359_vm4, %v4261_v24, 0.0 }
 0x2b2   :  { %v2376_v34 = vadd.f32 %v2375_v46, %v2374_v40  ;;  %v2429_v32 = vadd.f32 %v2428_v18, %v2427_v61  ;;  %v2410_v13 = vmul.f32 %v4269_v20, %v4269_v20  ;;  %v2381_v15 = vsel %vm2359_vm4, %v4269_v20, 0.0 }
 0x2b3   :  { %v2430_v56 = vsel %vm2359_vm4, %v2407_v31, 0.0  ;;  %v2377_v44 = vsel %vm2359_vm4, %v4276_v35, 0.0  ;;  %v2408_v29 = vmul.f32 %v4276_v35, %v4276_v35  ;;  %v2434_v8 = vsel %vm2359_vm4, %v2409_v45, 0.0 }
 0x2b4   :  { %v2378_v59 = vadd.f32 %v2377_v44, %v2376_v34  ;;  %v2431_v58 = vadd.f32 %v2430_v56, %v2429_v32 }
 0x2b5   :  { %v2432_v17 = vsel %vm2359_vm4, %v2408_v29, 0.0  ;;  %v3084_v41 = vpop.f32.mrb[12].mxu0 }
 0x2b6   :  { %v2380_v11 = vadd.f32 %v2379_v10, %v2378_v59  ;;  %v4292_v9 = vadd.f32 %v3084_v41, %v4201_v14  ;;  %v2328_v26 = vpop.f32.mrb[13].mxu0  ;;  %v2433_v6 = vadd.f32 %v2432_v17, %v2431_v58 }
 0x2b7   :  { %v4297_v4 = vadd.f32 %v2328_v26, %v4203_v22  ;;  %v3085_v7 = vpop.f32.mrb[14].mxu0  ;;  %v2436_v22 = vsel %vm2359_vm4, %v2410_v13, 0.0 }
 0x2b8   :  { %v2382_v12 = vadd.f32 %v2381_v15, %v2380_v11  ;;  %v4301_v27 = vadd.f32 %v3085_v7, %v4205_v60  ;;  %v2331_v28 = vpop.f32.mrb[15].mxu0  ;;  %v2435_v30 = vadd.f32 %v2434_v8, %v2433_v6  ;;  %v2413_v16 = vmul.f32 %v4292_v9, %v4292_v9 }
 0x2b9   :  { %v2383_v14 = vsel %vm2359_vm4, %v4297_v4, 0.0  ;;  %v2411_v43 = vmul.f32 %v4297_v4, %v4297_v4  ;;  %v4308_v47 = vadd.f32 %v2331_v28, %v4207_v19  ;;  %v2387_v19 = vsel %vm2359_vm4, %v4292_v9, 0.0 }
 0x2ba   :  { %v2384_v50 = vadd.f32 %v2383_v14, %v2382_v12  ;;  %v2437_v52 = vadd.f32 %v2436_v22, %v2435_v30  ;;  %v2414_v2 = vmul.f32 %v4301_v27, %v4301_v27  ;;  %v2389_v21 = vsel %vm2359_vm4, %v4301_v27, 0.0 }
 0x2bb   :  { %v2438_v0 = vsel %vm2359_vm4, %v2411_v43, 0.0  ;;  %v2385_v60 = vsel %vm2359_vm4, %v4308_v47, 0.0  ;;  %v2412_v1 = vmul.f32 %v4308_v47, %v4308_v47  ;;  %v2442_v48 = vsel %vm2359_vm4, %v2413_v16, 0.0 }
 0x2bc   :  { %v2386_v33 = vadd.f32 %v2385_v60, %v2384_v50  ;;  %v2439_v62 = vadd.f32 %v2438_v0, %v2437_v52  ;;  %v2444_v38 = vsel %vm2359_vm4, %v2414_v2, 0.0 }
 0x2bd   :  { %v2440_v63 = vsel %vm2359_vm4, %v2412_v1, 0.0  ;;  %v2734_v1 = vld [vmem:[%s4417_s4 + $0x1] ss:$0 sm:$0xff] }
 0x2be   :  { %v2388_v5 = vadd.f32 %v2387_v19, %v2386_v33  ;;  %v2441_v25 = vadd.f32 %v2440_v63, %v2439_v62 }
 0x2c0   :  { %v2390_v49 = vadd.f32 %v2389_v21, %v2388_v5  ;;  %v2443_v37 = vadd.f32 %v2442_v48, %v2441_v25 }
 0x2c2   :  { %v2391_v40 = vrot.slane %v2390_v49, 4  ;;  %v2445_v54 = vadd.f32 %v2444_v38, %v2443_v37 }
 0x2c4   :  { %v2392_v61 = vadd.f32 %v2391_v40, %v2390_v49  ;;  %v2446_v46 = vrot.slane %v2445_v54, 4 }
 0x2c6   :  { %v2393_v31 = vrot.slane %v2392_v61, 2  ;;  %v2447_v18 = vadd.f32 %v2446_v46, %v2445_v54 }
 0x2c8   :  { %v2394_v34 = vadd.f32 %v2393_v31, %v2392_v61  ;;  %v2448_v32 = vrot.slane %v2447_v18, 2 }
 0x2ca   :  { %v2395_v56 = vrot.slane %v2394_v34, 1  ;;  %v2449_v44 = vadd.f32 %v2448_v32, %v2447_v18 }
 0x2cc   :  { %v2396_v29 = vadd.f32 %v2395_v56, %v2394_v34  ;;  %v2450_v45 = vrot.slane %v2449_v44, 1 }
 0x2ce   :  { %v2398_v59 = vmul.f32 0.0078125, %v2396_v29  ;;  %v2451_v10 = vadd.f32 %v2450_v45, %v2449_v44 }
 0x2d0   :  { %v2453_v58 = vmul.f32 %v2398_v59, %v2398_v59  ;;  %v2458_v17 = vsub.f32 %v4211_v57, %v2398_v59  ;;  %v2459_v41 = vsub.f32 %v4217_v55, %v2398_v59  ;;  %v2460_v13 = vsub.f32 %v4209_v23, %v2398_v59 }
 0x2d1   :  { %v2452_v11 = vmul.f32 0.0078125, %v2451_v10  ;;  %v2461_v26 = vsub.f32 %v4213_v53, %v2398_v59  ;;  %v2462_v15 = vsub.f32 %v4238_v3, %v2398_v59  ;;  %v2463_v6 = vsub.f32 %v4247_v42, %v2398_v59 }
 0x2d2   :  { %v2464_v7 = vsub.f32 %v4233_v51, %v2398_v59  ;;  %v2465_v8 = vsub.f32 %v4245_v39, %v2398_v59  ;;  %v2466_v12 = vsub.f32 %v4265_v36, %v2398_v59  ;;  %v2467_v28 = vsub.f32 %v4276_v35, %v2398_v59  ;;  %v2474_v35 = vld [vmem:[%s4417_s4] sm:$0x1] }
 0x2d3   :  { %v2454_v57 = vsub.f32 %v2452_v11, %v2453_v58  ;;  %v2468_v55 = vsub.f32 %v4261_v24, %v2398_v59  ;;  %v2469_v23 = vsub.f32 %v4269_v20, %v2398_v59  ;;  %v2470_v30 = vsub.f32 %v4297_v4, %v2398_v59 }
 0x2d4   :  { %v2471_v53 = vsub.f32 %v4308_v47, %v2398_v59  ;;  %v2472_v3 = vsub.f32 %v4292_v9, %v2398_v59  ;;  %v2473_v42 = vsub.f32 %v4301_v27, %v2398_v59  ;;  %v2476_v39 = vlaneseq }
 0x2d5   :  { %v2455_v51 = vmax.f32 %v2454_v57, 0.0 }
 0x2d6   :  { %v2477_v36 = vshrl.u32 %v2476_v39, 7 }
 0x2d7   :  { %v2456_v14 = vadd.f32 1e-05, %v2455_v51 }
 0x2d8   :  { %v2478_v24 = vsub.s32 0, %v2477_v36 }
 0x2d9   :  { %3230 = vrsqrt.f32 %v2456_v14 }
 0x2e3   :  { %v3231_v43 = vpop.eup %3230 }
 0x2e4   :  { %v2475_v20 = vmul.f32 %v3231_v43, %v2474_v35 }
 0x2e6   :  { %v2479_v22 = vrot.slane %v2475_v20, %v2478_v24 }
 0x2e8   :  { %v2480_v4 = vmul.f32 %v2479_v22, %v2458_v17  ;;  %v2481_v50 = vmul.f32 %v2479_v22, %v2459_v41  ;;  %v2482_v47 = vmul.f32 %v2479_v22, %v2460_v13  ;;  %v2483_v52 = vmul.f32 %v2479_v22, %v2461_v26 }
 0x2e9   :  { %v2484_v9 = vmul.f32 %v2479_v22, %v2462_v15  ;;  %v2485_v0 = vmul.f32 %v2479_v22, %v2463_v6  ;;  %v2486_v27 = vmul.f32 %v2479_v22, %v2464_v7  ;;  %v2487_v60 = vmul.f32 %v2479_v22, %v2465_v8 }
 0x2ea   :  { %v2488_v16 = vmul.f32 %v2479_v22, %v2466_v12  ;;  %v2489_v33 = vmul.f32 %v2479_v22, %v2467_v28  ;;  %v2490_v19 = vmul.f32 %v2479_v22, %v2468_v55  ;;  %v2491_v62 = vmul.f32 %v2479_v22, %v2469_v23 }
 0x2eb   :  { %v2492_v63 = vmul.f32 %v2479_v22, %v2470_v30  ;;  %v2493_v2 = vmul.f32 %v2479_v22, %v2471_v53  ;;  %v2494_v5 = vmul.f32 %v2479_v22, %v2472_v3  ;;  %v2495_v21 = vmul.f32 %v2479_v22, %v2473_v42 }
 0x2ec   :  { %v2501_v25 = vadd.f32 %v2734_v1, %v2480_v4  ;;  %v2502_v48 = vadd.f32 %v2734_v1, %v2481_v50  ;;  %v2503_v49 = vadd.f32 %v2734_v1, %v2482_v47  ;;  %v2504_v37 = vadd.f32 %v2734_v1, %v2483_v52 }
 0x2ed   :  { %v2505_v38 = vadd.f32 %v2734_v1, %v2484_v9  ;;  %v2506_v40 = vadd.f32 %v2734_v1, %v2485_v0  ;;  %v2507_v54 = vadd.f32 %v2734_v1, %v2486_v27  ;;  %v2508_v61 = vadd.f32 %v2734_v1, %v2487_v60 }
 0x2ee   :  { %v2509_v46 = vadd.f32 %v2734_v1, %v2488_v16  ;;  %v2510_v31 = vadd.f32 %v2734_v1, %v2489_v33  ;;  %v2511_v18 = vadd.f32 %v2734_v1, %v2490_v19  ;;  %v2512_v34 = vadd.f32 %v2734_v1, %v2491_v62 }
 0x2ef   :  { %v2513_v32 = vadd.f32 %v2734_v1, %v2492_v63  ;;  %v2514_v56 = vadd.f32 %v2734_v1, %v2493_v2  ;;  %v2515_v44 = vadd.f32 %v2734_v1, %v2494_v5  ;;  %v2516_v29 = vadd.f32 %v2734_v1, %v2495_v21 }
 0x2f0   :  { %v2517_v45 = vmax.f32 %v2501_v25, 0.0  ;;  %v2518_v59 = vmax.f32 %v2502_v48, 0.0  ;;  %v2519_v10 = vmax.f32 %v2503_v49, 0.0  ;;  %v2520_v58 = vmax.f32 %v2504_v37, 0.0 }
 0x2f1   :  { %v2521_v17 = vmax.f32 %v2505_v38, 0.0  ;;  %v2522_v41 = vmax.f32 %v2506_v40, 0.0  ;;  %v2523_v13 = vmax.f32 %v2507_v54, 0.0  ;;  %v2524_v11 = vmax.f32 %v2508_v61, 0.0 }
 0x2f2   :  { %v2525_v26 = vmax.f32 %v2509_v46, 0.0  ;;  %v2526_v15 = vmax.f32 %v2510_v31, 0.0  ;;  %v2527_v6 = vmax.f32 %v2511_v18, 0.0  ;;  %v2528_v7 = vmax.f32 %v2512_v34, 0.0  ;;  %2533 = vst.msk [vmem:[%s4418_s5] sm:$0xff] %vm2359_vm4, %v2517_v45  ;;  %2534 = vst.msk [vmem:[%s4418_s5 + $0x8] sm:$0xff] %vm2359_vm4, %v2518_v59 }
 0x2f3   :  { %2535 = vst.msk [vmem:[%s4418_s5 + $0x10] sm:$0xff] %vm2359_vm4, %v2519_v10  ;;  %2536 = vst.msk [vmem:[%s4418_s5 + $0x18] sm:$0xff] %vm2359_vm4, %v2520_v58  ;;  %v2529_v8 = vmax.f32 %v2513_v32, 0.0  ;;  %v2530_v12 = vmax.f32 %v2514_v56, 0.0  ;;  %v2531_v28 = vmax.f32 %v2515_v44, 0.0  ;;  %v2532_v57 = vmax.f32 %v2516_v29, 0.0 }
 0x2f4   :  { %2537 = vst.msk [vmem:[%s4418_s5 + $0x20] sm:$0xff] %vm2359_vm4, %v2521_v17  ;;  %2538 = vst.msk [vmem:[%s4418_s5 + $0x28] sm:$0xff] %vm2359_vm4, %v2522_v41 }
 0x2f5   :  { %2539 = vst.msk [vmem:[%s4418_s5 + $0x30] sm:$0xff] %vm2359_vm4, %v2523_v13  ;;  %2540 = vst.msk [vmem:[%s4418_s5 + $0x38] sm:$0xff] %vm2359_vm4, %v2524_v11 }
 0x2f6   :  { %2541 = vst.msk [vmem:[%s4418_s5 + $0x40] sm:$0xff] %vm2359_vm4, %v2525_v26  ;;  %2542 = vst.msk [vmem:[%s4418_s5 + $0x48] sm:$0xff] %vm2359_vm4, %v2526_v15 }
 0x2f7   :  { %2543 = vst.msk [vmem:[%s4418_s5 + $0x50] sm:$0xff] %vm2359_vm4, %v2527_v6  ;;  %2544 = vst.msk [vmem:[%s4418_s5 + $0x58] sm:$0xff] %vm2359_vm4, %v2528_v7 }
 0x2f8   :  { %2545 = vst.msk [vmem:[%s4418_s5 + $0x60] sm:$0xff] %vm2359_vm4, %v2529_v8  ;;  %2546 = vst.msk [vmem:[%s4418_s5 + $0x68] sm:$0xff] %vm2359_vm4, %v2530_v12 }
 0x2f9   :  { %2547 = vst.msk [vmem:[%s4418_s5 + $0x70] sm:$0xff] %vm2359_vm4, %v2531_v28  ;;  %2548 = vst.msk [vmem:[%s4418_s5 + $0x78] sm:$0xff] %vm2359_vm4, %v2532_v57 }

// kernel: res_block_forward.3
= control target key start
LH: loop header
LB: loop body
LE: loop exit
PB: predicated region body
PF: predicated region fallthrough
CT: control target
= control target key end

     0   :  { %vm222_vm0 = vcmask 1041408   ;;  %vm125_vm1 = vcmask 31744   ;;  %vm515_vm2 = vcmask 130048   ;;  %vm518_vm3 = vcmask 123904   ;;  %s11402_s1 = inlined_call_operand.vmem [shape: bf16[4,16], index: 1, kind: input, shape index: {}]   ;;  %s11403_s0 = inlined_call_operand.vmem [shape: f32[512,4], index: 0, kind: input, shape index: {}]   ;;  %s11404_s3 = inlined_call_operand.vmem [shape: bf16[9,16,4], index: 3, kind: input, shape index: {}]   ;;  %s11405_s2 = inlined_call_operand.vmem [shape: f32[1,16], index: 2, kind: input, shape index: {}]   ;;  %s11406_s4 = inlined_call_operand.vmem [shape: f32[2,4], index: 4, kind: input, shape index: {}]   ;;  %s11407_s5 = inlined_call_operand.vmem [shape: f32[512,4], index: 5, kind: output, shape index: {}]  }
   0x1   :  { %v117_v0 = vld [vmem:[%s11402_s1] sm:$0x3]  ;;  %v22_v2 = vld [vmem:[%s11403_s0 + $0x8] sm:$0xff]  ;;  %v23_v5 = vld [vmem:[%s11403_s0 + $0x10] sm:$0xff] }
   0x2   :  { %v21_v1 = vld [vmem:[%s11403_s0] sm:$0xff]  ;;  %8198 = vmatprep.subr.msk.bf16.mxu0 %vm222_vm0, %v117_v0  ;;  %v224_v3 = vsel %vm222_vm0, %v117_v0, 0  ;;  %v24_v6 = vld [vmem:[%s11403_s0 + $0x18] sm:$0xff]  ;;  %v26_v9 = vld [vmem:[%s11403_s0 + $0x28] sm:$0xff] }
   0x3   :  { %v85_v4 = vpack.c.bf16 %v22_v2, %v21_v1  ;;  %v25_v7 = vld [vmem:[%s11403_s0 + $0x20] sm:$0xff]  ;;  %7027 = vmatpush3.bf16.msra.mxu0 %v224_v3  ;;  %v86_v8 = vpack.c.bf16 %v24_v6, %v23_v5  ;;  %v27_v11 = vld [vmem:[%s11403_s0 + $0x30] sm:$0xff]  ;;  %v28_v12 = vld [vmem:[%s11403_s0 + $0x38] sm:$0xff] }
   0x4   :  { %v87_v10 = vpack.c.bf16 %v26_v9, %v25_v7  ;;  %v29_v13 = vld [vmem:[%s11403_s0 + $0x40] sm:$0xff]  ;;  %v30_v14 = vld [vmem:[%s11403_s0 + $0x48] sm:$0xff]  ;;  %v88_v15 = vpack.c.bf16 %v28_v12, %v27_v11  ;;  %v31_v17 = vld [vmem:[%s11403_s0 + $0x50] sm:$0xff] }
   0x5   :  { %7028 = vmatprep.mubr.msk.bf16.mxu0 %vm125_vm1, %v85_v4  ;;  %v89_v16 = vpack.c.bf16 %v30_v14, %v29_v13  ;;  %v32_v18 = vld [vmem:[%s11403_s0 + $0x58] sm:$0xff]  ;;  %v33_v19 = vld [vmem:[%s11403_s0 + $0x60] sm:$0xff]  ;;  %v34_v20 = vld [vmem:[%s11403_s0 + $0x68] sm:$0xff]  ;;  %v8211_v13 = vmov 0.0  }
   0x6   :  { %7029 = vmatmul.mubr.msk.bf16.vlgmr.msra.gmra.mrb[0].mxu0 %vm125_vm1, %v86_v8  ;;  %v90_v21 = vpack.c.bf16 %v32_v18, %v31_v17  ;;  %v91_v22 = vpack.c.bf16 %v34_v20, %v33_v19  ;;  %v35_v23 = vld [vmem:[%s11403_s0 + $0x70] sm:$0xff]  ;;  %v36_v24 = vld [vmem:[%s11403_s0 + $0x78] sm:$0xff]  ;;  %v37_v25 = vld [vmem:[%s11403_s0 + $0x80] sm:$0xff]  ;;  %523 = vst.msk [vmem:[#allocation2 + $0x30] sm:$0xff] %vm515_vm2, %v8211_v13 }
   0x7   :  { %7032 = vmatprep.mubr.msk.bf16.mxu0 %vm125_vm1, %v87_v10  ;;  %v38_v26 = vld [vmem:[%s11403_s0 + $0x88] sm:$0xff]  ;;  %v92_v27 = vpack.c.bf16 %v36_v24, %v35_v23  ;;  %v39_v29 = vld [vmem:[%s11403_s0 + $0x90] sm:$0xff]  ;;  %v40_v30 = vld [vmem:[%s11403_s0 + $0x98] sm:$0xff]  ;;  %524 = vst.msk [vmem:[#allocation2 + $0x38] sm:$0xff] %vm515_vm2, %v8211_v13 }
   0x8   :  { %v93_v28 = vpack.c.bf16 %v38_v26, %v37_v25  ;;  %v41_v31 = vld [vmem:[%s11403_s0 + $0xa0] sm:$0xff]  ;;  %v42_v32 = vld [vmem:[%s11403_s0 + $0xa8] sm:$0xff]  ;;  %v94_v33 = vpack.c.bf16 %v40_v30, %v39_v29  ;;  %v43_v35 = vld [vmem:[%s11403_s0 + $0xb0] sm:$0xff]  ;;  %516 = vst.msk [vmem:[#allocation2] sm:$0xff] %vm515_vm2, %v8211_v13 }
   0x9   :  { %v95_v34 = vpack.c.bf16 %v42_v32, %v41_v31  ;;  %v44_v36 = vld [vmem:[%s11403_s0 + $0xb8] sm:$0xff]  ;;  %v45_v37 = vld [vmem:[%s11403_s0 + $0xc0] sm:$0xff]  ;;  %v46_v38 = vld [vmem:[%s11403_s0 + $0xc8] sm:$0xff]  ;;  %517 = vst.msk [vmem:[#allocation2 + $0x8] sm:$0xff] %vm515_vm2, %v8211_v13 }
   0xa   :  { %v96_v39 = vpack.c.bf16 %v44_v36, %v43_v35  ;;  %v97_v40 = vpack.c.bf16 %v46_v38, %v45_v37  ;;  %v47_v41 = vld [vmem:[%s11403_s0 + $0xd0] sm:$0xff]  ;;  %v48_v42 = vld [vmem:[%s11403_s0 + $0xd8] sm:$0xff]  ;;  %v49_v43 = vld [vmem:[%s11403_s0 + $0xe0] sm:$0xff]  ;;  %520 = vst.msk [vmem:[#allocation2 + $0x18] sm:$0xff] %vm515_vm2, %v8211_v13 }
   0xb   :  { %v50_v44 = vld [vmem:[%s11403_s0 + $0xe8] sm:$0xff]  ;;  %v98_v45 = vpack.c.bf16 %v48_v42, %v47_v41  ;;  %v51_v47 = vld [vmem:[%s11403_s0 + $0xf0] sm:$0xff]  ;;  %v52_v48 = vld [vmem:[%s11403_s0 + $0xf8] sm:$0xff]  ;;  %521 = vst.msk [vmem:[#allocation2 + $0x20] sm:$0xff] %vm515_vm2, %v8211_v13 }
   0xc   :  { %v99_v46 = vpack.c.bf16 %v50_v44, %v49_v43  ;;  %v53_v49 = vld [vmem:[%s11403_s0 + $0x100] sm:$0xff]  ;;  %v54_v50 = vld [vmem:[%s11403_s0 + $0x108] sm:$0xff]  ;;  %v100_v51 = vpack.c.bf16 %v52_v48, %v51_v47  ;;  %v55_v53 = vld [vmem:[%s11403_s0 + $0x110] sm:$0xff]  ;;  %526 = vst.msk [vmem:[#allocation2 + $0x48] sm:$0xff] %vm515_vm2, %v8211_v13 }
   0xd   :  { %v101_v52 = vpack.c.bf16 %v54_v50, %v53_v49  ;;  %v56_v54 = vld [vmem:[%s11403_s0 + $0x118] sm:$0xff]  ;;  %v57_v55 = vld [vmem:[%s11403_s0 + $0x120] sm:$0xff]  ;;  %v58_v56 = vld [vmem:[%s11403_s0 + $0x128] sm:$0xff]  ;;  %527 = vst.msk [vmem:[#allocation2 + $0x50] sm:$0xff] %vm515_vm2, %v8211_v13 }
   0xe   :  { %7033 = vmatmul.mubr.msk.bf16.gmra.mrb[4].mxu0 %vm125_vm1, %v88_v15  ;;  %v102_v57 = vpack.c.bf16 %v56_v54, %v55_v53  ;;  %v103_v58 = vpack.c.bf16 %v58_v56, %v57_v55  ;;  %v59_v59 = vld [vmem:[%s11403_s0 + $0x130] sm:$0xff]  ;;  %v60_v60 = vld [vmem:[%s11403_s0 + $0x138] sm:$0xff]  ;;  %v61_v61 = vld [vmem:[%s11403_s0 + $0x140] sm:$0xff]  ;;  %529 = vst.msk [vmem:[#allocation2 + $0x60] sm:$0xff] %vm515_vm2, %v8211_v13 }
   0xf   :  { %7036 = vmatprep.mubr.msk.bf16.mxu0 %vm125_vm1, %v89_v16  ;;  %v62_v62 = vld [vmem:[%s11403_s0 + $0x148] sm:$0xff]  ;;  %v104_v63 = vpack.c.bf16 %v60_v60, %v59_v59  ;;  %v63_v1 = vld [vmem:[%s11403_s0 + $0x150] sm:$0xff]  ;;  %v64_v2 = vld [vmem:[%s11403_s0 + $0x158] sm:$0xff]  ;;  %530 = vst.msk [vmem:[#allocation2 + $0x68] sm:$0xff] %vm515_vm2, %v8211_v13 }
  0x10   :  { %v105_v0 = vpack.c.bf16 %v62_v62, %v61_v61  ;;  %v65_v3 = vld [vmem:[%s11403_s0 + $0x160] sm:$0xff]  ;;  %v66_v4 = vld [vmem:[%s11403_s0 + $0x168] sm:$0xff]  ;;  %v106_v5 = vpack.c.bf16 %v64_v2, %v63_v1  ;;  %v8409_v7 = vld [vmem:[%s11403_s0 + $0x170] sm:$0xff]  ;;  %532 = vst.msk [vmem:[#allocation2 + $0x78] sm:$0xff] %vm515_vm2, %v8211_v13 }
  0x11   :  { %v107_v6 = vpack.c.bf16 %v66_v4, %v65_v3  ;;  %v8414_v8 = vld [vmem:[%s11403_s0 + $0x178] sm:$0xff]  ;;  %v8419_v9 = vld [vmem:[%s11403_s0 + $0x180] sm:$0xff]  ;;  %v8424_v10 = vld [vmem:[%s11403_s0 + $0x188] sm:$0xff]  ;;  %533 = vst.msk [vmem:[#allocation2 + $0x80] sm:$0xff] %vm515_vm2, %v8211_v13 }
  0x12   :  { %v108_v11 = vpack.c.bf16 %v8414_v8, %v8409_v7  ;;  %v109_v12 = vpack.c.bf16 %v8424_v10, %v8419_v9  ;;  %535 = vst.msk [vmem:[#allocation2 + $0x90] sm:$0xff] %vm515_vm2, %v8211_v13  ;;  %536 = vst.msk [vmem:[#allocation2 + $0x98] sm:$0xff] %vm515_vm2, %v8211_v13  ;;  %v71_v14 = vld [vmem:[%s11403_s0 + $0x190] sm:$0xff]  ;;  %v72_v15 = vld [vmem:[%s11403_s0 + $0x198] sm:$0xff] }
  0x13   :  { %538 = vst.msk [vmem:[#allocation2 + $0xa8] sm:$0xff] %vm515_vm2, %v8211_v13  ;;  %539 = vst.msk [vmem:[#allocation2 + $0xb0] sm:$0xff] %vm515_vm2, %v8211_v13  ;;  %v73_v16 = vld [vmem:[%s11403_s0 + $0x1a0] sm:$0xff]  ;;  %v74_v17 = vld [vmem:[%s11403_s0 + $0x1a8] sm:$0xff]  ;;  %v110_v18 = vpack.c.bf16 %v72_v15, %v71_v14 }
  0x14   :  { %541 = vst.msk [vmem:[#allocation2 + $0xc0] sm:$0xff] %vm515_vm2, %v8211_v13  ;;  %542 = vst.msk [vmem:[#allocation2 + $0xc8] sm:$0xff] %vm515_vm2, %v8211_v13  ;;  %v111_v19 = vpack.c.bf16 %v74_v17, %v73_v16  ;;  %v8200_v20 = vld [vmem:[%s11404_s3 + $0x8] sm:$0xff]   ;;  %v76_v23 = vld [vmem:[%s11403_s0 + $0x1b8] sm:$0xff] }
  0x15   :  { %544 = vst.msk [vmem:[#allocation2 + $0xd8] sm:$0xff] %vm515_vm2, %v8211_v13  ;;  %545 = vst.msk [vmem:[#allocation2 + $0xe0] sm:$0xff] %vm515_vm2, %v8211_v13  ;;  %7092 = vmatprep.subr.bf16.mxu0 %v8200_v20  ;;  %v77_v24 = vld [vmem:[%s11403_s0 + $0x1c0] sm:$0xff]  ;;  %v78_v25 = vld [vmem:[%s11403_s0 + $0x1c8] sm:$0xff] }
  0x16   :  { %7037 = vmatmul.mubr.msk.bf16.gmra.mrb[8].mxu0 %vm125_vm1, %v90_v21  ;;  %547 = vst.msk [vmem:[#allocation2 + $0xf0] sm:$0xff] %vm515_vm2, %v8211_v13  ;;  %548 = vst.msk [vmem:[#allocation2 + $0xf8] sm:$0xff] %vm515_vm2, %v8211_v13  ;;  %v8201_v21 = vld [vmem:[%s11404_s3 + $0x20] sm:$0xff]   ;;  %v79_v29 = vld [vmem:[%s11403_s0 + $0x1d0] sm:$0xff] }
  0x17   :  { %7040 = vmatprep.mubr.msk.bf16.mxu0 %vm125_vm1, %v91_v22  ;;  %550 = vst.msk [vmem:[#allocation2 + $0x108] sm:$0xff] %vm515_vm2, %v8211_v13  ;;  %551 = vst.msk [vmem:[#allocation2 + $0x110] sm:$0xff] %vm515_vm2, %v8211_v13  ;;  %v75_v22 = vld [vmem:[%s11403_s0 + $0x1b0] sm:$0xff]  ;;  %7356 = vmatprep.subr.bf16.mxu1 %v8201_v21  ;;  %v80_v30 = vld [vmem:[%s11403_s0 + $0x1d8] sm:$0xff] }
  0x18   :  { %553 = vst.msk [vmem:[#allocation2 + $0x120] sm:$0xff] %vm515_vm2, %v8211_v13  ;;  %554 = vst.msk [vmem:[#allocation2 + $0x128] sm:$0xff] %vm515_vm2, %v8211_v13  ;;  %7093 = vmatpush3.bf16.msra.mxu0 %v8200_v20  ;;  %7357 = vmatpush3.bf16.msra.mxu1 %v8201_v21  ;;  %v112_v26 = vpack.c.bf16 %v76_v23, %v75_v22  ;;  %v81_v31 = vld [vmem:[%s11403_s0 + $0x1e0] sm:$0xff]  ;;  %v82_v32 = vld [vmem:[%s11403_s0 + $0x1e8] sm:$0xff] }
  0x19   :  { %556 = vst.msk [vmem:[#allocation2 + $0x138] sm:$0xff] %vm515_vm2, %v8211_v13  ;;  %557 = vst.msk [vmem:[#allocation2 + $0x140] sm:$0xff] %vm515_vm2, %v8211_v13  ;;  %v83_v35 = vld [vmem:[%s11403_s0 + $0x1f0] sm:$0xff]  ;;  %v84_v36 = vld [vmem:[%s11403_s0 + $0x1f8] sm:$0xff] }
  0x1a   :  { %559 = vst.msk [vmem:[#allocation2 + $0x150] sm:$0xff] %vm515_vm2, %v8211_v13  ;;  %560 = vst.msk [vmem:[#allocation2 + $0x158] sm:$0xff] %vm515_vm2, %v8211_v13  ;;  %v788_v37 = vld [vmem:[#allocation2 + $0x1] sm:$0xff]  ;;  %v8719_v41 = vld [vmem:[%s11405_s2] ss:$0 sm:$0xff] }
  0x1b   :  { %562 = vst.msk [vmem:[#allocation2 + $0x168] sm:$0xff] %vm515_vm2, %v8211_v13  ;;  %563 = vst.msk [vmem:[#allocation2 + $0x170] sm:$0xff] %vm515_vm2, %v8211_v13  ;;  %v8203_v55 = vld [vmem:[%s11404_s3] sm:$0xff]   ;;  %v8745_v2 = vld [vmem:[%s11404_s3 + $0x30] sm:$0xff]  }
  0x1c   :  { %565 = vst.msk [vmem:[#allocation2 + $0x180] sm:$0xff] %vm515_vm2, %v8211_v13  ;;  %566 = vst.msk [vmem:[#allocation2 + $0x188] sm:$0xff] %vm515_vm2, %v8211_v13  ;;  %7158 = vmatprep.subr.bf16.mxu0 %v8203_v55 }
  0x1d   :  { %568 = vst.msk [vmem:[#allocation2 + $0x198] sm:$0xff] %vm515_vm2, %v8211_v13  ;;  %569 = vst.msk [vmem:[#allocation2 + $0x1a0] sm:$0xff] %vm515_vm2, %v8211_v13 }
  0x1e   :  { %7041 = vmatmul.mubr.msk.bf16.gmra.mrb[12].mxu0 %vm125_vm1, %v92_v27  ;;  %571 = vst.msk [vmem:[#allocation2 + $0x1b0] sm:$0xff] %vm515_vm2, %v8211_v13  ;;  %572 = vst.msk [vmem:[#allocation2 + $0x1b8] sm:$0xff] %vm515_vm2, %v8211_v13  ;;  %v113_v27 = vpack.c.bf16 %v78_v25, %v77_v24 }
  0x1f   :  { %7044 = vmatprep.mubr.msk.bf16.mxu0 %vm125_vm1, %v93_v28  ;;  %574 = vst.msk [vmem:[#allocation2 + $0x1c8] sm:$0xff] %vm515_vm2, %v8211_v13  ;;  %575 = vst.msk [vmem:[#allocation2 + $0x1d0] sm:$0xff] %vm515_vm2, %v8211_v13  ;;  %v8689_v28 = vld [vmem:[%s11404_s3 + $0x28] sm:$0xff]  }
  0x20   :  { %577 = vst.msk [vmem:[#allocation2 + $0x1e0] sm:$0xff] %vm515_vm2, %v8211_v13  ;;  %578 = vst.msk [vmem:[#allocation2 + $0x1e8] sm:$0xff] %vm515_vm2, %v8211_v13  ;;  %7422 = vmatprep.subr.bf16.mxu1 %v8689_v28 }
  0x21   :  { %580 = vst.msk [vmem:[#allocation2 + $0x1f8] sm:$0xff] %vm515_vm2, %v8211_v13  ;;  %581 = vst.msk [vmem:[#allocation2 + $0x200] sm:$0xff] %vm515_vm2, %v8211_v13 }
  0x22   :  { %583 = vst.msk [vmem:[#allocation2 + $0x210] sm:$0xff] %vm515_vm2, %v8211_v13  ;;  %584 = vst.msk [vmem:[#allocation2 + $0x218] sm:$0xff] %vm515_vm2, %v8211_v13 }
  0x23   :  { %586 = vst.msk [vmem:[#allocation2 + $0x228] sm:$0xff] %vm515_vm2, %v8211_v13  ;;  %587 = vst.msk [vmem:[#allocation2 + $0x230] sm:$0xff] %vm515_vm2, %v8211_v13 }
  0x24   :  { %589 = vst.msk [vmem:[#allocation2 + $0x240] sm:$0xff] %vm515_vm2, %v8211_v13  ;;  %590 = vst.msk [vmem:[#allocation2 + $0x248] sm:$0xff] %vm515_vm2, %v8211_v13 }
  0x25   :  { %592 = vst.msk [vmem:[#allocation2 + $0x258] sm:$0xff] %vm515_vm2, %v8211_v13  ;;  %593 = vst.msk [vmem:[#allocation2 + $0x260] sm:$0xff] %vm515_vm2, %v8211_v13 }
  0x26   :  { %7045 = vmatmul.mubr.msk.bf16.gmra.mrb[16].mxu0 %vm125_vm1, %v94_v33  ;;  %595 = vst.msk [vmem:[#allocation2 + $0x270] sm:$0xff] %vm515_vm2, %v8211_v13  ;;  %596 = vst.msk [vmem:[#allocation2 + $0x278] sm:$0xff] %vm515_vm2, %v8211_v13  ;;  %v114_v33 = vpack.c.bf16 %v80_v30, %v79_v29 }
  0x27   :  { %7048 = vmatprep.mubr.msk.bf16.mxu0 %vm125_vm1, %v95_v34  ;;  %598 = vst.msk [vmem:[#allocation2 + $0x288] sm:$0xff] %vm515_vm2, %v8211_v13  ;;  %599 = vst.msk [vmem:[#allocation2 + $0x290] sm:$0xff] %vm515_vm2, %v8211_v13  ;;  %v115_v34 = vpack.c.bf16 %v82_v32, %v81_v31 }
  0x28   :  { %601 = vst.msk [vmem:[#allocation2 + $0x2a0] sm:$0xff] %vm515_vm2, %v8211_v13  ;;  %602 = vst.msk [vmem:[#allocation2 + $0x2a8] sm:$0xff] %vm515_vm2, %v8211_v13 }
  0x29   :  { %604 = vst.msk [vmem:[#allocation2 + $0x2b8] sm:$0xff] %vm515_vm2, %v8211_v13  ;;  %605 = vst.msk [vmem:[#allocation2 + $0x2c0] sm:$0xff] %vm515_vm2, %v8211_v13 }
  0x2a   :  { %607 = vst.msk [vmem:[#allocation2 + $0x2d0] sm:$0xff] %vm515_vm2, %v8211_v13  ;;  %608 = vst.msk [vmem:[#allocation2 + $0x2d8] sm:$0xff] %vm515_vm2, %v8211_v13 }
  0x2b   :  { %610 = vst.msk [vmem:[#allocation2 + $0x2e8] sm:$0xff] %vm515_vm2, %v8211_v13  ;;  %611 = vst.msk [vmem:[#allocation2 + $0x2f0] sm:$0xff] %vm515_vm2, %v8211_v13 }
  0x2c   :  { %613 = vst.msk [vmem:[#allocation2 + $0x300] sm:$0xff] %vm515_vm2, %v8211_v13  ;;  %614 = vst.msk [vmem:[#allocation2 + $0x308] sm:$0xff] %vm515_vm2, %v8211_v13 }
  0x2d   :  { %616 = vst.msk [vmem:[#allocation2 + $0x318] sm:$0xff] %vm515_vm2, %v8211_v13  ;;  %617 = vst.msk [vmem:[#allocation2 + $0x320] sm:$0xff] %vm515_vm2, %v8211_v13 }
  0x2e   :  { %7049 = vmatmul.mubr.msk.bf16.gmra.mrb[20].mxu0 %vm125_vm1, %v96_v39  ;;  %619 = vst.msk [vmem:[#allocation2 + $0x330] sm:$0xff] %vm515_vm2, %v8211_v13  ;;  %620 = vst.msk [vmem:[#allocation2 + $0x338] sm:$0xff] %vm515_vm2, %v8211_v13  ;;  %v116_v39 = vpack.c.bf16 %v84_v36, %v83_v35 }
  0x2f   :  { %7052 = vmatprep.mubr.msk.bf16.mxu0 %vm125_vm1, %v97_v40  ;;  %622 = vst.msk [vmem:[#allocation2 + $0x348] sm:$0xff] %vm515_vm2, %v8211_v13  ;;  %623 = vst.msk [vmem:[#allocation2 + $0x350] sm:$0xff] %vm515_vm2, %v8211_v13 }
  0x30   :  { %525 = vst.msk [vmem:[#allocation2 + $0x40] sm:$0x3] %vm518_vm3, %v8211_v13  ;;  %519 = vst.msk [vmem:[#allocation2 + $0x10] sm:$0x3] %vm518_vm3, %v8211_v13 }
  0x31   :  { %522 = vst.msk [vmem:[#allocation2 + $0x28] sm:$0x3] %vm518_vm3, %v8211_v13  ;;  %528 = vst.msk [vmem:[#allocation2 + $0x58] sm:$0x3] %vm518_vm3, %v8211_v13 }
  0x32   :  { %531 = vst.msk [vmem:[#allocation2 + $0x70] sm:$0x3] %vm518_vm3, %v8211_v13  ;;  %534 = vst.msk [vmem:[#allocation2 + $0x88] sm:$0x3] %vm518_vm3, %v8211_v13 }
  0x33   :  { %537 = vst.msk [vmem:[#allocation2 + $0xa0] sm:$0x3] %vm518_vm3, %v8211_v13  ;;  %540 = vst.msk [vmem:[#allocation2 + $0xb8] sm:$0x3] %vm518_vm3, %v8211_v13 }
  0x34   :  { %543 = vst.msk [vmem:[#allocation2 + $0xd0] sm:$0x3] %vm518_vm3, %v8211_v13  ;;  %546 = vst.msk [vmem:[#allocation2 + $0xe8] sm:$0x3] %vm518_vm3, %v8211_v13 }
  0x35   :  { %549 = vst.msk [vmem:[#allocation2 + $0x100] sm:$0x3] %vm518_vm3, %v8211_v13  ;;  %552 = vst.msk [vmem:[#allocation2 + $0x118] sm:$0x3] %vm518_vm3, %v8211_v13 }
  0x36   :  { %7053 = vmatmul.mubr.msk.bf16.gmra.mrb[24].mxu0 %vm125_vm1, %v98_v45  ;;  %555 = vst.msk [vmem:[#allocation2 + $0x130] sm:$0x3] %vm518_vm3, %v8211_v13  ;;  %558 = vst.msk [vmem:[#allocation2 + $0x148] sm:$0x3] %vm518_vm3, %v8211_v13 }
  0x37   :  { %7056 = vmatprep.mubr.msk.bf16.mxu0 %vm125_vm1, %v99_v46  ;;  %561 = vst.msk [vmem:[#allocation2 + $0x160] sm:$0x3] %vm518_vm3, %v8211_v13  ;;  %564 = vst.msk [vmem:[#allocation2 + $0x178] sm:$0x3] %vm518_vm3, %v8211_v13  ;;  %v789_v38 = vld [vmem:[#allocation2 + $0x9] sm:$0xff] }
  0x38   :  { %567 = vst.msk [vmem:[#allocation2 + $0x190] sm:$0x3] %vm518_vm3, %v8211_v13  ;;  %570 = vst.msk [vmem:[#allocation2 + $0x1a8] sm:$0x3] %vm518_vm3, %v8211_v13  ;;  %v852_v40 = vpack.c.bf16 %v789_v38, %v788_v37 }
  0x39   :  { %573 = vst.msk [vmem:[#allocation2 + $0x1c0] sm:$0x3] %vm518_vm3, %v8211_v13  ;;  %576 = vst.msk [vmem:[#allocation2 + $0x1d8] sm:$0x3] %vm518_vm3, %v8211_v13 }
  0x3a   :  { %579 = vst.msk [vmem:[#allocation2 + $0x1f0] sm:$0x3] %vm518_vm3, %v8211_v13  ;;  %582 = vst.msk [vmem:[#allocation2 + $0x208] sm:$0x3] %vm518_vm3, %v8211_v13 }
  0x3b   :  { %585 = vst.msk [vmem:[#allocation2 + $0x220] sm:$0x3] %vm518_vm3, %v8211_v13  ;;  %588 = vst.msk [vmem:[#allocation2 + $0x238] sm:$0x3] %vm518_vm3, %v8211_v13 }
  0x3c   :  { %591 = vst.msk [vmem:[#allocation2 + $0x250] sm:$0x3] %vm518_vm3, %v8211_v13  ;;  %594 = vst.msk [vmem:[#allocation2 + $0x268] sm:$0x3] %vm518_vm3, %v8211_v13 }
  0x3d   :  { %597 = vst.msk [vmem:[#allocation2 + $0x280] sm:$0x3] %vm518_vm3, %v8211_v13  ;;  %600 = vst.msk [vmem:[#allocation2 + $0x298] sm:$0x3] %vm518_vm3, %v8211_v13 }
  0x3e   :  { %7057 = vmatmul.mubr.msk.bf16.gmra.mrb[28].mxu0 %vm125_vm1, %v100_v51  ;;  %603 = vst.msk [vmem:[#allocation2 + $0x2b0] sm:$0x3] %vm518_vm3, %v8211_v13  ;;  %606 = vst.msk [vmem:[#allocation2 + $0x2c8] sm:$0x3] %vm518_vm3, %v8211_v13 }
  0x3f   :  { %7060 = vmatprep.mubr.msk.bf16.mxu0 %vm125_vm1, %v101_v52  ;;  %609 = vst.msk [vmem:[#allocation2 + $0x2e0] sm:$0x3] %vm518_vm3, %v8211_v13  ;;  %612 = vst.msk [vmem:[#allocation2 + $0x2f8] sm:$0x3] %vm518_vm3, %v8211_v13 }
  0x40   :  { %615 = vst.msk [vmem:[#allocation2 + $0x310] sm:$0x3] %vm518_vm3, %v8211_v13  ;;  %618 = vst.msk [vmem:[#allocation2 + $0x328] sm:$0x3] %vm518_vm3, %v8211_v13 }
  0x41   :  { %621 = vst.msk [vmem:[#allocation2 + $0x340] sm:$0x3] %vm518_vm3, %v8211_v13  ;;  %624 = vst.msk [vmem:[#allocation2 + $0x358] sm:$0x3] %vm518_vm3, %v8211_v13 }
  0x46   :  { %7061 = vmatmul.mubr.msk.bf16.gmra.mrb[32].mxu0 %vm125_vm1, %v102_v57 }
  0x47   :  { %7064 = vmatprep.mubr.msk.bf16.mxu0 %vm125_vm1, %v103_v58 }
  0x4e   :  { %7065 = vmatmul.mubr.msk.bf16.gmra.mrb[36].mxu0 %vm125_vm1, %v104_v63 }
  0x4f   :  { %7068 = vmatprep.mubr.msk.bf16.mxu0 %vm125_vm1, %v105_v0 }
  0x56   :  { %7069 = vmatmul.mubr.msk.bf16.gmra.mrb[40].mxu0 %vm125_vm1, %v106_v5 }
  0x57   :  { %7072 = vmatprep.mubr.msk.bf16.mxu0 %vm125_vm1, %v107_v6 }
  0x5e   :  { %7073 = vmatmul.mubr.msk.bf16.gmra.mrb[44].mxu0 %vm125_vm1, %v108_v11 }
  0x5f   :  { %7076 = vmatprep.mubr.msk.bf16.mxu0 %vm125_vm1, %v109_v12 }
  0x66   :  { %7077 = vmatmul.mubr.msk.bf16.gmra.mrb[48].mxu0 %vm125_vm1, %v110_v18 }
  0x67   :  { %7080 = vmatprep.mubr.msk.bf16.mxu0 %vm125_vm1, %v111_v19 }
  0x6e   :  { %7081 = vmatmul.mubr.msk.bf16.gmra.mrb[52].mxu0 %vm125_vm1, %v112_v26 }
  0x6f   :  { %7084 = vmatprep.mubr.msk.bf16.mxu0 %vm125_vm1, %v113_v27 }
  0x76   :  { %7085 = vmatmul.mubr.msk.bf16.gmra.mrb[56].mxu0 %vm125_vm1, %v114_v33 }
  0x77   :  { %7088 = vmatprep.mubr.msk.bf16.mxu0 %vm125_vm1, %v115_v34 }
  0x7e   :  { %7089 = vmatmul.mubr.msk.bf16.gmra.mrb[60].mxu0 %vm125_vm1, %v116_v39 }
  0x7f   :  { %7094 = vmatprep.mubr.msk.bf16.mxu0 %vm515_vm2, %v852_v40 }
  0xd9   :  { %v7030_v42 = vpop.f32.mrb[0].mxu0 }
  0xda   :  { %v269_v43 = vadd.f32 %v7030_v42, %v8719_v41  ;;  %v260_v44 = vpop.f32.mrb[1].mxu0 }
  0xdb   :  { %v261_v45 = vadd.f32 %v8719_v41, %v260_v44  ;;  %v7031_v46 = vpop.f32.mrb[2].mxu0 }
  0xdc   :  { %628 = vst.msk [vmem:[#allocation2 + $0x31] sm:$0xff] %vm515_vm2, %v269_v43  ;;  %v272_v47 = vadd.f32 %v7031_v46, %v8719_v41  ;;  %v263_v48 = vpop.f32.mrb[3].mxu0 }
  0xdd   :  { %626 = vst.msk [vmem:[#allocation2 + $0x19] sm:$0xff] %vm515_vm2, %v261_v45  ;;  %v264_v49 = vadd.f32 %v8719_v41, %v263_v48 }
  0xde   :  { %629 = vst.msk [vmem:[#allocation2 + $0x39] sm:$0xff] %vm515_vm2, %v272_v47 }
  0xdf   :  { %627 = vst.msk [vmem:[#allocation2 + $0x21] sm:$0xff] %vm515_vm2, %v264_v49 }
  0xe1   :  { %v7034_v50 = vpop.f32.mrb[4].mxu0 }
  0xe2   :  { %v285_v51 = vadd.f32 %v7034_v50, %v8719_v41  ;;  %v276_v52 = vpop.f32.mrb[5].mxu0 }
  0xe3   :  { %v277_v53 = vadd.f32 %v8719_v41, %v276_v52  ;;  %v7035_v54 = vpop.f32.mrb[6].mxu0  ;;  %v792_v63 = vld [vmem:[#allocation2 + $0x31] sm:$0xff] }
  0xe4   :  { %632 = vst.msk [vmem:[#allocation2 + $0x61] sm:$0xff] %vm515_vm2, %v285_v51  ;;  %v288_v56 = vadd.f32 %v7035_v54, %v8719_v41  ;;  %v279_v57 = vpop.f32.mrb[7].mxu0  ;;  %v790_v60 = vld [vmem:[#allocation2 + $0x19] sm:$0xff] }
  0xe5   :  { %630 = vst.msk [vmem:[#allocation2 + $0x49] sm:$0xff] %vm515_vm2, %v277_v53  ;;  %v280_v58 = vadd.f32 %v8719_v41, %v279_v57  ;;  %v793_v59 = vld [vmem:[#allocation2 + $0x39] sm:$0xff] }
  0xe6   :  { %633 = vst.msk [vmem:[#allocation2 + $0x69] sm:$0xff] %vm515_vm2, %v288_v56  ;;  %v791_v61 = vld [vmem:[#allocation2 + $0x21] sm:$0xff]  ;;  %v854_v0 = vpack.c.bf16 %v793_v59, %v792_v63 }
  0xe7   :  { %631 = vst.msk [vmem:[#allocation2 + $0x51] sm:$0xff] %vm515_vm2, %v280_v58  ;;  %v853_v62 = vpack.c.bf16 %v791_v61, %v790_v60 }
  0xe9   :  { %v7038_v1 = vpop.f32.mrb[8].mxu0  ;;  %7095 = vmatmul.mubr.msk.bf16.vlgmr.msra.gmra.mrb[64].mxu0 %vm515_vm2, %v853_v62  ;;  %7358 = vmatprep.mubr.msk.bf16.mxu1 %vm515_vm2, %v853_v62 }
  0xea   :  { %v301_v3 = vadd.f32 %v7038_v1, %v8719_v41  ;;  %v292_v4 = vpop.f32.mrb[9].mxu0  ;;  %7098 = vmatprep.mubr.msk.bf16.mxu0 %vm515_vm2, %v854_v0  ;;  %7359 = vmatmul.mubr.msk.bf16.vlgmr.msra.gmra.mrb[0].mxu1 %vm515_vm2, %v854_v0 }
  0xeb   :  { %v293_v5 = vadd.f32 %v8719_v41, %v292_v4  ;;  %7423 = vmatpush3.bf16.msra.mxu1 %v8689_v28  ;;  %v7039_v6 = vpop.f32.mrb[10].mxu0  ;;  %7159 = vmatpush3.bf16.msra.mxu0 %v8203_v55  ;;  %v796_v14 = vld [vmem:[#allocation2 + $0x61] sm:$0xff] }
  0xec   :  { %636 = vst.msk [vmem:[#allocation2 + $0x91] sm:$0xff] %vm515_vm2, %v301_v3  ;;  %v304_v7 = vadd.f32 %v7039_v6, %v8719_v41  ;;  %v295_v8 = vpop.f32.mrb[11].mxu0  ;;  %7488 = vmatprep.subr.bf16.mxu1 %v8745_v2  ;;  %v794_v11 = vld [vmem:[#allocation2 + $0x49] sm:$0xff] }
  0xed   :  { %634 = vst.msk [vmem:[#allocation2 + $0x79] sm:$0xff] %vm515_vm2, %v293_v5  ;;  %v296_v9 = vadd.f32 %v8719_v41, %v295_v8  ;;  %v797_v10 = vld [vmem:[#allocation2 + $0x69] sm:$0xff] }
  0xee   :  { %637 = vst.msk [vmem:[#allocation2 + $0x99] sm:$0xff] %vm515_vm2, %v304_v7  ;;  %v795_v12 = vld [vmem:[#allocation2 + $0x51] sm:$0xff]  ;;  %v856_v15 = vpack.c.bf16 %v797_v10, %v796_v14 }
  0xef   :  { %635 = vst.msk [vmem:[#allocation2 + $0x81] sm:$0xff] %vm515_vm2, %v296_v9  ;;  %v855_v13 = vpack.c.bf16 %v795_v12, %v794_v11 }
  0xf1   :  { %v7042_v16 = vpop.f32.mrb[12].mxu0  ;;  %7099 = vmatmul.mubr.msk.bf16.gmra.mrb[68].mxu0 %vm515_vm2, %v855_v13  ;;  %7362 = vmatprep.mubr.msk.bf16.mxu1 %vm515_vm2, %v855_v13 }
  0xf2   :  { %v317_v17 = vadd.f32 %v7042_v16, %v8719_v41  ;;  %v308_v18 = vpop.f32.mrb[13].mxu0  ;;  %7102 = vmatprep.mubr.msk.bf16.mxu0 %vm515_vm2, %v856_v15  ;;  %7363 = vmatmul.mubr.msk.bf16.gmra.mrb[4].mxu1 %vm515_vm2, %v856_v15 }
  0xf3   :  { %v309_v19 = vadd.f32 %v8719_v41, %v308_v18  ;;  %v7043_v20 = vpop.f32.mrb[14].mxu0  ;;  %v800_v28 = vld [vmem:[#allocation2 + $0x91] sm:$0xff] }
  0xf4   :  { %640 = vst.msk [vmem:[#allocation2 + $0xc1] sm:$0xff] %vm515_vm2, %v317_v17  ;;  %v320_v21 = vadd.f32 %v7043_v20, %v8719_v41  ;;  %v311_v22 = vpop.f32.mrb[15].mxu0  ;;  %v798_v25 = vld [vmem:[#allocation2 + $0x79] sm:$0xff] }
  0xf5   :  { %638 = vst.msk [vmem:[#allocation2 + $0xa9] sm:$0xff] %vm515_vm2, %v309_v19  ;;  %v312_v23 = vadd.f32 %v8719_v41, %v311_v22  ;;  %v801_v24 = vld [vmem:[#allocation2 + $0x99] sm:$0xff] }
  0xf6   :  { %641 = vst.msk [vmem:[#allocation2 + $0xc9] sm:$0xff] %vm515_vm2, %v320_v21  ;;  %v799_v26 = vld [vmem:[#allocation2 + $0x81] sm:$0xff]  ;;  %v858_v29 = vpack.c.bf16 %v801_v24, %v800_v28 }
  0xf7   :  { %639 = vst.msk [vmem:[#allocation2 + $0xb1] sm:$0xff] %vm515_vm2, %v312_v23  ;;  %v857_v27 = vpack.c.bf16 %v799_v26, %v798_v25 }
  0xf9   :  { %v7046_v30 = vpop.f32.mrb[16].mxu0  ;;  %7103 = vmatmul.mubr.msk.bf16.gmra.mrb[72].mxu0 %vm515_vm2, %v857_v27  ;;  %7366 = vmatprep.mubr.msk.bf16.mxu1 %vm515_vm2, %v857_v27 }
  0xfa   :  { %v333_v31 = vadd.f32 %v7046_v30, %v8719_v41  ;;  %v324_v32 = vpop.f32.mrb[17].mxu0  ;;  %7106 = vmatprep.mubr.msk.bf16.mxu0 %vm515_vm2, %v858_v29  ;;  %7367 = vmatmul.mubr.msk.bf16.gmra.mrb[8].mxu1 %vm515_vm2, %v858_v29  ;;  %v820_v29 = vld [vmem:[#allocation2 + $0x1b1] sm:$0xff]  ;;  %v821_v30 = vld [vmem:[#allocation2 + $0x1b9] sm:$0xff] }
  0xfb   :  { %v325_v33 = vadd.f32 %v8719_v41, %v324_v32  ;;  %v7047_v34 = vpop.f32.mrb[18].mxu0  ;;  %v804_v43 = vld [vmem:[#allocation2 + $0xc1] sm:$0xff] }
  0xfc   :  { %644 = vst.msk [vmem:[#allocation2 + $0xf1] sm:$0xff] %vm515_vm2, %v333_v31  ;;  %v336_v35 = vadd.f32 %v7047_v34, %v8719_v41  ;;  %v327_v36 = vpop.f32.mrb[19].mxu0  ;;  %v802_v39 = vld [vmem:[#allocation2 + $0xa9] sm:$0xff] }
  0xfd   :  { %642 = vst.msk [vmem:[#allocation2 + $0xd9] sm:$0xff] %vm515_vm2, %v325_v33  ;;  %v328_v37 = vadd.f32 %v8719_v41, %v327_v36  ;;  %v805_v38 = vld [vmem:[#allocation2 + $0xc9] sm:$0xff] }
  0xfe   :  { %645 = vst.msk [vmem:[#allocation2 + $0xf9] sm:$0xff] %vm515_vm2, %v336_v35  ;;  %v803_v40 = vld [vmem:[#allocation2 + $0xb1] sm:$0xff]  ;;  %v860_v44 = vpack.c.bf16 %v805_v38, %v804_v43 }
  0xff   :  { %643 = vst.msk [vmem:[#allocation2 + $0xe1] sm:$0xff] %vm515_vm2, %v328_v37  ;;  %v859_v42 = vpack.c.bf16 %v803_v40, %v802_v39  ;;  %v868_v37 = vpack.c.bf16 %v821_v30, %v820_v29 }
 0x101   :  { %v7050_v45 = vpop.f32.mrb[20].mxu0  ;;  %7107 = vmatmul.mubr.msk.bf16.gmra.mrb[76].mxu0 %vm515_vm2, %v859_v42  ;;  %7370 = vmatprep.mubr.msk.bf16.mxu1 %vm515_vm2, %v859_v42 }
 0x102   :  { %v349_v46 = vadd.f32 %v7050_v45, %v8719_v41  ;;  %v340_v47 = vpop.f32.mrb[21].mxu0  ;;  %7110 = vmatprep.mubr.msk.bf16.mxu0 %vm515_vm2, %v860_v44  ;;  %7371 = vmatmul.mubr.msk.bf16.gmra.mrb[12].mxu1 %vm515_vm2, %v860_v44 }
 0x103   :  { %v341_v48 = vadd.f32 %v8719_v41, %v340_v47  ;;  %v7051_v49 = vpop.f32.mrb[22].mxu0  ;;  %v808_v57 = vld [vmem:[#allocation2 + $0xf1] sm:$0xff] }
 0x104   :  { %648 = vst.msk [vmem:[#allocation2 + $0x121] sm:$0xff] %vm515_vm2, %v349_v46  ;;  %v352_v50 = vadd.f32 %v7051_v49, %v8719_v41  ;;  %v343_v51 = vpop.f32.mrb[23].mxu0  ;;  %v806_v54 = vld [vmem:[#allocation2 + $0xd9] sm:$0xff] }
 0x105   :  { %646 = vst.msk [vmem:[#allocation2 + $0x109] sm:$0xff] %vm515_vm2, %v341_v48  ;;  %v344_v52 = vadd.f32 %v8719_v41, %v343_v51  ;;  %v809_v53 = vld [vmem:[#allocation2 + $0xf9] sm:$0xff] }
 0x106   :  { %649 = vst.msk [vmem:[#allocation2 + $0x129] sm:$0xff] %vm515_vm2, %v352_v50  ;;  %v807_v55 = vld [vmem:[#allocation2 + $0xe1] sm:$0xff]  ;;  %v862_v58 = vpack.c.bf16 %v809_v53, %v808_v57 }
 0x107   :  { %647 = vst.msk [vmem:[#allocation2 + $0x111] sm:$0xff] %vm515_vm2, %v344_v52  ;;  %v861_v56 = vpack.c.bf16 %v807_v55, %v806_v54 }
 0x109   :  { %v7054_v59 = vpop.f32.mrb[24].mxu0  ;;  %7111 = vmatmul.mubr.msk.bf16.gmra.mrb[80].mxu0 %vm515_vm2, %v861_v56  ;;  %7374 = vmatprep.mubr.msk.bf16.mxu1 %vm515_vm2, %v861_v56 }
 0x10a   :  { %v365_v60 = vadd.f32 %v7054_v59, %v8719_v41  ;;  %v356_v61 = vpop.f32.mrb[25].mxu0  ;;  %7114 = vmatprep.mubr.msk.bf16.mxu0 %vm515_vm2, %v862_v58  ;;  %7375 = vmatmul.mubr.msk.bf16.gmra.mrb[16].mxu1 %vm515_vm2, %v862_v58 }
 0x10b   :  { %v357_v62 = vadd.f32 %v8719_v41, %v356_v61  ;;  %v7055_v63 = vpop.f32.mrb[26].mxu0  ;;  %v812_v8 = vld [vmem:[#allocation2 + $0x121] sm:$0xff] }
 0x10c   :  { %652 = vst.msk [vmem:[#allocation2 + $0x151] sm:$0xff] %vm515_vm2, %v365_v60  ;;  %v368_v0 = vadd.f32 %v7055_v63, %v8719_v41  ;;  %v359_v1 = vpop.f32.mrb[27].mxu0  ;;  %v810_v5 = vld [vmem:[#allocation2 + $0x109] sm:$0xff] }
 0x10d   :  { %650 = vst.msk [vmem:[#allocation2 + $0x139] sm:$0xff] %vm515_vm2, %v357_v62  ;;  %v360_v3 = vadd.f32 %v8719_v41, %v359_v1  ;;  %v813_v4 = vld [vmem:[#allocation2 + $0x129] sm:$0xff] }
 0x10e   :  { %653 = vst.msk [vmem:[#allocation2 + $0x159] sm:$0xff] %vm515_vm2, %v368_v0  ;;  %v811_v6 = vld [vmem:[#allocation2 + $0x111] sm:$0xff]  ;;  %v864_v9 = vpack.c.bf16 %v813_v4, %v812_v8 }
 0x10f   :  { %651 = vst.msk [vmem:[#allocation2 + $0x141] sm:$0xff] %vm515_vm2, %v360_v3  ;;  %v863_v7 = vpack.c.bf16 %v811_v6, %v810_v5 }
 0x111   :  { %v7058_v10 = vpop.f32.mrb[28].mxu0  ;;  %7115 = vmatmul.mubr.msk.bf16.gmra.mrb[84].mxu0 %vm515_vm2, %v863_v7  ;;  %7378 = vmatprep.mubr.msk.bf16.mxu1 %vm515_vm2, %v863_v7 }
 0x112   :  { %v381_v11 = vadd.f32 %v7058_v10, %v8719_v41  ;;  %v372_v12 = vpop.f32.mrb[29].mxu0  ;;  %7118 = vmatprep.mubr.msk.bf16.mxu0 %vm515_vm2, %v864_v9  ;;  %7379 = vmatmul.mubr.msk.bf16.gmra.mrb[20].mxu1 %vm515_vm2, %v864_v9 }
 0x113   :  { %v373_v13 = vadd.f32 %v8719_v41, %v372_v12  ;;  %v7059_v14 = vpop.f32.mrb[30].mxu0  ;;  %v816_v22 = vld [vmem:[#allocation2 + $0x151] sm:$0xff] }
 0x114   :  { %656 = vst.msk [vmem:[#allocation2 + $0x181] sm:$0xff] %vm515_vm2, %v381_v11  ;;  %v384_v15 = vadd.f32 %v7059_v14, %v8719_v41  ;;  %v375_v16 = vpop.f32.mrb[31].mxu0  ;;  %v814_v19 = vld [vmem:[#allocation2 + $0x139] sm:$0xff] }
 0x115   :  { %654 = vst.msk [vmem:[#allocation2 + $0x169] sm:$0xff] %vm515_vm2, %v373_v13  ;;  %v376_v17 = vadd.f32 %v8719_v41, %v375_v16  ;;  %v817_v18 = vld [vmem:[#allocation2 + $0x159] sm:$0xff] }
 0x116   :  { %657 = vst.msk [vmem:[#allocation2 + $0x189] sm:$0xff] %vm515_vm2, %v384_v15  ;;  %v815_v20 = vld [vmem:[#allocation2 + $0x141] sm:$0xff]  ;;  %v866_v23 = vpack.c.bf16 %v817_v18, %v816_v22 }
 0x117   :  { %655 = vst.msk [vmem:[#allocation2 + $0x171] sm:$0xff] %vm515_vm2, %v376_v17  ;;  %v865_v21 = vpack.c.bf16 %v815_v20, %v814_v19 }
 0x119   :  { %v7062_v24 = vpop.f32.mrb[32].mxu0  ;;  %7119 = vmatmul.mubr.msk.bf16.gmra.mrb[88].mxu0 %vm515_vm2, %v865_v21  ;;  %7382 = vmatprep.mubr.msk.bf16.mxu1 %vm515_vm2, %v865_v21 }
 0x11a   :  { %v397_v25 = vadd.f32 %v7062_v24, %v8719_v41  ;;  %v388_v26 = vpop.f32.mrb[33].mxu0  ;;  %7122 = vmatprep.mubr.msk.bf16.mxu0 %vm515_vm2, %v866_v23  ;;  %7383 = vmatmul.mubr.msk.bf16.gmra.mrb[24].mxu1 %vm515_vm2, %v866_v23 }
 0x11b   :  { %v389_v27 = vadd.f32 %v8719_v41, %v388_v26  ;;  %v7063_v28 = vpop.f32.mrb[34].mxu0  ;;  %v2807_v39 = vld [vmem:[#allocation2 + $0x181] sm:$0xff] }
 0x11c   :  { %660 = vst.msk [vmem:[#allocation2 + $0x1e1] sm:$0xff] %vm515_vm2, %v397_v25  ;;  %v400_v31 = vadd.f32 %v7063_v28, %v8719_v41  ;;  %v391_v32 = vpop.f32.mrb[35].mxu0  ;;  %v818_v35 = vld [vmem:[#allocation2 + $0x169] sm:$0xff] }
 0x11d   :  { %658 = vst.msk [vmem:[#allocation2 + $0x1c9] sm:$0xff] %vm515_vm2, %v389_v27  ;;  %v392_v33 = vadd.f32 %v8719_v41, %v391_v32  ;;  %v2808_v34 = vld [vmem:[#allocation2 + $0x189] sm:$0xff] }
 0x11e   :  { %661 = vst.msk [vmem:[#allocation2 + $0x1e9] sm:$0xff] %vm515_vm2, %v400_v31  ;;  %v819_v36 = vld [vmem:[#allocation2 + $0x171] sm:$0xff]  ;;  %v2856_v40 = vpack.c.bf16 %v2808_v34, %v2807_v39 }
 0x11f   :  { %659 = vst.msk [vmem:[#allocation2 + $0x1d1] sm:$0xff] %vm515_vm2, %v392_v33  ;;  %v867_v38 = vpack.c.bf16 %v819_v36, %v818_v35 }
 0x121   :  { %v7066_v42 = vpop.f32.mrb[36].mxu0  ;;  %7123 = vmatmul.mubr.msk.bf16.gmra.mrb[92].mxu0 %vm515_vm2, %v867_v38  ;;  %7386 = vmatprep.mubr.msk.bf16.mxu1 %vm515_vm2, %v867_v38 }
 0x122   :  { %v413_v43 = vadd.f32 %v7066_v42, %v8719_v41  ;;  %v404_v44 = vpop.f32.mrb[37].mxu0  ;;  %7387 = vmatmul.mubr.msk.bf16.gmra.mrb[28].mxu1 %vm515_vm2, %v2856_v40  ;;  %7126 = vmatprep.mubr.msk.bf16.mxu0 %vm515_vm2, %v868_v37 }
 0x123   :  { %v405_v45 = vadd.f32 %v8719_v41, %v404_v44  ;;  %v7067_v46 = vpop.f32.mrb[38].mxu0  ;;  %v824_v54 = vld [vmem:[#allocation2 + $0x1e1] sm:$0xff] }
 0x124   :  { %664 = vst.msk [vmem:[#allocation2 + $0x211] sm:$0xff] %vm515_vm2, %v413_v43  ;;  %v416_v47 = vadd.f32 %v7067_v46, %v8719_v41  ;;  %v407_v48 = vpop.f32.mrb[39].mxu0  ;;  %v822_v51 = vld [vmem:[#allocation2 + $0x1c9] sm:$0xff] }
 0x125   :  { %662 = vst.msk [vmem:[#allocation2 + $0x1f9] sm:$0xff] %vm515_vm2, %v405_v45  ;;  %v408_v49 = vadd.f32 %v8719_v41, %v407_v48  ;;  %v825_v50 = vld [vmem:[#allocation2 + $0x1e9] sm:$0xff] }
 0x126   :  { %665 = vst.msk [vmem:[#allocation2 + $0x219] sm:$0xff] %vm515_vm2, %v416_v47  ;;  %v823_v52 = vld [vmem:[#allocation2 + $0x1d1] sm:$0xff]  ;;  %v870_v55 = vpack.c.bf16 %v825_v50, %v824_v54 }
 0x127   :  { %663 = vst.msk [vmem:[#allocation2 + $0x201] sm:$0xff] %vm515_vm2, %v408_v49  ;;  %v869_v53 = vpack.c.bf16 %v823_v52, %v822_v51 }
 0x129   :  { %v7070_v56 = vpop.f32.mrb[40].mxu0  ;;  %7127 = vmatmul.mubr.msk.bf16.gmra.mrb[96].mxu0 %vm515_vm2, %v869_v53  ;;  %7390 = vmatprep.mubr.msk.bf16.mxu1 %vm515_vm2, %v869_v53 }
 0x12a   :  { %v429_v57 = vadd.f32 %v7070_v56, %v8719_v41  ;;  %v420_v58 = vpop.f32.mrb[41].mxu0  ;;  %7130 = vmatprep.mubr.msk.bf16.mxu0 %vm515_vm2, %v870_v55  ;;  %7391 = vmatmul.mubr.msk.bf16.gmra.mrb[32].mxu1 %vm515_vm2, %v870_v55 }
 0x12b   :  { %v421_v59 = vadd.f32 %v8719_v41, %v420_v58  ;;  %v7071_v60 = vpop.f32.mrb[42].mxu0  ;;  %v828_v5 = vld [vmem:[#allocation2 + $0x211] sm:$0xff] }
 0x12c   :  { %668 = vst.msk [vmem:[#allocation2 + $0x241] sm:$0xff] %vm515_vm2, %v429_v57  ;;  %v432_v61 = vadd.f32 %v7071_v60, %v8719_v41  ;;  %v423_v62 = vpop.f32.mrb[43].mxu0  ;;  %v826_v1 = vld [vmem:[#allocation2 + $0x1f9] sm:$0xff] }
 0x12d   :  { %666 = vst.msk [vmem:[#allocation2 + $0x229] sm:$0xff] %vm515_vm2, %v421_v59  ;;  %v424_v63 = vadd.f32 %v8719_v41, %v423_v62  ;;  %v829_v0 = vld [vmem:[#allocation2 + $0x219] sm:$0xff] }
 0x12e   :  { %669 = vst.msk [vmem:[#allocation2 + $0x249] sm:$0xff] %vm515_vm2, %v432_v61  ;;  %v827_v3 = vld [vmem:[#allocation2 + $0x201] sm:$0xff]  ;;  %v872_v6 = vpack.c.bf16 %v829_v0, %v828_v5 }
 0x12f   :  { %667 = vst.msk [vmem:[#allocation2 + $0x231] sm:$0xff] %vm515_vm2, %v424_v63  ;;  %v871_v4 = vpack.c.bf16 %v827_v3, %v826_v1 }
 0x131   :  { %v7074_v7 = vpop.f32.mrb[44].mxu0  ;;  %7131 = vmatmul.mubr.msk.bf16.gmra.mrb[100].mxu0 %vm515_vm2, %v871_v4  ;;  %7394 = vmatprep.mubr.msk.bf16.mxu1 %vm515_vm2, %v871_v4 }
 0x132   :  { %v445_v8 = vadd.f32 %v7074_v7, %v8719_v41  ;;  %v436_v9 = vpop.f32.mrb[45].mxu0  ;;  %7134 = vmatprep.mubr.msk.bf16.mxu0 %vm515_vm2, %v872_v6  ;;  %7395 = vmatmul.mubr.msk.bf16.gmra.mrb[36].mxu1 %vm515_vm2, %v872_v6 }
 0x133   :  { %v437_v10 = vadd.f32 %v8719_v41, %v436_v9  ;;  %v7075_v11 = vpop.f32.mrb[46].mxu0  ;;  %v832_v19 = vld [vmem:[#allocation2 + $0x241] sm:$0xff] }
 0x134   :  { %672 = vst.msk [vmem:[#allocation2 + $0x271] sm:$0xff] %vm515_vm2, %v445_v8  ;;  %v448_v12 = vadd.f32 %v7075_v11, %v8719_v41  ;;  %v439_v13 = vpop.f32.mrb[47].mxu0  ;;  %v830_v16 = vld [vmem:[#allocation2 + $0x229] sm:$0xff] }
 0x135   :  { %670 = vst.msk [vmem:[#allocation2 + $0x259] sm:$0xff] %vm515_vm2, %v437_v10  ;;  %v440_v14 = vadd.f32 %v8719_v41, %v439_v13  ;;  %v833_v15 = vld [vmem:[#allocation2 + $0x249] sm:$0xff] }
 0x136   :  { %673 = vst.msk [vmem:[#allocation2 + $0x279] sm:$0xff] %vm515_vm2, %v448_v12  ;;  %v831_v17 = vld [vmem:[#allocation2 + $0x231] sm:$0xff]  ;;  %v874_v20 = vpack.c.bf16 %v833_v15, %v832_v19  ;;  %v690_v15 = vld [vmem:[#allocation2] sm:$0xff] }
 0x137   :  { %671 = vst.msk [vmem:[#allocation2 + $0x261] sm:$0xff] %vm515_vm2, %v440_v14  ;;  %v873_v18 = vpack.c.bf16 %v831_v17, %v830_v16  ;;  %v3331_v17 = vld [vmem:[#allocation2 + $0x1a] sm:$0xff] }
 0x139   :  { %v7078_v21 = vpop.f32.mrb[48].mxu0  ;;  %7135 = vmatmul.mubr.msk.bf16.gmra.mrb[104].mxu0 %vm515_vm2, %v873_v18  ;;  %7398 = vmatprep.mubr.msk.bf16.mxu1 %vm515_vm2, %v873_v18 }
 0x13a   :  { %v461_v22 = vadd.f32 %v7078_v21, %v8719_v41  ;;  %v452_v23 = vpop.f32.mrb[49].mxu0  ;;  %7138 = vmatprep.mubr.msk.bf16.mxu0 %vm515_vm2, %v874_v20  ;;  %7399 = vmatmul.mubr.msk.bf16.gmra.mrb[40].mxu1 %vm515_vm2, %v874_v20  ;;  %v3332_v20 = vld [vmem:[#allocation2 + $0x22] sm:$0xff] }
 0x13b   :  { %v453_v24 = vadd.f32 %v8719_v41, %v452_v23  ;;  %v7079_v25 = vpop.f32.mrb[50].mxu0  ;;  %v836_v33 = vld [vmem:[#allocation2 + $0x271] sm:$0xff] }
 0x13c   :  { %676 = vst.msk [vmem:[#allocation2 + $0x2a1] sm:$0xff] %vm515_vm2, %v461_v22  ;;  %v464_v26 = vadd.f32 %v7079_v25, %v8719_v41  ;;  %v455_v27 = vpop.f32.mrb[51].mxu0  ;;  %v834_v30 = vld [vmem:[#allocation2 + $0x259] sm:$0xff]  ;;  %v8921_v25 = vpack.c.bf16 %v3332_v20, %v3331_v17  ;;  %v3351_v17 = vld [vmem:[#allocation2 + $0x10a] sm:$0xff] }
 0x13d   :  { %674 = vst.msk [vmem:[#allocation2 + $0x289] sm:$0xff] %vm515_vm2, %v453_v24  ;;  %v456_v28 = vadd.f32 %v8719_v41, %v455_v27  ;;  %v837_v29 = vld [vmem:[#allocation2 + $0x279] sm:$0xff]  ;;  %v710_v20 = vld [vmem:[#allocation2 + $0xf0] sm:$0xff] }
 0x13e   :  { %677 = vst.msk [vmem:[#allocation2 + $0x2a9] sm:$0xff] %vm515_vm2, %v464_v26  ;;  %v835_v31 = vld [vmem:[#allocation2 + $0x261] sm:$0xff]  ;;  %v876_v34 = vpack.c.bf16 %v837_v29, %v836_v33  ;;  %v8205_v26 = vld [vmem:[%s11404_s3 + $0x10] sm:$0xff]  }
 0x13f   :  { %675 = vst.msk [vmem:[#allocation2 + $0x291] sm:$0xff] %vm515_vm2, %v456_v28  ;;  %v875_v32 = vpack.c.bf16 %v835_v31, %v834_v30  ;;  %v693_v27 = vld [vmem:[#allocation2 + $0x20] sm:$0xff]  ;;  %v695_v28 = vld [vmem:[#allocation2 + $0x38] sm:$0xff]  ;;  %7224 = vmatprep.subr.bf16.mxu0 %v8205_v26 }
 0x140   :  { %v3333_v29 = vld [vmem:[#allocation2 + $0x32] sm:$0xff]  ;;  %v3334_v30 = vld [vmem:[#allocation2 + $0x3a] sm:$0xff] }
 0x141   :  { %v7082_v35 = vpop.f32.mrb[52].mxu0  ;;  %7139 = vmatmul.mubr.msk.bf16.gmra.mrb[108].mxu0 %vm515_vm2, %v875_v32  ;;  %7402 = vmatprep.mubr.msk.bf16.mxu1 %vm515_vm2, %v875_v32  ;;  %v692_v31 = vld [vmem:[#allocation2 + $0x18] sm:$0xff]  ;;  %v3335_v32 = vld [vmem:[#allocation2 + $0x4a] sm:$0xff] }
 0x142   :  { %v477_v36 = vadd.f32 %v7082_v35, %v8719_v41  ;;  %v468_v37 = vpop.f32.mrb[53].mxu0  ;;  %7142 = vmatprep.mubr.msk.bf16.mxu0 %vm515_vm2, %v876_v34  ;;  %7403 = vmatmul.mubr.msk.bf16.gmra.mrb[44].mxu1 %vm515_vm2, %v876_v34  ;;  %v3336_v33 = vld [vmem:[#allocation2 + $0x52] sm:$0xff]  ;;  %v755_v34 = vpack.c.bf16 %v693_v27, %v692_v31  ;;  %v3353_v27 = vld [vmem:[#allocation2 + $0x122] sm:$0xff] }
 0x143   :  { %v469_v38 = vadd.f32 %v8719_v41, %v468_v37  ;;  %v7083_v39 = vpop.f32.mrb[54].mxu0  ;;  %v840_v48 = vld [vmem:[#allocation2 + $0x2a1] sm:$0xff]  ;;  %v694_v35 = vld [vmem:[#allocation2 + $0x30] sm:$0xff]  ;;  %v8932_v37 = vpack.c.bf16 %v3334_v30, %v3333_v29 }
 0x144   :  { %680 = vst.msk [vmem:[#allocation2 + $0x2d1] sm:$0xff] %vm515_vm2, %v477_v36  ;;  %v480_v40 = vadd.f32 %v7083_v39, %v8719_v41  ;;  %v471_v42 = vpop.f32.mrb[55].mxu0  ;;  %v838_v45 = vld [vmem:[#allocation2 + $0x289] sm:$0xff]  ;;  %v8930_v36 = vpack.c.bf16 %v695_v28, %v694_v35  ;;  %v8940_v39 = vld [vmem:[%s11404_s3 + $0x38] sm:$0xff]  }
 0x145   :  { %678 = vst.msk [vmem:[#allocation2 + $0x2b9] sm:$0xff] %vm515_vm2, %v469_v38  ;;  %v472_v43 = vadd.f32 %v8719_v41, %v471_v42  ;;  %v841_v44 = vld [vmem:[#allocation2 + $0x2a9] sm:$0xff]  ;;  %v8935_v38 = vpack.c.bf16 %v3336_v33, %v3335_v32  ;;  %v3355_v30 = vld [vmem:[#allocation2 + $0x13a] sm:$0xff] }
 0x146   :  { %681 = vst.msk [vmem:[#allocation2 + $0x2d9] sm:$0xff] %vm515_vm2, %v480_v40  ;;  %v839_v46 = vld [vmem:[#allocation2 + $0x291] sm:$0xff]  ;;  %v878_v49 = vpack.c.bf16 %v841_v44, %v840_v48  ;;  %v699_v42 = vld [vmem:[#allocation2 + $0x68] sm:$0xff]  ;;  %v714_v33 = vld [vmem:[#allocation2 + $0x120] sm:$0xff] }
 0x147   :  { %679 = vst.msk [vmem:[#allocation2 + $0x2c1] sm:$0xff] %vm515_vm2, %v472_v43  ;;  %v877_v47 = vpack.c.bf16 %v839_v46, %v838_v45  ;;  %v697_v40 = vld [vmem:[#allocation2 + $0x50] sm:$0xff]  ;;  %v3337_v43 = vld [vmem:[#allocation2 + $0x62] sm:$0xff]  ;;  %v3339_v46 = vld [vmem:[#allocation2 + $0x7a] sm:$0xff] }
 0x148   :  { %v3338_v44 = vld [vmem:[#allocation2 + $0x6a] sm:$0xff]  ;;  %v3356_v31 = vld [vmem:[#allocation2 + $0x142] sm:$0xff] }
 0x149   :  { %v7086_v50 = vpop.f32.mrb[56].mxu0  ;;  %7143 = vmatmul.mubr.msk.bf16.gmra.mrb[112].mxu0 %vm515_vm2, %v877_v47  ;;  %7406 = vmatprep.mubr.msk.bf16.mxu1 %vm515_vm2, %v877_v47  ;;  %v696_v45 = vld [vmem:[#allocation2 + $0x48] sm:$0xff] }
 0x14a   :  { %v493_v51 = vadd.f32 %v7086_v50, %v8719_v41  ;;  %v484_v52 = vpop.f32.mrb[57].mxu0  ;;  %7146 = vmatprep.mubr.msk.bf16.mxu0 %vm515_vm2, %v878_v49  ;;  %7407 = vmatmul.mubr.msk.bf16.gmra.mrb[48].mxu1 %vm515_vm2, %v878_v49  ;;  %v3340_v47 = vld [vmem:[#allocation2 + $0x82] sm:$0xff]  ;;  %v8950_v48 = vpack.c.bf16 %v697_v40, %v696_v45  ;;  %v3354_v28 = vld [vmem:[#allocation2 + $0x12a] sm:$0xff]  ;;  %v9022_v40 = vpack.c.bf16 %v3356_v31, %v3355_v30  ;;  %v3358_v45 = vld [vmem:[#allocation2 + $0x15a] sm:$0xff] }
 0x14b   :  { %v485_v53 = vadd.f32 %v8719_v41, %v484_v52  ;;  %v7087_v54 = vpop.f32.mrb[58].mxu0  ;;  %v844_v62 = vld [vmem:[#allocation2 + $0x2d1] sm:$0xff]  ;;  %v698_v49 = vld [vmem:[#allocation2 + $0x60] sm:$0xff]  ;;  %v712_v29 = vld [vmem:[#allocation2 + $0x108] sm:$0xff]  ;;  %v9018_v35 = vpack.c.bf16 %v3354_v28, %v3353_v27 }
 0x14c   :  { %684 = vst.msk [vmem:[#allocation2 + $0x301] sm:$0xff] %vm515_vm2, %v493_v51  ;;  %v496_v55 = vadd.f32 %v7087_v54, %v8719_v41  ;;  %v487_v56 = vpop.f32.mrb[59].mxu0  ;;  %v842_v59 = vld [vmem:[#allocation2 + $0x2b9] sm:$0xff]  ;;  %v8952_v50 = vpack.c.bf16 %v699_v42, %v698_v49  ;;  %v8954_v51 = vpack.c.bf16 %v3338_v44, %v3337_v43 }
 0x14d   :  { %682 = vst.msk [vmem:[#allocation2 + $0x2e9] sm:$0xff] %vm515_vm2, %v485_v53  ;;  %v488_v57 = vadd.f32 %v8719_v41, %v487_v56  ;;  %v845_v58 = vld [vmem:[#allocation2 + $0x2d9] sm:$0xff] }
 0x14e   :  { %685 = vst.msk [vmem:[#allocation2 + $0x309] sm:$0xff] %vm515_vm2, %v496_v55  ;;  %v843_v60 = vld [vmem:[#allocation2 + $0x2c1] sm:$0xff]  ;;  %v880_v63 = vpack.c.bf16 %v845_v58, %v844_v62  ;;  %v703_v53 = vld [vmem:[#allocation2 + $0x98] sm:$0xff] }
 0x14f   :  { %683 = vst.msk [vmem:[#allocation2 + $0x2f1] sm:$0xff] %vm515_vm2, %v488_v57  ;;  %v879_v61 = vpack.c.bf16 %v843_v60, %v842_v59  ;;  %v701_v52 = vld [vmem:[#allocation2 + $0x80] sm:$0xff]  ;;  %v3341_v54 = vld [vmem:[#allocation2 + $0x92] sm:$0xff]  ;;  %v3343_v57 = vld [vmem:[#allocation2 + $0xaa] sm:$0xff] }
 0x150   :  { %v3342_v55 = vld [vmem:[#allocation2 + $0x9a] sm:$0xff]  ;;  %v3344_v58 = vld [vmem:[#allocation2 + $0xb2] sm:$0xff] }
 0x151   :  { %v7090_v0 = vpop.f32.mrb[60].mxu0  ;;  %7147 = vmatmul.mubr.msk.bf16.gmra.mrb[116].mxu0 %vm515_vm2, %v879_v61  ;;  %7410 = vmatprep.mubr.msk.bf16.mxu1 %vm515_vm2, %v879_v61  ;;  %v700_v56 = vld [vmem:[#allocation2 + $0x78] sm:$0xff]  ;;  %v702_v60 = vld [vmem:[#allocation2 + $0x90] sm:$0xff]  ;;  %v8970_v62 = vpack.c.bf16 %v3342_v55, %v3341_v54  ;;  %v717_v42 = vld [vmem:[#allocation2 + $0x140] sm:$0xff] }
 0x152   :  { %v509_v1 = vadd.f32 %v7090_v0, %v8719_v41  ;;  %v500_v3 = vpop.f32.mrb[61].mxu0  ;;  %7150 = vmatprep.mubr.msk.bf16.mxu0 %vm515_vm2, %v880_v63  ;;  %7411 = vmatmul.mubr.msk.bf16.gmra.mrb[52].mxu1 %vm515_vm2, %v880_v63  ;;  %v8966_v59 = vpack.c.bf16 %v701_v52, %v700_v56  ;;  %v8968_v61 = vpack.c.bf16 %v703_v53, %v702_v60  ;;  %v705_v0 = vld [vmem:[#allocation2 + $0xb0] sm:$0xff]  ;;  %v719_v43 = vld [vmem:[#allocation2 + $0x158] sm:$0xff]  ;;  %v729_v30 = vld [vmem:[#allocation2 + $0x200] sm:$0xff] }
 0x153   :  { %v501_v4 = vadd.f32 %v8719_v41, %v500_v3  ;;  %v7091_v5 = vpop.f32.mrb[62].mxu0  ;;  %v848_v13 = vld [vmem:[#allocation2 + $0x301] sm:$0xff]  ;;  %v8974_v63 = vpack.c.bf16 %v3344_v58, %v3343_v57  ;;  %v3357_v44 = vld [vmem:[#allocation2 + $0x152] sm:$0xff] }
 0x154   :  { %688 = vst.msk [vmem:[#allocation2 + $0x331] sm:$0xff] %vm515_vm2, %v509_v1  ;;  %v512_v6 = vadd.f32 %v7091_v5, %v8719_v41  ;;  %v503_v7 = vpop.f32.mrb[63].mxu0  ;;  %v846_v10 = vld [vmem:[#allocation2 + $0x2e9] sm:$0xff]  ;;  %v3360_v49 = vld [vmem:[#allocation2 + $0x172] sm:$0xff]  ;;  %v9034_v55 = vpack.c.bf16 %v3358_v45, %v3357_v44 }
 0x155   :  { %686 = vst.msk [vmem:[#allocation2 + $0x319] sm:$0xff] %vm515_vm2, %v501_v4  ;;  %v504_v8 = vadd.f32 %v8719_v41, %v503_v7  ;;  %v849_v9 = vld [vmem:[#allocation2 + $0x309] sm:$0xff]  ;;  %v723_v58 = vld [vmem:[#allocation2 + $0x1b8] sm:$0xff] }
 0x156   :  { %689 = vst.msk [vmem:[#allocation2 + $0x339] sm:$0xff] %vm515_vm2, %v512_v6  ;;  %v847_v11 = vld [vmem:[#allocation2 + $0x2f1] sm:$0xff]  ;;  %v882_v14 = vpack.c.bf16 %v849_v9, %v848_v13  ;;  %v691_v41 = vld [vmem:[#allocation2 + $0x8] sm:$0xff]  ;;  %v3347_v6 = vld [vmem:[#allocation2 + $0xda] sm:$0xff] }
 0x157   :  { %687 = vst.msk [vmem:[#allocation2 + $0x321] sm:$0xff] %vm515_vm2, %v504_v8  ;;  %v881_v12 = vpack.c.bf16 %v847_v11, %v846_v10  ;;  %v754_v21 = vpack.c.bf16 %v691_v41, %v690_v15  ;;  %v707_v1 = vld [vmem:[#allocation2 + $0xc8] sm:$0xff]  ;;  %v706_v9 = vld [vmem:[#allocation2 + $0xc0] sm:$0xff]  ;;  %v3349_v15 = vld [vmem:[#allocation2 + $0xf2] sm:$0xff] }
 0x158   :  { %v3345_v3 = vld [vmem:[#allocation2 + $0xc2] sm:$0xff]  ;;  %v3346_v4 = vld [vmem:[#allocation2 + $0xca] sm:$0xff]  ;;  %v8984_v10 = vpack.c.bf16 %v707_v1, %v706_v9  ;;  %v3350_v41 = vld [vmem:[#allocation2 + $0xfa] sm:$0xff] }
 0x159   :  { %7151 = vmatmul.mubr.msk.bf16.gmra.mrb[120].mxu0 %vm515_vm2, %v881_v12  ;;  %7414 = vmatprep.mubr.msk.bf16.mxu1 %vm515_vm2, %v881_v12  ;;  %v704_v5 = vld [vmem:[#allocation2 + $0xa8] sm:$0xff]  ;;  %v8986_v11 = vpack.c.bf16 %v3346_v4, %v3345_v3  ;;  %v709_v13 = vld [vmem:[#allocation2 + $0xe0] sm:$0xff]  ;;  %v718_v53 = vld [vmem:[#allocation2 + $0x150] sm:$0xff] }
 0x15a   :  { %7154 = vmatprep.mubr.msk.bf16.mxu0 %vm515_vm2, %v882_v14  ;;  %7415 = vmatmul.mubr.msk.bf16.gmra.mrb[56].mxu1 %vm515_vm2, %v882_v14  ;;  %v3348_v7 = vld [vmem:[#allocation2 + $0xe2] sm:$0xff]  ;;  %v8982_v8 = vpack.c.bf16 %v705_v0, %v704_v5  ;;  %v711_v14 = vld [vmem:[#allocation2 + $0xf8] sm:$0xff]  ;;  %v9032_v54 = vpack.c.bf16 %v719_v43, %v718_v53  ;;  %v722_v57 = vld [vmem:[#allocation2 + $0x1b0] sm:$0xff] }
 0x15b   :  { %v2839_v23 = vld [vmem:[#allocation2 + $0x331] sm:$0xff]  ;;  %v8990_v12 = vpack.c.bf16 %v3348_v7, %v3347_v6  ;;  %v3361_v0 = vld [vmem:[#allocation2 + $0x182] sm:$0xff]  ;;  %v770_v6 = vpack.c.bf16 %v723_v58, %v722_v57 }
 0x15c   :  { %v850_v18 = vld [vmem:[#allocation2 + $0x319] sm:$0xff]  ;;  %v721_v60 = vld [vmem:[#allocation2 + $0x170] sm:$0xff]  ;;  %v720_v3 = vld [vmem:[#allocation2 + $0x168] sm:$0xff] }
 0x15d   :  { %v2840_v16 = vld [vmem:[#allocation2 + $0x339] sm:$0xff]  ;;  %v3362_v1 = vld [vmem:[#allocation2 + $0x18a] sm:$0xff]  ;;  %v9046_v7 = vpack.c.bf16 %v721_v60, %v720_v3 }
 0x15e   :  { %v851_v19 = vld [vmem:[#allocation2 + $0x321] sm:$0xff]  ;;  %v2872_v24 = vpack.c.bf16 %v2840_v16, %v2839_v23  ;;  %v708_v16 = vld [vmem:[#allocation2 + $0xd8] sm:$0xff]  ;;  %v3363_v4 = vld [vmem:[#allocation2 + $0x1ca] sm:$0xff]  ;;  %v3410_v9 = vpack.c.bf16 %v3362_v1, %v3361_v0 }
 0x15f   :  { %v883_v22 = vpack.c.bf16 %v851_v19, %v850_v18  ;;  %v3352_v18 = vld [vmem:[#allocation2 + $0x112] sm:$0xff]  ;;  %v8998_v19 = vpack.c.bf16 %v709_v13, %v708_v16  ;;  %v3366_v16 = vld [vmem:[#allocation2 + $0x1ea] sm:$0xff]  ;;  %v3373_v0 = vld [vmem:[#allocation2 + $0x242] sm:$0xff] }
 0x160   :  { %v9006_v23 = vpack.c.bf16 %v3352_v18, %v3351_v17  ;;  %v3364_v5 = vld [vmem:[#allocation2 + $0x1d2] sm:$0xff]  ;;  %v724_v17 = vld [vmem:[#allocation2 + $0x1c8] sm:$0xff]  ;;  %v3367_v18 = vld [vmem:[#allocation2 + $0x1fa] sm:$0xff] }
 0x161   :  { %7155 = vmatmul.mubr.msk.bf16.gmra.mrb[124].mxu0 %vm515_vm2, %v883_v22  ;;  %7418 = vmatprep.mubr.msk.bf16.mxu1 %vm515_vm2, %v883_v22  ;;  %v9002_v22 = vpack.c.bf16 %v3350_v41, %v3349_v15  ;;  %v9050_v13 = vpack.c.bf16 %v3364_v5, %v3363_v4  ;;  %v727_v15 = vld [vmem:[#allocation2 + $0x1e8] sm:$0xff]  ;;  %v731_v31 = vld [vmem:[#allocation2 + $0x218] sm:$0xff]  ;;  %v733_v58 = vld [vmem:[#allocation2 + $0x230] sm:$0xff] }
 0x162   :  { %7419 = vmatmul.mubr.msk.bf16.gmra.mrb[60].mxu1 %vm515_vm2, %v2872_v24  ;;  %7160 = vmatprep.mubr.msk.bf16.mxu0 %vm515_vm2, %v754_v21  ;;  %v9000_v21 = vpack.c.bf16 %v711_v14, %v710_v20  ;;  %v713_v24 = vld [vmem:[#allocation2 + $0x110] sm:$0xff]  ;;  %v3365_v41 = vld [vmem:[#allocation2 + $0x1e2] sm:$0xff]  ;;  %v728_v43 = vld [vmem:[#allocation2 + $0x1f8] sm:$0xff] }
 0x163   :  { %7424 = vmatprep.mubr.msk.bf16.mxu1 %vm515_vm2, %v8921_v25  ;;  %v9014_v32 = vpack.c.bf16 %v713_v24, %v712_v29  ;;  %v725_v14 = vld [vmem:[#allocation2 + $0x1d0] sm:$0xff]  ;;  %v3368_v20 = vld [vmem:[#allocation2 + $0x202] sm:$0xff]  ;;  %v9058_v28 = vpack.c.bf16 %v3366_v16, %v3365_v41  ;;  %v3375_v4 = vld [vmem:[#allocation2 + $0x25a] sm:$0xff] }
 0x164   :  { %v771_v24 = vpack.c.bf16 %v725_v14, %v724_v17  ;;  %v9061_v29 = vpack.c.bf16 %v3368_v20, %v3367_v18  ;;  %v3371_v44 = vld [vmem:[#allocation2 + $0x22a] sm:$0xff]  ;;  %v3372_v45 = vld [vmem:[#allocation2 + $0x232] sm:$0xff]  ;;  %v3376_v5 = vld [vmem:[#allocation2 + $0x262] sm:$0xff] }
 0x165   :  { %v9077_v57 = vpack.c.bf16 %v3372_v45, %v3371_v44  ;;  %v735_v60 = vld [vmem:[#allocation2 + $0x248] sm:$0xff]  ;;  %v9093_v41 = vpack.c.bf16 %v3376_v5, %v3375_v4  ;;  %v737_v16 = vld [vmem:[#allocation2 + $0x260] sm:$0xff]  ;;  %v739_v17 = vld [vmem:[#allocation2 + $0x278] sm:$0xff] }
 0x166   :  { %v3374_v1 = vld [vmem:[#allocation2 + $0x24a] sm:$0xff]  ;;  %v3377_v18 = vld [vmem:[#allocation2 + $0x272] sm:$0xff]  ;;  %v3378_v20 = vld [vmem:[#allocation2 + $0x27a] sm:$0xff] }
 0x167   :  { %v732_v3 = vld [vmem:[#allocation2 + $0x228] sm:$0xff]  ;;  %v741_v45 = vld [vmem:[#allocation2 + $0x290] sm:$0xff]  ;;  %v742_v5 = vld [vmem:[#allocation2 + $0x2a0] sm:$0xff] }
 0x169   :  { %7161 = vmatmul.mubr.msk.bf16.vlgmr.msra.gmra.mrb[64].mxu0 %vm515_vm2, %v755_v34 }
 0x16a   :  { %7164 = vmatprep.mubr.msk.bf16.mxu0 %vm515_vm2, %v8930_v36  ;;  %7425 = vmatmul.mubr.msk.bf16.vlgmr.msra.gmra.mrb[0].mxu1 %vm515_vm2, %v8932_v37 }
 0x16b   :  { %7489 = vmatpush3.bf16.msra.mxu1 %v8745_v2  ;;  %7428 = vmatprep.mubr.msk.bf16.mxu1 %vm515_vm2, %v8935_v38  ;;  %v8958_v2 = vpack.c.bf16 %v3340_v47, %v3339_v46  ;;  %v716_v46 = vld [vmem:[#allocation2 + $0x138] sm:$0xff]  ;;  %v3359_v47 = vld [vmem:[#allocation2 + $0x16a] sm:$0xff] }
 0x16c   :  { %7225 = vmatpush3.bf16.msra.mxu0 %v8205_v26  ;;  %7554 = vmatprep.subr.bf16.mxu1 %v8940_v39  ;;  %v715_v26 = vld [vmem:[#allocation2 + $0x128] sm:$0xff]  ;;  %v9030_v52 = vpack.c.bf16 %v717_v42, %v716_v46  ;;  %v9038_v56 = vpack.c.bf16 %v3360_v49, %v3359_v47  ;;  %v3370_v42 = vld [vmem:[#allocation2 + $0x21a] sm:$0xff]  ;;  %v9069_v46 = vpack.c.bf16 %v729_v30, %v728_v43  ;;  %v730_v47 = vld [vmem:[#allocation2 + $0x210] sm:$0xff] }
 0x16d   :  { %v9016_v34 = vpack.c.bf16 %v715_v26, %v714_v33  ;;  %v726_v26 = vld [vmem:[#allocation2 + $0x1e0] sm:$0xff]  ;;  %v3369_v33 = vld [vmem:[#allocation2 + $0x212] sm:$0xff]  ;;  %v9071_v49 = vpack.c.bf16 %v731_v31, %v730_v47  ;;  %v9105_v43 = vpack.c.bf16 %v3378_v20, %v3377_v18  ;;  %v743_v47 = vld [vmem:[#allocation2 + $0x2a8] sm:$0xff] }
 0x16e   :  { %v9056_v27 = vpack.c.bf16 %v727_v15, %v726_v26  ;;  %v9073_v53 = vpack.c.bf16 %v3370_v42, %v3369_v33  ;;  %v9089_v15 = vpack.c.bf16 %v3374_v1, %v3373_v0  ;;  %v3379_v26 = vld [vmem:[#allocation2 + $0x28a] sm:$0xff]  ;;  %v3380_v30 = vld [vmem:[#allocation2 + $0x292] sm:$0xff]  ;;  %v3383_v1 = vld [vmem:[#allocation2 + $0x2ba] sm:$0xff] }
 0x16f   :  { %v738_v33 = vld [vmem:[#allocation2 + $0x270] sm:$0xff]  ;;  %v9109_v44 = vpack.c.bf16 %v3380_v30, %v3379_v26  ;;  %v740_v0 = vld [vmem:[#allocation2 + $0x288] sm:$0xff]  ;;  %v745_v18 = vld [vmem:[#allocation2 + $0x2c0] sm:$0xff] }
 0x170   :  { %v9103_v42 = vpack.c.bf16 %v739_v17, %v738_v33  ;;  %v9117_v4 = vpack.c.bf16 %v741_v45, %v740_v0  ;;  %v747_v20 = vld [vmem:[#allocation2 + $0x2d8] sm:$0xff]  ;;  %v3387_v33 = vld [vmem:[#allocation2 + $0x2ea] sm:$0xff] }
 0x171   :  { %7165 = vmatmul.mubr.msk.bf16.gmra.mrb[68].mxu0 %vm515_vm2, %v8950_v48  ;;  %v3386_v26 = vld [vmem:[#allocation2 + $0x2da] sm:$0xff]  ;;  %v3388_v45 = vld [vmem:[#allocation2 + $0x2f2] sm:$0xff] }
 0x172   :  { %7168 = vmatprep.mubr.msk.bf16.mxu0 %vm515_vm2, %v8952_v50  ;;  %7429 = vmatmul.mubr.msk.bf16.gmra.mrb[4].mxu1 %vm515_vm2, %v8954_v51  ;;  %v744_v30 = vld [vmem:[#allocation2 + $0x2b8] sm:$0xff] }
 0x173   :  { %7432 = vmatprep.mubr.msk.bf16.mxu1 %vm515_vm2, %v8958_v2 }
 0x179   :  { %7169 = vmatmul.mubr.msk.bf16.gmra.mrb[72].mxu0 %vm515_vm2, %v8966_v59 }
 0x17a   :  { %7172 = vmatprep.mubr.msk.bf16.mxu0 %vm515_vm2, %v8968_v61  ;;  %7433 = vmatmul.mubr.msk.bf16.gmra.mrb[8].mxu1 %vm515_vm2, %v8970_v62 }
 0x17b   :  { %7436 = vmatprep.mubr.msk.bf16.mxu1 %vm515_vm2, %v8974_v63 }
 0x181   :  { %7173 = vmatmul.mubr.msk.bf16.gmra.mrb[76].mxu0 %vm515_vm2, %v8982_v8 }
 0x182   :  { %7176 = vmatprep.mubr.msk.bf16.mxu0 %vm515_vm2, %v8984_v10  ;;  %7437 = vmatmul.mubr.msk.bf16.gmra.mrb[12].mxu1 %vm515_vm2, %v8986_v11 }
 0x183   :  { %7440 = vmatprep.mubr.msk.bf16.mxu1 %vm515_vm2, %v8990_v12 }
 0x189   :  { %7177 = vmatmul.mubr.msk.bf16.gmra.mrb[80].mxu0 %vm515_vm2, %v8998_v19 }
 0x18a   :  { %7180 = vmatprep.mubr.msk.bf16.mxu0 %vm515_vm2, %v9000_v21  ;;  %7441 = vmatmul.mubr.msk.bf16.gmra.mrb[16].mxu1 %vm515_vm2, %v9002_v22 }
 0x18b   :  { %7444 = vmatprep.mubr.msk.bf16.mxu1 %vm515_vm2, %v9006_v23 }
 0x191   :  { %7181 = vmatmul.mubr.msk.bf16.gmra.mrb[84].mxu0 %vm515_vm2, %v9014_v32 }
 0x192   :  { %7184 = vmatprep.mubr.msk.bf16.mxu0 %vm515_vm2, %v9016_v34  ;;  %7445 = vmatmul.mubr.msk.bf16.gmra.mrb[20].mxu1 %vm515_vm2, %v9018_v35 }
 0x193   :  { %7448 = vmatprep.mubr.msk.bf16.mxu1 %vm515_vm2, %v9022_v40 }
 0x199   :  { %7185 = vmatmul.mubr.msk.bf16.gmra.mrb[88].mxu0 %vm515_vm2, %v9030_v52 }
 0x19a   :  { %7188 = vmatprep.mubr.msk.bf16.mxu0 %vm515_vm2, %v9032_v54  ;;  %7449 = vmatmul.mubr.msk.bf16.gmra.mrb[24].mxu1 %vm515_vm2, %v9034_v55 }
 0x19b   :  { %7452 = vmatprep.mubr.msk.bf16.mxu1 %vm515_vm2, %v9038_v56 }
 0x1a1   :  { %7189 = vmatmul.mubr.msk.bf16.gmra.mrb[92].mxu0 %vm515_vm2, %v9046_v7 }
 0x1a2   :  { %7453 = vmatmul.mubr.msk.bf16.gmra.mrb[28].mxu1 %vm515_vm2, %v3410_v9  ;;  %7192 = vmatprep.mubr.msk.bf16.mxu0 %vm515_vm2, %v770_v6  ;;  %v9085_v6 = vpack.c.bf16 %v733_v58, %v732_v3  ;;  %v734_v9 = vld [vmem:[#allocation2 + $0x240] sm:$0xff] }
 0x1a3   :  { %7456 = vmatprep.mubr.msk.bf16.mxu1 %vm515_vm2, %v9050_v13  ;;  %v9087_v14 = vpack.c.bf16 %v735_v60, %v734_v9  ;;  %v3381_v58 = vld [vmem:[#allocation2 + $0x2a2] sm:$0xff]  ;;  %v3382_v60 = vld [vmem:[#allocation2 + $0x2aa] sm:$0xff]  ;;  %v9119_v9 = vpack.c.bf16 %v743_v47, %v742_v5  ;;  %v9133_v47 = vpack.c.bf16 %v745_v18, %v744_v30 }
 0x1a4   :  { %v3384_v3 = vld [vmem:[#allocation2 + $0x2c2] sm:$0xff] }
 0x1a5   :  { %v9125_v17 = vpack.c.bf16 %v3384_v3, %v3383_v1  ;;  %v9141_v1 = vpack.c.bf16 %v3388_v45, %v3387_v33  ;;  %v749_v3 = vld [vmem:[#allocation2 + $0x2f0] sm:$0xff]  ;;  %v751_v5 = vld [vmem:[#allocation2 + $0x308] sm:$0xff]  ;;  %v750_v33 = vld [vmem:[#allocation2 + $0x300] sm:$0xff] }
 0x1a6   :  { %v3389_v18 = vld [vmem:[#allocation2 + $0x302] sm:$0xff]  ;;  %v9151_v45 = vpack.c.bf16 %v751_v5, %v750_v33  ;;  %v3393_v33 = vld [vmem:[#allocation2 + $0x332] sm:$0xff] }
 0x1a7   :  { %11484 = vst [vmem:[#allocation3_spill] sm:$0xff] %v9125_v17  ;;  %11487 = vst [vmem:[#allocation6_spill] sm:$0xff] %v9141_v1  ;;  %v3392_v30 = vld [vmem:[#allocation2 + $0x322] sm:$0xff] }
 0x1a8   :  { %v753_v5 = vld [vmem:[#allocation2 + $0x320] sm:$0xff] }
 0x1a9   :  { %7193 = vmatmul.mubr.msk.bf16.gmra.mrb[96].mxu0 %vm515_vm2, %v771_v24  ;;  %v736_v24 = vld [vmem:[#allocation2 + $0x258] sm:$0xff] }
 0x1aa   :  { %7196 = vmatprep.mubr.msk.bf16.mxu0 %vm515_vm2, %v9056_v27  ;;  %7457 = vmatmul.mubr.msk.bf16.gmra.mrb[32].mxu1 %vm515_vm2, %v9058_v28  ;;  %v9101_v31 = vpack.c.bf16 %v737_v16, %v736_v24  ;;  %v9121_v16 = vpack.c.bf16 %v3382_v60, %v3381_v58  ;;  %v3385_v24 = vld [vmem:[#allocation2 + $0x2d2] sm:$0xff] }
 0x1ab   :  { %7460 = vmatprep.mubr.msk.bf16.mxu1 %vm515_vm2, %v9061_v29  ;;  %v746_v58 = vld [vmem:[#allocation2 + $0x2d0] sm:$0xff]  ;;  %v9137_v0 = vpack.c.bf16 %v3386_v26, %v3385_v24  ;;  %v748_v24 = vld [vmem:[#allocation2 + $0x2e8] sm:$0xff]  ;;  %v3391_v26 = vld [vmem:[#allocation2 + $0x31a] sm:$0xff] }
 0x1ac   :  { %v9135_v60 = vpack.c.bf16 %v747_v20, %v746_v58  ;;  %v3390_v20 = vld [vmem:[#allocation2 + $0x30a] sm:$0xff]  ;;  %v9149_v58 = vpack.c.bf16 %v749_v3, %v748_v24  ;;  %v1669_v3 = vld [vmem:[#allocation2 + $0x2] sm:$0xff] }
 0x1ad   :  { %11486 = vst [vmem:[#allocation5_spill] sm:$0xff] %v9137_v0  ;;  %v1670_v24 = vld [vmem:[#allocation2 + $0xa] sm:$0xff] }
 0x1ae   :  { %11485 = vst [vmem:[#allocation4_spill] sm:$0xff] %v9135_v60 }
 0x1b1   :  { %7197 = vmatmul.mubr.msk.bf16.gmra.mrb[100].mxu0 %vm515_vm2, %v9069_v46 }
 0x1b2   :  { %7200 = vmatprep.mubr.msk.bf16.mxu0 %vm515_vm2, %v9071_v49  ;;  %7461 = vmatmul.mubr.msk.bf16.gmra.mrb[36].mxu1 %vm515_vm2, %v9073_v53 }
 0x1b3   :  { %7464 = vmatprep.mubr.msk.bf16.mxu1 %vm515_vm2, %v9077_v57 }
 0x1b9   :  { %7201 = vmatmul.mubr.msk.bf16.gmra.mrb[104].mxu0 %vm515_vm2, %v9085_v6 }
 0x1ba   :  { %7204 = vmatprep.mubr.msk.bf16.mxu0 %vm515_vm2, %v9087_v14  ;;  %7465 = vmatmul.mubr.msk.bf16.gmra.mrb[40].mxu1 %vm515_vm2, %v9089_v15 }
 0x1bb   :  { %7468 = vmatprep.mubr.msk.bf16.mxu1 %vm515_vm2, %v9093_v41 }
 0x1c1   :  { %7205 = vmatmul.mubr.msk.bf16.gmra.mrb[108].mxu0 %vm515_vm2, %v9101_v31 }
 0x1c2   :  { %7208 = vmatprep.mubr.msk.bf16.mxu0 %vm515_vm2, %v9103_v42  ;;  %7469 = vmatmul.mubr.msk.bf16.gmra.mrb[44].mxu1 %vm515_vm2, %v9105_v43 }
 0x1c3   :  { %7472 = vmatprep.mubr.msk.bf16.mxu1 %vm515_vm2, %v9109_v44 }
 0x1c9   :  { %7209 = vmatmul.mubr.msk.bf16.gmra.mrb[112].mxu0 %vm515_vm2, %v9117_v4 }
 0x1ca   :  { %7212 = vmatprep.mubr.msk.bf16.mxu0 %vm515_vm2, %v9119_v9  ;;  %7473 = vmatmul.mubr.msk.bf16.gmra.mrb[48].mxu1 %vm515_vm2, %v9121_v16 }
 0x1cb   :  { %7476 = vmatprep.mubr.msk.bf16.mxu1 %vm515_vm2, %v9125_v17  ;;  %v9153_v17 = vpack.c.bf16 %v3390_v20, %v3389_v18  ;;  %v3394_v18 = vld [vmem:[#allocation2 + $0x33a] sm:$0xff] }
 0x1cc   :  { %v752_v20 = vld [vmem:[#allocation2 + $0x318] sm:$0xff] }
 0x1d1   :  { %7213 = vmatmul.mubr.msk.bf16.gmra.mrb[116].mxu0 %vm515_vm2, %v9133_v47 }
 0x1d2   :  { %7216 = vmatprep.mubr.msk.bf16.mxu0 %vm515_vm2, %v9135_v60  ;;  %7477 = vmatmul.mubr.msk.bf16.gmra.mrb[52].mxu1 %vm515_vm2, %v9137_v0  ;;  %v9157_v0 = vpack.c.bf16 %v3392_v30, %v3391_v26  ;;  %v9165_v60 = vpack.c.bf16 %v753_v5, %v752_v20  ;;  %v3426_v26 = vpack.c.bf16 %v3394_v18, %v3393_v33  ;;  %v8207_v30 = vld [vmem:[%s11404_s3 + $0x18] sm:$0xff]   ;;  %v4452_v18 = vld [vmem:[#allocation2 + $0xc1] sm:$0xff] }
 0x1d3   :  { %7480 = vmatprep.mubr.msk.bf16.mxu1 %vm515_vm2, %v9141_v1  ;;  %v1733_v1 = vpack.c.bf16 %v1670_v24, %v1669_v3  ;;  %7290 = vmatprep.subr.bf16.mxu0 %v8207_v30  ;;  %v9181_v3 = vld [vmem:[%s11404_s3 + $0x40] sm:$0xff]   ;;  %v4450_v24 = vld [vmem:[#allocation2 + $0xa9] sm:$0xff] }
 0x1d9   :  { %7217 = vmatmul.mubr.msk.bf16.gmra.mrb[120].mxu0 %vm515_vm2, %v9149_v58 }
 0x1da   :  { %7220 = vmatprep.mubr.msk.bf16.mxu0 %vm515_vm2, %v9151_v45  ;;  %7481 = vmatmul.mubr.msk.bf16.gmra.mrb[56].mxu1 %vm515_vm2, %v9153_v17 }
 0x1db   :  { %7484 = vmatprep.mubr.msk.bf16.mxu1 %vm515_vm2, %v9157_v0 }
 0x1e1   :  { %7221 = vmatmul.mubr.msk.bf16.gmra.mrb[124].mxu0 %vm515_vm2, %v9165_v60 }
 0x1e2   :  { %7485 = vmatmul.mubr.msk.bf16.gmra.mrb[60].mxu1 %vm515_vm2, %v3426_v26  ;;  %7226 = vmatprep.mubr.msk.bf16.mxu0 %vm515_vm2, %v1733_v1  ;;  %v4453_v1 = vld [vmem:[#allocation2 + $0xc9] sm:$0xff] }
 0x1e3   :  { %7490 = vmatprep.mubr.msk.bf16.mxu1 %vm515_vm2, %v8930_v36  ;;  %v3914_v36 = vld [vmem:[#allocation2 + $0x180] sm:$0xff]  ;;  %v4510_v20 = vpack.c.bf16 %v4453_v1, %v4452_v18  ;;  %v2238_v26 = vld [vmem:[#allocation2 + $0xc8] sm:$0xff] }
 0x1e4   :  { %v2257_v18 = vld [vmem:[#allocation2 + $0x1e0] sm:$0xff] }
 0x1e9   :  { %7227 = vmatmul.mubr.msk.bf16.vlgmr.msra.gmra.mrb[64].mxu0 %vm515_vm2, %v8921_v25  ;;  %v3915_v25 = vld [vmem:[#allocation2 + $0x188] sm:$0xff] }
 0x1ea   :  { %7230 = vmatprep.mubr.msk.bf16.mxu0 %vm515_vm2, %v8932_v37  ;;  %7491 = vmatmul.mubr.msk.bf16.vlgmr.msra.gmra.mrb[0].mxu1 %vm515_vm2, %v8950_v48  ;;  %v9233_v37 = vpack.c.bf16 %v3915_v25, %v3914_v36  ;;  %v1701_v48 = vld [vmem:[#allocation2 + $0x1b2] sm:$0xff]  ;;  %v2237_v25 = vld [vmem:[#allocation2 + $0xc0] sm:$0xff] }
 0x1eb   :  { %7555 = vmatpush3.bf16.msra.mxu1 %v8940_v39  ;;  %7494 = vmatprep.mubr.msk.bf16.mxu1 %vm515_vm2, %v8952_v50  ;;  %v3917_v39 = vld [vmem:[#allocation2 + $0x1a0] sm:$0xff] }
 0x1ec   :  { %7291 = vmatpush3.bf16.msra.mxu0 %v8207_v30  ;;  %7620 = vmatprep.subr.bf16.mxu1 %v9181_v3  ;;  %v1702_v50 = vld [vmem:[#allocation2 + $0x1ba] sm:$0xff] }
 0x1ed   :  { %v2240_v30 = vld [vmem:[#allocation2 + $0xe0] sm:$0xff] }
 0x1ee   :  { %v4457_v36 = vld [vmem:[#allocation2 + $0xf9] sm:$0xff] }
 0x1f1   :  { %7231 = vmatmul.mubr.msk.bf16.gmra.mrb[68].mxu0 %vm515_vm2, %v8935_v38  ;;  %v3916_v38 = vld [vmem:[#allocation2 + $0x198] sm:$0xff] }
 0x1f2   :  { %7234 = vmatprep.mubr.msk.bf16.mxu0 %vm515_vm2, %v8954_v51  ;;  %7495 = vmatmul.mubr.msk.bf16.gmra.mrb[4].mxu1 %vm515_vm2, %v8966_v59  ;;  %v3965_v51 = vpack.c.bf16 %v3917_v39, %v3916_v38  ;;  %v11488_v59 = vld [vmem:[#allocation4_spill] sm:$0xff]  ;;  %v2294_v38 = vpack.c.bf16 %v2238_v26, %v2237_v25  ;;  %v2239_v39 = vld [vmem:[#allocation2 + $0xd8] sm:$0xff] }
 0x1f3   :  { %7498 = vmatprep.mubr.msk.bf16.mxu1 %vm515_vm2, %v8968_v61  ;;  %v11489_v61 = vld [vmem:[#allocation3_spill] sm:$0xff] }
 0x1f9   :  { %7235 = vmatmul.mubr.msk.bf16.gmra.mrb[72].mxu0 %vm515_vm2, %v8958_v2  ;;  %v1749_v2 = vpack.c.bf16 %v1702_v50, %v1701_v48  ;;  %v4454_v48 = vld [vmem:[#allocation2 + $0xd9] sm:$0xff]  ;;  %v2295_v50 = vpack.c.bf16 %v2240_v30, %v2239_v39 }
 0x1fa   :  { %7238 = vmatprep.mubr.msk.bf16.mxu0 %vm515_vm2, %v8970_v62  ;;  %7499 = vmatmul.mubr.msk.bf16.gmra.mrb[8].mxu1 %vm515_vm2, %v8982_v8  ;;  %v11490_v62 = vld [vmem:[#allocation5_spill] sm:$0xff]  ;;  %v2259_v30 = vld [vmem:[#allocation2 + $0x1f8] sm:$0xff] }
 0x1fb   :  { %7502 = vmatprep.mubr.msk.bf16.mxu1 %vm515_vm2, %v8984_v10  ;;  %v3946_v8 = vld [vmem:[#allocation2 + $0x330] sm:$0xff]  ;;  %v11491_v10 = vld [vmem:[#allocation6_spill] sm:$0xff] }
 0x1fc   :  { %v2262_v39 = vld [vmem:[#allocation2 + $0x218] sm:$0xff] }
 0x201   :  { %7239 = vmatmul.mubr.msk.bf16.gmra.mrb[76].mxu0 %vm515_vm2, %v8974_v63  ;;  %v3947_v63 = vld [vmem:[#allocation2 + $0x338] sm:$0xff] }
 0x202   :  { %7242 = vmatprep.mubr.msk.bf16.mxu0 %vm515_vm2, %v8986_v11  ;;  %7503 = vmatmul.mubr.msk.bf16.gmra.mrb[12].mxu1 %vm515_vm2, %v8998_v19  ;;  %v9297_v11 = vpack.c.bf16 %v3947_v63, %v3946_v8  ;;  %v3949_v19 = vld [vmem:[#allocation2 + $0x350] sm:$0xff] }
 0x203   :  { %7506 = vmatprep.mubr.msk.bf16.mxu1 %vm515_vm2, %v9000_v21  ;;  %v2224_v21 = vld [vmem:[#allocation2 + $0x20] sm:$0xff]  ;;  %v4459_v63 = vld [vmem:[#allocation2 + $0x111] sm:$0xff] }
 0x204   :  { %v2241_v8 = vld [vmem:[#allocation2 + $0xf0] sm:$0xff] }
 0x209   :  { %7243 = vmatmul.mubr.msk.bf16.gmra.mrb[80].mxu0 %vm515_vm2, %v8990_v12  ;;  %v3948_v12 = vld [vmem:[#allocation2 + $0x348] sm:$0xff] }
 0x20a   :  { %7246 = vmatprep.mubr.msk.bf16.mxu0 %vm515_vm2, %v9002_v22  ;;  %7507 = vmatmul.mubr.msk.bf16.gmra.mrb[16].mxu1 %vm515_vm2, %v9014_v32  ;;  %v3981_v22 = vpack.c.bf16 %v3949_v19, %v3948_v12  ;;  %v2223_v32 = vld [vmem:[#allocation2 + $0x18] sm:$0xff]  ;;  %v2243_v19 = vld [vmem:[#allocation2 + $0x108] sm:$0xff] }
 0x20b   :  { %7510 = vmatprep.mubr.msk.bf16.mxu1 %vm515_vm2, %v9016_v34  ;;  %v2287_v34 = vpack.c.bf16 %v2224_v21, %v2223_v32  ;;  %v4458_v21 = vld [vmem:[#allocation2 + $0x109] sm:$0xff]  ;;  %v4460_v32 = vld [vmem:[#allocation2 + $0x121] sm:$0xff] }
 0x211   :  { %7247 = vmatmul.mubr.msk.bf16.gmra.mrb[84].mxu0 %vm515_vm2, %v9006_v23  ;;  %v4441_v23 = vld [vmem:[#allocation2 + $0x39] sm:$0xff] }
 0x212   :  { %7250 = vmatprep.mubr.msk.bf16.mxu0 %vm515_vm2, %v9018_v35  ;;  %7511 = vmatmul.mubr.msk.bf16.gmra.mrb[20].mxu1 %vm515_vm2, %v9030_v52  ;;  %v4440_v35 = vld [vmem:[#allocation2 + $0x31] sm:$0xff] }
 0x213   :  { %7514 = vmatprep.mubr.msk.bf16.mxu1 %vm515_vm2, %v9032_v54  ;;  %v2226_v52 = vld [vmem:[#allocation2 + $0x38] sm:$0xff]  ;;  %v2228_v54 = vld [vmem:[#allocation2 + $0x50] sm:$0xff] }
 0x219   :  { %7251 = vmatmul.mubr.msk.bf16.gmra.mrb[88].mxu0 %vm515_vm2, %v9022_v40  ;;  %v4504_v40 = vpack.c.bf16 %v4441_v23, %v4440_v35  ;;  %v4513_v23 = vpack.c.bf16 %v4459_v63, %v4458_v21  ;;  %v2246_v35 = vld [vmem:[#allocation2 + $0x128] sm:$0xff]  ;;  %v2268_v21 = vld [vmem:[#allocation2 + $0x260] sm:$0xff] }
 0x21a   :  { %7254 = vmatprep.mubr.msk.bf16.mxu0 %vm515_vm2, %v9034_v55  ;;  %7515 = vmatmul.mubr.msk.bf16.gmra.mrb[24].mxu1 %vm515_vm2, %v9046_v7  ;;  %v4443_v55 = vld [vmem:[#allocation2 + $0x51] sm:$0xff]  ;;  %v4445_v7 = vld [vmem:[#allocation2 + $0x69] sm:$0xff] }
 0x21b   :  { %7518 = vmatprep.mubr.msk.bf16.mxu1 %vm515_vm2, %v9233_v37 }
 0x221   :  { %7255 = vmatmul.mubr.msk.bf16.gmra.mrb[92].mxu0 %vm515_vm2, %v9038_v56  ;;  %v2225_v56 = vld [vmem:[#allocation2 + $0x30] sm:$0xff] }
 0x222   :  { %7519 = vmatmul.mubr.msk.bf16.gmra.mrb[28].mxu1 %vm515_vm2, %v3965_v51  ;;  %7258 = vmatprep.mubr.msk.bf16.mxu0 %vm515_vm2, %v1749_v2  ;;  %v4456_v2 = vld [vmem:[#allocation2 + $0xf1] sm:$0xff] }
 0x223   :  { %7522 = vmatprep.mubr.msk.bf16.mxu1 %vm515_vm2, %v9056_v27  ;;  %v2227_v27 = vld [vmem:[#allocation2 + $0x48] sm:$0xff] }
 0x229   :  { %7259 = vmatmul.mubr.msk.bf16.gmra.mrb[96].mxu0 %vm515_vm2, %v9050_v13  ;;  %v2288_v13 = vpack.c.bf16 %v2226_v52, %v2225_v56  ;;  %v4463_v52 = vld [vmem:[#allocation2 + $0x141] sm:$0xff] }
 0x22a   :  { %7262 = vmatprep.mubr.msk.bf16.mxu0 %vm515_vm2, %v9058_v28  ;;  %7523 = vmatmul.mubr.msk.bf16.gmra.mrb[32].mxu1 %vm515_vm2, %v9069_v46  ;;  %v4442_v28 = vld [vmem:[#allocation2 + $0x49] sm:$0xff] }
 0x22b   :  { %7526 = vmatprep.mubr.msk.bf16.mxu1 %vm515_vm2, %v9071_v49  ;;  %v4505_v46 = vpack.c.bf16 %v4443_v55, %v4442_v28  ;;  %v4444_v49 = vld [vmem:[#allocation2 + $0x61] sm:$0xff]  ;;  %v4465_v55 = vld [vmem:[#allocation2 + $0x159] sm:$0xff] }
 0x231   :  { %7263 = vmatmul.mubr.msk.bf16.gmra.mrb[100].mxu0 %vm515_vm2, %v9061_v29  ;;  %v2289_v29 = vpack.c.bf16 %v2228_v54, %v2227_v27  ;;  %v2245_v54 = vld [vmem:[#allocation2 + $0x120] sm:$0xff] }
 0x232   :  { %7266 = vmatprep.mubr.msk.bf16.mxu0 %vm515_vm2, %v9073_v53  ;;  %7527 = vmatmul.mubr.msk.bf16.gmra.mrb[36].mxu1 %vm515_vm2, %v9085_v6  ;;  %v4506_v53 = vpack.c.bf16 %v4445_v7, %v4444_v49  ;;  %v2232_v6 = vld [vmem:[#allocation2 + $0x80] sm:$0xff]  ;;  %v2298_v56 = vpack.c.bf16 %v2246_v35, %v2245_v54  ;;  %v2247_v7 = vld [vmem:[#allocation2 + $0x138] sm:$0xff] }
 0x233   :  { %7530 = vmatprep.mubr.msk.bf16.mxu1 %vm515_vm2, %v9087_v14  ;;  %v4447_v14 = vld [vmem:[#allocation2 + $0x81] sm:$0xff]  ;;  %v2250_v49 = vld [vmem:[#allocation2 + $0x158] sm:$0xff] }
 0x234   :  { %v2267_v35 = vld [vmem:[#allocation2 + $0x258] sm:$0xff] }
 0x239   :  { %7267 = vmatmul.mubr.msk.bf16.gmra.mrb[104].mxu0 %vm515_vm2, %v9077_v57  ;;  %v2230_v57 = vld [vmem:[#allocation2 + $0x68] sm:$0xff] }
 0x23a   :  { %7270 = vmatprep.mubr.msk.bf16.mxu0 %vm515_vm2, %v9089_v15  ;;  %7531 = vmatmul.mubr.msk.bf16.gmra.mrb[40].mxu1 %vm515_vm2, %v9101_v31  ;;  %v2229_v15 = vld [vmem:[#allocation2 + $0x60] sm:$0xff] }
 0x23b   :  { %7534 = vmatprep.mubr.msk.bf16.mxu1 %vm515_vm2, %v9103_v42  ;;  %v2290_v31 = vpack.c.bf16 %v2230_v57, %v2229_v15  ;;  %v2231_v42 = vld [vmem:[#allocation2 + $0x78] sm:$0xff] }
 0x23c   :  { %v4467_v57 = vld [vmem:[#allocation2 + $0x171] sm:$0xff] }
 0x241   :  { %7271 = vmatmul.mubr.msk.bf16.gmra.mrb[108].mxu0 %vm515_vm2, %v9093_v41  ;;  %v4449_v41 = vld [vmem:[#allocation2 + $0x99] sm:$0xff] }
 0x242   :  { %7274 = vmatprep.mubr.msk.bf16.mxu0 %vm515_vm2, %v9105_v43  ;;  %7535 = vmatmul.mubr.msk.bf16.gmra.mrb[44].mxu1 %vm515_vm2, %v9117_v4  ;;  %v4446_v43 = vld [vmem:[#allocation2 + $0x79] sm:$0xff] }
 0x243   :  { %7538 = vmatprep.mubr.msk.bf16.mxu1 %vm515_vm2, %v9119_v9  ;;  %v4507_v4 = vpack.c.bf16 %v4447_v14, %v4446_v43  ;;  %v4448_v9 = vld [vmem:[#allocation2 + $0x91] sm:$0xff]  ;;  %v4469_v14 = vld [vmem:[#allocation2 + $0x189] sm:$0xff] }
 0x249   :  { %7275 = vmatmul.mubr.msk.bf16.gmra.mrb[112].mxu0 %vm515_vm2, %v9109_v44  ;;  %v2291_v44 = vpack.c.bf16 %v2232_v6, %v2231_v42  ;;  %v2249_v6 = vld [vmem:[#allocation2 + $0x150] sm:$0xff] }
 0x24a   :  { %7278 = vmatprep.mubr.msk.bf16.mxu0 %vm515_vm2, %v9121_v16  ;;  %7539 = vmatmul.mubr.msk.bf16.gmra.mrb[48].mxu1 %vm515_vm2, %v9133_v47  ;;  %v4508_v16 = vpack.c.bf16 %v4449_v41, %v4448_v9  ;;  %v2236_v47 = vld [vmem:[#allocation2 + $0xb0] sm:$0xff]  ;;  %v2300_v15 = vpack.c.bf16 %v2250_v49, %v2249_v6  ;;  %v2251_v41 = vld [vmem:[#allocation2 + $0x168] sm:$0xff]  ;;  %v4470_v9 = vld [vmem:[#allocation2 + $0x199] sm:$0xff] }
 0x24b   :  { %7542 = vmatprep.mubr.msk.bf16.mxu1 %vm515_vm2, %v11488_v59  ;;  %v4512_v59 = vpack.c.bf16 %v4457_v36, %v4456_v2  ;;  %v4481_v2 = vld [vmem:[#allocation2 + $0x249] sm:$0xff] }
 0x24c   :  { %v2271_v49 = vld [vmem:[#allocation2 + $0x288] sm:$0xff] }
 0x251   :  { %7279 = vmatmul.mubr.msk.bf16.gmra.mrb[116].mxu0 %vm515_vm2, %v11489_v61  ;;  %v2242_v61 = vld [vmem:[#allocation2 + $0xf8] sm:$0xff] }
 0x252   :  { %7282 = vmatprep.mubr.msk.bf16.mxu0 %vm515_vm2, %v11490_v62  ;;  %7543 = vmatmul.mubr.msk.bf16.gmra.mrb[52].mxu1 %vm515_vm2, %v9149_v58  ;;  %v2244_v62 = vld [vmem:[#allocation2 + $0x110] sm:$0xff]  ;;  %v2296_v12 = vpack.c.bf16 %v2242_v61, %v2241_v8  ;;  %v2263_v61 = vld [vmem:[#allocation2 + $0x228] sm:$0xff] }
 0x253   :  { %7546 = vmatprep.mubr.msk.bf16.mxu1 %vm515_vm2, %v9151_v45  ;;  %v2235_v45 = vld [vmem:[#allocation2 + $0xa8] sm:$0xff] }
 0x254   :  { %v2293_v5 = vpack.c.bf16 %v2236_v47, %v2235_v45 }
 0x259   :  { %7283 = vmatmul.mubr.msk.bf16.gmra.mrb[120].mxu0 %vm515_vm2, %v11491_v10  ;;  %v4461_v10 = vld [vmem:[#allocation2 + $0x129] sm:$0xff] }
 0x25a   :  { %7286 = vmatprep.mubr.msk.bf16.mxu0 %vm515_vm2, %v9153_v17  ;;  %7547 = vmatmul.mubr.msk.bf16.gmra.mrb[56].mxu1 %vm515_vm2, %v9165_v60  ;;  %v2234_v17 = vld [vmem:[#allocation2 + $0x98] sm:$0xff] }
 0x25b   :  { %7550 = vmatprep.mubr.msk.bf16.mxu1 %vm515_vm2, %v9297_v11  ;;  %v4451_v60 = vld [vmem:[#allocation2 + $0xb1] sm:$0xff] }
 0x25c   :  { %v4509_v33 = vpack.c.bf16 %v4451_v60, %v4450_v24  ;;  %v4473_v60 = vld [vmem:[#allocation2 + $0x1e9] sm:$0xff] }
 0x25d   :  { %v2258_v24 = vld [vmem:[#allocation2 + $0x1e8] sm:$0xff] }
 0x25e   :  { %v2304_v26 = vpack.c.bf16 %v2258_v24, %v2257_v18  ;;  %v2277_v24 = vld [vmem:[#allocation2 + $0x2d0] sm:$0xff]  ;;  %v2279_v18 = vld [vmem:[#allocation2 + $0x2e8] sm:$0xff] }
 0x261   :  { %7287 = vmatmul.mubr.msk.bf16.gmra.mrb[124].mxu0 %vm515_vm2, %v9157_v0  ;;  %v2233_v0 = vld [vmem:[#allocation2 + $0x90] sm:$0xff] }
 0x262   :  { %7292 = vmatprep.mubr.msk.bf16.mxu0 %vm515_vm2, %v2287_v34  ;;  %7551 = vmatmul.mubr.msk.bf16.gmra.mrb[60].mxu1 %vm515_vm2, %v3981_v22  ;;  %v2292_v58 = vpack.c.bf16 %v2234_v17, %v2233_v0  ;;  %v2297_v22 = vpack.c.bf16 %v2244_v62, %v2243_v19  ;;  %v4514_v34 = vpack.c.bf16 %v4461_v10, %v4460_v32  ;;  %v2256_v17 = vld [vmem:[#allocation2 + $0x1d0] sm:$0xff]  ;;  %v2255_v0 = vld [vmem:[#allocation2 + $0x1c8] sm:$0xff]  ;;  %v4485_v32 = vld [vmem:[#allocation2 + $0x279] sm:$0xff] }
 0x263   :  { %7556 = vmatprep.mubr.msk.bf16.mxu1 %vm515_vm2, %v4504_v40  ;;  %v2248_v40 = vld [vmem:[#allocation2 + $0x140] sm:$0xff]  ;;  %v2303_v1 = vpack.c.bf16 %v2256_v17, %v2255_v0  ;;  %v4478_v62 = vld [vmem:[#allocation2 + $0x229] sm:$0xff] }
 0x264   :  { %v2299_v27 = vpack.c.bf16 %v2248_v40, %v2247_v7  ;;  %v4480_v10 = vld [vmem:[#allocation2 + $0x241] sm:$0xff]  ;;  %v4482_v40 = vld [vmem:[#allocation2 + $0x259] sm:$0xff] }
 0x265   :  { %v2266_v19 = vld [vmem:[#allocation2 + $0x248] sm:$0xff]  ;;  %v2270_v7 = vld [vmem:[#allocation2 + $0x278] sm:$0xff] }
 0x269   :  { %7293 = vmatmul.mubr.msk.bf16.vlgmr.msra.gmra.mrb[64].mxu0 %vm515_vm2, %v2288_v13  ;;  %v4462_v13 = vld [vmem:[#allocation2 + $0x139] sm:$0xff] }
 0x26a   :  { %7296 = vmatprep.mubr.msk.bf16.mxu0 %vm515_vm2, %v2289_v29  ;;  %7557 = vmatmul.mubr.msk.bf16.vlgmr.msra.gmra.mrb[0].mxu1 %vm515_vm2, %v4505_v46  ;;  %v4515_v28 = vpack.c.bf16 %v4463_v52, %v4462_v13  ;;  %v4464_v29 = vld [vmem:[#allocation2 + $0x151] sm:$0xff]  ;;  %v2309_v52 = vpack.c.bf16 %v2268_v21, %v2267_v35  ;;  %v4995_v21 = vld [vmem:[#allocation2 + $0x3a] sm:$0xff] }
 0x26b   :  { %7621 = vmatpush3.bf16.msra.mxu1 %v9181_v3  ;;  %7560 = vmatprep.mubr.msk.bf16.mxu1 %vm515_vm2, %v4506_v53  ;;  %v4455_v3 = vld [vmem:[#allocation2 + $0xe1] sm:$0xff]  ;;  %v4516_v46 = vpack.c.bf16 %v4465_v55, %v4464_v29  ;;  %v2252_v53 = vld [vmem:[#allocation2 + $0x170] sm:$0xff] }
 0x26c   :  { %v4511_v51 = vpack.c.bf16 %v4455_v3, %v4454_v48  ;;  %v2301_v42 = vpack.c.bf16 %v2252_v53, %v2251_v41  ;;  %v4474_v3 = vld [vmem:[#allocation2 + $0x1f9] sm:$0xff]  ;;  %v2264_v48 = vld [vmem:[#allocation2 + $0x230] sm:$0xff]  ;;  %v2274_v41 = vld [vmem:[#allocation2 + $0x2a8] sm:$0xff] }
 0x26d   :  { %v2307_v63 = vpack.c.bf16 %v2264_v48, %v2263_v61  ;;  %v4484_v55 = vld [vmem:[#allocation2 + $0x271] sm:$0xff]  ;;  %v4489_v29 = vld [vmem:[#allocation2 + $0x2a9] sm:$0xff]  ;;  %v4501_v48 = vld [vmem:[#allocation2 + $0x339] sm:$0xff] }
 0x26e   :  { %v2272_v13 = vld [vmem:[#allocation2 + $0x290] sm:$0xff] }
 0x26f   :  { %v4486_v53 = vld [vmem:[#allocation2 + $0x289] sm:$0xff] }
 0x270   :  { %v4999_v35 = vld [vmem:[#allocation2 + $0x6a] sm:$0xff] }
 0x271   :  { %7297 = vmatmul.mubr.msk.bf16.gmra.mrb[68].mxu0 %vm515_vm2, %v2290_v31  ;;  %v4466_v31 = vld [vmem:[#allocation2 + $0x169] sm:$0xff] }
 0x272   :  { %7300 = vmatprep.mubr.msk.bf16.mxu0 %vm515_vm2, %v2291_v44  ;;  %7561 = vmatmul.mubr.msk.bf16.gmra.mrb[4].mxu1 %vm515_vm2, %v4507_v4  ;;  %v4517_v43 = vpack.c.bf16 %v4467_v57, %v4466_v31  ;;  %v4468_v44 = vld [vmem:[#allocation2 + $0x181] sm:$0xff]  ;;  %v2311_v57 = vpack.c.bf16 %v2272_v13, %v2271_v49 }
 0x273   :  { %7564 = vmatprep.mubr.msk.bf16.mxu1 %vm515_vm2, %v4508_v16  ;;  %v4518_v4 = vpack.c.bf16 %v4469_v14, %v4468_v44  ;;  %v4471_v16 = vld [vmem:[#allocation2 + $0x1a1] sm:$0xff]  ;;  %v4493_v44 = vld [vmem:[#allocation2 + $0x2d9] sm:$0xff] }
 0x274   :  { %v4519_v47 = vpack.c.bf16 %v4471_v16, %v4470_v9  ;;  %v4488_v14 = vld [vmem:[#allocation2 + $0x2a1] sm:$0xff]  ;;  %v2275_v9 = vld [vmem:[#allocation2 + $0x2b8] sm:$0xff] }
 0x275   :  { %v2276_v31 = vld [vmem:[#allocation2 + $0x2c0] sm:$0xff] }
 0x276   :  { %v4490_v16 = vld [vmem:[#allocation2 + $0x2b9] sm:$0xff]  ;;  %v2313_v17 = vpack.c.bf16 %v2276_v31, %v2275_v9 }
 0x279   :  { %7301 = vmatmul.mubr.msk.bf16.gmra.mrb[72].mxu0 %vm515_vm2, %v2292_v58  ;;  %v4472_v58 = vld [vmem:[#allocation2 + $0x1e1] sm:$0xff] }
 0x27a   :  { %7304 = vmatprep.mubr.msk.bf16.mxu0 %vm515_vm2, %v2293_v5  ;;  %7565 = vmatmul.mubr.msk.bf16.gmra.mrb[8].mxu1 %vm515_vm2, %v4509_v33  ;;  %v4520_v45 = vpack.c.bf16 %v4473_v60, %v4472_v58  ;;  %v2260_v5 = vld [vmem:[#allocation2 + $0x200] sm:$0xff]  ;;  %v4492_v60 = vld [vmem:[#allocation2 + $0x2d1] sm:$0xff] }
 0x27b   :  { %7568 = vmatprep.mubr.msk.bf16.mxu1 %vm515_vm2, %v4510_v20  ;;  %v4475_v33 = vld [vmem:[#allocation2 + $0x201] sm:$0xff]  ;;  %v4477_v20 = vld [vmem:[#allocation2 + $0x219] sm:$0xff]  ;;  %v2305_v25 = vpack.c.bf16 %v2260_v5, %v2259_v30  ;;  %v4530_v0 = vpack.c.bf16 %v4493_v44, %v4492_v60  ;;  %v2280_v58 = vld [vmem:[#allocation2 + $0x2f0] sm:$0xff] }
 0x27c   :  { %v4521_v36 = vpack.c.bf16 %v4475_v33, %v4474_v3  ;;  %v4497_v5 = vld [vmem:[#allocation2 + $0x309] sm:$0xff]  ;;  %v4496_v3 = vld [vmem:[#allocation2 + $0x301] sm:$0xff]  ;;  %v5018_v60 = vld [vmem:[#allocation2 + $0x152] sm:$0xff] }
 0x27d   :  { %v5014_v44 = vld [vmem:[#allocation2 + $0x122] sm:$0xff] }
 0x281   :  { %7305 = vmatmul.mubr.msk.bf16.gmra.mrb[76].mxu0 %vm515_vm2, %v2294_v38  ;;  %v4476_v38 = vld [vmem:[#allocation2 + $0x211] sm:$0xff] }
 0x282   :  { %7308 = vmatprep.mubr.msk.bf16.mxu0 %vm515_vm2, %v2295_v50  ;;  %7569 = vmatmul.mubr.msk.bf16.gmra.mrb[12].mxu1 %vm515_vm2, %v4511_v51  ;;  %v4479_v50 = vld [vmem:[#allocation2 + $0x231] sm:$0xff] }
 0x283   :  { %7572 = vmatprep.mubr.msk.bf16.mxu1 %vm515_vm2, %v4512_v59  ;;  %v2261_v51 = vld [vmem:[#allocation2 + $0x210] sm:$0xff]  ;;  %v4523_v8 = vpack.c.bf16 %v4479_v50, %v4478_v62 }
 0x284   :  { %v2306_v59 = vpack.c.bf16 %v2262_v39, %v2261_v51  ;;  %v2281_v39 = vld [vmem:[#allocation2 + $0x300] sm:$0xff]  ;;  %v2283_v51 = vld [vmem:[#allocation2 + $0x318] sm:$0xff] }
 0x285   :  { %v4500_v62 = vld [vmem:[#allocation2 + $0x331] sm:$0xff] }
 0x289   :  { %7309 = vmatmul.mubr.msk.bf16.gmra.mrb[80].mxu0 %vm515_vm2, %v2296_v12  ;;  %v4524_v12 = vpack.c.bf16 %v4481_v2, %v4480_v10  ;;  %v4498_v2 = vld [vmem:[#allocation2 + $0x319] sm:$0xff]  ;;  %v4503_v10 = vld [vmem:[#allocation2 + $0x351] sm:$0xff] }
 0x28a   :  { %7312 = vmatprep.mubr.msk.bf16.mxu0 %vm515_vm2, %v2297_v22  ;;  %7573 = vmatmul.mubr.msk.bf16.gmra.mrb[16].mxu1 %vm515_vm2, %v4513_v23  ;;  %v4483_v22 = vld [vmem:[#allocation2 + $0x261] sm:$0xff] }
 0x28b   :  { %7576 = vmatprep.mubr.msk.bf16.mxu1 %vm515_vm2, %v4514_v34  ;;  %v2265_v23 = vld [vmem:[#allocation2 + $0x240] sm:$0xff]  ;;  %v4525_v54 = vpack.c.bf16 %v4483_v22, %v4482_v40 }
 0x28c   :  { %v2308_v34 = vpack.c.bf16 %v2266_v19, %v2265_v23  ;;  %v4994_v19 = vld [vmem:[#allocation2 + $0x32] sm:$0xff]  ;;  %v4996_v23 = vld [vmem:[#allocation2 + $0x4a] sm:$0xff] }
 0x28d   :  { %v5058_v22 = vpack.c.bf16 %v4995_v21, %v4994_v19  ;;  %v5037_v19 = vld [vmem:[#allocation2 + $0x262] sm:$0xff]  ;;  %v5038_v21 = vld [vmem:[#allocation2 + $0x272] sm:$0xff] }
 0x291   :  { %7313 = vmatmul.mubr.msk.bf16.gmra.mrb[84].mxu0 %vm515_vm2, %v2298_v56  ;;  %v4526_v56 = vpack.c.bf16 %v4485_v32, %v4484_v55  ;;  %v4997_v32 = vld [vmem:[#allocation2 + $0x52] sm:$0xff]  ;;  %v5001_v55 = vld [vmem:[#allocation2 + $0x82] sm:$0xff] }
 0x292   :  { %7316 = vmatprep.mubr.msk.bf16.mxu0 %vm515_vm2, %v2299_v27  ;;  %7577 = vmatmul.mubr.msk.bf16.gmra.mrb[20].mxu1 %vm515_vm2, %v4515_v28  ;;  %v4487_v27 = vld [vmem:[#allocation2 + $0x291] sm:$0xff]  ;;  %v5059_v40 = vpack.c.bf16 %v4997_v32, %v4996_v23 }
 0x293   :  { %7580 = vmatprep.mubr.msk.bf16.mxu1 %vm515_vm2, %v4516_v46  ;;  %v2269_v28 = vld [vmem:[#allocation2 + $0x270] sm:$0xff]  ;;  %v4527_v6 = vpack.c.bf16 %v4487_v27, %v4486_v53 }
 0x294   :  { %v2310_v46 = vpack.c.bf16 %v2270_v7, %v2269_v28  ;;  %v5003_v7 = vld [vmem:[#allocation2 + $0x9a] sm:$0xff]  ;;  %v5004_v27 = vld [vmem:[#allocation2 + $0xaa] sm:$0xff]  ;;  %v5005_v28 = vld [vmem:[#allocation2 + $0xb2] sm:$0xff] }
 0x295   :  { %v5063_v49 = vpack.c.bf16 %v5005_v28, %v5004_v27 }
 0x299   :  { %7317 = vmatmul.mubr.msk.bf16.gmra.mrb[88].mxu0 %vm515_vm2, %v2300_v15  ;;  %v4528_v15 = vpack.c.bf16 %v4489_v29, %v4488_v14  ;;  %v5006_v29 = vld [vmem:[#allocation2 + $0xc2] sm:$0xff]  ;;  %v5010_v14 = vld [vmem:[#allocation2 + $0xf2] sm:$0xff] }
 0x29a   :  { %7320 = vmatprep.mubr.msk.bf16.mxu0 %vm515_vm2, %v2301_v42  ;;  %7581 = vmatmul.mubr.msk.bf16.gmra.mrb[24].mxu1 %vm515_vm2, %v4517_v43  ;;  %v4491_v42 = vld [vmem:[#allocation2 + $0x2c1] sm:$0xff] }
 0x29b   :  { %7584 = vmatprep.mubr.msk.bf16.mxu1 %vm515_vm2, %v4518_v4  ;;  %v2273_v43 = vld [vmem:[#allocation2 + $0x2a0] sm:$0xff] }
 0x29c   :  { %v2312_v4 = vpack.c.bf16 %v2274_v41, %v2273_v43  ;;  %v5013_v43 = vld [vmem:[#allocation2 + $0x112] sm:$0xff] }
 0x2a1   :  { %7321 = vmatmul.mubr.msk.bf16.gmra.mrb[92].mxu0 %vm515_vm2, %v9233_v37  ;;  %v4522_v37 = vpack.c.bf16 %v4477_v20, %v4476_v38  ;;  %v4494_v20 = vld [vmem:[#allocation2 + $0x2e9] sm:$0xff]  ;;  %v2284_v38 = vld [vmem:[#allocation2 + $0x320] sm:$0xff] }
 0x2a2   :  { %7324 = vmatprep.mubr.msk.bf16.mxu0 %vm515_vm2, %v2303_v1  ;;  %7585 = vmatmul.mubr.msk.bf16.gmra.mrb[28].mxu1 %vm515_vm2, %v4519_v47  ;;  %v4529_v47 = vpack.c.bf16 %v4491_v42, %v4490_v16  ;;  %v2278_v1 = vld [vmem:[#allocation2 + $0x2d8] sm:$0xff]  ;;  %v5012_v42 = vld [vmem:[#allocation2 + $0x10a] sm:$0xff] }
 0x2a3   :  { %7588 = vmatprep.mubr.msk.bf16.mxu1 %vm515_vm2, %v4520_v45  ;;  %v4495_v45 = vld [vmem:[#allocation2 + $0x2f1] sm:$0xff]  ;;  %v2314_v33 = vpack.c.bf16 %v2278_v1, %v2277_v24  ;;  %v5067_v9 = vpack.c.bf16 %v5013_v43, %v5012_v42 }
 0x2a4   :  { %v4531_v30 = vpack.c.bf16 %v4495_v45, %v4494_v20  ;;  %v5020_v45 = vld [vmem:[#allocation2 + $0x16a] sm:$0xff]  ;;  %v5021_v24 = vld [vmem:[#allocation2 + $0x172] sm:$0xff] }
 0x2a5   :  { %v5048_v42 = vld [vmem:[#allocation2 + $0x2ea] sm:$0xff]  ;;  %v5049_v43 = vld [vmem:[#allocation2 + $0x2f2] sm:$0xff] }
 0x2a9   :  { %7325 = vmatmul.mubr.msk.bf16.gmra.mrb[96].mxu0 %vm515_vm2, %v2304_v26  ;;  %v2315_v26 = vpack.c.bf16 %v2280_v58, %v2279_v18  ;;  %v5071_v18 = vpack.c.bf16 %v5021_v24, %v5020_v45  ;;  %v5054_v24 = vld [vmem:[#allocation2 + $0x332] sm:$0xff] }
 0x2aa   :  { %7328 = vmatprep.mubr.msk.bf16.mxu0 %vm515_vm2, %v2305_v25  ;;  %7589 = vmatmul.mubr.msk.bf16.gmra.mrb[32].mxu1 %vm515_vm2, %v4521_v36  ;;  %v4532_v25 = vpack.c.bf16 %v4497_v5, %v4496_v3  ;;  %v2282_v36 = vld [vmem:[#allocation2 + $0x308] sm:$0xff] }
 0x2ab   :  { %7592 = vmatprep.mubr.msk.bf16.mxu1 %vm515_vm2, %v4522_v37  ;;  %v4499_v37 = vld [vmem:[#allocation2 + $0x321] sm:$0xff]  ;;  %v2316_v50 = vpack.c.bf16 %v2282_v36, %v2281_v39  ;;  %v5027_v36 = vld [vmem:[#allocation2 + $0x1ea] sm:$0xff] }
 0x2ac   :  { %v4533_v61 = vpack.c.bf16 %v4499_v37, %v4498_v2  ;;  %v5022_v5 = vld [vmem:[#allocation2 + $0x182] sm:$0xff]  ;;  %v5028_v37 = vld [vmem:[#allocation2 + $0x1fa] sm:$0xff] }
 0x2ad   :  { %v5029_v39 = vld [vmem:[#allocation2 + $0x202] sm:$0xff] }
 0x2b1   :  { %7329 = vmatmul.mubr.msk.bf16.gmra.mrb[100].mxu0 %vm515_vm2, %v2306_v59  ;;  %v2317_v59 = vpack.c.bf16 %v2284_v38, %v2283_v51  ;;  %v5075_v51 = vpack.c.bf16 %v5029_v39, %v5028_v37 }
 0x2b2   :  { %7332 = vmatprep.mubr.msk.bf16.mxu0 %vm515_vm2, %v2307_v63  ;;  %7593 = vmatmul.mubr.msk.bf16.gmra.mrb[36].mxu1 %vm515_vm2, %v4523_v8  ;;  %v4534_v63 = vpack.c.bf16 %v4501_v48, %v4500_v62  ;;  %v4502_v8 = vld [vmem:[#allocation2 + $0x349] sm:$0xff]  ;;  %v5030_v48 = vld [vmem:[#allocation2 + $0x212] sm:$0xff] }
 0x2b3   :  { %7596 = vmatprep.mubr.msk.bf16.mxu1 %vm515_vm2, %v4524_v12  ;;  %v4535_v12 = vpack.c.bf16 %v4503_v10, %v4502_v8  ;;  %v5034_v62 = vld [vmem:[#allocation2 + $0x242] sm:$0xff] }
 0x2b9   :  { %7333 = vmatmul.mubr.msk.bf16.gmra.mrb[104].mxu0 %vm515_vm2, %v2308_v34  ;;  %v4998_v34 = vld [vmem:[#allocation2 + $0x62] sm:$0xff] }
 0x2ba   :  { %7336 = vmatprep.mubr.msk.bf16.mxu0 %vm515_vm2, %v2309_v52  ;;  %7597 = vmatmul.mubr.msk.bf16.gmra.mrb[40].mxu1 %vm515_vm2, %v4525_v54  ;;  %v5060_v52 = vpack.c.bf16 %v4999_v35, %v4998_v34  ;;  %v5000_v54 = vld [vmem:[#allocation2 + $0x7a] sm:$0xff] }
 0x2bb   :  { %7600 = vmatprep.mubr.msk.bf16.mxu1 %vm515_vm2, %v4526_v56  ;;  %v5002_v56 = vld [vmem:[#allocation2 + $0x92] sm:$0xff] }
 0x2bc   :  { %v5062_v13 = vpack.c.bf16 %v5003_v7, %v5002_v56  ;;  %v5043_v56 = vld [vmem:[#allocation2 + $0x2aa] sm:$0xff] }
 0x2c1   :  { %7337 = vmatmul.mubr.msk.bf16.gmra.mrb[108].mxu0 %vm515_vm2, %v2310_v46  ;;  %v5007_v46 = vld [vmem:[#allocation2 + $0xca] sm:$0xff] }
 0x2c2   :  { %7340 = vmatprep.mubr.msk.bf16.mxu0 %vm515_vm2, %v2311_v57  ;;  %7601 = vmatmul.mubr.msk.bf16.gmra.mrb[44].mxu1 %vm515_vm2, %v4527_v6  ;;  %v5064_v53 = vpack.c.bf16 %v5007_v46, %v5006_v29  ;;  %v5008_v57 = vld [vmem:[#allocation2 + $0xda] sm:$0xff]  ;;  %v5009_v6 = vld [vmem:[#allocation2 + $0xe2] sm:$0xff] }
 0x2c3   :  { %7604 = vmatprep.mubr.msk.bf16.mxu1 %vm515_vm2, %v4528_v15  ;;  %v5011_v15 = vld [vmem:[#allocation2 + $0xfa] sm:$0xff]  ;;  %v5065_v41 = vpack.c.bf16 %v5009_v6, %v5008_v57  ;;  %v5045_v46 = vld [vmem:[#allocation2 + $0x2c2] sm:$0xff] }
 0x2c4   :  { %v5066_v31 = vpack.c.bf16 %v5011_v15, %v5010_v14  ;;  %v5044_v29 = vld [vmem:[#allocation2 + $0x2ba] sm:$0xff] }
 0x2c5   :  { %v5047_v57 = vld [vmem:[#allocation2 + $0x2da] sm:$0xff]  ;;  %v5083_v14 = vpack.c.bf16 %v5045_v46, %v5044_v29 }
 0x2c9   :  { %7341 = vmatmul.mubr.msk.bf16.gmra.mrb[112].mxu0 %vm515_vm2, %v2312_v4  ;;  %v5015_v4 = vld [vmem:[#allocation2 + $0x12a] sm:$0xff] }
 0x2ca   :  { %7344 = vmatprep.mubr.msk.bf16.mxu0 %vm515_vm2, %v2313_v17  ;;  %7605 = vmatmul.mubr.msk.bf16.gmra.mrb[48].mxu1 %vm515_vm2, %v4529_v47  ;;  %v5068_v16 = vpack.c.bf16 %v5015_v4, %v5014_v44  ;;  %v5016_v17 = vld [vmem:[#allocation2 + $0x13a] sm:$0xff]  ;;  %v5017_v47 = vld [vmem:[#allocation2 + $0x142] sm:$0xff] }
 0x2cb   :  { %7608 = vmatprep.mubr.msk.bf16.mxu1 %vm515_vm2, %v4530_v0  ;;  %v5019_v0 = vld [vmem:[#allocation2 + $0x15a] sm:$0xff]  ;;  %v5069_v1 = vpack.c.bf16 %v5017_v47, %v5016_v17  ;;  %v5050_v4 = vld [vmem:[#allocation2 + $0x302] sm:$0xff]  ;;  %v5085_v17 = vpack.c.bf16 %v5049_v43, %v5048_v42 }
 0x2cc   :  { %v5070_v58 = vpack.c.bf16 %v5019_v0, %v5018_v60 }
 0x2d1   :  { %7345 = vmatmul.mubr.msk.bf16.gmra.mrb[116].mxu0 %vm515_vm2, %v2314_v33  ;;  %v5023_v33 = vld [vmem:[#allocation2 + $0x18a] sm:$0xff] }
 0x2d2   :  { %7348 = vmatprep.mubr.msk.bf16.mxu0 %vm515_vm2, %v2315_v26  ;;  %7609 = vmatmul.mubr.msk.bf16.gmra.mrb[52].mxu1 %vm515_vm2, %v4531_v30  ;;  %v5072_v20 = vpack.c.bf16 %v5023_v33, %v5022_v5  ;;  %v5024_v26 = vld [vmem:[#allocation2 + $0x19a] sm:$0xff]  ;;  %v5025_v30 = vld [vmem:[#allocation2 + $0x1a2] sm:$0xff] }
 0x2d3   :  { %7612 = vmatprep.mubr.msk.bf16.mxu1 %vm515_vm2, %v4532_v25  ;;  %v5073_v3 = vpack.c.bf16 %v5025_v30, %v5024_v26  ;;  %v5026_v25 = vld [vmem:[#allocation2 + $0x1e2] sm:$0xff]  ;;  %v5055_v5 = vld [vmem:[#allocation2 + $0x33a] sm:$0xff]  ;;  %v5056_v26 = vld [vmem:[#allocation2 + $0x34a] sm:$0xff] }
 0x2d4   :  { %v5074_v38 = vpack.c.bf16 %v5027_v36, %v5026_v25  ;;  %v5057_v30 = vld [vmem:[#allocation2 + $0x352] sm:$0xff] }
 0x2d9   :  { %7349 = vmatmul.mubr.msk.bf16.gmra.mrb[120].mxu0 %vm515_vm2, %v2316_v50  ;;  %v5031_v50 = vld [vmem:[#allocation2 + $0x21a] sm:$0xff] }
 0x2da   :  { %7352 = vmatprep.mubr.msk.bf16.mxu0 %vm515_vm2, %v2317_v59  ;;  %7613 = vmatmul.mubr.msk.bf16.gmra.mrb[56].mxu1 %vm515_vm2, %v4533_v61  ;;  %v5076_v2 = vpack.c.bf16 %v5031_v50, %v5030_v48  ;;  %v5032_v59 = vld [vmem:[#allocation2 + $0x22a] sm:$0xff]  ;;  %v5033_v61 = vld [vmem:[#allocation2 + $0x232] sm:$0xff] }
 0x2db   :  { %7616 = vmatprep.mubr.msk.bf16.mxu1 %vm515_vm2, %v4534_v63  ;;  %v5035_v63 = vld [vmem:[#allocation2 + $0x24a] sm:$0xff]  ;;  %v5077_v8 = vpack.c.bf16 %v5033_v61, %v5032_v59 }
 0x2dc   :  { %v5078_v10 = vpack.c.bf16 %v5035_v63, %v5034_v62 }
 0x2e1   :  { %7353 = vmatmul.mubr.msk.bf16.gmra.mrb[124].mxu0 %vm515_vm2, %v9297_v11  ;;  %v5061_v11 = vpack.c.bf16 %v5001_v55, %v5000_v54  ;;  %v5042_v55 = vld [vmem:[#allocation2 + $0x2a2] sm:$0xff] }
 0x2e2   :  { %7617 = vmatmul.mubr.msk.bf16.gmra.mrb[60].mxu1 %vm515_vm2, %v4535_v12  ;;  %v5036_v12 = vld [vmem:[#allocation2 + $0x25a] sm:$0xff] }
 0x2e3   :  { %7622 = vmatprep.mubr.msk.bf16.mxu1 %vm515_vm2, %v5058_v22  ;;  %v5039_v22 = vld [vmem:[#allocation2 + $0x27a] sm:$0xff]  ;;  %v5079_v23 = vpack.c.bf16 %v5037_v19, %v5036_v12 }
 0x2e4   :  { %v5080_v32 = vpack.c.bf16 %v5039_v22, %v5038_v21 }
 0x2ea   :  { %7623 = vmatmul.mubr.msk.bf16.vlgmr.msra.gmra.mrb[0].mxu1 %vm515_vm2, %v5059_v40  ;;  %v5040_v40 = vld [vmem:[#allocation2 + $0x28a] sm:$0xff] }
 0x2eb   :  { %7626 = vmatprep.mubr.msk.bf16.mxu1 %vm515_vm2, %v5060_v52  ;;  %v5041_v52 = vld [vmem:[#allocation2 + $0x292] sm:$0xff] }
 0x2f2   :  { %7627 = vmatmul.mubr.msk.bf16.gmra.mrb[4].mxu1 %vm515_vm2, %v5061_v11  ;;  %v5081_v11 = vpack.c.bf16 %v5041_v52, %v5040_v40 }
 0x2f3   :  { %7630 = vmatprep.mubr.msk.bf16.mxu1 %vm515_vm2, %v5062_v13  ;;  %v5082_v13 = vpack.c.bf16 %v5043_v56, %v5042_v55 }
 0x2fa   :  { %7631 = vmatmul.mubr.msk.bf16.gmra.mrb[8].mxu1 %vm515_vm2, %v5063_v49 }
 0x2fb   :  { %7634 = vmatprep.mubr.msk.bf16.mxu1 %vm515_vm2, %v5064_v53  ;;  %v5046_v53 = vld [vmem:[#allocation2 + $0x2d2] sm:$0xff] }
 0x2fc   :  { %v5084_v15 = vpack.c.bf16 %v5047_v57, %v5046_v53 }
 0x302   :  { %7635 = vmatmul.mubr.msk.bf16.gmra.mrb[12].mxu1 %vm515_vm2, %v5065_v41 }
 0x303   :  { %7638 = vmatprep.mubr.msk.bf16.mxu1 %vm515_vm2, %v5066_v31 }
 0x30a   :  { %7639 = vmatmul.mubr.msk.bf16.gmra.mrb[16].mxu1 %vm515_vm2, %v5067_v9  ;;  %v5051_v9 = vld [vmem:[#allocation2 + $0x30a] sm:$0xff] }
 0x30b   :  { %7642 = vmatprep.mubr.msk.bf16.mxu1 %vm515_vm2, %v5068_v16  ;;  %v5086_v47 = vpack.c.bf16 %v5051_v9, %v5050_v4 }
 0x312   :  { %7643 = vmatmul.mubr.msk.bf16.gmra.mrb[20].mxu1 %vm515_vm2, %v5069_v1  ;;  %v5052_v1 = vld [vmem:[#allocation2 + $0x31a] sm:$0xff] }
 0x313   :  { %7646 = vmatprep.mubr.msk.bf16.mxu1 %vm515_vm2, %v5070_v58  ;;  %v5053_v58 = vld [vmem:[#allocation2 + $0x322] sm:$0xff] }
 0x31a   :  { %7647 = vmatmul.mubr.msk.bf16.gmra.mrb[24].mxu1 %vm515_vm2, %v5071_v18  ;;  %v5087_v18 = vpack.c.bf16 %v5053_v58, %v5052_v1 }
 0x31b   :  { %7650 = vmatprep.mubr.msk.bf16.mxu1 %vm515_vm2, %v5072_v20  ;;  %v5088_v20 = vpack.c.bf16 %v5055_v5, %v5054_v24 }
 0x322   :  { %7651 = vmatmul.mubr.msk.bf16.gmra.mrb[28].mxu1 %vm515_vm2, %v5073_v3 }
 0x323   :  { %7654 = vmatprep.mubr.msk.bf16.mxu1 %vm515_vm2, %v5074_v38  ;;  %v5089_v38 = vpack.c.bf16 %v5057_v30, %v5056_v26 }
 0x32a   :  { %7655 = vmatmul.mubr.msk.bf16.gmra.mrb[32].mxu1 %vm515_vm2, %v5075_v51 }
 0x32b   :  { %7658 = vmatprep.mubr.msk.bf16.mxu1 %vm515_vm2, %v5076_v2 }
 0x332   :  { %7659 = vmatmul.mubr.msk.bf16.gmra.mrb[36].mxu1 %vm515_vm2, %v5077_v8 }
 0x333   :  { %7662 = vmatprep.mubr.msk.bf16.mxu1 %vm515_vm2, %v5078_v10 }
 0x33a   :  { %7663 = vmatmul.mubr.msk.bf16.gmra.mrb[40].mxu1 %vm515_vm2, %v5079_v23 }
 0x33b   :  { %7666 = vmatprep.mubr.msk.bf16.mxu1 %vm515_vm2, %v5080_v32 }
 0x33c   :  { %v9398_v34 = vpop.f32.mrb[64].mxu0 }
 0x33d   :  { %v9400_v35 = vpop.f32.mrb[65].mxu0 }
 0x33e   :  { %v9402_v54 = vpop.f32.mrb[66].mxu0 }
 0x33f   :  { %v9404_v7 = vpop.f32.mrb[67].mxu0 }
 0x342   :  { %7667 = vmatmul.mubr.msk.bf16.gmra.mrb[44].mxu1 %vm515_vm2, %v5081_v11 }
 0x343   :  { %7670 = vmatprep.mubr.msk.bf16.mxu1 %vm515_vm2, %v5082_v13 }
 0x344   :  { %v9408_v27 = vpop.f32.mrb[68].mxu0 }
 0x345   :  { %v9410_v28 = vpop.f32.mrb[69].mxu0 }
 0x346   :  { %v9412_v49 = vpop.f32.mrb[70].mxu0 }
 0x347   :  { %v9414_v6 = vpop.f32.mrb[71].mxu0 }
 0x34a   :  { %7671 = vmatmul.mubr.msk.bf16.gmra.mrb[48].mxu1 %vm515_vm2, %v5083_v14 }
 0x34b   :  { %7674 = vmatprep.mubr.msk.bf16.mxu1 %vm515_vm2, %v5084_v15 }
 0x34c   :  { %v9418_v41 = vpop.f32.mrb[72].mxu0 }
 0x34d   :  { %v9420_v31 = vpop.f32.mrb[73].mxu0 }
 0x34e   :  { %v9422_v44 = vpop.f32.mrb[74].mxu0 }
 0x34f   :  { %v9424_v16 = vpop.f32.mrb[75].mxu0 }
 0x352   :  { %7675 = vmatmul.mubr.msk.bf16.gmra.mrb[52].mxu1 %vm515_vm2, %v5085_v17 }
 0x353   :  { %7678 = vmatprep.mubr.msk.bf16.mxu1 %vm515_vm2, %v5086_v47 }
 0x354   :  { %v9428_v60 = vpop.f32.mrb[76].mxu0 }
 0x355   :  { %v9430_v0 = vpop.f32.mrb[77].mxu0 }
 0x356   :  { %v9432_v45 = vpop.f32.mrb[78].mxu0 }
 0x357   :  { %v9434_v33 = vpop.f32.mrb[79].mxu0 }
 0x35a   :  { %7679 = vmatmul.mubr.msk.bf16.gmra.mrb[56].mxu1 %vm515_vm2, %v5087_v18 }
 0x35b   :  { %7682 = vmatprep.mubr.msk.bf16.mxu1 %vm515_vm2, %v5088_v20 }
 0x35c   :  { %v9438_v3 = vpop.f32.mrb[80].mxu0 }
 0x35d   :  { %v9440_v25 = vpop.f32.mrb[81].mxu0 }
 0x35e   :  { %v9442_v36 = vpop.f32.mrb[82].mxu0 }
 0x35f   :  { %v9444_v37 = vpop.f32.mrb[83].mxu0 }
 0x362   :  { %7683 = vmatmul.mubr.msk.bf16.gmra.mrb[60].mxu1 %vm515_vm2, %v5089_v38 }
 0x364   :  { %v9447_v39 = vpop.f32.mrb[84].mxu0 }
 0x365   :  { %v9449_v48 = vpop.f32.mrb[85].mxu0 }
 0x366   :  { %v9451_v50 = vpop.f32.mrb[86].mxu0 }
 0x367   :  { %v9453_v51 = vpop.f32.mrb[87].mxu0 }
 0x36c   :  { %v9455_v2 = vpop.f32.mrb[88].mxu0 }
 0x36d   :  { %v9457_v59 = vpop.f32.mrb[89].mxu0 }
 0x36e   :  { %v9459_v61 = vpop.f32.mrb[90].mxu0 }
 0x36f   :  { %v9461_v62 = vpop.f32.mrb[91].mxu0 }
 0x374   :  { %v9463_v63 = vpop.f32.mrb[92].mxu0 }
 0x375   :  { %v9465_v8 = vpop.f32.mrb[93].mxu0 }
 0x376   :  { %v9467_v10 = vpop.f32.mrb[94].mxu0 }
 0x377   :  { %v9469_v12 = vpop.f32.mrb[95].mxu0 }
 0x37c   :  { %v9471_v19 = vpop.f32.mrb[96].mxu0 }
 0x37d   :  { %v9473_v21 = vpop.f32.mrb[97].mxu0 }
 0x37e   :  { %v9475_v22 = vpop.f32.mrb[98].mxu0 }
 0x37f   :  { %v9477_v23 = vpop.f32.mrb[99].mxu0 }
 0x384   :  { %v9479_v32 = vpop.f32.mrb[100].mxu0 }
 0x385   :  { %v9481_v40 = vpop.f32.mrb[101].mxu0 }
 0x386   :  { %v9483_v52 = vpop.f32.mrb[102].mxu0 }
 0x387   :  { %v9485_v55 = vpop.f32.mrb[103].mxu0 }
 0x38c   :  { %v9487_v56 = vpop.f32.mrb[104].mxu0 }
 0x38d   :  { %v9489_v11 = vpop.f32.mrb[105].mxu0 }
 0x38e   :  { %v9491_v13 = vpop.f32.mrb[106].mxu0 }
 0x38f   :  { %v9493_v29 = vpop.f32.mrb[107].mxu0 }
 0x394   :  { %v9495_v46 = vpop.f32.mrb[108].mxu0 }
 0x395   :  { %v9497_v53 = vpop.f32.mrb[109].mxu0 }
 0x396   :  { %v9499_v57 = vpop.f32.mrb[110].mxu0 }
 0x397   :  { %v9501_v14 = vpop.f32.mrb[111].mxu0 }
 0x39c   :  { %v9503_v15 = vpop.f32.mrb[112].mxu0 }
 0x39d   :  { %11492 = vst [vmem:[#allocation4_spill] sm:$0xff] %v9503_v15  ;;  %v9505_v42 = vpop.f32.mrb[113].mxu0 }
 0x39e   :  { %11493 = vst [vmem:[#allocation3_spill] sm:$0xff] %v9505_v42  ;;  %v9507_v43 = vpop.f32.mrb[114].mxu0 }
 0x39f   :  { %11494 = vst [vmem:[#allocation5_spill] sm:$0xff] %v9507_v43  ;;  %v9509_v4 = vpop.f32.mrb[115].mxu0 }
 0x3a0   :  { %11495 = vst [vmem:[#allocation6_spill] sm:$0xff] %v9509_v4 }
 0x3a4   :  { %v9511_v9 = vpop.f32.mrb[116].mxu0 }
 0x3a5   :  { %11496 = vst [vmem:[#allocation7_spill] sm:$0xff] %v9511_v9  ;;  %v9513_v17 = vpop.f32.mrb[117].mxu0 }
 0x3a6   :  { %11497 = vst [vmem:[#allocation8_spill] sm:$0xff] %v9513_v17  ;;  %v9515_v47 = vpop.f32.mrb[118].mxu0 }
 0x3a7   :  { %11498 = vst [vmem:[#allocation9_spill] sm:$0xff] %v9515_v47  ;;  %v9517_v1 = vpop.f32.mrb[119].mxu0 }
 0x3a8   :  { %11499 = vst [vmem:[#allocation10_spill] sm:$0xff] %v9517_v1 }
 0x3ac   :  { %v9519_v58 = vpop.f32.mrb[120].mxu0 }
 0x3ad   :  { %11500 = vst [vmem:[#allocation11_spill] sm:$0xff] %v9519_v58  ;;  %v9521_v24 = vpop.f32.mrb[121].mxu0 }
 0x3ae   :  { %11501 = vst [vmem:[#allocation12_spill] sm:$0xff] %v9521_v24  ;;  %v9523_v5 = vpop.f32.mrb[122].mxu0 }
 0x3af   :  { %11502 = vst [vmem:[#allocation13_spill] sm:$0xff] %v9523_v5  ;;  %v9525_v18 = vpop.f32.mrb[123].mxu0 }
 0x3b0   :  { %11503 = vst [vmem:[#allocation14_spill] sm:$0xff] %v9525_v18 }
 0x3b4   :  { %v9527_v20 = vpop.f32.mrb[124].mxu0 }
 0x3b5   :  { %11504 = vst [vmem:[#allocation15_spill] sm:$0xff] %v9527_v20  ;;  %v9529_v26 = vpop.f32.mrb[125].mxu0 }
 0x3b6   :  { %11505 = vst [vmem:[#allocation16_spill] sm:$0xff] %v9529_v26  ;;  %v9531_v30 = vpop.f32.mrb[126].mxu0 }
 0x3b7   :  { %11506 = vst [vmem:[#allocation17_spill] sm:$0xff] %v9531_v30  ;;  %v9533_v38 = vpop.f32.mrb[127].mxu0 }
 0x3b8   :  { %11507 = vst [vmem:[#allocation18_spill] sm:$0xff] %v9533_v38 }
 0x3bd   :  { %v7624_v17 = vpop.f32.mrb[0].mxu1 }
 0x3be   :  { %v9536_v47 = vadd.f32 %v7624_v17, %v9398_v34  ;;  %v5229_v1 = vpop.f32.mrb[1].mxu1 }
 0x3bf   :  { %v9539_v58 = vadd.f32 %v5229_v1, %v9400_v35  ;;  %v7625_v24 = vpop.f32.mrb[2].mxu1 }
 0x3c0   :  { %11508 = vst [vmem:[#allocation19_spill] sm:$0xff] %v9536_v47  ;;  %v9542_v5 = vadd.f32 %v7625_v24, %v9402_v54  ;;  %v5232_v18 = vpop.f32.mrb[3].mxu1  ;;  %v5685_v38 = vmul.f32 %v9536_v47, %v9536_v47 }
 0x3c1   :  { %11509 = vst [vmem:[#allocation20_spill] sm:$0xff] %v9539_v58  ;;  %v5683_v26 = vmul.f32 %v9539_v58, %v9539_v58  ;;  %v9547_v30 = vadd.f32 %v5232_v18, %v9404_v7  ;;  %v5548_v34 = vsel %vm125_vm1, %v9539_v58, 0.0  ;;  %v5551_v7 = vsel %vm125_vm1, %v9536_v47, 0.0 }
 0x3c2   :  { %v5686_v17 = vmul.f32 %v9542_v5, %v9542_v5  ;;  %v5553_v42 = vsel %vm125_vm1, %v9542_v5, 0.0 }
 0x3c3   :  { %11510 = vst [vmem:[#allocation21_spill] sm:$0xff] %v9547_v30  ;;  %v5549_v35 = vsel %vm125_vm1, %v9547_v30, 0.0  ;;  %v5684_v54 = vmul.f32 %v9547_v30, %v9547_v30  ;;  %v5747_v24 = vsel %vm125_vm1, %v5683_v26, 0.0  ;;  %v5750_v30 = vsel %vm125_vm1, %v5685_v38, 0.0 }
 0x3c4   :  { %v5550_v1 = vadd.f32 %v5549_v35, %v5548_v34  ;;  %v5752_v26 = vsel %vm125_vm1, %v5686_v17, 0.0 }
 0x3c5   :  { %v5748_v18 = vsel %vm125_vm1, %v5684_v54, 0.0  ;;  %v7628_v20 = vpop.f32.mrb[4].mxu1 }
 0x3c6   :  { %v5552_v9 = vadd.f32 %v5551_v7, %v5550_v1  ;;  %v5749_v58 = vadd.f32 %v5748_v18, %v5747_v24  ;;  %v9564_v4 = vadd.f32 %v7628_v20, %v9408_v27  ;;  %v5245_v43 = vpop.f32.mrb[5].mxu1 }
 0x3c7   :  { %v9570_v34 = vadd.f32 %v5245_v43, %v9410_v28  ;;  %v7629_v35 = vpop.f32.mrb[6].mxu1 }
 0x3c8   :  { %v5751_v47 = vadd.f32 %v5750_v30, %v5749_v58  ;;  %v5554_v54 = vadd.f32 %v5553_v42, %v5552_v9  ;;  %v5248_v15 = vpop.f32.mrb[7].mxu1  ;;  %v9578_v20 = vadd.f32 %v7629_v35, %v9412_v49  ;;  %v5689_v9 = vmul.f32 %v9564_v4, %v9564_v4 }
 0x3c9   :  { %v5555_v1 = vsel %vm125_vm1, %v9570_v34, 0.0  ;;  %v5687_v27 = vmul.f32 %v9570_v34, %v9570_v34  ;;  %v9581_v38 = vadd.f32 %v5248_v15, %v9414_v6  ;;  %v5559_v49 = vsel %vm125_vm1, %v9564_v4, 0.0 }
 0x3ca   :  { %v5556_v28 = vadd.f32 %v5555_v1, %v5554_v54  ;;  %v5753_v43 = vadd.f32 %v5752_v26, %v5751_v47  ;;  %v5690_v15 = vmul.f32 %v9578_v20, %v9578_v20  ;;  %v5561_v26 = vsel %vm125_vm1, %v9578_v20, 0.0 }
 0x3cb   :  { %v5754_v7 = vsel %vm125_vm1, %v5687_v27, 0.0  ;;  %v5557_v42 = vsel %vm125_vm1, %v9581_v38, 0.0  ;;  %v5688_v17 = vmul.f32 %v9581_v38, %v9581_v38 }
 0x3cc   :  { %v5755_v58 = vadd.f32 %v5754_v7, %v5753_v43  ;;  %v5558_v30 = vadd.f32 %v5557_v42, %v5556_v28  ;;  %v5758_v28 = vsel %vm125_vm1, %v5689_v9, 0.0 }
 0x3cd   :  { %v7632_v6 = vpop.f32.mrb[8].mxu1  ;;  %v5756_v24 = vsel %vm125_vm1, %v5688_v17, 0.0 }
 0x3ce   :  { %v5560_v47 = vadd.f32 %v5559_v49, %v5558_v30  ;;  %v9596_v18 = vadd.f32 %v7632_v6, %v9418_v41  ;;  %v5261_v35 = vpop.f32.mrb[9].mxu1  ;;  %v5757_v54 = vadd.f32 %v5756_v24, %v5755_v58 }
 0x3cf   :  { %v9601_v1 = vadd.f32 %v5261_v35, %v9420_v31  ;;  %v7633_v27 = vpop.f32.mrb[10].mxu1  ;;  %v5760_v31 = vsel %vm125_vm1, %v5690_v15, 0.0 }
 0x3d0   :  { %v5562_v43 = vadd.f32 %v5561_v26, %v5560_v47  ;;  %v9605_v7 = vadd.f32 %v7633_v27, %v9422_v44  ;;  %v5264_v42 = vpop.f32.mrb[11].mxu1  ;;  %v5759_v30 = vadd.f32 %v5758_v28, %v5757_v54  ;;  %v5693_v24 = vmul.f32 %v9596_v18, %v9596_v18 }
 0x3d1   :  { %v5563_v41 = vsel %vm125_vm1, %v9601_v1, 0.0  ;;  %v5691_v17 = vmul.f32 %v9601_v1, %v9601_v1  ;;  %v9612_v58 = vadd.f32 %v5264_v42, %v9424_v16  ;;  %v5567_v16 = vsel %vm125_vm1, %v9596_v18, 0.0 }
 0x3d2   :  { %v5564_v49 = vadd.f32 %v5563_v41, %v5562_v43  ;;  %v5761_v6 = vadd.f32 %v5760_v31, %v5759_v30  ;;  %v5694_v27 = vmul.f32 %v9605_v7, %v9605_v7  ;;  %v5569_v30 = vsel %vm125_vm1, %v9605_v7, 0.0 }
 0x3d3   :  { %v5762_v9 = vsel %vm125_vm1, %v5691_v17, 0.0  ;;  %v5565_v44 = vsel %vm125_vm1, %v9612_v58, 0.0  ;;  %v5692_v47 = vmul.f32 %v9612_v58, %v9612_v58 }
 0x3d4   :  { %v5566_v35 = vadd.f32 %v5565_v44, %v5564_v49  ;;  %v5763_v26 = vadd.f32 %v5762_v9, %v5761_v6  ;;  %v5766_v49 = vsel %vm125_vm1, %v5693_v24, 0.0 }
 0x3d5   :  { %v5764_v15 = vsel %vm125_vm1, %v5692_v47, 0.0  ;;  %v7636_v54 = vpop.f32.mrb[12].mxu1 }
 0x3d6   :  { %v5568_v28 = vadd.f32 %v5567_v16, %v5566_v35  ;;  %v9628_v43 = vadd.f32 %v7636_v54, %v9428_v60  ;;  %v5277_v42 = vpop.f32.mrb[13].mxu1  ;;  %v5765_v41 = vadd.f32 %v5764_v15, %v5763_v26 }
 0x3d7   :  { %v9633_v17 = vadd.f32 %v5277_v42, %v9430_v0  ;;  %v7637_v31 = vpop.f32.mrb[14].mxu1  ;;  %v5768_v0 = vsel %vm125_vm1, %v5694_v27, 0.0 }
 0x3d8   :  { %v5570_v6 = vadd.f32 %v5569_v30, %v5568_v28  ;;  %v9637_v9 = vadd.f32 %v7637_v31, %v9432_v45  ;;  %v5280_v44 = vpop.f32.mrb[15].mxu1  ;;  %v5767_v47 = vadd.f32 %v5766_v49, %v5765_v41  ;;  %v5697_v28 = vmul.f32 %v9628_v43, %v9628_v43 }
 0x3d9   :  { %v5571_v60 = vsel %vm125_vm1, %v9633_v17, 0.0  ;;  %v5695_v35 = vmul.f32 %v9633_v17, %v9633_v17  ;;  %v9644_v16 = vadd.f32 %v5280_v44, %v9434_v33  ;;  %v5575_v33 = vsel %vm125_vm1, %v9628_v43, 0.0 }
 0x3da   :  { %v5572_v26 = vadd.f32 %v5571_v60, %v5570_v6  ;;  %v5769_v15 = vadd.f32 %v5768_v0, %v5767_v47  ;;  %v5698_v31 = vmul.f32 %v9637_v9, %v9637_v9  ;;  %v5577_v47 = vsel %vm125_vm1, %v9637_v9, 0.0 }
 0x3db   :  { %v5770_v24 = vsel %vm125_vm1, %v5695_v35, 0.0  ;;  %v5573_v45 = vsel %vm125_vm1, %v9644_v16, 0.0  ;;  %v5696_v54 = vmul.f32 %v9644_v16, %v9644_v16 }
 0x3dc   :  { %v5574_v42 = vadd.f32 %v5573_v45, %v5572_v26  ;;  %v5771_v30 = vadd.f32 %v5770_v24, %v5769_v15  ;;  %v5774_v26 = vsel %vm125_vm1, %v5697_v28, 0.0 }
 0x3dd   :  { %v5772_v27 = vsel %vm125_vm1, %v5696_v54, 0.0  ;;  %v7640_v41 = vpop.f32.mrb[16].mxu1 }
 0x3de   :  { %v5576_v49 = vadd.f32 %v5575_v33, %v5574_v42  ;;  %v9660_v6 = vadd.f32 %v7640_v41, %v9438_v3  ;;  %v5293_v44 = vpop.f32.mrb[17].mxu1  ;;  %v5773_v60 = vadd.f32 %v5772_v27, %v5771_v30 }
 0x3df   :  { %v9665_v35 = vadd.f32 %v5293_v44, %v9440_v25  ;;  %v7641_v0 = vpop.f32.mrb[18].mxu1  ;;  %v5776_v25 = vsel %vm125_vm1, %v5698_v31, 0.0 }
 0x3e0   :  { %v5578_v15 = vadd.f32 %v5577_v47, %v5576_v49  ;;  %v9669_v24 = vadd.f32 %v7641_v0, %v9442_v36  ;;  %v5296_v45 = vpop.f32.mrb[19].mxu1  ;;  %v5775_v54 = vadd.f32 %v5774_v26, %v5773_v60  ;;  %v5701_v49 = vmul.f32 %v9660_v6, %v9660_v6 }
 0x3e1   :  { %v5579_v3 = vsel %vm125_vm1, %v9665_v35, 0.0  ;;  %v5699_v42 = vmul.f32 %v9665_v35, %v9665_v35  ;;  %v9676_v33 = vadd.f32 %v5296_v45, %v9444_v37  ;;  %v5583_v37 = vsel %vm125_vm1, %v9660_v6, 0.0 }
 0x3e2   :  { %v5580_v30 = vadd.f32 %v5579_v3, %v5578_v15  ;;  %v5777_v27 = vadd.f32 %v5776_v25, %v5775_v54  ;;  %v5702_v0 = vmul.f32 %v9669_v24, %v9669_v24  ;;  %v5585_v54 = vsel %vm125_vm1, %v9669_v24, 0.0 }
 0x3e3   :  { %v5778_v28 = vsel %vm125_vm1, %v5699_v42, 0.0  ;;  %v5581_v36 = vsel %vm125_vm1, %v9676_v33, 0.0  ;;  %v5700_v41 = vmul.f32 %v9676_v33, %v9676_v33 }
 0x3e4   :  { %v5582_v44 = vadd.f32 %v5581_v36, %v5580_v30  ;;  %v5779_v47 = vadd.f32 %v5778_v28, %v5777_v27  ;;  %v5782_v30 = vsel %vm125_vm1, %v5701_v49, 0.0 }
 0x3e5   :  { %v5780_v31 = vsel %vm125_vm1, %v5700_v41, 0.0  ;;  %v7644_v60 = vpop.f32.mrb[20].mxu1 }
 0x3e6   :  { %v5584_v26 = vadd.f32 %v5583_v37, %v5582_v44  ;;  %v9692_v15 = vadd.f32 %v7644_v60, %v9447_v39  ;;  %v5309_v45 = vpop.f32.mrb[21].mxu1  ;;  %v5781_v3 = vadd.f32 %v5780_v31, %v5779_v47 }
 0x3e7   :  { %v9697_v42 = vadd.f32 %v5309_v45, %v9449_v48  ;;  %v7645_v25 = vpop.f32.mrb[22].mxu1  ;;  %v5784_v48 = vsel %vm125_vm1, %v5702_v0, 0.0 }
 0x3e8   :  { %v5586_v27 = vadd.f32 %v5585_v54, %v5584_v26  ;;  %v9701_v28 = vadd.f32 %v7645_v25, %v9451_v50  ;;  %v5312_v36 = vpop.f32.mrb[23].mxu1  ;;  %v5783_v41 = vadd.f32 %v5782_v30, %v5781_v3  ;;  %v5705_v26 = vmul.f32 %v9692_v15, %v9692_v15 }
 0x3e9   :  { %v5587_v39 = vsel %vm125_vm1, %v9697_v42, 0.0  ;;  %v5703_v44 = vmul.f32 %v9697_v42, %v9697_v42  ;;  %v9708_v37 = vadd.f32 %v5312_v36, %v9453_v51  ;;  %v5591_v51 = vsel %vm125_vm1, %v9692_v15, 0.0 }
 0x3ea   :  { %v5588_v47 = vadd.f32 %v5587_v39, %v5586_v27  ;;  %v5785_v31 = vadd.f32 %v5784_v48, %v5783_v41  ;;  %v5706_v25 = vmul.f32 %v9701_v28, %v9701_v28  ;;  %v5593_v41 = vsel %vm125_vm1, %v9701_v28, 0.0 }
 0x3eb   :  { %v5786_v49 = vsel %vm125_vm1, %v5703_v44, 0.0  ;;  %v5589_v50 = vsel %vm125_vm1, %v9708_v37, 0.0  ;;  %v5704_v60 = vmul.f32 %v9708_v37, %v9708_v37 }
 0x3ec   :  { %v5590_v45 = vadd.f32 %v5589_v50, %v5588_v47  ;;  %v5787_v54 = vadd.f32 %v5786_v49, %v5785_v31  ;;  %v5790_v47 = vsel %vm125_vm1, %v5705_v26, 0.0 }
 0x3ed   :  { %v5788_v0 = vsel %vm125_vm1, %v5704_v60, 0.0  ;;  %v7648_v3 = vpop.f32.mrb[24].mxu1 }
 0x3ee   :  { %v5592_v30 = vadd.f32 %v5591_v51, %v5590_v45  ;;  %v9724_v27 = vadd.f32 %v7648_v3, %v9455_v2  ;;  %v5325_v36 = vpop.f32.mrb[25].mxu1  ;;  %v5789_v39 = vadd.f32 %v5788_v0, %v5787_v54 }
 0x3ef   :  { %v9729_v44 = vadd.f32 %v5325_v36, %v9457_v59  ;;  %v7649_v48 = vpop.f32.mrb[26].mxu1  ;;  %v5792_v59 = vsel %vm125_vm1, %v5706_v25, 0.0 }
 0x3f0   :  { %v5594_v31 = vadd.f32 %v5593_v41, %v5592_v30  ;;  %v9733_v49 = vadd.f32 %v7649_v48, %v9459_v61  ;;  %v5328_v50 = vpop.f32.mrb[27].mxu1  ;;  %v5791_v60 = vadd.f32 %v5790_v47, %v5789_v39  ;;  %v5709_v30 = vmul.f32 %v9724_v27, %v9724_v27 }
 0x3f1   :  { %v5595_v2 = vsel %vm125_vm1, %v9729_v44, 0.0  ;;  %v5707_v45 = vmul.f32 %v9729_v44, %v9729_v44  ;;  %v9740_v51 = vadd.f32 %v5328_v50, %v9461_v62  ;;  %v5599_v62 = vsel %vm125_vm1, %v9724_v27, 0.0 }
 0x3f2   :  { %11511 = vst [vmem:[#allocation22_spill] sm:$0xff] %v9733_v49  ;;  %v5596_v54 = vadd.f32 %v5595_v2, %v5594_v31  ;;  %v5793_v0 = vadd.f32 %v5792_v59, %v5791_v60  ;;  %v5710_v48 = vmul.f32 %v9733_v49, %v9733_v49  ;;  %v5601_v60 = vsel %vm125_vm1, %v9733_v49, 0.0 }
 0x3f3   :  { %v5794_v26 = vsel %vm125_vm1, %v5707_v45, 0.0  ;;  %v5597_v61 = vsel %vm125_vm1, %v9740_v51, 0.0  ;;  %v5708_v3 = vmul.f32 %v9740_v51, %v9740_v51 }
 0x3f4   :  { %v5598_v36 = vadd.f32 %v5597_v61, %v5596_v54  ;;  %v5795_v41 = vadd.f32 %v5794_v26, %v5793_v0  ;;  %v5798_v54 = vsel %vm125_vm1, %v5709_v30, 0.0 }
 0x3f5   :  { %v5796_v25 = vsel %vm125_vm1, %v5708_v3, 0.0  ;;  %v7652_v39 = vpop.f32.mrb[28].mxu1 }
 0x3f6   :  { %v5600_v47 = vadd.f32 %v5599_v62, %v5598_v36  ;;  %v9756_v31 = vadd.f32 %v7652_v39, %v9463_v63  ;;  %v5341_v50 = vpop.f32.mrb[29].mxu1  ;;  %v5797_v2 = vadd.f32 %v5796_v25, %v5795_v41 }
 0x3f7   :  { %v9761_v45 = vadd.f32 %v5341_v50, %v9465_v8  ;;  %v7653_v59 = vpop.f32.mrb[30].mxu1  ;;  %v5800_v8 = vsel %vm125_vm1, %v5710_v48, 0.0 }
 0x3f8   :  { %11512 = vst [vmem:[#allocation23_spill] sm:$0xff] %v9756_v31  ;;  %v5602_v0 = vadd.f32 %v5601_v60, %v5600_v47  ;;  %v9765_v26 = vadd.f32 %v7653_v59, %v9467_v10  ;;  %v5344_v61 = vpop.f32.mrb[31].mxu1  ;;  %v5799_v3 = vadd.f32 %v5798_v54, %v5797_v2  ;;  %v5713_v47 = vmul.f32 %v9756_v31, %v9756_v31 }
 0x3f9   :  { %11513 = vst [vmem:[#allocation24_spill] sm:$0xff] %v9761_v45  ;;  %v5603_v63 = vsel %vm125_vm1, %v9761_v45, 0.0  ;;  %v5711_v36 = vmul.f32 %v9761_v45, %v9761_v45  ;;  %v9772_v62 = vadd.f32 %v5344_v61, %v9469_v12  ;;  %v5607_v12 = vsel %vm125_vm1, %v9756_v31, 0.0 }
 0x3fa   :  { %11514 = vst [vmem:[#allocation25_spill] sm:$0xff] %v9765_v26  ;;  %v5604_v41 = vadd.f32 %v5603_v63, %v5602_v0  ;;  %v5801_v25 = vadd.f32 %v5800_v8, %v5799_v3  ;;  %v5714_v59 = vmul.f32 %v9765_v26, %v9765_v26  ;;  %v5609_v3 = vsel %vm125_vm1, %v9765_v26, 0.0 }
 0x3fb   :  { %11515 = vst [vmem:[#allocation26_spill] sm:$0xff] %v9772_v62  ;;  %v5802_v30 = vsel %vm125_vm1, %v5711_v36, 0.0  ;;  %v5605_v10 = vsel %vm125_vm1, %v9772_v62, 0.0  ;;  %v5712_v39 = vmul.f32 %v9772_v62, %v9772_v62 }
 0x3fc   :  { %v5606_v50 = vadd.f32 %v5605_v10, %v5604_v41  ;;  %v5803_v60 = vadd.f32 %v5802_v30, %v5801_v25  ;;  %v5806_v41 = vsel %vm125_vm1, %v5713_v47, 0.0 }
 0x3fd   :  { %v5804_v48 = vsel %vm125_vm1, %v5712_v39, 0.0  ;;  %v7656_v2 = vpop.f32.mrb[32].mxu1 }
 0x3fe   :  { %v5608_v54 = vadd.f32 %v5607_v12, %v5606_v50  ;;  %v9788_v0 = vadd.f32 %v7656_v2, %v9471_v19  ;;  %v5357_v61 = vpop.f32.mrb[33].mxu1  ;;  %v5805_v63 = vadd.f32 %v5804_v48, %v5803_v60 }
 0x3ff   :  { %v9793_v36 = vadd.f32 %v5357_v61, %v9473_v21  ;;  %v7657_v8 = vpop.f32.mrb[34].mxu1  ;;  %v5808_v21 = vsel %vm125_vm1, %v5714_v59, 0.0 }
 0x400   :  { %11516 = vst [vmem:[#allocation27_spill] sm:$0xff] %v9788_v0  ;;  %v5610_v25 = vadd.f32 %v5609_v3, %v5608_v54  ;;  %v9797_v30 = vadd.f32 %v7657_v8, %v9475_v22  ;;  %v5360_v10 = vpop.f32.mrb[35].mxu1  ;;  %v5807_v39 = vadd.f32 %v5806_v41, %v5805_v63  ;;  %v5717_v54 = vmul.f32 %v9788_v0, %v9788_v0 }
 0x401   :  { %11517 = vst [vmem:[#allocation28_spill] sm:$0xff] %v9793_v36  ;;  %v5611_v19 = vsel %vm125_vm1, %v9793_v36, 0.0  ;;  %v5715_v50 = vmul.f32 %v9793_v36, %v9793_v36  ;;  %v9804_v12 = vadd.f32 %v5360_v10, %v9477_v23  ;;  %v5615_v23 = vsel %vm125_vm1, %v9788_v0, 0.0 }
 0x402   :  { %11518 = vst [vmem:[#allocation29_spill] sm:$0xff] %v9797_v30  ;;  %v5612_v60 = vadd.f32 %v5611_v19, %v5610_v25  ;;  %v5809_v48 = vadd.f32 %v5808_v21, %v5807_v39  ;;  %v5718_v8 = vmul.f32 %v9797_v30, %v9797_v30  ;;  %v5617_v39 = vsel %vm125_vm1, %v9797_v30, 0.0 }
 0x403   :  { %11519 = vst [vmem:[#allocation30_spill] sm:$0xff] %v9804_v12  ;;  %v5810_v47 = vsel %vm125_vm1, %v5715_v50, 0.0  ;;  %v5613_v22 = vsel %vm125_vm1, %v9804_v12, 0.0  ;;  %v5716_v2 = vmul.f32 %v9804_v12, %v9804_v12 }
 0x404   :  { %v5614_v61 = vadd.f32 %v5613_v22, %v5612_v60  ;;  %v5811_v3 = vadd.f32 %v5810_v47, %v5809_v48  ;;  %v5814_v60 = vsel %vm125_vm1, %v5717_v54, 0.0 }
 0x405   :  { %v5812_v59 = vsel %vm125_vm1, %v5716_v2, 0.0  ;;  %v7660_v63 = vpop.f32.mrb[36].mxu1 }
 0x406   :  { %v5616_v41 = vadd.f32 %v5615_v23, %v5614_v61  ;;  %v9820_v25 = vadd.f32 %v7660_v63, %v9479_v32  ;;  %v5373_v10 = vpop.f32.mrb[37].mxu1  ;;  %v5813_v19 = vadd.f32 %v5812_v59, %v5811_v3 }
 0x407   :  { %v9825_v50 = vadd.f32 %v5373_v10, %v9481_v40  ;;  %v7661_v21 = vpop.f32.mrb[38].mxu1  ;;  %v5816_v40 = vsel %vm125_vm1, %v5718_v8, 0.0 }
 0x408   :  { %11520 = vst [vmem:[#allocation31_spill] sm:$0xff] %v9820_v25  ;;  %v5618_v48 = vadd.f32 %v5617_v39, %v5616_v41  ;;  %v9829_v47 = vadd.f32 %v7661_v21, %v9483_v52  ;;  %v5376_v22 = vpop.f32.mrb[39].mxu1  ;;  %v5815_v2 = vadd.f32 %v5814_v60, %v5813_v19  ;;  %v5721_v41 = vmul.f32 %v9820_v25, %v9820_v25 }
 0x409   :  { %11521 = vst [vmem:[#allocation32_spill] sm:$0xff] %v9825_v50  ;;  %v5619_v32 = vsel %vm125_vm1, %v9825_v50, 0.0  ;;  %v5719_v61 = vmul.f32 %v9825_v50, %v9825_v50  ;;  %v9836_v23 = vadd.f32 %v5376_v22, %v9485_v55  ;;  %v5623_v55 = vsel %vm125_vm1, %v9820_v25, 0.0 }
 0x40a   :  { %11522 = vst [vmem:[#allocation33_spill] sm:$0xff] %v9829_v47  ;;  %v5620_v3 = vadd.f32 %v5619_v32, %v5618_v48  ;;  %v5817_v59 = vadd.f32 %v5816_v40, %v5815_v2  ;;  %v5722_v21 = vmul.f32 %v9829_v47, %v9829_v47  ;;  %v5625_v2 = vsel %vm125_vm1, %v9829_v47, 0.0 }
 0x40b   :  { %11523 = vst [vmem:[#allocation34_spill] sm:$0xff] %v9836_v23  ;;  %v5818_v54 = vsel %vm125_vm1, %v5719_v61, 0.0  ;;  %v5621_v52 = vsel %vm125_vm1, %v9836_v23, 0.0  ;;  %v5720_v63 = vmul.f32 %v9836_v23, %v9836_v23 }
 0x40c   :  { %v5622_v10 = vadd.f32 %v5621_v52, %v5620_v3  ;;  %v5819_v39 = vadd.f32 %v5818_v54, %v5817_v59  ;;  %v5822_v3 = vsel %vm125_vm1, %v5721_v41, 0.0 }
 0x40d   :  { %v5820_v8 = vsel %vm125_vm1, %v5720_v63, 0.0  ;;  %v7664_v19 = vpop.f32.mrb[40].mxu1 }
 0x40e   :  { %v5624_v60 = vadd.f32 %v5623_v55, %v5622_v10  ;;  %v9852_v48 = vadd.f32 %v7664_v19, %v9487_v56  ;;  %v5389_v22 = vpop.f32.mrb[41].mxu1  ;;  %v5821_v32 = vadd.f32 %v5820_v8, %v5819_v39 }
 0x40f   :  { %v9857_v61 = vadd.f32 %v5389_v22, %v9489_v11  ;;  %v7665_v40 = vpop.f32.mrb[42].mxu1  ;;  %v5824_v11 = vsel %vm125_vm1, %v5722_v21, 0.0 }
 0x410   :  { %11524 = vst [vmem:[#allocation35_spill] sm:$0xff] %v9852_v48  ;;  %v5626_v59 = vadd.f32 %v5625_v2, %v5624_v60  ;;  %v9861_v54 = vadd.f32 %v7665_v40, %v9491_v13  ;;  %v5392_v52 = vpop.f32.mrb[43].mxu1  ;;  %v5823_v63 = vadd.f32 %v5822_v3, %v5821_v32  ;;  %v5725_v60 = vmul.f32 %v9852_v48, %v9852_v48 }
 0x411   :  { %11525 = vst [vmem:[#allocation36_spill] sm:$0xff] %v9857_v61  ;;  %v5627_v56 = vsel %vm125_vm1, %v9857_v61, 0.0  ;;  %v5723_v10 = vmul.f32 %v9857_v61, %v9857_v61  ;;  %v9868_v55 = vadd.f32 %v5392_v52, %v9493_v29  ;;  %v5631_v29 = vsel %vm125_vm1, %v9852_v48, 0.0 }
 0x412   :  { %11526 = vst [vmem:[#allocation37_spill] sm:$0xff] %v9861_v54  ;;  %v5628_v39 = vadd.f32 %v5627_v56, %v5626_v59  ;;  %v5825_v8 = vadd.f32 %v5824_v11, %v5823_v63  ;;  %v5726_v40 = vmul.f32 %v9861_v54, %v9861_v54  ;;  %v5633_v63 = vsel %vm125_vm1, %v9861_v54, 0.0 }
 0x413   :  { %11527 = vst [vmem:[#allocation38_spill] sm:$0xff] %v9868_v55  ;;  %v5826_v41 = vsel %vm125_vm1, %v5723_v10, 0.0  ;;  %v5629_v13 = vsel %vm125_vm1, %v9868_v55, 0.0  ;;  %v5724_v19 = vmul.f32 %v9868_v55, %v9868_v55 }
 0x414   :  { %v5630_v22 = vadd.f32 %v5629_v13, %v5628_v39  ;;  %v5827_v2 = vadd.f32 %v5826_v41, %v5825_v8  ;;  %v5830_v39 = vsel %vm125_vm1, %v5725_v60, 0.0 }
 0x415   :  { %v5828_v21 = vsel %vm125_vm1, %v5724_v19, 0.0  ;;  %v7668_v32 = vpop.f32.mrb[44].mxu1 }
 0x416   :  { %v5632_v3 = vadd.f32 %v5631_v29, %v5630_v22  ;;  %v9884_v59 = vadd.f32 %v7668_v32, %v9495_v46  ;;  %v5405_v52 = vpop.f32.mrb[45].mxu1  ;;  %v5829_v56 = vadd.f32 %v5828_v21, %v5827_v2 }
 0x417   :  { %v9889_v10 = vadd.f32 %v5405_v52, %v9497_v53  ;;  %v7669_v11 = vpop.f32.mrb[46].mxu1  ;;  %v5832_v53 = vsel %vm125_vm1, %v5726_v40, 0.0 }
 0x418   :  { %11528 = vst [vmem:[#allocation39_spill] sm:$0xff] %v9884_v59  ;;  %v5634_v8 = vadd.f32 %v5633_v63, %v5632_v3  ;;  %v9893_v41 = vadd.f32 %v7669_v11, %v9499_v57  ;;  %v5408_v13 = vpop.f32.mrb[47].mxu1  ;;  %v5831_v19 = vadd.f32 %v5830_v39, %v5829_v56  ;;  %v5729_v3 = vmul.f32 %v9884_v59, %v9884_v59 }
 0x419   :  { %11529 = vst [vmem:[#allocation40_spill] sm:$0xff] %v9889_v10  ;;  %v5635_v46 = vsel %vm125_vm1, %v9889_v10, 0.0  ;;  %v5727_v22 = vmul.f32 %v9889_v10, %v9889_v10  ;;  %v9900_v29 = vadd.f32 %v5408_v13, %v9501_v14  ;;  %v5639_v14 = vsel %vm125_vm1, %v9884_v59, 0.0 }
 0x41a   :  { %11530 = vst [vmem:[#allocation41_spill] sm:$0xff] %v9893_v41  ;;  %v5636_v2 = vadd.f32 %v5635_v46, %v5634_v8  ;;  %v5833_v21 = vadd.f32 %v5832_v53, %v5831_v19  ;;  %v5730_v11 = vmul.f32 %v9893_v41, %v9893_v41  ;;  %v11532_v8 = vld [vmem:[#allocation4_spill] sm:$0xff]  ;;  %v5641_v46 = vsel %vm125_vm1, %v9893_v41, 0.0  ;;  %v11533_v53 = vld [vmem:[#allocation3_spill] sm:$0xff] }
 0x41b   :  { %11531 = vst [vmem:[#allocation42_spill] sm:$0xff] %v9900_v29  ;;  %v5834_v60 = vsel %vm125_vm1, %v5727_v22, 0.0  ;;  %v5637_v57 = vsel %vm125_vm1, %v9900_v29, 0.0  ;;  %v5728_v32 = vmul.f32 %v9900_v29, %v9900_v29 }
 0x41c   :  { %v5638_v52 = vadd.f32 %v5637_v57, %v5636_v2  ;;  %v5835_v63 = vadd.f32 %v5834_v60, %v5833_v21  ;;  %v5838_v21 = vsel %vm125_vm1, %v5729_v3, 0.0 }
 0x41d   :  { %v5836_v40 = vsel %vm125_vm1, %v5728_v32, 0.0  ;;  %v7672_v56 = vpop.f32.mrb[48].mxu1  ;;  %v11534_v32 = vld [vmem:[#allocation5_spill] sm:$0xff] }
 0x41e   :  { %v5640_v39 = vadd.f32 %v5639_v14, %v5638_v52  ;;  %v9916_v13 = vadd.f32 %v7672_v56, %v11532_v8  ;;  %v5421_v19 = vpop.f32.mrb[49].mxu1  ;;  %v5837_v22 = vadd.f32 %v5836_v40, %v5835_v63  ;;  %v11535_v8 = vld [vmem:[#allocation6_spill] sm:$0xff]  ;;  %v5840_v40 = vsel %vm125_vm1, %v5730_v11, 0.0 }
 0x41f   :  { %v9921_v2 = vadd.f32 %v5421_v19, %v11533_v53  ;;  %v7673_v57 = vpop.f32.mrb[50].mxu1 }
 0x420   :  { %v5642_v60 = vadd.f32 %v5641_v46, %v5640_v39  ;;  %v9925_v59 = vadd.f32 %v7673_v57, %v11534_v32  ;;  %v5424_v29 = vpop.f32.mrb[51].mxu1  ;;  %v5839_v52 = vadd.f32 %v5838_v21, %v5837_v22  ;;  %v5733_v22 = vmul.f32 %v9916_v13, %v9916_v13 }
 0x421   :  { %v5643_v14 = vsel %vm125_vm1, %v9921_v2, 0.0  ;;  %v5731_v56 = vmul.f32 %v9921_v2, %v9921_v2  ;;  %v9932_v63 = vadd.f32 %v5424_v29, %v11535_v8  ;;  %v5647_v29 = vsel %vm125_vm1, %v9916_v13, 0.0 }
 0x422   :  { %v5644_v19 = vadd.f32 %v5643_v14, %v5642_v60  ;;  %v5841_v53 = vadd.f32 %v5840_v40, %v5839_v52  ;;  %v5734_v32 = vmul.f32 %v9925_v59, %v9925_v59  ;;  %v11536_v14 = vld [vmem:[#allocation7_spill] sm:$0xff]  ;;  %v5649_v40 = vsel %vm125_vm1, %v9925_v59, 0.0 }
 0x423   :  { %v5842_v3 = vsel %vm125_vm1, %v5731_v56, 0.0  ;;  %v5645_v39 = vsel %vm125_vm1, %v9932_v63, 0.0  ;;  %v5732_v46 = vmul.f32 %v9932_v63, %v9932_v63 }
 0x424   :  { %v5646_v57 = vadd.f32 %v5645_v39, %v5644_v19  ;;  %v5843_v21 = vadd.f32 %v5842_v3, %v5841_v53  ;;  %v11538_v19 = vld [vmem:[#allocation8_spill] sm:$0xff]  ;;  %v5846_v53 = vsel %vm125_vm1, %v5733_v22, 0.0 }
 0x425   :  { %v5844_v11 = vsel %vm125_vm1, %v5732_v46, 0.0  ;;  %v7676_v60 = vpop.f32.mrb[52].mxu1  ;;  %v11539_v46 = vld [vmem:[#allocation9_spill] sm:$0xff] }
 0x426   :  { %v5648_v52 = vadd.f32 %v5647_v29, %v5646_v57  ;;  %v9948_v56 = vadd.f32 %v7676_v60, %v11536_v14  ;;  %v5437_v8 = vpop.f32.mrb[53].mxu1  ;;  %v5845_v41 = vadd.f32 %v5844_v11, %v5843_v21  ;;  %v11541_v14 = vld [vmem:[#allocation10_spill] sm:$0xff]  ;;  %v5848_v11 = vsel %vm125_vm1, %v5734_v32, 0.0 }
 0x427   :  { %v9953_v39 = vadd.f32 %v5437_v8, %v11538_v19  ;;  %v7677_v10 = vpop.f32.mrb[54].mxu1 }
 0x428   :  { %11537 = vst [vmem:[#allocation4_spill] sm:$0xff] %v9948_v56  ;;  %v5650_v3 = vadd.f32 %v5649_v40, %v5648_v52  ;;  %v9957_v54 = vadd.f32 %v7677_v10, %v11539_v46  ;;  %v5440_v48 = vpop.f32.mrb[55].mxu1  ;;  %v5847_v57 = vadd.f32 %v5846_v53, %v5845_v41  ;;  %v5737_v52 = vmul.f32 %v9948_v56, %v9948_v56 }
 0x429   :  { %v5651_v29 = vsel %vm125_vm1, %v9953_v39, 0.0  ;;  %v5735_v60 = vmul.f32 %v9953_v39, %v9953_v39  ;;  %v9964_v21 = vadd.f32 %v5440_v48, %v11541_v14  ;;  %v5655_v48 = vsel %vm125_vm1, %v9948_v56, 0.0 }
 0x42a   :  { %11540 = vst [vmem:[#allocation3_spill] sm:$0xff] %v9957_v54  ;;  %v5652_v8 = vadd.f32 %v5651_v29, %v5650_v3  ;;  %v5849_v19 = vadd.f32 %v5848_v11, %v5847_v57  ;;  %v5738_v46 = vmul.f32 %v9957_v54, %v9957_v54  ;;  %v11543_v29 = vld [vmem:[#allocation11_spill] sm:$0xff]  ;;  %v5657_v11 = vsel %vm125_vm1, %v9957_v54, 0.0 }
 0x42b   :  { %11542 = vst [vmem:[#allocation5_spill] sm:$0xff] %v9964_v21  ;;  %v5850_v22 = vsel %vm125_vm1, %v5735_v60, 0.0  ;;  %v5653_v10 = vsel %vm125_vm1, %v9964_v21, 0.0  ;;  %v5736_v41 = vmul.f32 %v9964_v21, %v9964_v21 }
 0x42c   :  { %v5654_v40 = vadd.f32 %v5653_v10, %v5652_v8  ;;  %v5851_v53 = vadd.f32 %v5850_v22, %v5849_v19  ;;  %v11545_v8 = vld [vmem:[#allocation12_spill] sm:$0xff]  ;;  %v5854_v19 = vsel %vm125_vm1, %v5737_v52, 0.0 }
 0x42d   :  { %v5852_v32 = vsel %vm125_vm1, %v5736_v41, 0.0  ;;  %v7680_v3 = vpop.f32.mrb[56].mxu1  ;;  %v11547_v41 = vld [vmem:[#allocation13_spill] sm:$0xff] }
 0x42e   :  { %v5656_v57 = vadd.f32 %v5655_v48, %v5654_v40  ;;  %v9980_v60 = vadd.f32 %v7680_v3, %v11543_v29  ;;  %v5453_v14 = vpop.f32.mrb[57].mxu1  ;;  %v5853_v55 = vadd.f32 %v5852_v32, %v5851_v53  ;;  %v11549_v29 = vld [vmem:[#allocation14_spill] sm:$0xff]  ;;  %v5856_v32 = vsel %vm125_vm1, %v5738_v46, 0.0 }
 0x42f   :  { %v9985_v10 = vadd.f32 %v5453_v14, %v11545_v8  ;;  %v7681_v61 = vpop.f32.mrb[58].mxu1 }
 0x430   :  { %11544 = vst [vmem:[#allocation6_spill] sm:$0xff] %v9980_v60  ;;  %v5658_v22 = vadd.f32 %v5657_v11, %v5656_v57  ;;  %v9989_v47 = vadd.f32 %v7681_v61, %v11547_v41  ;;  %v5456_v25 = vpop.f32.mrb[59].mxu1  ;;  %v5855_v40 = vadd.f32 %v5854_v19, %v5853_v55  ;;  %v5741_v57 = vmul.f32 %v9980_v60, %v9980_v60 }
 0x431   :  { %11546 = vst [vmem:[#allocation7_spill] sm:$0xff] %v9985_v10  ;;  %v5659_v48 = vsel %vm125_vm1, %v9985_v10, 0.0  ;;  %v5739_v3 = vmul.f32 %v9985_v10, %v9985_v10  ;;  %v9996_v53 = vadd.f32 %v5456_v25, %v11549_v29  ;;  %v5663_v25 = vsel %vm125_vm1, %v9980_v60, 0.0 }
 0x432   :  { %11548 = vst [vmem:[#allocation8_spill] sm:$0xff] %v9989_v47  ;;  %v5660_v14 = vadd.f32 %v5659_v48, %v5658_v22  ;;  %v5857_v8 = vadd.f32 %v5856_v32, %v5855_v40  ;;  %v5742_v41 = vmul.f32 %v9989_v47, %v9989_v47  ;;  %v11551_v48 = vld [vmem:[#allocation15_spill] sm:$0xff]  ;;  %v5665_v32 = vsel %vm125_vm1, %v9989_v47, 0.0 }
 0x433   :  { %11550 = vst [vmem:[#allocation9_spill] sm:$0xff] %v9996_v53  ;;  %v5858_v52 = vsel %vm125_vm1, %v5739_v3, 0.0  ;;  %v5661_v61 = vsel %vm125_vm1, %v9996_v53, 0.0  ;;  %v5740_v55 = vmul.f32 %v9996_v53, %v9996_v53 }
 0x434   :  { %v5662_v11 = vadd.f32 %v5661_v61, %v5660_v14  ;;  %v5859_v19 = vadd.f32 %v5858_v52, %v5857_v8  ;;  %v11553_v14 = vld [vmem:[#allocation16_spill] sm:$0xff]  ;;  %v5862_v8 = vsel %vm125_vm1, %v5741_v57, 0.0 }
 0x435   :  { %v5860_v46 = vsel %vm125_vm1, %v5740_v55, 0.0  ;;  %v7684_v22 = vpop.f32.mrb[60].mxu1  ;;  %v11555_v55 = vld [vmem:[#allocation17_spill] sm:$0xff] }
 0x436   :  { %v5664_v40 = vadd.f32 %v5663_v25, %v5662_v11  ;;  %v10012_v3 = vadd.f32 %v7684_v22, %v11551_v48  ;;  %v5469_v29 = vpop.f32.mrb[61].mxu1  ;;  %v5861_v23 = vadd.f32 %v5860_v46, %v5859_v19  ;;  %v11557_v48 = vld [vmem:[#allocation18_spill] sm:$0xff]  ;;  %v5864_v46 = vsel %vm125_vm1, %v5742_v41, 0.0 }
 0x437   :  { %v10017_v61 = vadd.f32 %v5469_v29, %v11553_v14  ;;  %v7685_v50 = vpop.f32.mrb[62].mxu1 }
 0x438   :  { %11552 = vst [vmem:[#allocation10_spill] sm:$0xff] %v10012_v3  ;;  %v5666_v52 = vadd.f32 %v5665_v32, %v5664_v40  ;;  %v10021_v30 = vadd.f32 %v7685_v50, %v11555_v55  ;;  %v5472_v0 = vpop.f32.mrb[63].mxu1  ;;  %v5863_v11 = vadd.f32 %v5862_v8, %v5861_v23  ;;  %v5745_v40 = vmul.f32 %v10012_v3, %v10012_v3 }
 0x439   :  { %11554 = vst [vmem:[#allocation11_spill] sm:$0xff] %v10017_v61  ;;  %v5667_v25 = vsel %vm125_vm1, %v10017_v61, 0.0  ;;  %v5743_v22 = vmul.f32 %v10017_v61, %v10017_v61  ;;  %v10028_v19 = vadd.f32 %v5472_v0, %v11557_v48  ;;  %v5671_v0 = vsel %vm125_vm1, %v10012_v3, 0.0 }
 0x43a   :  { %11556 = vst [vmem:[#allocation12_spill] sm:$0xff] %v10021_v30  ;;  %v5668_v29 = vadd.f32 %v5667_v25, %v5666_v52  ;;  %v5865_v14 = vadd.f32 %v5864_v46, %v5863_v11  ;;  %v5746_v52 = vmul.f32 %v10021_v30, %v10021_v30  ;;  %v5673_v11 = vsel %vm125_vm1, %v10021_v30, 0.0 }
 0x43b   :  { %11558 = vst [vmem:[#allocation13_spill] sm:$0xff] %v10028_v19  ;;  %v5866_v57 = vsel %vm125_vm1, %v5743_v22, 0.0  ;;  %v5669_v50 = vsel %vm125_vm1, %v10028_v19, 0.0  ;;  %v5744_v23 = vmul.f32 %v10028_v19, %v10028_v19  ;;  %v5870_v22 = vsel %vm125_vm1, %v5745_v40, 0.0 }
 0x43c   :  { %v5670_v32 = vadd.f32 %v5669_v50, %v5668_v29  ;;  %v5867_v8 = vadd.f32 %v5866_v57, %v5865_v14  ;;  %v5872_v29 = vsel %vm125_vm1, %v5746_v52, 0.0 }
 0x43d   :  { %v5868_v41 = vsel %vm125_vm1, %v5744_v23, 0.0 }
 0x43e   :  { %v5672_v55 = vadd.f32 %v5671_v0, %v5670_v32  ;;  %v5869_v25 = vadd.f32 %v5868_v41, %v5867_v8  ;;  %v5952_v8 = vlaneseq }
 0x440   :  { %v5674_v48 = vadd.f32 %v5673_v11, %v5672_v55  ;;  %v5871_v46 = vadd.f32 %v5870_v22, %v5869_v25  ;;  %v10051_v55 = vshrl.u32 %v5952_v8, 7  ;;  %v11559_v22 = vld [vmem:[#allocation20_spill] sm:$0xff] }
 0x442   :  { %v5675_v50 = vrot.slane %v5674_v48, 4  ;;  %v5873_v12 = vadd.f32 %v5872_v29, %v5871_v46  ;;  %v11567_v29 = vld [vmem:[#allocation28_spill] sm:$0xff] }
 0x444   :  { %v5676_v36 = vadd.f32 %v5675_v50, %v5674_v48  ;;  %v5874_v14 = vrot.slane %v5873_v12, 4  ;;  %v11561_v48 = vld [vmem:[#allocation19_spill] sm:$0xff] }
 0x446   :  { %v5677_v57 = vrot.slane %v5676_v36, 2  ;;  %v5875_v23 = vadd.f32 %v5874_v14, %v5873_v12  ;;  %v11566_v14 = vld [vmem:[#allocation25_spill] sm:$0xff] }
 0x448   :  { %v5678_v26 = vadd.f32 %v5677_v57, %v5676_v36  ;;  %v5876_v31 = vrot.slane %v5875_v23, 2  ;;  %v11565_v57 = vld [vmem:[#allocation23_spill] sm:$0xff] }
 0x44a   :  { %v5679_v62 = vrot.slane %v5678_v26, 1  ;;  %v5877_v32 = vadd.f32 %v5876_v31, %v5875_v23 }
 0x44c   :  { %v5680_v0 = vadd.f32 %v5679_v62, %v5678_v26  ;;  %v5878_v45 = vrot.slane %v5877_v32, 1  ;;  %v11560_v26 = vld [vmem:[#allocation21_spill] sm:$0xff] }
 0x44e   :  { %v10047_v49 = vmul.f32 0.001953125, %v5680_v0  ;;  %v5879_v40 = vadd.f32 %v5878_v45, %v5877_v32 }
 0x450   :  { %v5881_v41 = vmul.f32 %v10047_v49, %v10047_v49  ;;  %v5880_v52 = vmul.f32 0.001953125, %v5879_v40  ;;  %v5911_v8 = vsub.f32 %v9740_v51, %v10047_v49  ;;  %v11564_v51 = vld [vmem:[#allocation26_spill] sm:$0xff]  ;;  %v5917_v50 = vsub.f32 %v11566_v14, %v10047_v49  ;;  %v11573_v14 = vld [vmem:[#allocation31_spill] sm:$0xff] }
 0x451   :  { %v5915_v23 = vsub.f32 %v11564_v51, %v10047_v49  ;;  %v5918_v46 = vsub.f32 %v11567_v29, %v10047_v49  ;;  %v11571_v51 = vld [vmem:[#allocation32_spill] sm:$0xff]  ;;  %v5924_v19 = vsub.f32 %v11573_v14, %v10047_v49  ;;  %v11574_v29 = vld [vmem:[#allocation33_spill] sm:$0xff] }
 0x452   :  { %v5882_v11 = vsub.f32 %v5880_v52, %v5881_v41  ;;  %v5950_v52 = vld [vmem:[%s11406_s4] sm:$0x1]  ;;  %v5916_v41 = vsub.f32 %v11565_v57, %v10047_v49  ;;  %v5922_v12 = vsub.f32 %v11571_v51, %v10047_v49  ;;  %v11572_v57 = vld [vmem:[#allocation34_spill] sm:$0xff]  ;;  %v5925_v61 = vsub.f32 %v11574_v29, %v10047_v49  ;;  %v11580_v14 = vld [vmem:[#allocation40_spill] sm:$0xff] }
 0x453   :  { %v5923_v3 = vsub.f32 %v11572_v57, %v10047_v49  ;;  %v11579_v51 = vsub.s32 0, %v10051_v55  ;;  %v5930_v10 = vsub.f32 %v11580_v14, %v10047_v49  ;;  %v11581_v29 = vld [vmem:[#allocation42_spill] sm:$0xff] }
 0x454   :  { %v5883_v25 = vmax.f32 %v5882_v11, 0.0  ;;  %v5912_v11 = vsub.f32 %v9724_v27, %v10047_v49  ;;  %v11568_v27 = vld [vmem:[#allocation30_spill] sm:$0xff]  ;;  %v5931_v54 = vsub.f32 %v11581_v29, %v10047_v49  ;;  %v11587_v29 = vsub.f32 %v9542_v5, %v10047_v49 }
 0x455   :  { %v5919_v45 = vsub.f32 %v11568_v27, %v10047_v49  ;;  %v11575_v27 = vld [vmem:[#allocation36_spill] sm:$0xff] }
 0x456   :  { %v5884_v36 = vadd.f32 1e-05, %v5883_v25  ;;  %v11562_v25 = vld [vmem:[#allocation22_spill] sm:$0xff]  ;;  %v5926_v47 = vsub.f32 %v11575_v27, %v10047_v49  ;;  %v11582_v27 = vld [vmem:[#allocation39_spill] sm:$0xff] }
 0x457   :  { %v5913_v0 = vsub.f32 %v11562_v25, %v10047_v49  ;;  %v11569_v25 = vld [vmem:[#allocation27_spill] sm:$0xff]  ;;  %v5932_v56 = vsub.f32 %v11582_v27, %v10047_v49  ;;  %v11588_v27 = vsub.f32 %v9570_v34, %v10047_v49 }
 0x458   :  { %8209 = vrsqrt.f32 %v5884_v36  ;;  %v5910_v36 = vsub.f32 %v9729_v44, %v10047_v49  ;;  %v11563_v44 = vld [vmem:[#allocation24_spill] sm:$0xff]  ;;  %v5920_v62 = vsub.f32 %v11569_v25, %v10047_v49  ;;  %v11576_v25 = vld [vmem:[#allocation38_spill] sm:$0xff] }
 0x459   :  { %v5914_v32 = vsub.f32 %v11563_v44, %v10047_v49  ;;  %v11570_v44 = vld [vmem:[#allocation29_spill] sm:$0xff]  ;;  %v5927_v60 = vsub.f32 %v11576_v25, %v10047_v49 }
 0x45a   :  { %v5921_v31 = vsub.f32 %v11570_v44, %v10047_v49  ;;  %v11577_v44 = vld [vmem:[#allocation35_spill] sm:$0xff]  ;;  %v11583_v25 = vld [vmem:[#allocation41_spill] sm:$0xff] }
 0x45b   :  { %v5928_v53 = vsub.f32 %v11577_v44, %v10047_v49  ;;  %v5933_v21 = vsub.f32 %v11583_v25, %v10047_v49  ;;  %v11584_v44 = vsub.f32 %v11559_v22, %v10047_v49  ;;  %v11589_v25 = vsub.f32 %v9581_v38, %v10047_v49 }
 0x462   :  { %v8210_v40 = vpop.eup %8209 }
 0x463   :  { %v5951_v30 = vmul.f32 %v8210_v40, %v5950_v52  ;;  %v11578_v40 = vld [vmem:[#allocation37_spill] sm:$0xff] }
 0x464   :  { %v5929_v52 = vsub.f32 %v11578_v40, %v10047_v49 }
 0x465   :  { %v10179_v57 = vrot.slane %v5951_v30, %v11579_v51  ;;  %v11585_v30 = vsub.f32 %v11560_v26, %v10047_v49  ;;  %v11586_v51 = vsub.f32 %v11561_v48, %v10047_v49 }
 0x467   :  { %v10193_v40 = vmul.f32 %v10179_v57, %v11584_v44  ;;  %v10199_v55 = vmul.f32 %v10179_v57, %v11585_v30  ;;  %v10205_v14 = vmul.f32 %v10179_v57, %v11586_v51  ;;  %v10211_v22 = vmul.f32 %v10179_v57, %v11587_v29 }
 0x468   :  { %v10217_v26 = vmul.f32 %v10179_v57, %v11588_v27  ;;  %v10223_v48 = vmul.f32 %v10179_v57, %v11589_v25  ;;  %v11590_v44 = vsub.f32 %v9564_v4, %v10047_v49  ;;  %v11591_v30 = vsub.f32 %v9578_v20, %v10047_v49 }
 0x469   :  { %v11592_v51 = vsub.f32 %v9601_v1, %v10047_v49  ;;  %v11593_v29 = vsub.f32 %v9612_v58, %v10047_v49  ;;  %v11594_v27 = vsub.f32 %v9596_v18, %v10047_v49  ;;  %v11595_v25 = vsub.f32 %v9605_v7, %v10047_v49 }
 0x46a   :  { %v10229_v5 = vmul.f32 %v10179_v57, %v11590_v44  ;;  %v10235_v34 = vmul.f32 %v10179_v57, %v11591_v30  ;;  %v11596_v44 = vsub.f32 %v9633_v17, %v10047_v49  ;;  %v11597_v30 = vsub.f32 %v9644_v16, %v10047_v49 }
 0x46b   :  { %v10241_v38 = vmul.f32 %v10179_v57, %v11592_v51  ;;  %v10247_v4 = vmul.f32 %v10179_v57, %v11593_v29  ;;  %v10253_v20 = vmul.f32 %v10179_v57, %v11594_v27  ;;  %v10259_v1 = vmul.f32 %v10179_v57, %v11595_v25 }
 0x46c   :  { %v10265_v58 = vmul.f32 %v10179_v57, %v11596_v44  ;;  %v10271_v18 = vmul.f32 %v10179_v57, %v11597_v30  ;;  %v11598_v51 = vsub.f32 %v9628_v43, %v10047_v49  ;;  %v11599_v29 = vsub.f32 %v9637_v9, %v10047_v49 }
 0x46d   :  { %v11600_v27 = vsub.f32 %v9665_v35, %v10047_v49  ;;  %v11601_v25 = vsub.f32 %v9676_v33, %v10047_v49  ;;  %v11602_v44 = vsub.f32 %v9660_v6, %v10047_v49  ;;  %v11603_v30 = vsub.f32 %v9669_v24, %v10047_v49 }
 0x46e   :  { %v10277_v7 = vmul.f32 %v10179_v57, %v11598_v51  ;;  %v10283_v17 = vmul.f32 %v10179_v57, %v11599_v29  ;;  %v11604_v51 = vsub.f32 %v9697_v42, %v10047_v49  ;;  %v11605_v29 = vsub.f32 %v9708_v37, %v10047_v49 }
 0x46f   :  { %v10289_v16 = vmul.f32 %v10179_v57, %v11600_v27  ;;  %v10295_v43 = vmul.f32 %v10179_v57, %v11601_v25  ;;  %v10301_v9 = vmul.f32 %v10179_v57, %v11602_v44  ;;  %v10307_v35 = vmul.f32 %v10179_v57, %v11603_v30 }
 0x470   :  { %v10313_v33 = vmul.f32 %v10179_v57, %v11604_v51  ;;  %v10319_v6 = vmul.f32 %v10179_v57, %v11605_v29  ;;  %v11606_v27 = vsub.f32 %v9692_v15, %v10047_v49  ;;  %v11607_v25 = vsub.f32 %v9701_v28, %v10047_v49 }
 0x471   :  { %v10334_v44 = vmul.f32 %v10179_v57, %v5910_v36  ;;  %v10337_v37 = vmul.f32 %v10179_v57, %v5911_v8  ;;  %v10340_v30 = vmul.f32 %v10179_v57, %v5912_v11  ;;  %v10343_v15 = vmul.f32 %v10179_v57, %v5913_v0 }
 0x472   :  { %v10325_v24 = vmul.f32 %v10179_v57, %v11606_v27  ;;  %v10331_v42 = vmul.f32 %v10179_v57, %v11607_v25  ;;  %v10346_v51 = vmul.f32 %v10179_v57, %v5914_v32  ;;  %v10349_v28 = vmul.f32 %v10179_v57, %v5915_v23  ;;  %v11616_v25 = vld [vmem:[#allocation5_spill] sm:$0xff] }
 0x473   :  { %v10352_v29 = vmul.f32 %v10179_v57, %v5916_v41  ;;  %v10355_v36 = vmul.f32 %v10179_v57, %v5917_v50  ;;  %v10358_v8 = vmul.f32 %v10179_v57, %v5918_v46  ;;  %v10361_v11 = vmul.f32 %v10179_v57, %v5919_v45 }
 0x474   :  { %v10364_v0 = vmul.f32 %v10179_v57, %v5920_v62  ;;  %v10367_v32 = vmul.f32 %v10179_v57, %v5921_v31  ;;  %v10370_v23 = vmul.f32 %v10179_v57, %v5922_v12  ;;  %v10373_v41 = vmul.f32 %v10179_v57, %v5923_v3 }
 0x475   :  { %v10376_v50 = vmul.f32 %v10179_v57, %v5924_v19  ;;  %v10379_v46 = vmul.f32 %v10179_v57, %v5925_v61  ;;  %v10382_v45 = vmul.f32 %v10179_v57, %v5926_v47  ;;  %v10385_v62 = vmul.f32 %v10179_v57, %v5927_v60 }
 0x476   :  { %v10388_v31 = vmul.f32 %v10179_v57, %v5928_v53  ;;  %v10391_v12 = vmul.f32 %v10179_v57, %v5929_v52  ;;  %v10394_v3 = vmul.f32 %v10179_v57, %v5930_v10  ;;  %v10397_v19 = vmul.f32 %v10179_v57, %v5931_v54 }
 0x477   :  { %v10400_v61 = vmul.f32 %v10179_v57, %v5932_v56  ;;  %v10403_v47 = vmul.f32 %v10179_v57, %v5933_v21  ;;  %v11608_v60 = vsub.f32 %v9921_v2, %v10047_v49  ;;  %v11609_v52 = vsub.f32 %v9932_v63, %v10047_v49 }
 0x478   :  { %v11610_v54 = vsub.f32 %v9916_v13, %v10047_v49  ;;  %v11612_v21 = vsub.f32 %v9925_v59, %v10047_v49  ;;  %v11614_v27 = vsub.f32 %v9953_v39, %v10047_v49 }
 0x479   :  { %v10409_v53 = vmul.f32 %v10179_v57, %v11608_v60  ;;  %v10415_v10 = vmul.f32 %v10179_v57, %v11609_v52  ;;  %v11617_v60 = vsub.f32 %v11616_v25, %v10047_v49  ;;  %v11619_v52 = vld [vmem:[#allocation4_spill] sm:$0xff]  ;;  %v11625_v25 = vld [vmem:[#allocation7_spill] sm:$0xff] }
 0x47a   :  { %v10421_v56 = vmul.f32 %v10179_v57, %v11610_v54  ;;  %v10427_v2 = vmul.f32 %v10179_v57, %v11612_v21  ;;  %v10433_v63 = vmul.f32 %v10179_v57, %v11614_v27  ;;  %v11620_v54 = vsub.f32 %v11619_v52, %v10047_v49  ;;  %v11622_v21 = vld [vmem:[#allocation3_spill] sm:$0xff]  ;;  %v11628_v52 = vld [vmem:[#allocation9_spill] sm:$0xff] }
 0x47b   :  { %v10439_v13 = vmul.f32 %v10179_v57, %v11617_v60  ;;  %v10456_v27 = vld [vmem:[%s11406_s4 + $0x1] ss:$0 sm:$0xff]  ;;  %v11626_v60 = vsub.f32 %v11625_v25, %v10047_v49 }
 0x47c   :  { %11611 = vst [vmem:[#allocation14_spill] sm:$0xff] %v10421_v56  ;;  %11613 = vst [vmem:[#allocation15_spill] sm:$0xff] %v10427_v2  ;;  %v10445_v59 = vmul.f32 %v10179_v57, %v11620_v54  ;;  %v11623_v2 = vsub.f32 %v11622_v21, %v10047_v49  ;;  %v11629_v54 = vsub.f32 %v11628_v52, %v10047_v49  ;;  %v11631_v21 = vld [vmem:[#allocation6_spill] sm:$0xff] }
 0x47d   :  { %11615 = vst [vmem:[#allocation16_spill] sm:$0xff] %v10433_v63  ;;  %11618 = vst [vmem:[#allocation17_spill] sm:$0xff] %v10439_v13  ;;  %v10462_v13 = vmul.f32 %v10179_v57, %v11626_v60  ;;  %v11634_v63 = vld [vmem:[#allocation8_spill] sm:$0xff]  ;;  %v11637_v60 = vld [vmem:[#allocation11_spill] sm:$0xff] }
 0x47e   :  { %11621 = vst [vmem:[#allocation18_spill] sm:$0xff] %v10445_v59  ;;  %v10451_v39 = vmul.f32 %v10179_v57, %v11623_v2  ;;  %v10468_v59 = vmul.f32 %v10179_v57, %v11629_v54  ;;  %v11632_v2 = vsub.f32 %v11631_v21, %v10047_v49  ;;  %v11635_v56 = vsub.f32 %v11634_v63, %v10047_v49  ;;  %v11639_v54 = vld [vmem:[#allocation13_spill] sm:$0xff] }
 0x47f   :  { %11627 = vst [vmem:[#allocation21_spill] sm:$0xff] %v10462_v13  ;;  %v11638_v13 = vsub.f32 %v11637_v60, %v10047_v49 }
 0x480   :  { %11624 = vst [vmem:[#allocation20_spill] sm:$0xff] %v10451_v39  ;;  %11630 = vst [vmem:[#allocation19_spill] sm:$0xff] %v10468_v59  ;;  %v10474_v39 = vmul.f32 %v10179_v57, %v11632_v2  ;;  %v10480_v25 = vmul.f32 %v10179_v57, %v11635_v56  ;;  %v11640_v59 = vsub.f32 %v11639_v54, %v10047_v49  ;;  %v11641_v2 = vld [vmem:[#allocation10_spill] sm:$0xff]  ;;  %v11643_v56 = vld [vmem:[#allocation12_spill] sm:$0xff] }
 0x481   :  { %v10486_v52 = vmul.f32 %v10179_v57, %v11638_v13  ;;  %v10508_v13 = vadd.f32 %v10456_v27, %v10193_v40  ;;  %v10516_v54 = vadd.f32 %v10456_v27, %v10205_v14  ;;  %v10532_v40 = vadd.f32 %v10456_v27, %v10229_v5 }
 0x482   :  { %11633 = vst [vmem:[#allocation22_spill] sm:$0xff] %v10474_v39  ;;  %11636 = vst [vmem:[#allocation24_spill] sm:$0xff] %v10480_v25  ;;  %v10492_v21 = vmul.f32 %v10179_v57, %v11640_v59  ;;  %v11642_v39 = vsub.f32 %v11641_v2, %v10047_v49  ;;  %v11644_v25 = vsub.f32 %v11643_v56, %v10047_v49 }
 0x483   :  { %v10512_v59 = vadd.f32 %v10456_v27, %v10199_v55  ;;  %v10524_v49 = vadd.f32 %v10456_v27, %v10217_v26  ;;  %v10536_v55 = vadd.f32 %v10456_v27, %v10235_v34  ;;  %v10540_v14 = vadd.f32 %v10456_v27, %v10241_v38 }
 0x484   :  { %v10498_v63 = vmul.f32 %v10179_v57, %v11642_v39  ;;  %v10504_v60 = vmul.f32 %v10179_v57, %v11644_v25  ;;  %v10520_v39 = vadd.f32 %v10456_v27, %v10211_v22  ;;  %v10528_v57 = vadd.f32 %v10456_v27, %v10223_v48  ;;  %v11667_v25 = vld [vmem:[#allocation15_spill] sm:$0xff]  ;;  %v11669_v2 = vld [vmem:[#allocation16_spill] sm:$0xff]  ;;  %v11671_v56 = vld [vmem:[#allocation17_spill] sm:$0xff] }
 0x485   :  { %v10544_v22 = vadd.f32 %v10456_v27, %v10247_v4  ;;  %v10548_v26 = vadd.f32 %v10456_v27, %v10253_v20  ;;  %v10552_v48 = vadd.f32 %v10456_v27, %v10259_v1  ;;  %v10556_v5 = vadd.f32 %v10456_v27, %v10265_v58 }
 0x486   :  { %v10560_v34 = vadd.f32 %v10456_v27, %v10271_v18  ;;  %v10564_v38 = vadd.f32 %v10456_v27, %v10277_v7  ;;  %v10568_v4 = vadd.f32 %v10456_v27, %v10283_v17  ;;  %v10572_v20 = vadd.f32 %v10456_v27, %v10289_v16 }
 0x487   :  { %v10576_v1 = vadd.f32 %v10456_v27, %v10295_v43  ;;  %v10580_v58 = vadd.f32 %v10456_v27, %v10301_v9  ;;  %v10584_v18 = vadd.f32 %v10456_v27, %v10307_v35  ;;  %v10588_v7 = vadd.f32 %v10456_v27, %v10313_v33 }
 0x488   :  { %v10592_v17 = vadd.f32 %v10456_v27, %v10319_v6  ;;  %v10596_v16 = vadd.f32 %v10456_v27, %v10325_v24  ;;  %v10600_v43 = vadd.f32 %v10456_v27, %v10331_v42  ;;  %v10604_v9 = vadd.f32 %v10456_v27, %v10334_v44 }
 0x489   :  { %v10608_v35 = vadd.f32 %v10456_v27, %v10337_v37  ;;  %v10612_v33 = vadd.f32 %v10456_v27, %v10340_v30  ;;  %v10616_v6 = vadd.f32 %v10456_v27, %v10343_v15  ;;  %v10620_v24 = vadd.f32 %v10456_v27, %v10346_v51 }
 0x48a   :  { %v10624_v42 = vadd.f32 %v10456_v27, %v10349_v28  ;;  %v10628_v44 = vadd.f32 %v10456_v27, %v10352_v29  ;;  %v10632_v37 = vadd.f32 %v10456_v27, %v10355_v36  ;;  %v10636_v30 = vadd.f32 %v10456_v27, %v10358_v8 }
 0x48b   :  { %v10640_v15 = vadd.f32 %v10456_v27, %v10361_v11  ;;  %v10644_v51 = vadd.f32 %v10456_v27, %v10364_v0  ;;  %v10648_v28 = vadd.f32 %v10456_v27, %v10367_v32  ;;  %v10652_v29 = vadd.f32 %v10456_v27, %v10370_v23 }
 0x48c   :  { %11645 = vst [vmem:[#allocation26_spill] sm:$0xff] %v10628_v44  ;;  %11646 = vst [vmem:[#allocation23_spill] sm:$0xff] %v10632_v37  ;;  %v10656_v36 = vadd.f32 %v10456_v27, %v10373_v41  ;;  %v10660_v8 = vadd.f32 %v10456_v27, %v10376_v50  ;;  %v10664_v11 = vadd.f32 %v10456_v27, %v10379_v46  ;;  %v6177_v37 = vld [vmem:[%s11403_s0 + $0xc0] sm:$0xff]  ;;  %v6178_v44 = vld [vmem:[%s11403_s0 + $0xc8] sm:$0xff] }
 0x48d   :  { %11647 = vst [vmem:[#allocation25_spill] sm:$0xff] %v10636_v30  ;;  %11648 = vst [vmem:[#allocation28_spill] sm:$0xff] %v10640_v15  ;;  %v10668_v0 = vadd.f32 %v10456_v27, %v10382_v45  ;;  %v10672_v32 = vadd.f32 %v10456_v27, %v10385_v62  ;;  %v10676_v23 = vadd.f32 %v10456_v27, %v10388_v31  ;;  %v11703_v15 = vmax.f32 %v10520_v39, 0.0 }
 0x48e   :  { %11649 = vst [vmem:[#allocation30_spill] sm:$0xff] %v10644_v51  ;;  %11650 = vst [vmem:[#allocation27_spill] sm:$0xff] %v10648_v28  ;;  %v10680_v41 = vadd.f32 %v10456_v27, %v10391_v12  ;;  %v10684_v50 = vadd.f32 %v10456_v27, %v10394_v3  ;;  %v10688_v46 = vadd.f32 %v10456_v27, %v10397_v19  ;;  %v11665_v3 = vld [vmem:[#allocation14_spill] sm:$0xff]  ;;  %v11702_v28 = vmax.f32 %v10516_v54, 0.0 }
 0x48f   :  { %11651 = vst [vmem:[#allocation29_spill] sm:$0xff] %v10652_v29  ;;  %11652 = vst [vmem:[#allocation32_spill] sm:$0xff] %v10656_v36  ;;  %v10692_v45 = vadd.f32 %v10456_v27, %v10400_v61  ;;  %v10696_v62 = vadd.f32 %v10456_v27, %v10403_v47  ;;  %v10700_v31 = vadd.f32 %v10456_v27, %v10409_v53  ;;  %v6171_v36 = vld [vmem:[%s11403_s0 + $0x90] sm:$0xff]  ;;  %v11704_v54 = vmax.f32 %v10524_v49, 0.0 }
 0x490   :  { %11653 = vst [vmem:[#allocation34_spill] sm:$0xff] %v10660_v8  ;;  %11654 = vst [vmem:[#allocation31_spill] sm:$0xff] %v10664_v11  ;;  %v10704_v12 = vadd.f32 %v10456_v27, %v10415_v10  ;;  %v10708_v19 = vadd.f32 %v10456_v27, %v11665_v3  ;;  %v10712_v61 = vadd.f32 %v10456_v27, %v11667_v25  ;;  %v6169_v11 = vld [vmem:[%s11403_s0 + $0x80] sm:$0xff]  ;;  %v6170_v8 = vld [vmem:[%s11403_s0 + $0x88] sm:$0xff] }
 0x491   :  { %11655 = vst [vmem:[#allocation33_spill] sm:$0xff] %v10668_v0  ;;  %11656 = vst [vmem:[#allocation36_spill] sm:$0xff] %v10672_v32  ;;  %v10716_v47 = vadd.f32 %v10456_v27, %v11669_v2  ;;  %v10720_v53 = vadd.f32 %v10456_v27, %v11671_v56  ;;  %v6166_v32 = vld [vmem:[%s11403_s0 + $0x68] sm:$0xff]  ;;  %v6167_v0 = vld [vmem:[%s11403_s0 + $0x70] sm:$0xff] }
 0x492   :  { %11657 = vst [vmem:[#allocation38_spill] sm:$0xff] %v10676_v23  ;;  %11658 = vst [vmem:[#allocation35_spill] sm:$0xff] %v10680_v41  ;;  %v6162_v41 = vld [vmem:[%s11403_s0 + $0x48] sm:$0xff]  ;;  %v6163_v23 = vld [vmem:[%s11403_s0 + $0x50] sm:$0xff] }
 0x493   :  { %11659 = vst [vmem:[#allocation37_spill] sm:$0xff] %v10684_v50  ;;  %11660 = vst [vmem:[#allocation40_spill] sm:$0xff] %v10688_v46  ;;  %v6158_v46 = vld [vmem:[%s11403_s0 + $0x28] sm:$0xff]  ;;  %v6159_v50 = vld [vmem:[%s11403_s0 + $0x30] sm:$0xff] }
 0x494   :  { %11661 = vst [vmem:[#allocation42_spill] sm:$0xff] %v10692_v45  ;;  %11662 = vst [vmem:[#allocation39_spill] sm:$0xff] %v10696_v62  ;;  %v6157_v45 = vld [vmem:[%s11403_s0 + $0x20] sm:$0xff]  ;;  %v6164_v62 = vld [vmem:[%s11403_s0 + $0x58] sm:$0xff] }
 0x495   :  { %11663 = vst [vmem:[#allocation41_spill] sm:$0xff] %v10700_v31  ;;  %11664 = vst [vmem:[#allocation5_spill] sm:$0xff] %v10704_v12  ;;  %v11673_v31 = vld [vmem:[#allocation18_spill] sm:$0xff]  ;;  %v11675_v12 = vld [vmem:[#allocation20_spill] sm:$0xff]  ;;  %v6221_v39 = vadd.f32 %v6157_v45, %v11704_v54  ;;  %v11710_v45 = vmax.f32 %v10548_v26, 0.0  ;;  %v11711_v54 = vmax.f32 %v10552_v48, 0.0 }
 0x496   :  { %11666 = vst [vmem:[#allocation4_spill] sm:$0xff] %v10708_v19  ;;  %11668 = vst [vmem:[#allocation3_spill] sm:$0xff] %v10712_v61  ;;  %v10724_v10 = vadd.f32 %v10456_v27, %v11673_v31  ;;  %v10728_v3 = vadd.f32 %v10456_v27, %v11675_v12  ;;  %v11677_v19 = vld [vmem:[#allocation21_spill] sm:$0xff]  ;;  %v11679_v61 = vld [vmem:[#allocation19_spill] sm:$0xff]  ;;  %v10748_v12 = vadd.f32 %v10456_v27, %v10486_v52 }
 0x497   :  { %11670 = vst [vmem:[#allocation7_spill] sm:$0xff] %v10716_v47  ;;  %11672 = vst [vmem:[#allocation9_spill] sm:$0xff] %v10720_v53  ;;  %v10732_v25 = vadd.f32 %v10456_v27, %v11677_v19  ;;  %v10736_v2 = vadd.f32 %v10456_v27, %v11679_v61  ;;  %v11681_v47 = vld [vmem:[#allocation22_spill] sm:$0xff]  ;;  %v11683_v53 = vld [vmem:[#allocation24_spill] sm:$0xff]  ;;  %v10752_v19 = vadd.f32 %v10456_v27, %v10492_v21 }
 0x498   :  { %11674 = vst [vmem:[#allocation6_spill] sm:$0xff] %v10724_v10  ;;  %11676 = vst [vmem:[#allocation8_spill] sm:$0xff] %v10728_v3  ;;  %v10740_v56 = vadd.f32 %v10456_v27, %v11681_v47  ;;  %v10744_v31 = vadd.f32 %v10456_v27, %v11683_v53  ;;  %v10756_v61 = vadd.f32 %v10456_v27, %v10498_v63  ;;  %v6154_v53 = vld [vmem:[%s11403_s0 + $0x8] sm:$0xff]  ;;  %v6155_v52 = vld [vmem:[%s11403_s0 + $0x10] sm:$0xff]  ;;  %v11700_v10 = vmax.f32 %v10508_v13, 0.0 }
 0x499   :  { %11678 = vst [vmem:[#allocation11_spill] sm:$0xff] %v10732_v25  ;;  %11680 = vst [vmem:[#allocation13_spill] sm:$0xff] %v10736_v2  ;;  %v10760_v47 = vadd.f32 %v10456_v27, %v10504_v60  ;;  %v6153_v27 = vld [vmem:[%s11403_s0] sm:$0xff]  ;;  %v6156_v21 = vld [vmem:[%s11403_s0 + $0x18] sm:$0xff]  ;;  %v6219_v51 = vadd.f32 %v6155_v52, %v11702_v28 }
 0x49a   :  { %11682 = vst [vmem:[#allocation10_spill] sm:$0xff] %v10740_v56  ;;  %11684 = vst [vmem:[#allocation12_spill] sm:$0xff] %v10744_v31  ;;  %v6160_v63 = vld [vmem:[%s11403_s0 + $0x38] sm:$0xff]  ;;  %v6173_v25 = vld [vmem:[%s11403_s0 + $0xa0] sm:$0xff]  ;;  %v11701_v56 = vmax.f32 %v10512_v59, 0.0  ;;  %v6220_v30 = vadd.f32 %v6156_v21, %v11703_v15  ;;  %v11705_v15 = vmax.f32 %v10528_v57, 0.0 }
 0x49b   :  { %11685 = vst [vmem:[#allocation14_spill] sm:$0xff] %v10748_v12  ;;  %11686 = vst [vmem:[#allocation15_spill] sm:$0xff] %v10752_v19  ;;  %v6161_v12 = vld [vmem:[%s11403_s0 + $0x40] sm:$0xff]  ;;  %v6168_v31 = vld [vmem:[%s11403_s0 + $0x78] sm:$0xff] }
 0x49c   :  { %11687 = vst [vmem:[#allocation16_spill] sm:$0xff] %v10756_v61  ;;  %11688 = vst [vmem:[#allocation17_spill] sm:$0xff] %v10760_v47  ;;  %v6165_v19 = vld [vmem:[%s11403_s0 + $0x60] sm:$0xff]  ;;  %v6172_v60 = vld [vmem:[%s11403_s0 + $0x98] sm:$0xff]  ;;  %v6217_v61 = vadd.f32 %v6153_v27, %v11700_v10  ;;  %v6218_v29 = vadd.f32 %v6154_v53, %v11701_v56  ;;  %v6222_v28 = vadd.f32 %v6158_v46, %v11705_v15  ;;  %v11706_v10 = vmax.f32 %v10532_v40, 0.0 }
 0x49d   :  { %v6174_v2 = vld [vmem:[%s11403_s0 + $0xa8] sm:$0xff]  ;;  %v6175_v3 = vld [vmem:[%s11403_s0 + $0xb0] sm:$0xff]  ;;  %v6176_v47 = vld [vmem:[%s11403_s0 + $0xb8] sm:$0xff]  ;;  %v11707_v53 = vmax.f32 %v10536_v55, 0.0  ;;  %v11708_v40 = vmax.f32 %v10540_v14, 0.0  ;;  %v6228_v15 = vadd.f32 %v6164_v62, %v11711_v54  ;;  %6283 = vst.msk [vmem:[%s11407_s5 + $0x10] sm:$0xff] %vm125_vm1, %v6219_v51 }
 0x49e   :  { %v6179_v13 = vld [vmem:[%s11403_s0 + $0xd0] sm:$0xff]  ;;  %v6180_v59 = vld [vmem:[%s11403_s0 + $0xd8] sm:$0xff]  ;;  %v6223_v56 = vadd.f32 %v6159_v50, %v11706_v10  ;;  %v6181_v21 = vld [vmem:[%s11403_s0 + $0xe0] sm:$0xff]  ;;  %v11709_v50 = vmax.f32 %v10544_v22, 0.0  ;;  %6281 = vst.msk [vmem:[%s11407_s5] sm:$0xff] %vm125_vm1, %v6217_v61  ;;  %v11712_v51 = vmax.f32 %v10556_v5, 0.0 }
 0x49f   :  { %v6224_v52 = vadd.f32 %v6160_v63, %v11707_v53  ;;  %v6182_v27 = vld [vmem:[%s11403_s0 + $0xe8] sm:$0xff]  ;;  %v6183_v49 = vld [vmem:[%s11403_s0 + $0xf0] sm:$0xff]  ;;  %v6184_v57 = vld [vmem:[%s11403_s0 + $0xf8] sm:$0xff]  ;;  %v6225_v55 = vadd.f32 %v6161_v12, %v11708_v40  ;;  %v6227_v63 = vadd.f32 %v6163_v23, %v11710_v45  ;;  %6282 = vst.msk [vmem:[%s11407_s5 + $0x8] sm:$0xff] %vm125_vm1, %v6218_v29  ;;  %v11715_v12 = vmax.f32 %v10568_v4, 0.0 }
 0x4a0   :  { %v6226_v46 = vadd.f32 %v6162_v41, %v11709_v50  ;;  %6284 = vst.msk [vmem:[%s11407_s5 + $0x18] sm:$0xff] %vm125_vm1, %v6220_v30  ;;  %v6185_v14 = vld [vmem:[%s11403_s0 + $0x100] sm:$0xff]  ;;  %v6186_v22 = vld [vmem:[%s11403_s0 + $0x108] sm:$0xff]  ;;  %v6187_v26 = vld [vmem:[%s11403_s0 + $0x110] sm:$0xff]  ;;  %v6229_v29 = vadd.f32 %v6165_v19, %v11712_v51  ;;  %v11713_v30 = vmax.f32 %v10560_v34, 0.0  ;;  %v11714_v41 = vmax.f32 %v10564_v38, 0.0 }
 0x4a1   :  { %v6188_v48 = vld [vmem:[%s11403_s0 + $0x118] sm:$0xff]  ;;  %v6232_v61 = vadd.f32 %v6168_v31, %v11715_v12  ;;  %6285 = vst.msk [vmem:[%s11407_s5 + $0x20] sm:$0xff] %vm125_vm1, %v6221_v39  ;;  %6286 = vst.msk [vmem:[%s11407_s5 + $0x28] sm:$0xff] %vm125_vm1, %v6222_v28  ;;  %v6189_v5 = vld [vmem:[%s11403_s0 + $0x120] sm:$0xff]  ;;  %v11717_v31 = vmax.f32 %v10576_v1, 0.0  ;;  %v11718_v39 = vmax.f32 %v10580_v58, 0.0 }
 0x4a2   :  { %v6230_v23 = vadd.f32 %v6166_v32, %v11713_v30  ;;  %v6231_v62 = vadd.f32 %v6167_v0, %v11714_v41  ;;  %6287 = vst.msk [vmem:[%s11407_s5 + $0x30] sm:$0xff] %vm125_vm1, %v6223_v56  ;;  %6288 = vst.msk [vmem:[%s11407_s5 + $0x38] sm:$0xff] %vm125_vm1, %v6224_v52  ;;  %v6190_v34 = vld [vmem:[%s11403_s0 + $0x128] sm:$0xff]  ;;  %v6191_v38 = vld [vmem:[%s11403_s0 + $0x130] sm:$0xff]  ;;  %v11716_v0 = vmax.f32 %v10572_v20, 0.0  ;;  %v11719_v10 = vmax.f32 %v10584_v18, 0.0 }
 0x4a3   :  { %v6192_v4 = vld [vmem:[%s11403_s0 + $0x138] sm:$0xff]  ;;  %v6234_v19 = vadd.f32 %v6170_v8, %v11717_v31  ;;  %v6235_v28 = vadd.f32 %v6171_v36, %v11718_v39  ;;  %6289 = vst.msk [vmem:[%s11407_s5 + $0x40] sm:$0xff] %vm125_vm1, %v6225_v55  ;;  %6290 = vst.msk [vmem:[%s11407_s5 + $0x48] sm:$0xff] %vm125_vm1, %v6226_v46  ;;  %v6193_v20 = vld [vmem:[%s11403_s0 + $0x140] sm:$0xff]  ;;  %v11720_v18 = vmax.f32 %v10588_v7, 0.0  ;;  %v11721_v8 = vmax.f32 %v10592_v17, 0.0 }
 0x4a4   :  { %v6233_v32 = vadd.f32 %v6169_v11, %v11716_v0  ;;  %v6236_v56 = vadd.f32 %v6172_v60, %v11719_v10  ;;  %6291 = vst.msk [vmem:[%s11407_s5 + $0x50] sm:$0xff] %vm125_vm1, %v6227_v63  ;;  %6292 = vst.msk [vmem:[%s11407_s5 + $0x58] sm:$0xff] %vm125_vm1, %v6228_v15  ;;  %v6194_v1 = vld [vmem:[%s11403_s0 + $0x148] sm:$0xff]  ;;  %v6195_v58 = vld [vmem:[%s11403_s0 + $0x150] sm:$0xff]  ;;  %v11722_v60 = vmax.f32 %v10596_v16, 0.0  ;;  %v11723_v52 = vmax.f32 %v10600_v43, 0.0 }
 0x4a5   :  { %v6237_v36 = vadd.f32 %v6173_v25, %v11720_v18  ;;  %v6238_v11 = vadd.f32 %v6174_v2, %v11721_v8  ;;  %6293 = vst.msk [vmem:[%s11407_s5 + $0x60] sm:$0xff] %vm125_vm1, %v6229_v29  ;;  %6294 = vst.msk [vmem:[%s11407_s5 + $0x68] sm:$0xff] %vm125_vm1, %v6230_v23  ;;  %v6196_v7 = vld [vmem:[%s11403_s0 + $0x158] sm:$0xff]  ;;  %v6197_v17 = vld [vmem:[%s11403_s0 + $0x160] sm:$0xff]  ;;  %v11724_v43 = vmax.f32 %v10604_v9, 0.0  ;;  %v11725_v25 = vmax.f32 %v10608_v35, 0.0 }
 0x4a6   :  { %v6239_v53 = vadd.f32 %v6175_v3, %v11722_v60  ;;  %v6240_v40 = vadd.f32 %v6176_v47, %v11723_v52  ;;  %6295 = vst.msk [vmem:[%s11407_s5 + $0x70] sm:$0xff] %vm125_vm1, %v6231_v62  ;;  %6296 = vst.msk [vmem:[%s11407_s5 + $0x78] sm:$0xff] %vm125_vm1, %v6232_v61  ;;  %v6198_v16 = vld [vmem:[%s11403_s0 + $0x168] sm:$0xff]  ;;  %v11726_v47 = vmax.f32 %v10612_v33, 0.0  ;;  %v11727_v50 = vmax.f32 %v10616_v6, 0.0  ;;  %v6199_v9 = vld [vmem:[%s11403_s0 + $0x170] sm:$0xff] }
 0x4a7   :  { %v6241_v3 = vadd.f32 %v6177_v37, %v11724_v43  ;;  %v6242_v2 = vadd.f32 %v6178_v44, %v11725_v25  ;;  %6297 = vst.msk [vmem:[%s11407_s5 + $0x80] sm:$0xff] %vm125_vm1, %v6233_v32  ;;  %6298 = vst.msk [vmem:[%s11407_s5 + $0x88] sm:$0xff] %vm125_vm1, %v6234_v19  ;;  %v6200_v35 = vld [vmem:[%s11403_s0 + $0x178] sm:$0xff]  ;;  %v6201_v33 = vld [vmem:[%s11403_s0 + $0x180] sm:$0xff]  ;;  %v11728_v6 = vmax.f32 %v10620_v24, 0.0  ;;  %v11729_v37 = vmax.f32 %v10624_v42, 0.0 }
 0x4a8   :  { %v6243_v55 = vadd.f32 %v6179_v13, %v11726_v47  ;;  %v6244_v46 = vadd.f32 %v6180_v59, %v11727_v50  ;;  %6299 = vst.msk [vmem:[%s11407_s5 + $0x90] sm:$0xff] %vm125_vm1, %v6235_v28  ;;  %6300 = vst.msk [vmem:[%s11407_s5 + $0x98] sm:$0xff] %vm125_vm1, %v6236_v56  ;;  %v11730_v59 = vld [vmem:[#allocation26_spill] sm:$0xff]  ;;  %v11732_v54 = vld [vmem:[#allocation23_spill] sm:$0xff] }
 0x4a9   :  { %v6245_v44 = vadd.f32 %v6181_v21, %v11728_v6  ;;  %v6246_v13 = vadd.f32 %v6182_v27, %v11729_v37  ;;  %v11731_v45 = vmax.f32 %v11730_v59, 0.0  ;;  %v11733_v15 = vmax.f32 %v11732_v54, 0.0  ;;  %6301 = vst.msk [vmem:[%s11407_s5 + $0xa0] sm:$0xff] %vm125_vm1, %v6237_v36  ;;  %6302 = vst.msk [vmem:[%s11407_s5 + $0xa8] sm:$0xff] %vm125_vm1, %v6238_v11  ;;  %v6202_v24 = vld [vmem:[%s11403_s0 + $0x188] sm:$0xff]  ;;  %v6203_v42 = vld [vmem:[%s11403_s0 + $0x190] sm:$0xff] }
 0x4aa   :  { %6303 = vst.msk [vmem:[%s11407_s5 + $0xb0] sm:$0xff] %vm125_vm1, %v6239_v53  ;;  %6304 = vst.msk [vmem:[%s11407_s5 + $0xb8] sm:$0xff] %vm125_vm1, %v6240_v40  ;;  %v6204_v21 = vld [vmem:[%s11403_s0 + $0x198] sm:$0xff]  ;;  %v11734_v27 = vld [vmem:[#allocation25_spill] sm:$0xff] }
 0x4ab   :  { %v6247_v63 = vadd.f32 %v6183_v49, %v11731_v45  ;;  %v6248_v51 = vadd.f32 %v6184_v57, %v11733_v15  ;;  %v11735_v49 = vmax.f32 %v11734_v27, 0.0  ;;  %v11736_v29 = vld [vmem:[#allocation28_spill] sm:$0xff]  ;;  %v11738_v41 = vld [vmem:[#allocation30_spill] sm:$0xff]  ;;  %v11740_v61 = vld [vmem:[#allocation27_spill] sm:$0xff]  ;;  %6305 = vst.msk [vmem:[%s11407_s5 + $0xc0] sm:$0xff] %vm125_vm1, %v6241_v3 }
 0x4ac   :  { %v11737_v30 = vmax.f32 %v11736_v29, 0.0  ;;  %v11739_v62 = vmax.f32 %v11738_v41, 0.0  ;;  %v11741_v0 = vmax.f32 %v11740_v61, 0.0  ;;  %6306 = vst.msk [vmem:[%s11407_s5 + $0xc8] sm:$0xff] %vm125_vm1, %v6242_v2  ;;  %6307 = vst.msk [vmem:[%s11407_s5 + $0xd0] sm:$0xff] %vm125_vm1, %v6243_v55  ;;  %v11744_v39 = vld [vmem:[#allocation32_spill] sm:$0xff] }
 0x4ad   :  { %v6249_v57 = vadd.f32 %v6185_v14, %v11735_v49  ;;  %6308 = vst.msk [vmem:[%s11407_s5 + $0xd8] sm:$0xff] %vm125_vm1, %v6244_v46  ;;  %v6205_v14 = vld [vmem:[%s11403_s0 + $0x1a0] sm:$0xff]  ;;  %v11745_v28 = vmax.f32 %v11744_v39, 0.0  ;;  %v11746_v56 = vld [vmem:[#allocation34_spill] sm:$0xff]  ;;  %6309 = vst.msk [vmem:[%s11407_s5 + $0xe0] sm:$0xff] %vm125_vm1, %v6245_v44 }
 0x4ae   :  { %v6250_v23 = vadd.f32 %v6186_v22, %v11737_v30  ;;  %v6251_v12 = vadd.f32 %v6187_v26, %v11739_v62  ;;  %v6252_v32 = vadd.f32 %v6188_v48, %v11741_v0  ;;  %v6206_v22 = vld [vmem:[%s11403_s0 + $0x1a8] sm:$0xff]  ;;  %v6207_v26 = vld [vmem:[%s11403_s0 + $0x1b0] sm:$0xff]  ;;  %v11747_v18 = vmax.f32 %v11746_v56, 0.0  ;;  %v11748_v8 = vld [vmem:[#allocation31_spill] sm:$0xff]  ;;  %6310 = vst.msk [vmem:[%s11407_s5 + $0xe8] sm:$0xff] %vm125_vm1, %v6246_v13 }
 0x4af   :  { %v11742_v48 = vld [vmem:[#allocation29_spill] sm:$0xff]  ;;  %v6254_v10 = vadd.f32 %v6190_v34, %v11745_v28  ;;  %v11749_v11 = vmax.f32 %v11748_v8, 0.0  ;;  %6311 = vst.msk [vmem:[%s11407_s5 + $0xf0] sm:$0xff] %vm125_vm1, %v6247_v63  ;;  %6312 = vst.msk [vmem:[%s11407_s5 + $0xf8] sm:$0xff] %vm125_vm1, %v6248_v51  ;;  %v6209_v34 = vld [vmem:[%s11403_s0 + $0x1c0] sm:$0xff] }
 0x4b0   :  { %v11743_v31 = vmax.f32 %v11742_v48, 0.0  ;;  %v6255_v36 = vadd.f32 %v6191_v38, %v11747_v18  ;;  %v6210_v38 = vld [vmem:[%s11403_s0 + $0x1c8] sm:$0xff]  ;;  %v11754_v25 = vld [vmem:[#allocation38_spill] sm:$0xff]  ;;  %v11756_v55 = vld [vmem:[#allocation35_spill] sm:$0xff]  ;;  %6313 = vst.msk [vmem:[%s11407_s5 + $0x100] sm:$0xff] %vm125_vm1, %v6249_v57 }
 0x4b1   :  { %v6256_v60 = vadd.f32 %v6192_v4, %v11749_v11  ;;  %v11750_v4 = vld [vmem:[#allocation33_spill] sm:$0xff]  ;;  %v11752_v40 = vld [vmem:[#allocation36_spill] sm:$0xff]  ;;  %v11755_v2 = vmax.f32 %v11754_v25, 0.0  ;;  %v11757_v50 = vmax.f32 %v11756_v55, 0.0  ;;  %6314 = vst.msk [vmem:[%s11407_s5 + $0x108] sm:$0xff] %vm125_vm1, %v6250_v23  ;;  %6315 = vst.msk [vmem:[%s11407_s5 + $0x110] sm:$0xff] %vm125_vm1, %v6251_v12 }
 0x4b2   :  { %v6253_v19 = vadd.f32 %v6189_v5, %v11743_v31  ;;  %v6208_v5 = vld [vmem:[%s11403_s0 + $0x1b8] sm:$0xff]  ;;  %v11751_v53 = vmax.f32 %v11750_v4, 0.0  ;;  %v11753_v43 = vmax.f32 %v11752_v40, 0.0  ;;  %6316 = vst.msk [vmem:[%s11407_s5 + $0x118] sm:$0xff] %vm125_vm1, %v6252_v32  ;;  %v11760_v37 = vld [vmem:[#allocation40_spill] sm:$0xff]  ;;  %v11764_v15 = vld [vmem:[#allocation39_spill] sm:$0xff] }
 0x4b3   :  { %v6259_v47 = vadd.f32 %v6195_v58, %v11755_v2  ;;  %v6260_v46 = vadd.f32 %v6196_v7, %v11757_v50  ;;  %v6213_v58 = vld [vmem:[%s11403_s0 + $0x1e0] sm:$0xff]  ;;  %v11758_v7 = vld [vmem:[#allocation37_spill] sm:$0xff]  ;;  %v11761_v13 = vmax.f32 %v11760_v37, 0.0  ;;  %v11762_v45 = vld [vmem:[#allocation42_spill] sm:$0xff]  ;;  %v11765_v51 = vmax.f32 %v11764_v15, 0.0  ;;  %6318 = vst.msk [vmem:[%s11407_s5 + $0x128] sm:$0xff] %vm125_vm1, %v6254_v10 }
 0x4b4   :  { %v6257_v52 = vadd.f32 %v6193_v20, %v11751_v53  ;;  %v6258_v3 = vadd.f32 %v6194_v1, %v11753_v43  ;;  %v6211_v20 = vld [vmem:[%s11403_s0 + $0x1d0] sm:$0xff]  ;;  %v6212_v1 = vld [vmem:[%s11403_s0 + $0x1d8] sm:$0xff]  ;;  %v11759_v6 = vmax.f32 %v11758_v7, 0.0  ;;  %v11763_v63 = vmax.f32 %v11762_v45, 0.0  ;;  %6317 = vst.msk [vmem:[%s11407_s5 + $0x120] sm:$0xff] %vm125_vm1, %v6253_v19  ;;  %6319 = vst.msk [vmem:[%s11407_s5 + $0x130] sm:$0xff] %vm125_vm1, %v6255_v36 }
 0x4b5   :  { %v6262_v59 = vadd.f32 %v6198_v16, %v11761_v13  ;;  %v6264_v27 = vadd.f32 %v6200_v35, %v11765_v51  ;;  %6320 = vst.msk [vmem:[%s11407_s5 + $0x138] sm:$0xff] %vm125_vm1, %v6256_v60  ;;  %v6215_v16 = vld [vmem:[%s11403_s0 + $0x1f0] sm:$0xff]  ;;  %v11770_v41 = vld [vmem:[#allocation4_spill] sm:$0xff]  ;;  %v11772_v61 = vld [vmem:[#allocation3_spill] sm:$0xff] }
 0x4b6   :  { %v6261_v44 = vadd.f32 %v6197_v17, %v11759_v6  ;;  %v6263_v54 = vadd.f32 %v6199_v9, %v11763_v63  ;;  %v6214_v17 = vld [vmem:[%s11403_s0 + $0x1e8] sm:$0xff]  ;;  %v6216_v9 = vld [vmem:[%s11403_s0 + $0x1f8] sm:$0xff]  ;;  %v11766_v35 = vld [vmem:[#allocation41_spill] sm:$0xff]  ;;  %v11771_v62 = vmax.f32 %v11770_v41, 0.0  ;;  %v11773_v0 = vmax.f32 %v11772_v61, 0.0  ;;  %6321 = vst.msk [vmem:[%s11407_s5 + $0x140] sm:$0xff] %vm125_vm1, %v6257_v52 }
 0x4b7   :  { %v11767_v49 = vmax.f32 %v11766_v35, 0.0  ;;  %v11768_v29 = vld [vmem:[#allocation5_spill] sm:$0xff]  ;;  %6322 = vst.msk [vmem:[%s11407_s5 + $0x148] sm:$0xff] %vm125_vm1, %v6258_v3  ;;  %6323 = vst.msk [vmem:[%s11407_s5 + $0x150] sm:$0xff] %vm125_vm1, %v6259_v47  ;;  %v11778_v19 = vld [vmem:[#allocation6_spill] sm:$0xff] }
 0x4b8   :  { %v11769_v30 = vmax.f32 %v11768_v29, 0.0  ;;  %v6267_v12 = vadd.f32 %v6203_v42, %v11771_v62  ;;  %v6268_v32 = vadd.f32 %v6204_v21, %v11773_v0  ;;  %6324 = vst.msk [vmem:[%s11407_s5 + $0x158] sm:$0xff] %vm125_vm1, %v6260_v46  ;;  %v11776_v21 = vld [vmem:[#allocation9_spill] sm:$0xff]  ;;  %v11779_v39 = vmax.f32 %v11778_v19, 0.0  ;;  %v11780_v10 = vld [vmem:[#allocation8_spill] sm:$0xff]  ;;  %6325 = vst.msk [vmem:[%s11407_s5 + $0x160] sm:$0xff] %vm125_vm1, %v6261_v44 }
 0x4b9   :  { %v6265_v57 = vadd.f32 %v6201_v33, %v11767_v49  ;;  %v11774_v33 = vld [vmem:[#allocation7_spill] sm:$0xff]  ;;  %v11777_v48 = vmax.f32 %v11776_v21, 0.0  ;;  %v11781_v56 = vmax.f32 %v11780_v10, 0.0  ;;  %6326 = vst.msk [vmem:[%s11407_s5 + $0x168] sm:$0xff] %vm125_vm1, %v6262_v59  ;;  %6327 = vst.msk [vmem:[%s11407_s5 + $0x170] sm:$0xff] %vm125_vm1, %v6263_v54  ;;  %v11784_v36 = vld [vmem:[#allocation13_spill] sm:$0xff] }
 0x4ba   :  { %v6266_v23 = vadd.f32 %v6202_v24, %v11769_v30  ;;  %v11775_v24 = vmax.f32 %v11774_v33, 0.0  ;;  %v6271_v28 = vadd.f32 %v6207_v26, %v11779_v39  ;;  %6328 = vst.msk [vmem:[%s11407_s5 + $0x178] sm:$0xff] %vm125_vm1, %v6264_v27  ;;  %v11785_v8 = vmax.f32 %v11784_v36, 0.0  ;;  %v11786_v60 = vld [vmem:[#allocation10_spill] sm:$0xff]  ;;  %v11788_v53 = vld [vmem:[#allocation12_spill] sm:$0xff]  ;;  %6331 = vst.msk [vmem:[%s11407_s5 + $0x190] sm:$0xff] %vm125_vm1, %v6267_v12 }
 0x4bb   :  { %v6270_v31 = vadd.f32 %v6206_v22, %v11777_v48  ;;  %v6272_v18 = vadd.f32 %v6208_v5, %v11781_v56  ;;  %v11787_v5 = vmax.f32 %v11786_v60, 0.0  ;;  %v11789_v52 = vmax.f32 %v11788_v53, 0.0  ;;  %6329 = vst.msk [vmem:[%s11407_s5 + $0x180] sm:$0xff] %vm125_vm1, %v6265_v57  ;;  %6332 = vst.msk [vmem:[%s11407_s5 + $0x198] sm:$0xff] %vm125_vm1, %v6268_v32  ;;  %v11792_v3 = vld [vmem:[#allocation15_spill] sm:$0xff]  ;;  %v11794_v47 = vld [vmem:[#allocation16_spill] sm:$0xff] }
 0x4bc   :  { %v6269_v42 = vadd.f32 %v6205_v14, %v11775_v24  ;;  %v11782_v14 = vld [vmem:[#allocation11_spill] sm:$0xff]  ;;  %v6274_v11 = vadd.f32 %v6210_v38, %v11785_v8  ;;  %6330 = vst.msk [vmem:[%s11407_s5 + $0x188] sm:$0xff] %vm125_vm1, %v6266_v23  ;;  %v11793_v25 = vmax.f32 %v11792_v3, 0.0  ;;  %v11795_v55 = vmax.f32 %v11794_v47, 0.0  ;;  %v11796_v46 = vld [vmem:[#allocation17_spill] sm:$0xff]  ;;  %6335 = vst.msk [vmem:[%s11407_s5 + $0x1b0] sm:$0xff] %vm125_vm1, %v6271_v28 }
 0x4bd   :  { %v11783_v22 = vmax.f32 %v11782_v14, 0.0  ;;  %v6275_v4 = vadd.f32 %v6211_v20, %v11787_v5  ;;  %v6276_v40 = vadd.f32 %v6212_v1, %v11789_v52  ;;  %v11797_v20 = vmax.f32 %v11796_v46, 0.0  ;;  %6334 = vst.msk [vmem:[%s11407_s5 + $0x1a8] sm:$0xff] %vm125_vm1, %v6270_v31  ;;  %6336 = vst.msk [vmem:[%s11407_s5 + $0x1b8] sm:$0xff] %vm125_vm1, %v6272_v18 }
 0x4be   :  { %v6278_v2 = vadd.f32 %v6214_v17, %v11793_v25  ;;  %v6279_v50 = vadd.f32 %v6215_v16, %v11795_v55  ;;  %6333 = vst.msk [vmem:[%s11407_s5 + $0x1a0] sm:$0xff] %vm125_vm1, %v6269_v42  ;;  %6338 = vst.msk [vmem:[%s11407_s5 + $0x1c8] sm:$0xff] %vm125_vm1, %v6274_v11 }
 0x4bf   :  { %v6273_v26 = vadd.f32 %v6209_v34, %v11783_v22  ;;  %v11790_v34 = vld [vmem:[#allocation14_spill] sm:$0xff]  ;;  %v6280_v1 = vadd.f32 %v6216_v9, %v11797_v20  ;;  %6339 = vst.msk [vmem:[%s11407_s5 + $0x1d0] sm:$0xff] %vm125_vm1, %v6275_v4  ;;  %6340 = vst.msk [vmem:[%s11407_s5 + $0x1d8] sm:$0xff] %vm125_vm1, %v6276_v40 }
 0x4c0   :  { %v11791_v38 = vmax.f32 %v11790_v34, 0.0  ;;  %6342 = vst.msk [vmem:[%s11407_s5 + $0x1e8] sm:$0xff] %vm125_vm1, %v6278_v2  ;;  %6343 = vst.msk [vmem:[%s11407_s5 + $0x1f0] sm:$0xff] %vm125_vm1, %v6279_v50 }
 0x4c1   :  { %6337 = vst.msk [vmem:[%s11407_s5 + $0x1c0] sm:$0xff] %vm125_vm1, %v6273_v26  ;;  %6344 = vst.msk [vmem:[%s11407_s5 + $0x1f8] sm:$0xff] %vm125_vm1, %v6280_v1 }
 0x4c2   :  { %v6277_v43 = vadd.f32 %v6213_v58, %v11791_v38 }
 0x4c4   :  { %6341 = vst.msk [vmem:[%s11407_s5 + $0x1e0] sm:$0xff] %vm125_vm1, %v6277_v43 }

</bundles_post_ra>
